<compile_context>
chip_gen: v5e
topology: v5e:2x2
jax: 0.10.0
libtpu: 0.0.40
codegen_flags: <defaults>
</compile_context>

<pallas_src>
import functools

import jax
import jax.numpy as jnp
from jax.experimental import pallas as pl
from jax.experimental.pallas import tpu as pltpu


def _round_up(x, m):
    return (x + m - 1) // m * m


# -----------------------------------------------------------------------------
# Pallas kernels
# -----------------------------------------------------------------------------
def _matmul_act_kernel(a_ref, b_ref, o_ref, *, activation):
    # a_ref: (1, tm, K) bf16, b_ref: (1, K, Npad) bf16, o_ref: (1, tm, Npad)
    acc = jnp.dot(a_ref[0], b_ref[0], preferred_element_type=jnp.float32)
    if activation == "tanh":
        acc = jnp.tanh(acc)
    o_ref[0] = acc.astype(o_ref.dtype)


def matmul_act(a, b, activation="none", out_dtype=jnp.float32, tm_max=512):
    """out[p] = act(a[p] @ b[p]) for p in range(P).

    a: (P, M, K), b: (P, K, N).  Inputs are cast to bf16 for the MXU
    (f32 accumulation).  N is zero-padded to a multiple of 128 for lane-dense
    stores, M is padded to the row tile; padding is sliced off before return.
    """
    P, M, K = a.shape
    Pb, Kb, N = b.shape
    assert P == Pb and K == Kb
    a = a.astype(jnp.bfloat16)
    b = b.astype(jnp.bfloat16)

    n_pad = _round_up(N, 128)
    if n_pad != N:
        b = jnp.pad(b, ((0, 0), (0, 0), (0, n_pad - N)))

    tm = min(tm_max, _round_up(M, 8))         # multiple of 8 (sublane aligned)
    m_pad = _round_up(M, tm)
    if m_pad != M:
        a = jnp.pad(a, ((0, 0), (0, m_pad - M), (0, 0)))

    grid = (P, m_pad // tm)

    # Double-buffered working set (A, B bf16; out f32) + slack; clamp to the
    # smallest per-generation physical VMEM (v7x: 64 MiB).
    vmem_bytes = 2 * (tm * K + K * n_pad) * 2 + 2 * tm * n_pad * 4 + (2 << 20)
    vmem_bytes = int(min(max(vmem_bytes, 32 << 20), 64 << 20))

    out = pl.pallas_call(
        functools.partial(_matmul_act_kernel, activation=activation),
        out_shape=jax.ShapeDtypeStruct((P, m_pad, n_pad), out_dtype),
        grid=grid,
        in_specs=[
            pl.BlockSpec((1, tm, K), lambda p, i: (p, i, 0)),
            pl.BlockSpec((1, K, n_pad), lambda p, i: (p, 0, 0)),
        ],
        out_specs=pl.BlockSpec((1, tm, n_pad), lambda p, i: (p, i, 0)),
        compiler_params=pltpu.CompilerParams(
            dimension_semantics=("parallel", "parallel"),
            vmem_limit_bytes=vmem_bytes,
        ),
    )(a, b)
    if m_pad != M or n_pad != N:
        out = out[:, :M, :N]
    return out


def _bn_stats_kernel(x_ref, sum_ref, sq_ref):
    # Accumulate per-channel sum / sum-of-squares over the M grid axis.
    @pl.when(pl.program_id(0) == 0)
    def _():
        sum_ref[...] = jnp.zeros_like(sum_ref)
        sq_ref[...] = jnp.zeros_like(sq_ref)

    x = x_ref[...].astype(jnp.float32)
    sum_ref[...] += jnp.sum(x, axis=0, keepdims=True)
    sq_ref[...] += jnp.sum(x * x, axis=0, keepdims=True)


def _bn_apply_kernel(x_ref, sum_ref, sq_ref, g_ref, b_ref, o_ref, *, inv_count, eps):
    mean = sum_ref[...] * inv_count
    var = jnp.maximum(sq_ref[...] * inv_count - mean * mean, 0.0)  # biased var
    scale = g_ref[...] * jax.lax.rsqrt(var + eps)
    shift = b_ref[...] - mean * scale
    y = x_ref[...].astype(jnp.float32) * scale + shift
    o_ref[...] = jnp.maximum(y, 0.0).astype(o_ref.dtype)


def batchnorm_relu(x_nhwc, gamma, beta, eps=1e-5, out_dtype=jnp.bfloat16):
    """Training-mode BatchNorm2d (batch statistics over N,H,W) + ReLU.

    Two tiled passes over the flattened (N*H*W, C) slab so the pipeline is
    double-buffered and never holds the full activation in VMEM.
    """
    N, H, W, C = x_nhwc.shape
    M = N * H * W
    x2 = x_nhwc.reshape(M, C)

    # Row tile: largest multiple of 8 keeping one block around <= 2 MiB.
    bytes_per_row = C * x2.dtype.itemsize
    tile_m = max(8, min(2048, ((2 << 20) // bytes_per_row) // 8 * 8))
    tile_m = min(tile_m, _round_up(M, 8))
    m_pad = _round_up(M, tile_m)
    x2p = jnp.pad(x2, ((0, m_pad - M), (0, 0))) if m_pad != M else x2
    grid = (m_pad // tile_m,)

    g2 = gamma.reshape(1, C).astype(jnp.float32)
    b2 = beta.reshape(1, C).astype(jnp.float32)

    # Pass 1: per-channel sum / sumsq (zero-padded rows contribute nothing).
    sums, sqs = pl.pallas_call(
        _bn_stats_kernel,
        out_shape=(jax.ShapeDtypeStruct((1, C), jnp.float32),
                   jax.ShapeDtypeStruct((1, C), jnp.float32)),
        grid=grid,
        in_specs=[pl.BlockSpec((tile_m, C), lambda i: (i, 0))],
        out_specs=(pl.BlockSpec((1, C), lambda i: (0, 0)),
                   pl.BlockSpec((1, C), lambda i: (0, 0))),
        compiler_params=pltpu.CompilerParams(dimension_semantics=("arbitrary",)),
    )(x2p)

    # Pass 2: normalize * gamma + beta, ReLU, emit bf16 for the next matmul.
    out = pl.pallas_call(
        functools.partial(_bn_apply_kernel, inv_count=1.0 / M, eps=eps),
        out_shape=jax.ShapeDtypeStruct((m_pad, C), out_dtype),
        grid=grid,
        in_specs=[
            pl.BlockSpec((tile_m, C), lambda i: (i, 0)),
            pl.BlockSpec((1, C), lambda i: (0, 0)),
            pl.BlockSpec((1, C), lambda i: (0, 0)),
            pl.BlockSpec((1, C), lambda i: (0, 0)),
            pl.BlockSpec((1, C), lambda i: (0, 0)),
        ],
        out_specs=pl.BlockSpec((tile_m, C), lambda i: (i, 0)),
        compiler_params=pltpu.CompilerParams(dimension_semantics=("parallel",)),
    )(x2p, sums, sqs, g2, b2)
    return out[:M].reshape(N, H, W, C)


# -----------------------------------------------------------------------------
# ConvTranspose2d lowerings (glue in JAX, FLOPs on the Pallas MXU matmul)
# -----------------------------------------------------------------------------
def conv_transpose_1x1_input(x_nhwc, w, out_dtype=jnp.float32):
    """ConvTranspose2d(k=4, stride=1, pad=0, bias=False) on a 1x1 input."""
    N, H, W, Cin = x_nhwc.shape
    assert H == 1 and W == 1 and w.shape[0] == Cin
    Cout, K = w.shape[1], w.shape[2]
    a = x_nhwc.reshape(1, N, Cin)
    b = jnp.transpose(w, (0, 2, 3, 1)).reshape(1, Cin, K * K * Cout)  # (ci,(ky,kx,co))
    out = matmul_act(a, b, out_dtype=out_dtype)                       # (1, N, K*K*Cout)
    return out.reshape(N, K, K, Cout)


# Kernel taps per output parity for ConvTranspose2d(k=4, stride=2, pad=1):
#   parity 0: kernel index 1 hits input offset 0, kernel index 3 hits offset -1
#   parity 1: kernel index 0 hits input offset +1, kernel index 2 hits offset 0
_PHASE_TAPS = {0: ((1, 0), (3, -1)), 1: ((0, 1), (2, 0))}


def conv_transpose_s2(x_nhwc, w, activation="none", out_dtype=jnp.float32):
    """ConvTranspose2d(k=4, stride=2, pad=1, bias=False) via phase decomposition.

    Each of the 4 output-pixel parities is an independent matmul with
    reduction dim 2*2*Cin (no multiplications by dilation zeros).
    """
    N, H, W, Cin = x_nhwc.shape
    assert w.shape == (Cin, w.shape[1], 4, 4)
    Cout = w.shape[1]
    M = N * H * W

    xp = jnp.pad(x_nhwc, ((0, 0), (1, 1), (1, 1), (0, 0)))  # halo for +-1 taps
    wt = jnp.transpose(w, (2, 3, 0, 1))                     # (ky, kx, Cin, Cout)

    a_phases, b_phases = [], []
    for a in (0, 1):          # output row parity
        for b in (0, 1):      # output col parity
            cols, wrows = [], []
            for (ky, dy) in _PHASE_TAPS[a]:
                for (kx, dx) in _PHASE_TAPS[b]:
                    cols.append(xp[:, 1 + dy:1 + dy + H, 1 + dx:1 + dx + W, :])
                    wrows.append(wt[ky, kx])                # (Cin, Cout)
            A = jnp.stack(cols, axis=3).reshape(M, 4 * Cin)
            a_phases.append(A)
            b_phases.append(jnp.concatenate(wrows, axis=0))  # (4*Cin, Cout)

    A_all = jnp.stack(a_phases, axis=0)                      # (4, M, 4*Cin)
    B_all = jnp.stack(b_phases, axis=0)                      # (4, 4*Cin, Cout)
    out = matmul_act(A_all, B_all, activation=activation, out_dtype=out_dtype)

    # Interleave the 4 phases: out[n, 2q+a, 2r+b, c] = out_phase[(a,b)][n,q,r,c]
    out = out.reshape(2, 2, N, H, W, Cout)
    out = jnp.transpose(out, (2, 3, 0, 4, 1, 5)).reshape(N, 2 * H, 2 * W, Cout)
    return out


# -----------------------------------------------------------------------------
# Generator
# -----------------------------------------------------------------------------
def init_generator_params(key, nz, ngf, nc):
    chans = [nz, ngf * 8, ngf * 4, ngf * 2, ngf, nc]
    params = {}
    keys = jax.random.split(key, 5)
    for i in range(5):
        cin, cout = chans[i], chans[i + 1]
        params[f"w{i + 1}"] = 0.02 * jax.random.normal(
            keys[i], (cin, cout, 4, 4), jnp.float32
        )
        if i < 4:  # BN after the first four deconvs
            params[f"g{i + 1}"] = jnp.ones((cout,), jnp.float32)
            params[f"b{i + 1}"] = jnp.zeros((cout,), jnp.float32)
    return params


def generator_forward(z_nchw, params):
    # NCHW -> NHWC
    x = jnp.transpose(z_nchw, (0, 2, 3, 1))

    x = conv_transpose_1x1_input(x, params["w1"], out_dtype=jnp.bfloat16)
    x = batchnorm_relu(x, params["g1"], params["b1"])

    x = conv_transpose_s2(x, params["w2"], out_dtype=jnp.bfloat16)
    x = batchnorm_relu(x, params["g2"], params["b2"])

    x = conv_transpose_s2(x, params["w3"], out_dtype=jnp.bfloat16)
    x = batchnorm_relu(x, params["g3"], params["b3"])

    x = conv_transpose_s2(x, params["w4"], out_dtype=jnp.bfloat16)
    x = batchnorm_relu(x, params["g4"], params["b4"])

    # Final deconv with Tanh fused into the Pallas matmul epilogue (f32 output).
    x = conv_transpose_s2(x, params["w5"], activation="tanh", out_dtype=jnp.float32)

    # NHWC -> NCHW to match PyTorch output convention
    return jnp.transpose(x, (0, 3, 1, 2))


if __name__ == "__main__":
    # Small-but-structurally-faithful sizes: nz=16, ngf=8, nc=3, batch=2.
    batch, nz_, ngf_, nc_ = 2, 16, 8, 3

    key = jax.random.PRNGKey(0)
    k_params, k_noise = jax.random.split(key)
    params = init_generator_params(k_params, nz_, ngf_, nc_)
    z = jax.random.normal(k_noise, (batch, nz_, 1, 1), jnp.float32)

    fwd = jax.jit(generator_forward)
    out = jax.block_until_ready(fwd(z, params))

    assert out.shape == (batch, nc_, 64, 64), out.shape
    assert out.dtype == jnp.float32
    assert bool(jnp.all(jnp.isfinite(out)))
    print("KERNEL_OK")
</pallas_src>

<mosaic_0001>
module attributes {stable_mosaic.version = 11 : i64} {
  func.func @_matmul_act_kernel(%arg0: i32, %arg1: i32, %arg2: memref<1x8x16xbf16, #tpu.memory_space<vmem>>, %arg3: memref<1x16x1024xbf16, #tpu.memory_space<vmem>>, %arg4: memref<1x8x1024xbf16, #tpu.memory_space<vmem>>) attributes {dimension_semantics = [#tpu.dimension_semantics<parallel>, #tpu.dimension_semantics<parallel>], iteration_bounds = array<i64: 1, 1>, scalar_prefetch = 0 : i64, scratch_operands = 0 : i64, tpu.core_type = #tpu.core_type<tc>, window_params = [{transform_indices = @transform_0, window_bounds = array<i64: 1, 8, 16>}, {transform_indices = @transform_1, window_bounds = array<i64: 1, 16, 1024>}, {transform_indices = @transform_2, window_bounds = array<i64: 1, 8, 1024>}]} {
    %c0 = arith.constant 0 : index
    %c0_0 = arith.constant 0 : index
    %c0_1 = arith.constant 0 : index
    %0 = vector.load %arg2[%c0, %c0_0, %c0_1] : memref<1x8x16xbf16, #tpu.memory_space<vmem>>, vector<1x8x16xbf16>
    %1 = vector.shape_cast %0 : vector<1x8x16xbf16> to vector<8x16xbf16>
    %c0_2 = arith.constant 0 : index
    %c0_3 = arith.constant 0 : index
    %c0_4 = arith.constant 0 : index
    %2 = vector.load %arg3[%c0_2, %c0_3, %c0_4] : memref<1x16x1024xbf16, #tpu.memory_space<vmem>>, vector<1x16x1024xbf16>
    %3 = vector.shape_cast %2 : vector<1x16x1024xbf16> to vector<16x1024xbf16>
    %cst = arith.constant dense<0.000000e+00> : vector<8x1024xf32>
    %4 = tpu.matmul %1, %3, %cst {dimension_numbers = #tpu.dot_dimension_numbers<[1], [0], [0], [1], [0, 0, 1, 1], [], []>} : vector<8x16xbf16>, vector<16x1024xbf16>, vector<8x1024xf32> -> vector<8x1024xf32>
    %5 = arith.truncf %4 : vector<8x1024xf32> to vector<8x1024xbf16>
    %c0_5 = arith.constant 0 : index
    %c0_6 = arith.constant 0 : index
    %c0_7 = arith.constant 0 : index
    %6 = vector.load %arg4[%c0_5, %c0_6, %c0_7] : memref<1x8x1024xbf16, #tpu.memory_space<vmem>>, vector<1x8x1024xbf16>
    %7 = vector.shape_cast %6 : vector<1x8x1024xbf16> to vector<8x1024xbf16>
    %8 = vector.shape_cast %5 : vector<8x1024xbf16> to vector<1x8x1024xbf16>
    tpu.vector_store %arg4[%c0_5, %c0_6, %c0_7], %8 {strides = array<i32>} : memref<1x8x1024xbf16, #tpu.memory_space<vmem>>, vector<1x8x1024xbf16>,
    return
  }
  func.func @transform_0(%arg0: i32, %arg1: i32) -> (i32, i32, i32) {
    %c0_i32 = arith.constant 0 : i32
    %c0_i32_0 = arith.constant 0 : i32
    return %arg0, %arg1, %c0_i32 : i32, i32, i32
  }
  func.func @transform_1(%arg0: i32, %arg1: i32) -> (i32, i32, i32) {
    %c0_i32 = arith.constant 0 : i32
    %c0_i32_0 = arith.constant 0 : i32
    %c0_i32_1 = arith.constant 0 : i32
    return %arg0, %c0_i32, %c0_i32_0 : i32, i32, i32
  }
  func.func @transform_2(%arg0: i32, %arg1: i32) -> (i32, i32, i32) {
    %c0_i32 = arith.constant 0 : i32
    %c0_i32_0 = arith.constant 0 : i32
    return %arg0, %arg1, %c0_i32 : i32, i32, i32
  }
}

module attributes {stable_mosaic.version = 11 : i64} {
  func.func @_bn_stats_kernel(%arg0: i32, %arg1: memref<32x64xbf16, #tpu.memory_space<vmem>>, %arg2: memref<1x64xf32, #tpu.memory_space<vmem>>, %arg3: memref<1x64xf32, #tpu.memory_space<vmem>>) attributes {dimension_semantics = [#tpu.dimension_semantics<arbitrary>], iteration_bounds = array<i64: 1>, scalar_prefetch = 0 : i64, scratch_operands = 0 : i64, tpu.core_type = #tpu.core_type<tc>, window_params = [{transform_indices = @transform_0, window_bounds = array<i64: 32, 64>}, {pipeline_mode = #tpu.pipeline_mode<synchronous>, transform_indices = @transform_1, window_bounds = array<i64: 1, 64>}, {pipeline_mode = #tpu.pipeline_mode<synchronous>, transform_indices = @transform_2, window_bounds = array<i64: 1, 64>}]} {
    %c0_i32 = arith.constant 0 : i32
    %0 = arith.cmpi eq, %arg0, %c0_i32 : i32
    %1 = arith.extui %0 : i1 to i32
    %c0_i32_0 = arith.constant 0 : i32
    %2 = arith.cmpi ne, %1, %c0_i32_0 : i32
    scf.if %2 {
      %cst_11 = arith.constant 0.000000e+00 : f32
      %16 = vector.broadcast %cst_11 : f32 to vector<1x64xf32>
      %c0_12 = arith.constant 0 : index
      %c0_13 = arith.constant 0 : index
      %17 = vector.load %arg2[%c0_12, %c0_13] : memref<1x64xf32, #tpu.memory_space<vmem>>, vector<1x64xf32>
      tpu.vector_store %arg2[%c0_12, %c0_13], %16 {strides = array<i32>} : memref<1x64xf32, #tpu.memory_space<vmem>>, vector<1x64xf32>,
      %cst_14 = arith.constant 0.000000e+00 : f32
      %18 = vector.broadcast %cst_14 : f32 to vector<1x64xf32>
      %c0_15 = arith.constant 0 : index
      %c0_16 = arith.constant 0 : index
      %19 = vector.load %arg3[%c0_15, %c0_16] : memref<1x64xf32, #tpu.memory_space<vmem>>, vector<1x64xf32>
      tpu.vector_store %arg3[%c0_15, %c0_16], %18 {strides = array<i32>} : memref<1x64xf32, #tpu.memory_space<vmem>>, vector<1x64xf32>,
    } else {
    }
    %c0 = arith.constant 0 : index
    %c0_1 = arith.constant 0 : index
    %3 = vector.load %arg1[%c0, %c0_1] : memref<32x64xbf16, #tpu.memory_space<vmem>>, vector<32x64xbf16>
    %4 = arith.extf %3 : vector<32x64xbf16> to vector<32x64xf32>
    %c0_2 = arith.constant 0 : index
    %c0_3 = arith.constant 0 : index
    %5 = vector.load %arg2[%c0_2, %c0_3] : memref<1x64xf32, #tpu.memory_space<vmem>>, vector<1x64xf32>
    %cst = arith.constant dense<0.000000e+00> : vector<64xf32>
    %6 = vector.multi_reduction <add>, %4, %cst [0] : vector<32x64xf32> to vector<64xf32>
    %7 = vector.shape_cast %6 : vector<64xf32> to vector<1x64xf32>
    %8 = arith.addf %5, %7 : vector<1x64xf32>
    %c0_4 = arith.constant 0 : index
    %c0_5 = arith.constant 0 : index
    %9 = vector.load %arg2[%c0_4, %c0_5] : memref<1x64xf32, #tpu.memory_space<vmem>>, vector<1x64xf32>
    tpu.vector_store %arg2[%c0_4, %c0_5], %8 {strides = array<i32>} : memref<1x64xf32, #tpu.memory_space<vmem>>, vector<1x64xf32>,
    %c0_6 = arith.constant 0 : index
    %c0_7 = arith.constant 0 : index
    %10 = vector.load %arg3[%c0_6, %c0_7] : memref<1x64xf32, #tpu.memory_space<vmem>>, vector<1x64xf32>
    %11 = arith.mulf %4, %4 : vector<32x64xf32>
    %cst_8 = arith.constant dense<0.000000e+00> : vector<64xf32>
    %12 = vector.multi_reduction <add>, %11, %cst_8 [0] : vector<32x64xf32> to vector<64xf32>
    %13 = vector.shape_cast %12 : vector<64xf32> to vector<1x64xf32>
    %14 = arith.addf %10, %13 : vector<1x64xf32>
    %c0_9 = arith.constant 0 : index
    %c0_10 = arith.constant 0 : index
    %15 = vector.load %arg3[%c0_9, %c0_10] : memref<1x64xf32, #tpu.memory_space<vmem>>, vector<1x64xf32>
    tpu.vector_store %arg3[%c0_9, %c0_10], %14 {strides = array<i32>} : memref<1x64xf32, #tpu.memory_space<vmem>>, vector<1x64xf32>,
    return
  }
  func.func @transform_0(%arg0: i32) -> (i32, i32) {
    %c0_i32 = arith.constant 0 : i32
    %c0_i32_0 = arith.constant 0 : i32
    return %arg0, %c0_i32 : i32, i32
  }
  func.func @transform_1(%arg0: i32) -> (i32, i32) {
    %c0_i32 = arith.constant 0 : i32
    %c0_i32_0 = arith.constant 0 : i32
    %c0_i32_1 = arith.constant 0 : i32
    return %c0_i32, %c0_i32_0 : i32, i32
  }
  func.func @transform_2(%arg0: i32) -> (i32, i32) {
    %c0_i32 = arith.constant 0 : i32
    %c0_i32_0 = arith.constant 0 : i32
    %c0_i32_1 = arith.constant 0 : i32
    return %c0_i32, %c0_i32_0 : i32, i32
  }
}

module attributes {stable_mosaic.version = 11 : i64} {
  func.func @_bn_apply_kernel(%arg0: i32, %arg1: memref<32x64xbf16, #tpu.memory_space<vmem>>, %arg2: memref<1x64xf32, #tpu.memory_space<vmem>>, %arg3: memref<1x64xf32, #tpu.memory_space<vmem>>, %arg4: memref<1x64xf32, #tpu.memory_space<vmem>>, %arg5: memref<1x64xf32, #tpu.memory_space<vmem>>, %arg6: memref<32x64xbf16, #tpu.memory_space<vmem>>) attributes {dimension_semantics = [#tpu.dimension_semantics<parallel>], iteration_bounds = array<i64: 1>, scalar_prefetch = 0 : i64, scratch_operands = 0 : i64, tpu.core_type = #tpu.core_type<tc>, window_params = [{transform_indices = @transform_0, window_bounds = array<i64: 32, 64>}, {pipeline_mode = #tpu.pipeline_mode<synchronous>, transform_indices = @transform_1, window_bounds = array<i64: 1, 64>}, {pipeline_mode = #tpu.pipeline_mode<synchronous>, transform_indices = @transform_2, window_bounds = array<i64: 1, 64>}, {pipeline_mode = #tpu.pipeline_mode<synchronous>, transform_indices = @transform_3, window_bounds = array<i64: 1, 64>}, {pipeline_mode = #tpu.pipeline_mode<synchronous>, transform_indices = @transform_4, window_bounds = array<i64: 1, 64>}, {transform_indices = @transform_5, window_bounds = array<i64: 32, 64>}]} {
    %c0 = arith.constant 0 : index
    %c0_0 = arith.constant 0 : index
    %0 = vector.load %arg2[%c0, %c0_0] : memref<1x64xf32, #tpu.memory_space<vmem>>, vector<1x64xf32>
    %cst = arith.constant 3.125000e-02 : f32
    %1 = vector.broadcast %cst : f32 to vector<1x64xf32>
    %2 = arith.mulf %0, %1 : vector<1x64xf32>
    %c0_1 = arith.constant 0 : index
    %c0_2 = arith.constant 0 : index
    %3 = vector.load %arg3[%c0_1, %c0_2] : memref<1x64xf32, #tpu.memory_space<vmem>>, vector<1x64xf32>
    %cst_3 = arith.constant 3.125000e-02 : f32
    %4 = vector.broadcast %cst_3 : f32 to vector<1x64xf32>
    %5 = arith.mulf %3, %4 : vector<1x64xf32>
    %6 = arith.mulf %2, %2 : vector<1x64xf32>
    %7 = arith.subf %5, %6 : vector<1x64xf32>
    %cst_4 = arith.constant 0.000000e+00 : f32
    %8 = vector.broadcast %cst_4 : f32 to vector<1x64xf32>
    %9 = arith.maximumf %7, %8 : vector<1x64xf32>
    %c0_5 = arith.constant 0 : index
    %c0_6 = arith.constant 0 : index
    %10 = vector.load %arg4[%c0_5, %c0_6] : memref<1x64xf32, #tpu.memory_space<vmem>>, vector<1x64xf32>
    %cst_7 = arith.constant 9.99999974E-6 : f32
    %11 = vector.broadcast %cst_7 : f32 to vector<1x64xf32>
    %12 = arith.addf %9, %11 : vector<1x64xf32>
    %13 = math.rsqrt %12 : vector<1x64xf32>
    %14 = arith.mulf %10, %13 : vector<1x64xf32>
    %c0_8 = arith.constant 0 : index
    %c0_9 = arith.constant 0 : index
    %15 = vector.load %arg5[%c0_8, %c0_9] : memref<1x64xf32, #tpu.memory_space<vmem>>, vector<1x64xf32>
    %16 = arith.mulf %2, %14 : vector<1x64xf32>
    %17 = arith.subf %15, %16 : vector<1x64xf32>
    %c0_10 = arith.constant 0 : index
    %c0_11 = arith.constant 0 : index
    %18 = vector.load %arg1[%c0_10, %c0_11] : memref<32x64xbf16, #tpu.memory_space<vmem>>, vector<32x64xbf16>
    %19 = arith.extf %18 : vector<32x64xbf16> to vector<32x64xf32>
    %20 = vector.broadcast %14 : vector<1x64xf32> to vector<32x64xf32>
    %21 = arith.mulf %19, %20 : vector<32x64xf32>
    %22 = vector.broadcast %17 : vector<1x64xf32> to vector<32x64xf32>
    %23 = arith.addf %21, %22 : vector<32x64xf32>
    %cst_12 = arith.constant 0.000000e+00 : f32
    %24 = vector.broadcast %cst_12 : f32 to vector<32x64xf32>
    %25 = arith.maximumf %23, %24 : vector<32x64xf32>
    %26 = arith.truncf %25 : vector<32x64xf32> to vector<32x64xbf16>
    %c0_13 = arith.constant 0 : index
    %c0_14 = arith.constant 0 : index
    %27 = vector.load %arg6[%c0_13, %c0_14] : memref<32x64xbf16, #tpu.memory_space<vmem>>, vector<32x64xbf16>
    tpu.vector_store %arg6[%c0_13, %c0_14], %26 {strides = array<i32>} : memref<32x64xbf16, #tpu.memory_space<vmem>>, vector<32x64xbf16>,
    return
  }
  func.func @transform_0(%arg0: i32) -> (i32, i32) {
    %c0_i32 = arith.constant 0 : i32
    %c0_i32_0 = arith.constant 0 : i32
    return %arg0, %c0_i32 : i32, i32
  }
  func.func @transform_1(%arg0: i32) -> (i32, i32) {
    %c0_i32 = arith.constant 0 : i32
    %c0_i32_0 = arith.constant 0 : i32
    %c0_i32_1 = arith.constant 0 : i32
    return %c0_i32, %c0_i32_0 : i32, i32
  }
  func.func @transform_2(%arg0: i32) -> (i32, i32) {
    %c0_i32 = arith.constant 0 : i32
    %c0_i32_0 = arith.constant 0 : i32
    %c0_i32_1 = arith.constant 0 : i32
    return %c0_i32, %c0_i32_0 : i32, i32
  }
  func.func @transform_3(%arg0: i32) -> (i32, i32) {
    %c0_i32 = arith.constant 0 : i32
    %c0_i32_0 = arith.constant 0 : i32
    %c0_i32_1 = arith.constant 0 : i32
    return %c0_i32, %c0_i32_0 : i32, i32
  }
  func.func @transform_4(%arg0: i32) -> (i32, i32) {
    %c0_i32 = arith.constant 0 : i32
    %c0_i32_0 = arith.constant 0 : i32
    %c0_i32_1 = arith.constant 0 : i32
    return %c0_i32, %c0_i32_0 : i32, i32
  }
  func.func @transform_5(%arg0: i32) -> (i32, i32) {
    %c0_i32 = arith.constant 0 : i32
    %c0_i32_0 = arith.constant 0 : i32
    return %arg0, %c0_i32 : i32, i32
  }
}

module attributes {stable_mosaic.version = 11 : i64} {
  func.func @_matmul_act_kernel(%arg0: i32, %arg1: i32, %arg2: memref<1x32x256xbf16, #tpu.memory_space<vmem>>, %arg3: memref<1x256x128xbf16, #tpu.memory_space<vmem>>, %arg4: memref<1x32x128xbf16, #tpu.memory_space<vmem>>) attributes {dimension_semantics = [#tpu.dimension_semantics<parallel>, #tpu.dimension_semantics<parallel>], iteration_bounds = array<i64: 4, 1>, scalar_prefetch = 0 : i64, scratch_operands = 0 : i64, tpu.core_type = #tpu.core_type<tc>, window_params = [{transform_indices = @transform_0, window_bounds = array<i64: 1, 32, 256>}, {transform_indices = @transform_1, window_bounds = array<i64: 1, 256, 128>}, {transform_indices = @transform_2, window_bounds = array<i64: 1, 32, 128>}]} {
    %c0 = arith.constant 0 : index
    %c0_0 = arith.constant 0 : index
    %c0_1 = arith.constant 0 : index
    %0 = vector.load %arg2[%c0, %c0_0, %c0_1] : memref<1x32x256xbf16, #tpu.memory_space<vmem>>, vector<1x32x256xbf16>
    %1 = vector.shape_cast %0 : vector<1x32x256xbf16> to vector<32x256xbf16>
    %c0_2 = arith.constant 0 : index
    %c0_3 = arith.constant 0 : index
    %c0_4 = arith.constant 0 : index
    %2 = vector.load %arg3[%c0_2, %c0_3, %c0_4] : memref<1x256x128xbf16, #tpu.memory_space<vmem>>, vector<1x256x128xbf16>
    %3 = vector.shape_cast %2 : vector<1x256x128xbf16> to vector<256x128xbf16>
    %cst = arith.constant dense<0.000000e+00> : vector<32x128xf32>
    %4 = tpu.matmul %1, %3, %cst {dimension_numbers = #tpu.dot_dimension_numbers<[1], [0], [0], [1], [0, 0, 1, 1], [], []>} : vector<32x256xbf16>, vector<256x128xbf16>, vector<32x128xf32> -> vector<32x128xf32>
    %5 = arith.truncf %4 : vector<32x128xf32> to vector<32x128xbf16>
    %c0_5 = arith.constant 0 : index
    %c0_6 = arith.constant 0 : index
    %c0_7 = arith.constant 0 : index
    %6 = vector.load %arg4[%c0_5, %c0_6, %c0_7] : memref<1x32x128xbf16, #tpu.memory_space<vmem>>, vector<1x32x128xbf16>
    %7 = vector.shape_cast %6 : vector<1x32x128xbf16> to vector<32x128xbf16>
    %8 = vector.shape_cast %5 : vector<32x128xbf16> to vector<1x32x128xbf16>
    tpu.vector_store %arg4[%c0_5, %c0_6, %c0_7], %8 {strides = array<i32>} : memref<1x32x128xbf16, #tpu.memory_space<vmem>>, vector<1x32x128xbf16>,
    return
  }
  func.func @transform_0(%arg0: i32, %arg1: i32) -> (i32, i32, i32) {
    %c0_i32 = arith.constant 0 : i32
    %c0_i32_0 = arith.constant 0 : i32
    return %arg0, %arg1, %c0_i32 : i32, i32, i32
  }
  func.func @transform_1(%arg0: i32, %arg1: i32) -> (i32, i32, i32) {
    %c0_i32 = arith.constant 0 : i32
    %c0_i32_0 = arith.constant 0 : i32
    %c0_i32_1 = arith.constant 0 : i32
    return %arg0, %c0_i32, %c0_i32_0 : i32, i32, i32
  }
  func.func @transform_2(%arg0: i32, %arg1: i32) -> (i32, i32, i32) {
    %c0_i32 = arith.constant 0 : i32
    %c0_i32_0 = arith.constant 0 : i32
    return %arg0, %arg1, %c0_i32 : i32, i32, i32
  }
}

module attributes {stable_mosaic.version = 11 : i64} {
  func.func @_bn_stats_kernel(%arg0: i32, %arg1: memref<128x32xbf16, #tpu.memory_space<vmem>>, %arg2: memref<1x32xf32, #tpu.memory_space<vmem>>, %arg3: memref<1x32xf32, #tpu.memory_space<vmem>>) attributes {dimension_semantics = [#tpu.dimension_semantics<arbitrary>], iteration_bounds = array<i64: 1>, scalar_prefetch = 0 : i64, scratch_operands = 0 : i64, tpu.core_type = #tpu.core_type<tc>, window_params = [{transform_indices = @transform_0, window_bounds = array<i64: 128, 32>}, {pipeline_mode = #tpu.pipeline_mode<synchronous>, transform_indices = @transform_1, window_bounds = array<i64: 1, 32>}, {pipeline_mode = #tpu.pipeline_mode<synchronous>, transform_indices = @transform_2, window_bounds = array<i64: 1, 32>}]} {
    %c0_i32 = arith.constant 0 : i32
    %0 = arith.cmpi eq, %arg0, %c0_i32 : i32
    %1 = arith.extui %0 : i1 to i32
    %c0_i32_0 = arith.constant 0 : i32
    %2 = arith.cmpi ne, %1, %c0_i32_0 : i32
    scf.if %2 {
      %cst_11 = arith.constant 0.000000e+00 : f32
      %16 = vector.broadcast %cst_11 : f32 to vector<1x32xf32>
      %c0_12 = arith.constant 0 : index
      %c0_13 = arith.constant 0 : index
      %17 = vector.load %arg2[%c0_12, %c0_13] : memref<1x32xf32, #tpu.memory_space<vmem>>, vector<1x32xf32>
      tpu.vector_store %arg2[%c0_12, %c0_13], %16 {strides = array<i32>} : memref<1x32xf32, #tpu.memory_space<vmem>>, vector<1x32xf32>,
      %cst_14 = arith.constant 0.000000e+00 : f32
      %18 = vector.broadcast %cst_14 : f32 to vector<1x32xf32>
      %c0_15 = arith.constant 0 : index
      %c0_16 = arith.constant 0 : index
      %19 = vector.load %arg3[%c0_15, %c0_16] : memref<1x32xf32, #tpu.memory_space<vmem>>, vector<1x32xf32>
      tpu.vector_store %arg3[%c0_15, %c0_16], %18 {strides = array<i32>} : memref<1x32xf32, #tpu.memory_space<vmem>>, vector<1x32xf32>,
    } else {
    }
    %c0 = arith.constant 0 : index
    %c0_1 = arith.constant 0 : index
    %3 = vector.load %arg1[%c0, %c0_1] : memref<128x32xbf16, #tpu.memory_space<vmem>>, vector<128x32xbf16>
    %4 = arith.extf %3 : vector<128x32xbf16> to vector<128x32xf32>
    %c0_2 = arith.constant 0 : index
    %c0_3 = arith.constant 0 : index
    %5 = vector.load %arg2[%c0_2, %c0_3] : memref<1x32xf32, #tpu.memory_space<vmem>>, vector<1x32xf32>
    %cst = arith.constant dense<0.000000e+00> : vector<32xf32>
    %6 = vector.multi_reduction <add>, %4, %cst [0] : vector<128x32xf32> to vector<32xf32>
    %7 = vector.shape_cast %6 : vector<32xf32> to vector<1x32xf32>
    %8 = arith.addf %5, %7 : vector<1x32xf32>
    %c0_4 = arith.constant 0 : index
    %c0_5 = arith.constant 0 : index
    %9 = vector.load %arg2[%c0_4, %c0_5] : memref<1x32xf32, #tpu.memory_space<vmem>>, vector<1x32xf32>
    tpu.vector_store %arg2[%c0_4, %c0_5], %8 {strides = array<i32>} : memref<1x32xf32, #tpu.memory_space<vmem>>, vector<1x32xf32>,
    %c0_6 = arith.constant 0 : index
    %c0_7 = arith.constant 0 : index
    %10 = vector.load %arg3[%c0_6, %c0_7] : memref<1x32xf32, #tpu.memory_space<vmem>>, vector<1x32xf32>
    %11 = arith.mulf %4, %4 : vector<128x32xf32>
    %cst_8 = arith.constant dense<0.000000e+00> : vector<32xf32>
    %12 = vector.multi_reduction <add>, %11, %cst_8 [0] : vector<128x32xf32> to vector<32xf32>
    %13 = vector.shape_cast %12 : vector<32xf32> to vector<1x32xf32>
    %14 = arith.addf %10, %13 : vector<1x32xf32>
    %c0_9 = arith.constant 0 : index
    %c0_10 = arith.constant 0 : index
    %15 = vector.load %arg3[%c0_9, %c0_10] : memref<1x32xf32, #tpu.memory_space<vmem>>, vector<1x32xf32>
    tpu.vector_store %arg3[%c0_9, %c0_10], %14 {strides = array<i32>} : memref<1x32xf32, #tpu.memory_space<vmem>>, vector<1x32xf32>,
    return
  }
  func.func @transform_0(%arg0: i32) -> (i32, i32) {
    %c0_i32 = arith.constant 0 : i32
    %c0_i32_0 = arith.constant 0 : i32
    return %arg0, %c0_i32 : i32, i32
  }
  func.func @transform_1(%arg0: i32) -> (i32, i32) {
    %c0_i32 = arith.constant 0 : i32
    %c0_i32_0 = arith.constant 0 : i32
    %c0_i32_1 = arith.constant 0 : i32
    return %c0_i32, %c0_i32_0 : i32, i32
  }
  func.func @transform_2(%arg0: i32) -> (i32, i32) {
    %c0_i32 = arith.constant 0 : i32
    %c0_i32_0 = arith.constant 0 : i32
    %c0_i32_1 = arith.constant 0 : i32
    return %c0_i32, %c0_i32_0 : i32, i32
  }
}

module attributes {stable_mosaic.version = 11 : i64} {
  func.func @_bn_apply_kernel(%arg0: i32, %arg1: memref<128x32xbf16, #tpu.memory_space<vmem>>, %arg2: memref<1x32xf32, #tpu.memory_space<vmem>>, %arg3: memref<1x32xf32, #tpu.memory_space<vmem>>, %arg4: memref<1x32xf32, #tpu.memory_space<vmem>>, %arg5: memref<1x32xf32, #tpu.memory_space<vmem>>, %arg6: memref<128x32xbf16, #tpu.memory_space<vmem>>) attributes {dimension_semantics = [#tpu.dimension_semantics<parallel>], iteration_bounds = array<i64: 1>, scalar_prefetch = 0 : i64, scratch_operands = 0 : i64, tpu.core_type = #tpu.core_type<tc>, window_params = [{transform_indices = @transform_0, window_bounds = array<i64: 128, 32>}, {pipeline_mode = #tpu.pipeline_mode<synchronous>, transform_indices = @transform_1, window_bounds = array<i64: 1, 32>}, {pipeline_mode = #tpu.pipeline_mode<synchronous>, transform_indices = @transform_2, window_bounds = array<i64: 1, 32>}, {pipeline_mode = #tpu.pipeline_mode<synchronous>, transform_indices = @transform_3, window_bounds = array<i64: 1, 32>}, {pipeline_mode = #tpu.pipeline_mode<synchronous>, transform_indices = @transform_4, window_bounds = array<i64: 1, 32>}, {transform_indices = @transform_5, window_bounds = array<i64: 128, 32>}]} {
    %c0 = arith.constant 0 : index
    %c0_0 = arith.constant 0 : index
    %0 = vector.load %arg2[%c0, %c0_0] : memref<1x32xf32, #tpu.memory_space<vmem>>, vector<1x32xf32>
    %cst = arith.constant 7.812500e-03 : f32
    %1 = vector.broadcast %cst : f32 to vector<1x32xf32>
    %2 = arith.mulf %0, %1 : vector<1x32xf32>
    %c0_1 = arith.constant 0 : index
    %c0_2 = arith.constant 0 : index
    %3 = vector.load %arg3[%c0_1, %c0_2] : memref<1x32xf32, #tpu.memory_space<vmem>>, vector<1x32xf32>
    %cst_3 = arith.constant 7.812500e-03 : f32
    %4 = vector.broadcast %cst_3 : f32 to vector<1x32xf32>
    %5 = arith.mulf %3, %4 : vector<1x32xf32>
    %6 = arith.mulf %2, %2 : vector<1x32xf32>
    %7 = arith.subf %5, %6 : vector<1x32xf32>
    %cst_4 = arith.constant 0.000000e+00 : f32
    %8 = vector.broadcast %cst_4 : f32 to vector<1x32xf32>
    %9 = arith.maximumf %7, %8 : vector<1x32xf32>
    %c0_5 = arith.constant 0 : index
    %c0_6 = arith.constant 0 : index
    %10 = vector.load %arg4[%c0_5, %c0_6] : memref<1x32xf32, #tpu.memory_space<vmem>>, vector<1x32xf32>
    %cst_7 = arith.constant 9.99999974E-6 : f32
    %11 = vector.broadcast %cst_7 : f32 to vector<1x32xf32>
    %12 = arith.addf %9, %11 : vector<1x32xf32>
    %13 = math.rsqrt %12 : vector<1x32xf32>
    %14 = arith.mulf %10, %13 : vector<1x32xf32>
    %c0_8 = arith.constant 0 : index
    %c0_9 = arith.constant 0 : index
    %15 = vector.load %arg5[%c0_8, %c0_9] : memref<1x32xf32, #tpu.memory_space<vmem>>, vector<1x32xf32>
    %16 = arith.mulf %2, %14 : vector<1x32xf32>
    %17 = arith.subf %15, %16 : vector<1x32xf32>
    %c0_10 = arith.constant 0 : index
    %c0_11 = arith.constant 0 : index
    %18 = vector.load %arg1[%c0_10, %c0_11] : memref<128x32xbf16, #tpu.memory_space<vmem>>, vector<128x32xbf16>
    %19 = arith.extf %18 : vector<128x32xbf16> to vector<128x32xf32>
    %20 = vector.broadcast %14 : vector<1x32xf32> to vector<128x32xf32>
    %21 = arith.mulf %19, %20 : vector<128x32xf32>
    %22 = vector.broadcast %17 : vector<1x32xf32> to vector<128x32xf32>
    %23 = arith.addf %21, %22 : vector<128x32xf32>
    %cst_12 = arith.constant 0.000000e+00 : f32
    %24 = vector.broadcast %cst_12 : f32 to vector<128x32xf32>
    %25 = arith.maximumf %23, %24 : vector<128x32xf32>
    %26 = arith.truncf %25 : vector<128x32xf32> to vector<128x32xbf16>
    %c0_13 = arith.constant 0 : index
    %c0_14 = arith.constant 0 : index
    %27 = vector.load %arg6[%c0_13, %c0_14] : memref<128x32xbf16, #tpu.memory_space<vmem>>, vector<128x32xbf16>
    tpu.vector_store %arg6[%c0_13, %c0_14], %26 {strides = array<i32>} : memref<128x32xbf16, #tpu.memory_space<vmem>>, vector<128x32xbf16>,
    return
  }
  func.func @transform_0(%arg0: i32) -> (i32, i32) {
    %c0_i32 = arith.constant 0 : i32
    %c0_i32_0 = arith.constant 0 : i32
    return %arg0, %c0_i32 : i32, i32
  }
  func.func @transform_1(%arg0: i32) -> (i32, i32) {
    %c0_i32 = arith.constant 0 : i32
    %c0_i32_0 = arith.constant 0 : i32
    %c0_i32_1 = arith.constant 0 : i32
    return %c0_i32, %c0_i32_0 : i32, i32
  }
  func.func @transform_2(%arg0: i32) -> (i32, i32) {
    %c0_i32 = arith.constant 0 : i32
    %c0_i32_0 = arith.constant 0 : i32
    %c0_i32_1 = arith.constant 0 : i32
    return %c0_i32, %c0_i32_0 : i32, i32
  }
  func.func @transform_3(%arg0: i32) -> (i32, i32) {
    %c0_i32 = arith.constant 0 : i32
    %c0_i32_0 = arith.constant 0 : i32
    %c0_i32_1 = arith.constant 0 : i32
    return %c0_i32, %c0_i32_0 : i32, i32
  }
  func.func @transform_4(%arg0: i32) -> (i32, i32) {
    %c0_i32 = arith.constant 0 : i32
    %c0_i32_0 = arith.constant 0 : i32
    %c0_i32_1 = arith.constant 0 : i32
    return %c0_i32, %c0_i32_0 : i32, i32
  }
  func.func @transform_5(%arg0: i32) -> (i32, i32) {
    %c0_i32 = arith.constant 0 : i32
    %c0_i32_0 = arith.constant 0 : i32
    return %arg0, %c0_i32 : i32, i32
  }
}

module attributes {stable_mosaic.version = 11 : i64} {
  func.func @_matmul_act_kernel(%arg0: i32, %arg1: i32, %arg2: memref<1x128x128xbf16, #tpu.memory_space<vmem>>, %arg3: memref<1x128x128xbf16, #tpu.memory_space<vmem>>, %arg4: memref<1x128x128xbf16, #tpu.memory_space<vmem>>) attributes {dimension_semantics = [#tpu.dimension_semantics<parallel>, #tpu.dimension_semantics<parallel>], iteration_bounds = array<i64: 4, 1>, scalar_prefetch = 0 : i64, scratch_operands = 0 : i64, tpu.core_type = #tpu.core_type<tc>, window_params = [{transform_indices = @transform_0, window_bounds = array<i64: 1, 128, 128>}, {transform_indices = @transform_1, window_bounds = array<i64: 1, 128, 128>}, {transform_indices = @transform_2, window_bounds = array<i64: 1, 128, 128>}]} {
    %c0 = arith.constant 0 : index
    %c0_0 = arith.constant 0 : index
    %c0_1 = arith.constant 0 : index
    %0 = vector.load %arg2[%c0, %c0_0, %c0_1] : memref<1x128x128xbf16, #tpu.memory_space<vmem>>, vector<1x128x128xbf16>
    %1 = vector.shape_cast %0 : vector<1x128x128xbf16> to vector<128x128xbf16>
    %c0_2 = arith.constant 0 : index
    %c0_3 = arith.constant 0 : index
    %c0_4 = arith.constant 0 : index
    %2 = vector.load %arg3[%c0_2, %c0_3, %c0_4] : memref<1x128x128xbf16, #tpu.memory_space<vmem>>, vector<1x128x128xbf16>
    %3 = vector.shape_cast %2 : vector<1x128x128xbf16> to vector<128x128xbf16>
    %cst = arith.constant dense<0.000000e+00> : vector<128x128xf32>
    %4 = tpu.matmul %1, %3, %cst {dimension_numbers = #tpu.dot_dimension_numbers<[1], [0], [0], [1], [0, 0, 1, 1], [], []>} : vector<128x128xbf16>, vector<128x128xbf16>, vector<128x128xf32> -> vector<128x128xf32>
    %5 = arith.truncf %4 : vector<128x128xf32> to vector<128x128xbf16>
    %c0_5 = arith.constant 0 : index
    %c0_6 = arith.constant 0 : index
    %c0_7 = arith.constant 0 : index
    %6 = vector.load %arg4[%c0_5, %c0_6, %c0_7] : memref<1x128x128xbf16, #tpu.memory_space<vmem>>, vector<1x128x128xbf16>
    %7 = vector.shape_cast %6 : vector<1x128x128xbf16> to vector<128x128xbf16>
    %8 = vector.shape_cast %5 : vector<128x128xbf16> to vector<1x128x128xbf16>
    tpu.vector_store %arg4[%c0_5, %c0_6, %c0_7], %8 {strides = array<i32>} : memref<1x128x128xbf16, #tpu.memory_space<vmem>>, vector<1x128x128xbf16>,
    return
  }
  func.func @transform_0(%arg0: i32, %arg1: i32) -> (i32, i32, i32) {
    %c0_i32 = arith.constant 0 : i32
    %c0_i32_0 = arith.constant 0 : i32
    return %arg0, %arg1, %c0_i32 : i32, i32, i32
  }
  func.func @transform_1(%arg0: i32, %arg1: i32) -> (i32, i32, i32) {
    %c0_i32 = arith.constant 0 : i32
    %c0_i32_0 = arith.constant 0 : i32
    %c0_i32_1 = arith.constant 0 : i32
    return %arg0, %c0_i32, %c0_i32_0 : i32, i32, i32
  }
  func.func @transform_2(%arg0: i32, %arg1: i32) -> (i32, i32, i32) {
    %c0_i32 = arith.constant 0 : i32
    %c0_i32_0 = arith.constant 0 : i32
    return %arg0, %arg1, %c0_i32 : i32, i32, i32
  }
}

module attributes {stable_mosaic.version = 11 : i64} {
  func.func @_bn_stats_kernel(%arg0: i32, %arg1: memref<512x16xbf16, #tpu.memory_space<vmem>>, %arg2: memref<1x16xf32, #tpu.memory_space<vmem>>, %arg3: memref<1x16xf32, #tpu.memory_space<vmem>>) attributes {dimension_semantics = [#tpu.dimension_semantics<arbitrary>], iteration_bounds = array<i64: 1>, scalar_prefetch = 0 : i64, scratch_operands = 0 : i64, tpu.core_type = #tpu.core_type<tc>, window_params = [{transform_indices = @transform_0, window_bounds = array<i64: 512, 16>}, {pipeline_mode = #tpu.pipeline_mode<synchronous>, transform_indices = @transform_1, window_bounds = array<i64: 1, 16>}, {pipeline_mode = #tpu.pipeline_mode<synchronous>, transform_indices = @transform_2, window_bounds = array<i64: 1, 16>}]} {
    %c0_i32 = arith.constant 0 : i32
    %0 = arith.cmpi eq, %arg0, %c0_i32 : i32
    %1 = arith.extui %0 : i1 to i32
    %c0_i32_0 = arith.constant 0 : i32
    %2 = arith.cmpi ne, %1, %c0_i32_0 : i32
    scf.if %2 {
      %cst_11 = arith.constant 0.000000e+00 : f32
      %16 = vector.broadcast %cst_11 : f32 to vector<1x16xf32>
      %c0_12 = arith.constant 0 : index
      %c0_13 = arith.constant 0 : index
      %17 = vector.load %arg2[%c0_12, %c0_13] : memref<1x16xf32, #tpu.memory_space<vmem>>, vector<1x16xf32>
      tpu.vector_store %arg2[%c0_12, %c0_13], %16 {strides = array<i32>} : memref<1x16xf32, #tpu.memory_space<vmem>>, vector<1x16xf32>,
      %cst_14 = arith.constant 0.000000e+00 : f32
      %18 = vector.broadcast %cst_14 : f32 to vector<1x16xf32>
      %c0_15 = arith.constant 0 : index
      %c0_16 = arith.constant 0 : index
      %19 = vector.load %arg3[%c0_15, %c0_16] : memref<1x16xf32, #tpu.memory_space<vmem>>, vector<1x16xf32>
      tpu.vector_store %arg3[%c0_15, %c0_16], %18 {strides = array<i32>} : memref<1x16xf32, #tpu.memory_space<vmem>>, vector<1x16xf32>,
    } else {
    }
    %c0 = arith.constant 0 : index
    %c0_1 = arith.constant 0 : index
    %3 = vector.load %arg1[%c0, %c0_1] : memref<512x16xbf16, #tpu.memory_space<vmem>>, vector<512x16xbf16>
    %4 = arith.extf %3 : vector<512x16xbf16> to vector<512x16xf32>
    %c0_2 = arith.constant 0 : index
    %c0_3 = arith.constant 0 : index
    %5 = vector.load %arg2[%c0_2, %c0_3] : memref<1x16xf32, #tpu.memory_space<vmem>>, vector<1x16xf32>
    %cst = arith.constant dense<0.000000e+00> : vector<16xf32>
    %6 = vector.multi_reduction <add>, %4, %cst [0] : vector<512x16xf32> to vector<16xf32>
    %7 = vector.shape_cast %6 : vector<16xf32> to vector<1x16xf32>
    %8 = arith.addf %5, %7 : vector<1x16xf32>
    %c0_4 = arith.constant 0 : index
    %c0_5 = arith.constant 0 : index
    %9 = vector.load %arg2[%c0_4, %c0_5] : memref<1x16xf32, #tpu.memory_space<vmem>>, vector<1x16xf32>
    tpu.vector_store %arg2[%c0_4, %c0_5], %8 {strides = array<i32>} : memref<1x16xf32, #tpu.memory_space<vmem>>, vector<1x16xf32>,
    %c0_6 = arith.constant 0 : index
    %c0_7 = arith.constant 0 : index
    %10 = vector.load %arg3[%c0_6, %c0_7] : memref<1x16xf32, #tpu.memory_space<vmem>>, vector<1x16xf32>
    %11 = arith.mulf %4, %4 : vector<512x16xf32>
    %cst_8 = arith.constant dense<0.000000e+00> : vector<16xf32>
    %12 = vector.multi_reduction <add>, %11, %cst_8 [0] : vector<512x16xf32> to vector<16xf32>
    %13 = vector.shape_cast %12 : vector<16xf32> to vector<1x16xf32>
    %14 = arith.addf %10, %13 : vector<1x16xf32>
    %c0_9 = arith.constant 0 : index
    %c0_10 = arith.constant 0 : index
    %15 = vector.load %arg3[%c0_9, %c0_10] : memref<1x16xf32, #tpu.memory_space<vmem>>, vector<1x16xf32>
    tpu.vector_store %arg3[%c0_9, %c0_10], %14 {strides = array<i32>} : memref<1x16xf32, #tpu.memory_space<vmem>>, vector<1x16xf32>,
    return
  }
  func.func @transform_0(%arg0: i32) -> (i32, i32) {
    %c0_i32 = arith.constant 0 : i32
    %c0_i32_0 = arith.constant 0 : i32
    return %arg0, %c0_i32 : i32, i32
  }
  func.func @transform_1(%arg0: i32) -> (i32, i32) {
    %c0_i32 = arith.constant 0 : i32
    %c0_i32_0 = arith.constant 0 : i32
    %c0_i32_1 = arith.constant 0 : i32
    return %c0_i32, %c0_i32_0 : i32, i32
  }
  func.func @transform_2(%arg0: i32) -> (i32, i32) {
    %c0_i32 = arith.constant 0 : i32
    %c0_i32_0 = arith.constant 0 : i32
    %c0_i32_1 = arith.constant 0 : i32
    return %c0_i32, %c0_i32_0 : i32, i32
  }
}

module attributes {stable_mosaic.version = 11 : i64} {
  func.func @_bn_apply_kernel(%arg0: i32, %arg1: memref<512x16xbf16, #tpu.memory_space<vmem>>, %arg2: memref<1x16xf32, #tpu.memory_space<vmem>>, %arg3: memref<1x16xf32, #tpu.memory_space<vmem>>, %arg4: memref<1x16xf32, #tpu.memory_space<vmem>>, %arg5: memref<1x16xf32, #tpu.memory_space<vmem>>, %arg6: memref<512x16xbf16, #tpu.memory_space<vmem>>) attributes {dimension_semantics = [#tpu.dimension_semantics<parallel>], iteration_bounds = array<i64: 1>, scalar_prefetch = 0 : i64, scratch_operands = 0 : i64, tpu.core_type = #tpu.core_type<tc>, window_params = [{transform_indices = @transform_0, window_bounds = array<i64: 512, 16>}, {pipeline_mode = #tpu.pipeline_mode<synchronous>, transform_indices = @transform_1, window_bounds = array<i64: 1, 16>}, {pipeline_mode = #tpu.pipeline_mode<synchronous>, transform_indices = @transform_2, window_bounds = array<i64: 1, 16>}, {pipeline_mode = #tpu.pipeline_mode<synchronous>, transform_indices = @transform_3, window_bounds = array<i64: 1, 16>}, {pipeline_mode = #tpu.pipeline_mode<synchronous>, transform_indices = @transform_4, window_bounds = array<i64: 1, 16>}, {transform_indices = @transform_5, window_bounds = array<i64: 512, 16>}]} {
    %c0 = arith.constant 0 : index
    %c0_0 = arith.constant 0 : index
    %0 = vector.load %arg2[%c0, %c0_0] : memref<1x16xf32, #tpu.memory_space<vmem>>, vector<1x16xf32>
    %cst = arith.constant 0.001953125 : f32
    %1 = vector.broadcast %cst : f32 to vector<1x16xf32>
    %2 = arith.mulf %0, %1 : vector<1x16xf32>
    %c0_1 = arith.constant 0 : index
    %c0_2 = arith.constant 0 : index
    %3 = vector.load %arg3[%c0_1, %c0_2] : memref<1x16xf32, #tpu.memory_space<vmem>>, vector<1x16xf32>
    %cst_3 = arith.constant 0.001953125 : f32
    %4 = vector.broadcast %cst_3 : f32 to vector<1x16xf32>
    %5 = arith.mulf %3, %4 : vector<1x16xf32>
    %6 = arith.mulf %2, %2 : vector<1x16xf32>
    %7 = arith.subf %5, %6 : vector<1x16xf32>
    %cst_4 = arith.constant 0.000000e+00 : f32
    %8 = vector.broadcast %cst_4 : f32 to vector<1x16xf32>
    %9 = arith.maximumf %7, %8 : vector<1x16xf32>
    %c0_5 = arith.constant 0 : index
    %c0_6 = arith.constant 0 : index
    %10 = vector.load %arg4[%c0_5, %c0_6] : memref<1x16xf32, #tpu.memory_space<vmem>>, vector<1x16xf32>
    %cst_7 = arith.constant 9.99999974E-6 : f32
    %11 = vector.broadcast %cst_7 : f32 to vector<1x16xf32>
    %12 = arith.addf %9, %11 : vector<1x16xf32>
    %13 = math.rsqrt %12 : vector<1x16xf32>
    %14 = arith.mulf %10, %13 : vector<1x16xf32>
    %c0_8 = arith.constant 0 : index
    %c0_9 = arith.constant 0 : index
    %15 = vector.load %arg5[%c0_8, %c0_9] : memref<1x16xf32, #tpu.memory_space<vmem>>, vector<1x16xf32>
    %16 = arith.mulf %2, %14 : vector<1x16xf32>
    %17 = arith.subf %15, %16 : vector<1x16xf32>
    %c0_10 = arith.constant 0 : index
    %c0_11 = arith.constant 0 : index
    %18 = vector.load %arg1[%c0_10, %c0_11] : memref<512x16xbf16, #tpu.memory_space<vmem>>, vector<512x16xbf16>
    %19 = arith.extf %18 : vector<512x16xbf16> to vector<512x16xf32>
    %20 = vector.broadcast %14 : vector<1x16xf32> to vector<512x16xf32>
    %21 = arith.mulf %19, %20 : vector<512x16xf32>
    %22 = vector.broadcast %17 : vector<1x16xf32> to vector<512x16xf32>
    %23 = arith.addf %21, %22 : vector<512x16xf32>
    %cst_12 = arith.constant 0.000000e+00 : f32
    %24 = vector.broadcast %cst_12 : f32 to vector<512x16xf32>
    %25 = arith.maximumf %23, %24 : vector<512x16xf32>
    %26 = arith.truncf %25 : vector<512x16xf32> to vector<512x16xbf16>
    %c0_13 = arith.constant 0 : index
    %c0_14 = arith.constant 0 : index
    %27 = vector.load %arg6[%c0_13, %c0_14] : memref<512x16xbf16, #tpu.memory_space<vmem>>, vector<512x16xbf16>
    tpu.vector_store %arg6[%c0_13, %c0_14], %26 {strides = array<i32>} : memref<512x16xbf16, #tpu.memory_space<vmem>>, vector<512x16xbf16>,
    return
  }
  func.func @transform_0(%arg0: i32) -> (i32, i32) {
    %c0_i32 = arith.constant 0 : i32
    %c0_i32_0 = arith.constant 0 : i32
    return %arg0, %c0_i32 : i32, i32
  }
  func.func @transform_1(%arg0: i32) -> (i32, i32) {
    %c0_i32 = arith.constant 0 : i32
    %c0_i32_0 = arith.constant 0 : i32
    %c0_i32_1 = arith.constant 0 : i32
    return %c0_i32, %c0_i32_0 : i32, i32
  }
  func.func @transform_2(%arg0: i32) -> (i32, i32) {
    %c0_i32 = arith.constant 0 : i32
    %c0_i32_0 = arith.constant 0 : i32
    %c0_i32_1 = arith.constant 0 : i32
    return %c0_i32, %c0_i32_0 : i32, i32
  }
  func.func @transform_3(%arg0: i32) -> (i32, i32) {
    %c0_i32 = arith.constant 0 : i32
    %c0_i32_0 = arith.constant 0 : i32
    %c0_i32_1 = arith.constant 0 : i32
    return %c0_i32, %c0_i32_0 : i32, i32
  }
  func.func @transform_4(%arg0: i32) -> (i32, i32) {
    %c0_i32 = arith.constant 0 : i32
    %c0_i32_0 = arith.constant 0 : i32
    %c0_i32_1 = arith.constant 0 : i32
    return %c0_i32, %c0_i32_0 : i32, i32
  }
  func.func @transform_5(%arg0: i32) -> (i32, i32) {
    %c0_i32 = arith.constant 0 : i32
    %c0_i32_0 = arith.constant 0 : i32
    return %arg0, %c0_i32 : i32, i32
  }
}

module attributes {stable_mosaic.version = 11 : i64} {
  func.func @_matmul_act_kernel(%arg0: i32, %arg1: i32, %arg2: memref<1x512x64xbf16, #tpu.memory_space<vmem>>, %arg3: memref<1x64x128xbf16, #tpu.memory_space<vmem>>, %arg4: memref<1x512x128xbf16, #tpu.memory_space<vmem>>) attributes {dimension_semantics = [#tpu.dimension_semantics<parallel>, #tpu.dimension_semantics<parallel>], iteration_bounds = array<i64: 4, 1>, scalar_prefetch = 0 : i64, scratch_operands = 0 : i64, tpu.core_type = #tpu.core_type<tc>, window_params = [{transform_indices = @transform_0, window_bounds = array<i64: 1, 512, 64>}, {transform_indices = @transform_1, window_bounds = array<i64: 1, 64, 128>}, {transform_indices = @transform_2, window_bounds = array<i64: 1, 512, 128>}]} {
    %c0 = arith.constant 0 : index
    %c0_0 = arith.constant 0 : index
    %c0_1 = arith.constant 0 : index
    %0 = vector.load %arg2[%c0, %c0_0, %c0_1] : memref<1x512x64xbf16, #tpu.memory_space<vmem>>, vector<1x512x64xbf16>
    %1 = vector.shape_cast %0 : vector<1x512x64xbf16> to vector<512x64xbf16>
    %c0_2 = arith.constant 0 : index
    %c0_3 = arith.constant 0 : index
    %c0_4 = arith.constant 0 : index
    %2 = vector.load %arg3[%c0_2, %c0_3, %c0_4] : memref<1x64x128xbf16, #tpu.memory_space<vmem>>, vector<1x64x128xbf16>
    %3 = vector.shape_cast %2 : vector<1x64x128xbf16> to vector<64x128xbf16>
    %cst = arith.constant dense<0.000000e+00> : vector<512x128xf32>
    %4 = tpu.matmul %1, %3, %cst {dimension_numbers = #tpu.dot_dimension_numbers<[1], [0], [0], [1], [0, 0, 1, 1], [], []>} : vector<512x64xbf16>, vector<64x128xbf16>, vector<512x128xf32> -> vector<512x128xf32>
    %5 = arith.truncf %4 : vector<512x128xf32> to vector<512x128xbf16>
    %c0_5 = arith.constant 0 : index
    %c0_6 = arith.constant 0 : index
    %c0_7 = arith.constant 0 : index
    %6 = vector.load %arg4[%c0_5, %c0_6, %c0_7] : memref<1x512x128xbf16, #tpu.memory_space<vmem>>, vector<1x512x128xbf16>
    %7 = vector.shape_cast %6 : vector<1x512x128xbf16> to vector<512x128xbf16>
    %8 = vector.shape_cast %5 : vector<512x128xbf16> to vector<1x512x128xbf16>
    tpu.vector_store %arg4[%c0_5, %c0_6, %c0_7], %8 {strides = array<i32>} : memref<1x512x128xbf16, #tpu.memory_space<vmem>>, vector<1x512x128xbf16>,
    return
  }
  func.func @transform_0(%arg0: i32, %arg1: i32) -> (i32, i32, i32) {
    %c0_i32 = arith.constant 0 : i32
    %c0_i32_0 = arith.constant 0 : i32
    return %arg0, %arg1, %c0_i32 : i32, i32, i32
  }
  func.func @transform_1(%arg0: i32, %arg1: i32) -> (i32, i32, i32) {
    %c0_i32 = arith.constant 0 : i32
    %c0_i32_0 = arith.constant 0 : i32
    %c0_i32_1 = arith.constant 0 : i32
    return %arg0, %c0_i32, %c0_i32_0 : i32, i32, i32
  }
  func.func @transform_2(%arg0: i32, %arg1: i32) -> (i32, i32, i32) {
    %c0_i32 = arith.constant 0 : i32
    %c0_i32_0 = arith.constant 0 : i32
    return %arg0, %arg1, %c0_i32 : i32, i32, i32
  }
}

module attributes {stable_mosaic.version = 11 : i64} {
  func.func @_bn_stats_kernel(%arg0: i32, %arg1: memref<2048x8xbf16, #tpu.memory_space<vmem>>, %arg2: memref<1x8xf32, #tpu.memory_space<vmem>>, %arg3: memref<1x8xf32, #tpu.memory_space<vmem>>) attributes {dimension_semantics = [#tpu.dimension_semantics<arbitrary>], iteration_bounds = array<i64: 1>, scalar_prefetch = 0 : i64, scratch_operands = 0 : i64, tpu.core_type = #tpu.core_type<tc>, window_params = [{transform_indices = @transform_0, window_bounds = array<i64: 2048, 8>}, {pipeline_mode = #tpu.pipeline_mode<synchronous>, transform_indices = @transform_1, window_bounds = array<i64: 1, 8>}, {pipeline_mode = #tpu.pipeline_mode<synchronous>, transform_indices = @transform_2, window_bounds = array<i64: 1, 8>}]} {
    %c0_i32 = arith.constant 0 : i32
    %0 = arith.cmpi eq, %arg0, %c0_i32 : i32
    %1 = arith.extui %0 : i1 to i32
    %c0_i32_0 = arith.constant 0 : i32
    %2 = arith.cmpi ne, %1, %c0_i32_0 : i32
    scf.if %2 {
      %cst_11 = arith.constant 0.000000e+00 : f32
      %16 = vector.broadcast %cst_11 : f32 to vector<1x8xf32>
      %c0_12 = arith.constant 0 : index
      %c0_13 = arith.constant 0 : index
      %17 = vector.load %arg2[%c0_12, %c0_13] : memref<1x8xf32, #tpu.memory_space<vmem>>, vector<1x8xf32>
      tpu.vector_store %arg2[%c0_12, %c0_13], %16 {strides = array<i32>} : memref<1x8xf32, #tpu.memory_space<vmem>>, vector<1x8xf32>,
      %cst_14 = arith.constant 0.000000e+00 : f32
      %18 = vector.broadcast %cst_14 : f32 to vector<1x8xf32>
      %c0_15 = arith.constant 0 : index
      %c0_16 = arith.constant 0 : index
      %19 = vector.load %arg3[%c0_15, %c0_16] : memref<1x8xf32, #tpu.memory_space<vmem>>, vector<1x8xf32>
      tpu.vector_store %arg3[%c0_15, %c0_16], %18 {strides = array<i32>} : memref<1x8xf32, #tpu.memory_space<vmem>>, vector<1x8xf32>,
    } else {
    }
    %c0 = arith.constant 0 : index
    %c0_1 = arith.constant 0 : index
    %3 = vector.load %arg1[%c0, %c0_1] : memref<2048x8xbf16, #tpu.memory_space<vmem>>, vector<2048x8xbf16>
    %4 = arith.extf %3 : vector<2048x8xbf16> to vector<2048x8xf32>
    %c0_2 = arith.constant 0 : index
    %c0_3 = arith.constant 0 : index
    %5 = vector.load %arg2[%c0_2, %c0_3] : memref<1x8xf32, #tpu.memory_space<vmem>>, vector<1x8xf32>
    %cst = arith.constant dense<0.000000e+00> : vector<8xf32>
    %6 = vector.multi_reduction <add>, %4, %cst [0] : vector<2048x8xf32> to vector<8xf32>
    %7 = vector.shape_cast %6 : vector<8xf32> to vector<1x8xf32>
    %8 = arith.addf %5, %7 : vector<1x8xf32>
    %c0_4 = arith.constant 0 : index
    %c0_5 = arith.constant 0 : index
    %9 = vector.load %arg2[%c0_4, %c0_5] : memref<1x8xf32, #tpu.memory_space<vmem>>, vector<1x8xf32>
    tpu.vector_store %arg2[%c0_4, %c0_5], %8 {strides = array<i32>} : memref<1x8xf32, #tpu.memory_space<vmem>>, vector<1x8xf32>,
    %c0_6 = arith.constant 0 : index
    %c0_7 = arith.constant 0 : index
    %10 = vector.load %arg3[%c0_6, %c0_7] : memref<1x8xf32, #tpu.memory_space<vmem>>, vector<1x8xf32>
    %11 = arith.mulf %4, %4 : vector<2048x8xf32>
    %cst_8 = arith.constant dense<0.000000e+00> : vector<8xf32>
    %12 = vector.multi_reduction <add>, %11, %cst_8 [0] : vector<2048x8xf32> to vector<8xf32>
    %13 = vector.shape_cast %12 : vector<8xf32> to vector<1x8xf32>
    %14 = arith.addf %10, %13 : vector<1x8xf32>
    %c0_9 = arith.constant 0 : index
    %c0_10 = arith.constant 0 : index
    %15 = vector.load %arg3[%c0_9, %c0_10] : memref<1x8xf32, #tpu.memory_space<vmem>>, vector<1x8xf32>
    tpu.vector_store %arg3[%c0_9, %c0_10], %14 {strides = array<i32>} : memref<1x8xf32, #tpu.memory_space<vmem>>, vector<1x8xf32>,
    return
  }
  func.func @transform_0(%arg0: i32) -> (i32, i32) {
    %c0_i32 = arith.constant 0 : i32
    %c0_i32_0 = arith.constant 0 : i32
    return %arg0, %c0_i32 : i32, i32
  }
  func.func @transform_1(%arg0: i32) -> (i32, i32) {
    %c0_i32 = arith.constant 0 : i32
    %c0_i32_0 = arith.constant 0 : i32
    %c0_i32_1 = arith.constant 0 : i32
    return %c0_i32, %c0_i32_0 : i32, i32
  }
  func.func @transform_2(%arg0: i32) -> (i32, i32) {
    %c0_i32 = arith.constant 0 : i32
    %c0_i32_0 = arith.constant 0 : i32
    %c0_i32_1 = arith.constant 0 : i32
    return %c0_i32, %c0_i32_0 : i32, i32
  }
}

module attributes {stable_mosaic.version = 11 : i64} {
  func.func @_bn_apply_kernel(%arg0: i32, %arg1: memref<2048x8xbf16, #tpu.memory_space<vmem>>, %arg2: memref<1x8xf32, #tpu.memory_space<vmem>>, %arg3: memref<1x8xf32, #tpu.memory_space<vmem>>, %arg4: memref<1x8xf32, #tpu.memory_space<vmem>>, %arg5: memref<1x8xf32, #tpu.memory_space<vmem>>, %arg6: memref<2048x8xbf16, #tpu.memory_space<vmem>>) attributes {dimension_semantics = [#tpu.dimension_semantics<parallel>], iteration_bounds = array<i64: 1>, scalar_prefetch = 0 : i64, scratch_operands = 0 : i64, tpu.core_type = #tpu.core_type<tc>, window_params = [{transform_indices = @transform_0, window_bounds = array<i64: 2048, 8>}, {pipeline_mode = #tpu.pipeline_mode<synchronous>, transform_indices = @transform_1, window_bounds = array<i64: 1, 8>}, {pipeline_mode = #tpu.pipeline_mode<synchronous>, transform_indices = @transform_2, window_bounds = array<i64: 1, 8>}, {pipeline_mode = #tpu.pipeline_mode<synchronous>, transform_indices = @transform_3, window_bounds = array<i64: 1, 8>}, {pipeline_mode = #tpu.pipeline_mode<synchronous>, transform_indices = @transform_4, window_bounds = array<i64: 1, 8>}, {transform_indices = @transform_5, window_bounds = array<i64: 2048, 8>}]} {
    %c0 = arith.constant 0 : index
    %c0_0 = arith.constant 0 : index
    %0 = vector.load %arg2[%c0, %c0_0] : memref<1x8xf32, #tpu.memory_space<vmem>>, vector<1x8xf32>
    %cst = arith.constant 4.8828125E-4 : f32
    %1 = vector.broadcast %cst : f32 to vector<1x8xf32>
    %2 = arith.mulf %0, %1 : vector<1x8xf32>
    %c0_1 = arith.constant 0 : index
    %c0_2 = arith.constant 0 : index
    %3 = vector.load %arg3[%c0_1, %c0_2] : memref<1x8xf32, #tpu.memory_space<vmem>>, vector<1x8xf32>
    %cst_3 = arith.constant 4.8828125E-4 : f32
    %4 = vector.broadcast %cst_3 : f32 to vector<1x8xf32>
    %5 = arith.mulf %3, %4 : vector<1x8xf32>
    %6 = arith.mulf %2, %2 : vector<1x8xf32>
    %7 = arith.subf %5, %6 : vector<1x8xf32>
    %cst_4 = arith.constant 0.000000e+00 : f32
    %8 = vector.broadcast %cst_4 : f32 to vector<1x8xf32>
    %9 = arith.maximumf %7, %8 : vector<1x8xf32>
    %c0_5 = arith.constant 0 : index
    %c0_6 = arith.constant 0 : index
    %10 = vector.load %arg4[%c0_5, %c0_6] : memref<1x8xf32, #tpu.memory_space<vmem>>, vector<1x8xf32>
    %cst_7 = arith.constant 9.99999974E-6 : f32
    %11 = vector.broadcast %cst_7 : f32 to vector<1x8xf32>
    %12 = arith.addf %9, %11 : vector<1x8xf32>
    %13 = math.rsqrt %12 : vector<1x8xf32>
    %14 = arith.mulf %10, %13 : vector<1x8xf32>
    %c0_8 = arith.constant 0 : index
    %c0_9 = arith.constant 0 : index
    %15 = vector.load %arg5[%c0_8, %c0_9] : memref<1x8xf32, #tpu.memory_space<vmem>>, vector<1x8xf32>
    %16 = arith.mulf %2, %14 : vector<1x8xf32>
    %17 = arith.subf %15, %16 : vector<1x8xf32>
    %c0_10 = arith.constant 0 : index
    %c0_11 = arith.constant 0 : index
    %18 = vector.load %arg1[%c0_10, %c0_11] : memref<2048x8xbf16, #tpu.memory_space<vmem>>, vector<2048x8xbf16>
    %19 = arith.extf %18 : vector<2048x8xbf16> to vector<2048x8xf32>
    %20 = vector.broadcast %14 : vector<1x8xf32> to vector<2048x8xf32>
    %21 = arith.mulf %19, %20 : vector<2048x8xf32>
    %22 = vector.broadcast %17 : vector<1x8xf32> to vector<2048x8xf32>
    %23 = arith.addf %21, %22 : vector<2048x8xf32>
    %cst_12 = arith.constant 0.000000e+00 : f32
    %24 = vector.broadcast %cst_12 : f32 to vector<2048x8xf32>
    %25 = arith.maximumf %23, %24 : vector<2048x8xf32>
    %26 = arith.truncf %25 : vector<2048x8xf32> to vector<2048x8xbf16>
    %c0_13 = arith.constant 0 : index
    %c0_14 = arith.constant 0 : index
    %27 = vector.load %arg6[%c0_13, %c0_14] : memref<2048x8xbf16, #tpu.memory_space<vmem>>, vector<2048x8xbf16>
    tpu.vector_store %arg6[%c0_13, %c0_14], %26 {strides = array<i32>} : memref<2048x8xbf16, #tpu.memory_space<vmem>>, vector<2048x8xbf16>,
    return
  }
  func.func @transform_0(%arg0: i32) -> (i32, i32) {
    %c0_i32 = arith.constant 0 : i32
    %c0_i32_0 = arith.constant 0 : i32
    return %arg0, %c0_i32 : i32, i32
  }
  func.func @transform_1(%arg0: i32) -> (i32, i32) {
    %c0_i32 = arith.constant 0 : i32
    %c0_i32_0 = arith.constant 0 : i32
    %c0_i32_1 = arith.constant 0 : i32
    return %c0_i32, %c0_i32_0 : i32, i32
  }
  func.func @transform_2(%arg0: i32) -> (i32, i32) {
    %c0_i32 = arith.constant 0 : i32
    %c0_i32_0 = arith.constant 0 : i32
    %c0_i32_1 = arith.constant 0 : i32
    return %c0_i32, %c0_i32_0 : i32, i32
  }
  func.func @transform_3(%arg0: i32) -> (i32, i32) {
    %c0_i32 = arith.constant 0 : i32
    %c0_i32_0 = arith.constant 0 : i32
    %c0_i32_1 = arith.constant 0 : i32
    return %c0_i32, %c0_i32_0 : i32, i32
  }
  func.func @transform_4(%arg0: i32) -> (i32, i32) {
    %c0_i32 = arith.constant 0 : i32
    %c0_i32_0 = arith.constant 0 : i32
    %c0_i32_1 = arith.constant 0 : i32
    return %c0_i32, %c0_i32_0 : i32, i32
  }
  func.func @transform_5(%arg0: i32) -> (i32, i32) {
    %c0_i32 = arith.constant 0 : i32
    %c0_i32_0 = arith.constant 0 : i32
    return %arg0, %c0_i32 : i32, i32
  }
}

module attributes {stable_mosaic.version = 11 : i64} {
  func.func @_matmul_act_kernel(%arg0: i32, %arg1: i32, %arg2: memref<1x512x32xbf16, #tpu.memory_space<vmem>>, %arg3: memref<1x32x128xbf16, #tpu.memory_space<vmem>>, %arg4: memref<1x512x128xf32, #tpu.memory_space<vmem>>) attributes {dimension_semantics = [#tpu.dimension_semantics<parallel>, #tpu.dimension_semantics<parallel>], iteration_bounds = array<i64: 4, 4>, scalar_prefetch = 0 : i64, scratch_operands = 0 : i64, tpu.core_type = #tpu.core_type<tc>, window_params = [{transform_indices = @transform_0, window_bounds = array<i64: 1, 512, 32>}, {transform_indices = @transform_1, window_bounds = array<i64: 1, 32, 128>}, {transform_indices = @transform_2, window_bounds = array<i64: 1, 512, 128>}]} {
    %c0 = arith.constant 0 : index
    %c0_0 = arith.constant 0 : index
    %c0_1 = arith.constant 0 : index
    %0 = vector.load %arg2[%c0, %c0_0, %c0_1] : memref<1x512x32xbf16, #tpu.memory_space<vmem>>, vector<1x512x32xbf16>
    %1 = vector.shape_cast %0 : vector<1x512x32xbf16> to vector<512x32xbf16>
    %c0_2 = arith.constant 0 : index
    %c0_3 = arith.constant 0 : index
    %c0_4 = arith.constant 0 : index
    %2 = vector.load %arg3[%c0_2, %c0_3, %c0_4] : memref<1x32x128xbf16, #tpu.memory_space<vmem>>, vector<1x32x128xbf16>
    %3 = vector.shape_cast %2 : vector<1x32x128xbf16> to vector<32x128xbf16>
    %cst = arith.constant dense<0.000000e+00> : vector<512x128xf32>
    %4 = tpu.matmul %1, %3, %cst {dimension_numbers = #tpu.dot_dimension_numbers<[1], [0], [0], [1], [0, 0, 1, 1], [], []>} : vector<512x32xbf16>, vector<32x128xbf16>, vector<512x128xf32> -> vector<512x128xf32>
    %5 = math.tanh %4 : vector<512x128xf32>
    %c0_5 = arith.constant 0 : index
    %c0_6 = arith.constant 0 : index
    %c0_7 = arith.constant 0 : index
    %6 = vector.load %arg4[%c0_5, %c0_6, %c0_7] : memref<1x512x128xf32, #tpu.memory_space<vmem>>, vector<1x512x128xf32>
    %7 = vector.shape_cast %6 : vector<1x512x128xf32> to vector<512x128xf32>
    %8 = vector.shape_cast %5 : vector<512x128xf32> to vector<1x512x128xf32>
    tpu.vector_store %arg4[%c0_5, %c0_6, %c0_7], %8 {strides = array<i32>} : memref<1x512x128xf32, #tpu.memory_space<vmem>>, vector<1x512x128xf32>,
    return
  }
  func.func @transform_0(%arg0: i32, %arg1: i32) -> (i32, i32, i32) {
    %c0_i32 = arith.constant 0 : i32
    %c0_i32_0 = arith.constant 0 : i32
    return %arg0, %arg1, %c0_i32 : i32, i32, i32
  }
  func.func @transform_1(%arg0: i32, %arg1: i32) -> (i32, i32, i32) {
    %c0_i32 = arith.constant 0 : i32
    %c0_i32_0 = arith.constant 0 : i32
    %c0_i32_1 = arith.constant 0 : i32
    return %arg0, %c0_i32, %c0_i32_0 : i32, i32, i32
  }
  func.func @transform_2(%arg0: i32, %arg1: i32) -> (i32, i32, i32) {
    %c0_i32 = arith.constant 0 : i32
    %c0_i32_0 = arith.constant 0 : i32
    return %arg0, %arg1, %c0_i32 : i32, i32, i32
  }
}

</mosaic_0001>

<bundles_post_ra>
// kernel: generator_forward.14
= control target key start
LH: loop header
LB: loop body
LE: loop exit
PB: predicated region body
PF: predicated region fallthrough
CT: control target
= control target key end

     0   :  { %vm14_vm0 = vcmask 516096   ;;  %v81_v0 = vmov 0.0   ;;  %vm26_vm1 = vcmask 523264   ;;  %s133_s0 = inlined_call_operand.vmem [shape: bf16[32,64], index: 0, kind: input, shape index: {}]   ;;  %s134_s1 = inlined_call_operand.vmem [shape: f32[1,64], index: 1, kind: output, shape index: {0}]   ;;  %s135_s2 = inlined_call_operand.vmem [shape: f32[1,64], index: 2, kind: output, shape index: {1}]  }
   0x1   :  { %15 = vst.msk [vmem:[%s134_s1] sm:$0x1] %vm14_vm0, %v81_v0  ;;  %v72_v1 = vld [vmem:[%s133_s0] sm:$0xff]   ;;  %v79_v2 = vld [vmem:[%s133_s0 + $0x8] sm:$0xff]  }
   0x2   :  { %v73_v3 = vunpack.c.l.bf16 %v72_v1  ;;  %v74_v4 = vunpack.c.h.bf16 %v72_v1  ;;  %v77_v5 = vunpack.c.l.bf16 %v79_v2  ;;  %v78_v6 = vunpack.c.h.bf16 %v79_v2  ;;  %16 = vst.msk [vmem:[%s135_s2] sm:$0x1] %vm14_vm0, %v81_v0 }
   0x4   :  { %v27_v7 = vsel %vm26_vm1, %v73_v3, 0.0  ;;  %v28_v8 = vsel %vm26_vm1, %v74_v4, 0.0  ;;  %v30_v9 = vsel %vm26_vm1, %v77_v5, 0.0  ;;  %v44_v11 = vmul.f32 %v73_v3, %v73_v3 }
   0x5   :  { %v29_v10 = vadd.f32 %v28_v8, %v27_v7  ;;  %v45_v12 = vmul.f32 %v74_v4, %v74_v4  ;;  %v46_v13 = vmul.f32 %v77_v5, %v77_v5  ;;  %v32_v14 = vsel %vm26_vm1, %v78_v6, 0.0 }
   0x6   :  { %v47_v15 = vmul.f32 %v78_v6, %v78_v6  ;;  %v48_v17 = vsel %vm26_vm1, %v44_v11, 0.0 }
   0x7   :  { %v31_v16 = vadd.f32 %v30_v9, %v29_v10  ;;  %v49_v18 = vsel %vm26_vm1, %v45_v12, 0.0  ;;  %v51_v19 = vsel %vm26_vm1, %v46_v13, 0.0 }
   0x8   :  { %v50_v20 = vadd.f32 %v49_v18, %v48_v17  ;;  %v53_v22 = vsel %vm26_vm1, %v47_v15, 0.0  ;;  %v25_v33 = vld [vmem:[%s134_s1] sm:$0x1] }
   0x9   :  { %v33_v21 = vadd.f32 %v32_v14, %v31_v16  ;;  %v43_v38 = vld [vmem:[%s135_s2] sm:$0x1] }
   0xa   :  { %v52_v23 = vadd.f32 %v51_v19, %v50_v20 }
   0xb   :  { %v34_v24 = vrot.slane %v33_v21, 4 }
   0xc   :  { %v54_v25 = vadd.f32 %v53_v22, %v52_v23 }
   0xd   :  { %v35_v26 = vadd.f32 %v34_v24, %v33_v21 }
   0xe   :  { %v55_v27 = vrot.slane %v54_v25, 4 }
   0xf   :  { %v36_v28 = vrot.slane %v35_v26, 2 }
  0x10   :  { %v56_v29 = vadd.f32 %v55_v27, %v54_v25 }
  0x11   :  { %v37_v30 = vadd.f32 %v36_v28, %v35_v26 }
  0x12   :  { %v57_v31 = vrot.slane %v56_v29, 2 }
  0x13   :  { %v38_v32 = vrot.slane %v37_v30, 1 }
  0x14   :  { %v58_v34 = vadd.f32 %v57_v31, %v56_v29 }
  0x15   :  { %v39_v35 = vadd.f32 %v38_v32, %v37_v30 }
  0x16   :  { %v59_v36 = vrot.slane %v58_v34, 1 }
  0x17   :  { %v40_v37 = vadd.f32 %v39_v35, %v25_v33 }
  0x18   :  { %v60_v39 = vadd.f32 %v59_v36, %v58_v34 }
  0x19   :  { %42 = vst.msk [vmem:[%s134_s1] sm:$0x1] %vm14_vm0, %v40_v37 }
  0x1a   :  { %v61_v40 = vadd.f32 %v60_v39, %v43_v38 }
  0x1c   :  { %62 = vst.msk [vmem:[%s135_s2] sm:$0x1] %vm14_vm0, %v61_v40 }

// kernel: generator_forward.15
= control target key start
LH: loop header
LB: loop body
LE: loop exit
PB: predicated region body
PF: predicated region fallthrough
CT: control target
= control target key end

     0   :  { %10 = vsyncpa [#allocation3], 0  ;;  %s239_s0 = inlined_call_operand.vmem [shape: bf16[32,64], index: 0, kind: input, shape index: {}]   ;;  %s240_s1 = inlined_call_operand.vmem [shape: f32[1,64], index: 1, kind: input, shape index: {}]   ;;  %s241_s2 = inlined_call_operand.vmem [shape: f32[1,64], index: 2, kind: input, shape index: {}]   ;;  %s242_s3 = inlined_call_operand.hbm [shape: f32[1,64], index: 3, kind: input, shape index: {}]   ;;  %s243_s4 = inlined_call_operand.hbm [shape: f32[1,64], index: 4, kind: input, shape index: {}]   ;;  %s244_s5 = inlined_call_operand.vmem [shape: bf16[32,64], index: 5, kind: output, shape index: {}]  }
   0x1   :  { %s23_s20 = sshll.u32 %s242_s3, 4  ;;  %s24_s20 = int_to_ptr.hbm [resolvable:$true] %s23_s20 }
   0x2   :  { %11 = vsyncpa [#allocation5], 0  ;;  %s177_s21 = smov [#allocation2]   ;;  %s34_s25 = sshll.u32 %s243_s4, 4  ;;  %s35_s25 = int_to_ptr.hbm [resolvable:$true] %s34_s25 }
   0x3   :  { %s25_s22 = sshll.u32 %s177_s21, 4  ;;  %s178_s26 = smov [#allocation4]   ;;  %s26_s22 = int_to_ptr.vmem [resolvable:$true] %s25_s22 }
   0x4   :  { %28 = dma.hbm_to_vmem [thread:$0]  %s24_s20, 16, %s26_s22, [#allocation3]  }
   0x5   :  { %s36_s27 = sshll.u32 %s178_s26, 4  ;;  %s37_s27 = int_to_ptr.vmem [resolvable:$true] %s36_s27 }
   0x6   :  { %39 = dma.hbm_to_vmem [thread:$0]  %s35_s25, 16, %s37_s27, [#allocation5]  }
   0x7   :  { %173 = dma.done.wait [#allocation3], 16  }
   0x8   :  { %174 = vsyncadd [#allocation3], 4294967280 }
   0x9   :  { %175 = dma.done.wait [#allocation5], 16  }
   0xa   :  { %176 = vsyncadd [#allocation5], 4294967280  ;;  %v48_v0 = vld [vmem:[%s240_s1] sm:$0x1]  ;;  %v120_v16 = vld [vmem:[%s239_s0 + $0x8] sm:$0xff]   ;;  %vm101_vm3 = vcmask 519168  }
   0xb   :  { %v50_v1 = vld [vmem:[%s241_s2] sm:$0x1]  ;;  %v49_v2 = vmul.f32 0.03125, %v48_v0  ;;  %v118_v21 = vunpack.c.l.bf16 %v120_v16  ;;  %v68_v22 = vld [vmem:[#allocation4] sm:$0x1]  ;;  %v119_v23 = vunpack.c.h.bf16 %v120_v16 }
   0xc   :  { %v51_v3 = vmul.f32 0.03125, %v50_v1  ;;  %v55_v13 = vld [vmem:[#allocation2] sm:$0x1] }
   0xd   :  { %v52_v4 = vmul.f32 %v49_v2, %v49_v2  ;;  %v113_v15 = vld [vmem:[%s239_s0] sm:$0xff]  }
   0xe   :  { %v114_v19 = vunpack.c.l.bf16 %v113_v15  ;;  %v115_v20 = vunpack.c.h.bf16 %v113_v15 }
   0xf   :  { %v53_v5 = vsub.f32 %v51_v3, %v52_v4 }
  0x11   :  { %v54_v6 = vmax.f32 %v53_v5, 0.0 }
  0x13   :  { %v56_v7 = vadd.f32 1e-05, %v54_v6 }
  0x15   :  { %123 = vrsqrt.f32 %v56_v7  ;;  %vm63_vm0 = vweird.f32 %v56_v7 }
  0x1b   :  { %v124_v8 = vpop.eup %123 }
  0x1c   :  { %v58_v9 = vmul.f32 %v124_v8, %v56_v7  ;;  %vm64_vm1 = vweird.f32 %v124_v8 }
  0x1d   :  { %vm65_vm2 = vmor %vm63_vm0, %vm64_vm1 }
  0x1e   :  { %v59_v10 = vmul.f32 %v124_v8, %v58_v9 }
  0x20   :  { %v60_v11 = vmul.f32 0.5, %v59_v10 }
  0x22   :  { %v61_v12 = vsub.f32 1.5, %v60_v11 }
  0x24   :  { %v62_v14 = vmul.f32 %v124_v8, %v61_v12 }
  0x26   :  { %v66_v17 = vsel %vm65_vm2, %v124_v8, %v62_v14 }
  0x27   :  { %v67_v18 = vmul.f32 %v66_v17, %v55_v13 }
  0x29   :  { %v69_v24 = vmul.f32 %v67_v18, %v49_v2  ;;  %v80_v25 = vperm.slane %v67_v18, 0 }
  0x2b   :  { %v70_v26 = vsub.f32 %v68_v22, %v69_v24  ;;  %v82_v27 = vmul.f32 %v114_v19, %v80_v25  ;;  %v83_v28 = vmul.f32 %v115_v20, %v80_v25  ;;  %v84_v29 = vmul.f32 %v118_v21, %v80_v25 }
  0x2c   :  { %v85_v30 = vmul.f32 %v119_v23, %v80_v25 }
  0x2d   :  { %v87_v31 = vperm.slane %v70_v26, 0 }
  0x2f   :  { %v89_v32 = vadd.f32 %v87_v31, %v82_v27  ;;  %v90_v33 = vadd.f32 %v87_v31, %v83_v28  ;;  %v91_v34 = vadd.f32 %v87_v31, %v84_v29  ;;  %v92_v35 = vadd.f32 %v87_v31, %v85_v30 }
  0x31   :  { %v93_v36 = vmax.f32 %v89_v32, 0.0  ;;  %v94_v37 = vmax.f32 %v90_v33, 0.0  ;;  %v95_v38 = vmax.f32 %v91_v34, 0.0  ;;  %v96_v39 = vmax.f32 %v92_v35, 0.0 }
  0x33   :  { %v97_v40 = vpack.c.bf16 %v93_v36, %v93_v36  ;;  %v98_v41 = vpack.c.bf16 %v94_v37, %v94_v37  ;;  %v99_v42 = vpack.c.bf16 %v95_v38, %v95_v38  ;;  %v100_v43 = vpack.c.bf16 %v96_v39, %v96_v39 }
  0x35   :  { %102 = vst.msk [vmem:[%s244_s5] sm:$0xf] %vm101_vm3, %v97_v40 }
  0x36   :  { %103 = vst.msk [vmem:[%s244_s5 + $0x4] sm:$0xf] %vm101_vm3, %v98_v41 }
  0x37   :  { %104 = vst.msk [vmem:[%s244_s5 + $0x8] sm:$0xf] %vm101_vm3, %v99_v42 }
  0x38   :  { %105 = vst.msk [vmem:[%s244_s5 + $0xc] sm:$0xf] %vm101_vm3, %v100_v43 }
  0x39   :  { %110 = vsyncpa [#allocation3], 1 }
  0x3a   :  { %111 = vsyncpa [#allocation5], 1 }

// kernel: generator_forward.13
= control target key start
LH: loop header
LB: loop body
LE: loop exit
PB: predicated region body
PF: predicated region fallthrough
CT: control target
= control target key end

     0   :  { %vm61_vm0 = vcmask 130048   ;;  %s315_s1 = inlined_call_operand.vmem [shape: bf16[1,16,1024], index: 1, kind: input, shape index: {}]   ;;  %s316_s0 = inlined_call_operand.vmem [shape: bf16[1,8,16], index: 0, kind: input, shape index: {}]   ;;  %s317_s2 = inlined_call_operand.vmem [shape: bf16[1,8,1024], index: 2, kind: output, shape index: {}]  }
   0x1   :  { %v183_v0 = vld [vmem:[%s315_s1] sm:$0xf]  ;;  %v221_v2 = vld [vmem:[%s315_s1 + $0x4] sm:$0xf]  ;;  %v191_v5 = vld [vmem:[%s315_s1 + $0x8] sm:$0xf] }
   0x2   :  { %v225_v1 = vld [vmem:[%s315_s1 + $0x1c] sm:$0xf0]  ;;  %v185_v4 = vld [vmem:[%s315_s1 + $0x20] sm:$0xf0]  ;;  %v226_v6 = vld [vmem:[%s315_s1 + $0x24] sm:$0xf0] }
   0x3   :  { %v184_v3 = vor.u32 %v225_v1, %v183_v0  ;;  %v188_v7 = vor.u32 %v221_v2, %v185_v4  ;;  %v192_v8 = vor.u32 %v226_v6, %v191_v5  ;;  %v222_v9 = vld [vmem:[%s315_s1 + $0xc] sm:$0xf]  ;;  %v12_v11 = vld [vmem:[%s316_s0] sm:$0xf]  ;;  %v207_v13 = vld [vmem:[%s315_s1 + $0x18] sm:$0xf] }
   0x4   :  { %v193_v10 = vld [vmem:[%s315_s1 + $0x28] sm:$0xf0]  ;;  %v228_v14 = vld [vmem:[%s315_s1 + $0x34] sm:$0xf0]  ;;  %v224_v15 = vld [vmem:[%s315_s1 + $0x1c] sm:$0xf] }
   0x5   :  { %72 = vmatpush.bf16.msra.mxu0 %v184_v3  ;;  %v196_v12 = vor.u32 %v222_v9, %v193_v10  ;;  %85 = vmatpush.bf16.msra.mxu1 %v188_v7  ;;  %v208_v16 = vor.u32 %v228_v14, %v207_v13  ;;  %v209_v17 = vld [vmem:[%s315_s1 + $0x38] sm:$0xf0]  ;;  %v199_v18 = vld [vmem:[%s315_s1 + $0x10] sm:$0xf]  ;;  %v223_v22 = vld [vmem:[%s315_s1 + $0x14] sm:$0xf] }
   0x6   :  { %98 = vmatpush.bf16.msra.mxu2 %v192_v8  ;;  %v227_v19 = vld [vmem:[%s315_s1 + $0x2c] sm:$0xf0]  ;;  %v212_v20 = vor.u32 %v224_v15, %v209_v17  ;;  %v201_v23 = vld [vmem:[%s315_s1 + $0x30] sm:$0xf0] }
   0x7   :  { %111 = vmatpush.bf16.msra.mxu3 %v196_v12  ;;  %v200_v21 = vor.u32 %v227_v19, %v199_v18  ;;  %v204_v24 = vor.u32 %v223_v22, %v201_v23 }
   0x8   :  { %213 = vmatmul.msk.bf16.vlgmr.msra.gmra.mxu0 %vm61_vm0, %v12_v11  ;;  %214 = vmatmul.msk.bf16.vlgmr.msra.gmra.mxu1 %vm61_vm0, %v12_v11 }
   0x9   :  { %215 = vmatmul.msk.bf16.vlgmr.msra.gmra.mxu2 %vm61_vm0, %v12_v11  ;;  %124 = vmatpush.bf16.msrb.mxu0 %v200_v21 }
   0xa   :  { %150 = vmatpush.bf16.msrb.mxu2 %v208_v16  ;;  %216 = vmatmul.msk.bf16.vlgmr.msra.gmra.mxu3 %vm61_vm0, %v12_v11 }
   0xb   :  { %163 = vmatpush.bf16.msrb.mxu3 %v212_v20  ;;  %137 = vmatpush.bf16.msrb.mxu1 %v204_v24 }
  0x18   :  { %217 = vmatmul.msk.bf16.vlgmr.msrb.gmra.mxu0 %vm61_vm0, %v12_v11  ;;  %218 = vmatmul.msk.bf16.vlgmr.msrb.gmra.mxu1 %vm61_vm0, %v12_v11 }
  0x19   :  { %219 = vmatmul.msk.bf16.vlgmr.msrb.gmra.mxu2 %vm61_vm0, %v12_v11 }
  0x1a   :  { %220 = vmatmul.msk.bf16.vlgmr.msrb.gmra.mxu3 %vm61_vm0, %v12_v11 }
  0x85   :  { %v74_v25 = vpop.f32.mrf.mxu0  ;;  %v87_v26 = vpop.f32.mrf.mxu1 }
  0x86   :  { %v169_v27 = vpack.c.bf16 %v87_v26, %v74_v25 }
  0x88   :  { %173 = vst [vmem:[%s317_s2] sm:$0xff] %v169_v27 }
  0x8c   :  { %v100_v28 = vpop.f32.mrf.mxu2 }
  0x8d   :  { %v113_v29 = vpop.f32.mrf.mxu3  ;;  %v76_v30 = vpop.f32.mrf.mxu0 }
  0x8e   :  { %v170_v31 = vpack.c.bf16 %v113_v29, %v100_v28  ;;  %v89_v32 = vpop.f32.mrf.mxu1 }
  0x90   :  { %174 = vst [vmem:[%s317_s2 + $0x8] sm:$0xff] %v170_v31 }
  0x94   :  { %v102_v33 = vpop.f32.mrf.mxu2 }
  0x95   :  { %v115_v34 = vpop.f32.mrf.mxu3  ;;  %v126_v35 = vpop.f32.mrf.mxu0 }
  0x96   :  { %v139_v36 = vpop.f32.mrf.mxu1 }
  0x97   :  { %v171_v37 = vpack.c.bf16 %v139_v36, %v126_v35 }
  0x99   :  { %175 = vst [vmem:[%s317_s2 + $0x10] sm:$0xff] %v171_v37 }
  0x9c   :  { %v152_v38 = vpop.f32.mrf.mxu2 }
  0x9d   :  { %v165_v39 = vpop.f32.mrf.mxu3  ;;  %v128_v40 = vpop.f32.mrf.mxu0 }
  0x9e   :  { %v172_v41 = vpack.c.bf16 %v165_v39, %v152_v38  ;;  %v141_v42 = vpop.f32.mrf.mxu1 }
  0xa0   :  { %176 = vst [vmem:[%s317_s2 + $0x18] sm:$0xff] %v172_v41 }
  0xa4   :  { %v154_v43 = vpop.f32.mrf.mxu2 }
  0xa5   :  { %v167_v44 = vpop.f32.mrf.mxu3 }

// kernel: generator_forward.16
= control target key start
LH: loop header
LB: loop body
LE: loop exit
PB: predicated region body
PF: predicated region fallthrough
CT: control target
= control target key end

     0   :  { %s712_s9 = smov 0   ;;  %s714_s10 = smov 0   ;;  %s771_s0 = inlined_call_operand.vmem [shape: bf16[4,32,256], index: 0, kind: input, shape index: {}]   ;;  %s772_s1 = inlined_call_operand.vmem [shape: bf16[4,256,128], index: 1, kind: input, shape index: {}]   ;;  %s773_s2 = inlined_call_operand.vmem [shape: bf16[4,32,128], index: 2, kind: output, shape index: {}]  }
   0x1   :  { %s716_s11 = smov 0  }
   0x2 LB: > { %s24_s12 = sadd.s32 1, %s691_s10  ;;  %p510_p0 = scmp.ge.s32.totalorder %s695_s11, 1  ;;  %s695_s11 = sphi %s716_s11, %s12_s11   ;;  %s691_s10 = sphi %s714_s10, %s775_s10   ;;  %s687_s9 = sphi %s712_s9, %s774_s9  }
   0x3   : > { %p26_p1 = scmp.ge.s32.totalorder %s24_s12, 4  ;;  %p144_p2 = scmp.lt.s32.totalorder %s695_s11, 5 }
   0x5   : > { %s777_s12 = smov (%p26_p1, %s24_s12), 0  ;;  %p145_p3 = pnand %p510_p0, %p144_p2 }
   0x6   : > { %p181_p4 = scmp.lt.s32.totalorder (!%p145_p3), %s687_s9, 3 }
   0x7   : > { %148 = sbr.rel (%p145_p3) target bundleno = 193 (0xc1), region = 28 }
   0xc   : > { %s779_s9 = smov (!%p181_p4, %s687_s9), 3 }
   0xd   : > { %s600_s13 = sshll.u32 %s779_s9, 7  ;;  %s599_s17 = sshll.u32 %s779_s9, 5 }
   0xe   : > { %s736_s16 = scalar_lea.vmem %s772_s1, %s600_s13  ;;  %s189_s20 = scalar_lea.vmem %s771_s0, %s599_s17 }
   0xf   : > { %v613_v0 = vld [vmem:[%s736_s16 + $0x38] sm:$0xff]  ;;  %v612_v2 = vld [vmem:[%s736_s16 + $0x30] sm:$0xff]  ;;  %v611_v4 = vld [vmem:[%s736_s16 + $0x28] sm:$0xff]  ;;  %s601_s21 = sshll.u32 %s779_s9, 4 }
  0x10   : > { %v621_v1 = vld [vmem:[%s736_s16 + $0x78] sm:$0xff]  ;;  %358 = vmatpush.bf16.msra.mxu0 %v613_v0  ;;  %633 = vmatpush.bf16.msra.mxu2 %v613_v0  ;;  %v620_v3 = vld [vmem:[%s736_s16 + $0x70] sm:$0xff]  ;;  %v619_v5 = vld [vmem:[%s736_s16 + $0x68] sm:$0xff]  ;;  %s204_s24 = scalar_lea.vmem %s773_s2, %s601_s21 }
  0x11   : > { %377 = vmatpush.bf16.msra.mxu1 %v621_v1  ;;  %641 = vmatpush.bf16.msra.mxu3 %v621_v1  ;;  %v610_v6 = vld [vmem:[%s736_s16 + $0x20] sm:$0xff]  ;;  %v609_v8 = vld [vmem:[%s736_s16 + $0x18] sm:$0xff]  ;;  %v608_v10 = vld [vmem:[%s736_s16 + $0x10] sm:$0xff] }
  0x12   : > { %v618_v7 = vld [vmem:[%s736_s16 + $0x60] sm:$0xff]  ;;  %v617_v9 = vld [vmem:[%s736_s16 + $0x58] sm:$0xff]  ;;  %v616_v11 = vld [vmem:[%s736_s16 + $0x50] sm:$0xff] }
  0x13   : > { %v607_v12 = vld [vmem:[%s736_s16 + $0x8] sm:$0xff]  ;;  %v606_v14 = vld [vmem:[%s736_s16] sm:$0xff]  ;;  %v527_v18 = vld [vmem:[%s189_s20 + $0x10] sm:$0xf] }
  0x14   : > { %359 = vmatpush.bf16.msra.mxu0 %v612_v2  ;;  %634 = vmatpush.bf16.msra.mxu2 %v612_v2  ;;  %v615_v13 = vld [vmem:[%s736_s16 + $0x48] sm:$0xff]  ;;  %v614_v15 = vld [vmem:[%s736_s16 + $0x40] sm:$0xff]  ;;  %v605_v19 = vld [vmem:[%s189_s20 + $0x14] sm:$0xf0] }
  0x15   : > { %378 = vmatpush.bf16.msra.mxu1 %v620_v3  ;;  %642 = vmatpush.bf16.msra.mxu3 %v620_v3  ;;  %v519_v16 = vld [vmem:[%s189_s20] sm:$0xf]  ;;  %v603_v17 = vld [vmem:[%s189_s20 + $0x4] sm:$0xf0]  ;;  %v602_v20 = vld [vmem:[%s189_s20 + $0x4] sm:$0xf]  ;;  %v528_v25 = vor.u32 %v605_v19, %v527_v18 }
  0x16   : > { %v521_v21 = vld [vmem:[%s189_s20 + $0x8] sm:$0xf0]  ;;  %v604_v22 = vld [vmem:[%s189_s20 + $0x14] sm:$0xf]  ;;  %v529_v23 = vld [vmem:[%s189_s20 + $0x18] sm:$0xf0]  ;;  %v520_v24 = vor.u32 %v603_v17, %v519_v16 }
  0x17   : > { %v524_v26 = vor.u32 %v602_v20, %v521_v21  ;;  %v532_v27 = vor.u32 %v604_v22, %v529_v23 }
  0x18   : > { %360 = vmatpush.bf16.msra.mxu0 %v611_v4  ;;  %635 = vmatpush.bf16.msra.mxu2 %v611_v4 }
  0x19   : > { %379 = vmatpush.bf16.msra.mxu1 %v619_v5  ;;  %643 = vmatpush.bf16.msra.mxu3 %v619_v5 }
  0x1c   : > { %361 = vmatpush.bf16.msra.mxu0 %v610_v6  ;;  %636 = vmatpush.bf16.msra.mxu2 %v610_v6 }
  0x1d   : > { %380 = vmatpush.bf16.msra.mxu1 %v618_v7  ;;  %644 = vmatpush.bf16.msra.mxu3 %v618_v7 }
  0x20   : > { %362 = vmatpush.bf16.msra.mxu0 %v609_v8  ;;  %637 = vmatpush.bf16.msra.mxu2 %v609_v8 }
  0x21   : > { %381 = vmatpush.bf16.msra.mxu1 %v617_v9  ;;  %645 = vmatpush.bf16.msra.mxu3 %v617_v9 }
  0x24   : > { %363 = vmatpush.bf16.msra.mxu0 %v608_v10  ;;  %638 = vmatpush.bf16.msra.mxu2 %v608_v10 }
  0x25   : > { %382 = vmatpush.bf16.msra.mxu1 %v616_v11  ;;  %646 = vmatpush.bf16.msra.mxu3 %v616_v11 }
  0x28   : > { %364 = vmatpush.bf16.msra.mxu0 %v607_v12  ;;  %639 = vmatpush.bf16.msra.mxu2 %v607_v12 }
  0x29   : > { %383 = vmatpush.bf16.msra.mxu1 %v615_v13  ;;  %647 = vmatpush.bf16.msra.mxu3 %v615_v13 }
  0x2c   : > { %365 = vmatpush.bf16.msra.mxu0 %v606_v14  ;;  %640 = vmatpush.bf16.msra.mxu2 %v606_v14 }
  0x2d   : > { %384 = vmatpush.bf16.msra.mxu1 %v614_v15  ;;  %648 = vmatpush.bf16.msra.mxu3 %v614_v15 }
  0x2f   : > { %366 = vmatmul.bf16.vlgmr.msra.gmra.mxu0 %v520_v24  ;;  %371 = vmatmul.bf16.vlgmr.msra.gmra.mxu2 %v528_v25 }
  0x30   : > { %385 = vmatmul.bf16.vlgmr.msra.gmra.mxu1 %v524_v26  ;;  %390 = vmatmul.bf16.vlgmr.msra.gmra.mxu3 %v532_v27 }
  0xac   : > { %v367_v28 = vpop.f32.mrf.mxu0 }
  0xad   : > { %v386_v29 = vpop.f32.mrf.mxu1 }
  0xae   : > { %v387_v34 = vadd.f32 %v386_v29, %v367_v28 }
  0xb2   : > { %v372_v30 = vpop.f32.mrf.mxu2 }
  0xb3   : > { %v391_v31 = vpop.f32.mrf.mxu3 }
  0xb4   : > { %v369_v32 = vpop.f32.mrf.mxu0  ;;  %v392_v39 = vadd.f32 %v391_v31, %v372_v30 }
  0xb5   : > { %v388_v33 = vpop.f32.mrf.mxu1 }
  0xb6   : > { %v389_v35 = vadd.f32 %v388_v33, %v369_v32 }
  0xb8   : > { %v625_v36 = vpack.c.bf16 %v389_v35, %v387_v34 }
  0xba   : > { %626 = vst [vmem:[%s204_s24] sm:$0xff] %v625_v36   ;;  %v374_v37 = vpop.f32.mrf.mxu2 }
  0xbb   : > { %v393_v38 = vpop.f32.mrf.mxu3 }
  0xbc   : > { %v394_v40 = vadd.f32 %v393_v38, %v374_v37 }
  0xbe   : > { %v630_v41 = vpack.c.bf16 %v394_v40, %v392_v39 }
  0xc0   : > { %632 = vst [vmem:[%s204_s24 + $0x8] sm:$0xff] %v630_v41  }
  0xc1 PF: > { %s12_s11 = sadd.s32 1, %s695_s11   ;;  %s774_s9 = smov %s691_s10 }
  0xc2   : > { %p9_p5 = scmp.ge.s32.totalorder %s12_s11, 6   ;;  %s775_s10 = smov %s777_s12 }
  0xc4   :  { %11 = sbr.rel (!%p9_p5) target bundleno = 2 (0x2), region = 61 }

// kernel: generator_forward.17
= control target key start
LH: loop header
LB: loop body
LE: loop exit
PB: predicated region body
PF: predicated region fallthrough
CT: control target
= control target key end

     0   :  { %vm14_vm0 = vcmask 253952   ;;  %v195_v0 = vmov 0.0   ;;  %vm50_vm1 = vcmask 261120   ;;  %s289_s0 = inlined_call_operand.vmem [shape: bf16[128,32], index: 0, kind: input, shape index: {}]   ;;  %s290_s1 = inlined_call_operand.vmem [shape: f32[1,32], index: 1, kind: output, shape index: {0}]   ;;  %s291_s2 = inlined_call_operand.vmem [shape: f32[1,32], index: 2, kind: output, shape index: {1}]  }
   0x1   :  { %15 = vst.msk [vmem:[%s290_s1] sm:$0x1] %vm14_vm0, %v195_v0  ;;  %v156_v1 = vld [vmem:[%s289_s0] sm:$0xff]   ;;  %v187_v2 = vld [vmem:[%s289_s0 + $0x8] sm:$0xff]   ;;  %v188_v6 = vld [vmem:[%s289_s0 + $0x10] sm:$0xff]  }
   0x2   :  { %16 = vst.msk [vmem:[%s291_s2] sm:$0x1] %vm14_vm0, %v195_v0  ;;  %v157_v3 = vunpack.c.l.bf16 %v156_v1  ;;  %v158_v4 = vunpack.c.h.bf16 %v156_v1  ;;  %v161_v5 = vunpack.c.l.bf16 %v187_v2  ;;  %v162_v7 = vunpack.c.h.bf16 %v187_v2  ;;  %v189_v14 = vld [vmem:[%s289_s0 + $0x18] sm:$0xff]   ;;  %v190_v24 = vld [vmem:[%s289_s0 + $0x20] sm:$0xff]   ;;  %v191_v37 = vld [vmem:[%s289_s0 + $0x28] sm:$0xff]  }
   0x3   :  { %v165_v12 = vunpack.c.l.bf16 %v188_v6  ;;  %v166_v16 = vunpack.c.h.bf16 %v188_v6  ;;  %v169_v22 = vunpack.c.l.bf16 %v189_v14  ;;  %v170_v27 = vunpack.c.h.bf16 %v189_v14  ;;  %v192_v50 = vld [vmem:[%s289_s0 + $0x30] sm:$0xff]   ;;  %v193_v63 = vld [vmem:[%s289_s0 + $0x38] sm:$0xff]  }
   0x4   :  { %v51_v8 = vsel %vm50_vm1, %v157_v3, 0.0  ;;  %v52_v9 = vsel %vm50_vm1, %v158_v4, 0.0  ;;  %v54_v10 = vsel %vm50_vm1, %v161_v5, 0.0  ;;  %v56_v13 = vsel %vm50_vm1, %v162_v7, 0.0 }
   0x5   :  { %v53_v11 = vadd.f32 %v52_v9, %v51_v8  ;;  %v58_v17 = vsel %vm50_vm1, %v165_v12, 0.0  ;;  %v92_v19 = vmul.f32 %v157_v3, %v157_v3  ;;  %v93_v20 = vmul.f32 %v158_v4, %v158_v4 }
   0x6   :  { %v94_v21 = vmul.f32 %v161_v5, %v161_v5  ;;  %v60_v23 = vsel %vm50_vm1, %v166_v16, 0.0  ;;  %v95_v26 = vmul.f32 %v162_v7, %v162_v7  ;;  %v62_v28 = vsel %vm50_vm1, %v169_v22, 0.0 }
   0x7   :  { %v55_v15 = vadd.f32 %v54_v10, %v53_v11  ;;  %v96_v29 = vmul.f32 %v165_v12, %v165_v12  ;;  %v108_v31 = vsel %vm50_vm1, %v92_v19, 0.0  ;;  %v109_v32 = vsel %vm50_vm1, %v93_v20, 0.0 }
   0x8   :  { %v111_v33 = vsel %vm50_vm1, %v94_v21, 0.0  ;;  %v173_v34 = vunpack.c.l.bf16 %v190_v24  ;;  %v64_v35 = vsel %vm50_vm1, %v170_v27, 0.0  ;;  %v110_v36 = vadd.f32 %v109_v32, %v108_v31 }
   0x9   :  { %v57_v18 = vadd.f32 %v56_v13, %v55_v15  ;;  %v97_v39 = vmul.f32 %v166_v16, %v166_v16  ;;  %v113_v40 = vsel %vm50_vm1, %v95_v26, 0.0  ;;  %v174_v41 = vunpack.c.h.bf16 %v190_v24 }
   0xa   :  { %v66_v42 = vsel %vm50_vm1, %v173_v34, 0.0  ;;  %v112_v43 = vadd.f32 %v111_v33, %v110_v36  ;;  %v98_v45 = vmul.f32 %v169_v22, %v169_v22  ;;  %v115_v46 = vsel %vm50_vm1, %v96_v29, 0.0 }
   0xb   :  { %v59_v25 = vadd.f32 %v58_v17, %v57_v18  ;;  %v177_v47 = vunpack.c.l.bf16 %v191_v37  ;;  %v68_v48 = vsel %vm50_vm1, %v174_v41, 0.0  ;;  %v99_v52 = vmul.f32 %v170_v27, %v170_v27 }
   0xc   :  { %v114_v49 = vadd.f32 %v113_v40, %v112_v43  ;;  %v117_v53 = vsel %vm50_vm1, %v97_v39, 0.0  ;;  %v178_v54 = vunpack.c.h.bf16 %v191_v37  ;;  %v100_v58 = vmul.f32 %v173_v34, %v173_v34 }
   0xd   :  { %v61_v30 = vadd.f32 %v60_v23, %v59_v25  ;;  %v70_v55 = vsel %vm50_vm1, %v177_v47, 0.0  ;;  %v119_v59 = vsel %vm50_vm1, %v98_v45, 0.0  ;;  %v181_v60 = vunpack.c.l.bf16 %v192_v50 }
   0xe   :  { %v116_v56 = vadd.f32 %v115_v46, %v114_v49  ;;  %v72_v61 = vsel %vm50_vm1, %v178_v54, 0.0  ;;  %v101_v1 = vmul.f32 %v174_v41, %v174_v41  ;;  %v121_v2 = vsel %vm50_vm1, %v99_v52, 0.0  ;;  %v91_v52 = vld [vmem:[%s291_s2] sm:$0x1] }
   0xf   :  { %v63_v38 = vadd.f32 %v62_v28, %v61_v30  ;;  %v182_v3 = vunpack.c.h.bf16 %v192_v50  ;;  %v74_v4 = vsel %vm50_vm1, %v181_v60, 0.0  ;;  %v102_v7 = vmul.f32 %v177_v47, %v177_v47 }
  0x10   :  { %v118_v62 = vadd.f32 %v117_v53, %v116_v56  ;;  %v123_v8 = vsel %vm50_vm1, %v100_v58, 0.0  ;;  %v185_v9 = vunpack.c.l.bf16 %v193_v63  ;;  %v103_v13 = vmul.f32 %v178_v54, %v178_v54 }
  0x11   :  { %v65_v44 = vadd.f32 %v64_v35, %v63_v38  ;;  %v76_v10 = vsel %vm50_vm1, %v182_v3, 0.0  ;;  %v125_v14 = vsel %vm50_vm1, %v101_v1, 0.0  ;;  %v186_v15 = vunpack.c.h.bf16 %v193_v63 }
  0x12   :  { %v120_v5 = vadd.f32 %v119_v59, %v118_v62  ;;  %v78_v16 = vsel %vm50_vm1, %v185_v9, 0.0  ;;  %v104_v19 = vmul.f32 %v181_v60, %v181_v60  ;;  %v127_v20 = vsel %vm50_vm1, %v102_v7, 0.0 }
  0x13   :  { %v67_v51 = vadd.f32 %v66_v42, %v65_v44  ;;  %v80_v21 = vsel %vm50_vm1, %v186_v15, 0.0  ;;  %v105_v24 = vmul.f32 %v182_v3, %v182_v3  ;;  %v129_v25 = vsel %vm50_vm1, %v103_v13, 0.0  ;;  %v49_v44 = vld [vmem:[%s290_s1] sm:$0x1] }
  0x14   :  { %v122_v11 = vadd.f32 %v121_v2, %v120_v5  ;;  %v106_v28 = vmul.f32 %v185_v9, %v185_v9  ;;  %v131_v29 = vsel %vm50_vm1, %v104_v19, 0.0  ;;  %v107_v32 = vmul.f32 %v186_v15, %v186_v15 }
  0x15   :  { %v69_v57 = vadd.f32 %v68_v48, %v67_v51  ;;  %v133_v33 = vsel %vm50_vm1, %v105_v24, 0.0 }
  0x16   :  { %v124_v17 = vadd.f32 %v123_v8, %v122_v11  ;;  %v135_v36 = vsel %vm50_vm1, %v106_v28, 0.0  ;;  %v137_v39 = vsel %vm50_vm1, %v107_v32, 0.0 }
  0x17   :  { %v71_v0 = vadd.f32 %v70_v55, %v69_v57 }
  0x18   :  { %v126_v22 = vadd.f32 %v125_v14, %v124_v17 }
  0x19   :  { %v73_v6 = vadd.f32 %v72_v61, %v71_v0 }
  0x1a   :  { %v128_v26 = vadd.f32 %v127_v20, %v126_v22 }
  0x1b   :  { %v75_v12 = vadd.f32 %v74_v4, %v73_v6 }
  0x1c   :  { %v130_v30 = vadd.f32 %v129_v25, %v128_v26 }
  0x1d   :  { %v77_v18 = vadd.f32 %v76_v10, %v75_v12 }
  0x1e   :  { %v132_v34 = vadd.f32 %v131_v29, %v130_v30 }
  0x1f   :  { %v79_v23 = vadd.f32 %v78_v16, %v77_v18 }
  0x20   :  { %v134_v37 = vadd.f32 %v133_v33, %v132_v34 }
  0x21   :  { %v81_v27 = vadd.f32 %v80_v21, %v79_v23 }
  0x22   :  { %v136_v40 = vadd.f32 %v135_v36, %v134_v37 }
  0x23   :  { %v82_v31 = vrot.slane %v81_v27, 4 }
  0x24   :  { %v138_v42 = vadd.f32 %v137_v39, %v136_v40 }
  0x25   :  { %v83_v35 = vadd.f32 %v82_v31, %v81_v27 }
  0x26   :  { %v139_v45 = vrot.slane %v138_v42, 4 }
  0x27   :  { %v84_v38 = vrot.slane %v83_v35, 2 }
  0x28   :  { %v140_v47 = vadd.f32 %v139_v45, %v138_v42 }
  0x29   :  { %v85_v41 = vadd.f32 %v84_v38, %v83_v35 }
  0x2a   :  { %v141_v49 = vrot.slane %v140_v47, 2 }
  0x2b   :  { %v86_v43 = vrot.slane %v85_v41, 1 }
  0x2c   :  { %v142_v50 = vadd.f32 %v141_v49, %v140_v47 }
  0x2d   :  { %v87_v46 = vadd.f32 %v86_v43, %v85_v41 }
  0x2e   :  { %v143_v51 = vrot.slane %v142_v50, 1 }
  0x2f   :  { %v88_v48 = vadd.f32 %v87_v46, %v49_v44 }
  0x30   :  { %v144_v53 = vadd.f32 %v143_v51, %v142_v50 }
  0x31   :  { %90 = vst.msk [vmem:[%s290_s1] sm:$0x1] %vm14_vm0, %v88_v48 }
  0x32   :  { %v145_v54 = vadd.f32 %v144_v53, %v91_v52 }
  0x34   :  { %146 = vst.msk [vmem:[%s291_s2] sm:$0x1] %vm14_vm0, %v145_v54 }

// kernel: generator_forward.18
= control target key start
LH: loop header
LB: loop body
LE: loop exit
PB: predicated region body
PF: predicated region fallthrough
CT: control target
= control target key end

     0   :  { %vm145_vm3 = vcmask 257024   ;;  %s337_s1 = inlined_call_operand.vmem [shape: f32[1,32], index: 1, kind: input, shape index: {}]   ;;  %s338_s2 = inlined_call_operand.vmem [shape: f32[1,32], index: 2, kind: input, shape index: {}]   ;;  %s339_s0 = inlined_call_operand.vmem [shape: bf16[128,32], index: 0, kind: input, shape index: {}]   ;;  %s340_s3 = inlined_call_operand.vmem [shape: f32[1,32], index: 3, kind: input, shape index: {}]   ;;  %s341_s4 = inlined_call_operand.vmem [shape: f32[1,32], index: 4, kind: input, shape index: {}]   ;;  %s342_s5 = inlined_call_operand.vmem [shape: bf16[128,32], index: 5, kind: output, shape index: {}]  }
   0x1   :  { %v20_v0 = vld [vmem:[%s337_s1] sm:$0x1]  ;;  %v198_v16 = vld [vmem:[%s339_s0 + $0x8] sm:$0xff]   ;;  %v199_v17 = vld [vmem:[%s339_s0 + $0x10] sm:$0xff]  }
   0x2   :  { %v22_v1 = vld [vmem:[%s338_s2] sm:$0x1]  ;;  %v21_v2 = vmul.f32 0.0078125, %v20_v0  ;;  %v200_v18 = vld [vmem:[%s339_s0 + $0x18] sm:$0xff]   ;;  %v172_v24 = vunpack.c.l.bf16 %v198_v16  ;;  %v173_v25 = vunpack.c.h.bf16 %v198_v16  ;;  %v202_v26 = vld [vmem:[%s339_s0 + $0x28] sm:$0xff]   ;;  %v176_v29 = vunpack.c.l.bf16 %v199_v17 }
   0x3   :  { %v23_v3 = vmul.f32 0.0078125, %v22_v1  ;;  %v167_v13 = vld [vmem:[%s339_s0] sm:$0xff]   ;;  %v203_v27 = vld [vmem:[%s339_s0 + $0x30] sm:$0xff]   ;;  %v177_v30 = vunpack.c.h.bf16 %v199_v17  ;;  %v180_v31 = vunpack.c.l.bf16 %v200_v18  ;;  %v181_v32 = vunpack.c.h.bf16 %v200_v18  ;;  %v204_v41 = vld [vmem:[%s339_s0 + $0x38] sm:$0xff]  }
   0x4   :  { %v24_v4 = vmul.f32 %v21_v2, %v21_v2  ;;  %v27_v14 = vld [vmem:[%s340_s3] sm:$0x1]  ;;  %v168_v20 = vunpack.c.l.bf16 %v167_v13  ;;  %v169_v23 = vunpack.c.h.bf16 %v167_v13  ;;  %v188_v37 = vunpack.c.l.bf16 %v202_v26 }
   0x5   :  { %v201_v21 = vld [vmem:[%s339_s0 + $0x20] sm:$0xff]   ;;  %v189_v38 = vunpack.c.h.bf16 %v202_v26  ;;  %v192_v39 = vunpack.c.l.bf16 %v203_v27  ;;  %v193_v40 = vunpack.c.h.bf16 %v203_v27  ;;  %v196_v52 = vunpack.c.l.bf16 %v204_v41 }
   0x6   :  { %v25_v5 = vsub.f32 %v23_v3, %v24_v4  ;;  %v40_v28 = vld [vmem:[%s341_s4] sm:$0x1]  ;;  %v184_v35 = vunpack.c.l.bf16 %v201_v21  ;;  %v185_v36 = vunpack.c.h.bf16 %v201_v21  ;;  %v197_v53 = vunpack.c.h.bf16 %v204_v41 }
   0x8   :  { %v26_v6 = vmax.f32 %v25_v5, 0.0 }
   0xa   :  { %v28_v7 = vadd.f32 1e-05, %v26_v6 }
   0xc   :  { %205 = vrsqrt.f32 %v28_v7  ;;  %vm35_vm0 = vweird.f32 %v28_v7 }
  0x12   :  { %v206_v8 = vpop.eup %205 }
  0x13   :  { %v30_v9 = vmul.f32 %v206_v8, %v28_v7  ;;  %vm36_vm1 = vweird.f32 %v206_v8 }
  0x14   :  { %vm37_vm2 = vmor %vm35_vm0, %vm36_vm1 }
  0x15   :  { %v31_v10 = vmul.f32 %v206_v8, %v30_v9 }
  0x17   :  { %v32_v11 = vmul.f32 0.5, %v31_v10 }
  0x19   :  { %v33_v12 = vsub.f32 1.5, %v32_v11 }
  0x1b   :  { %v34_v15 = vmul.f32 %v206_v8, %v33_v12 }
  0x1d   :  { %v38_v19 = vsel %vm37_vm2, %v206_v8, %v34_v15 }
  0x1e   :  { %v39_v22 = vmul.f32 %v38_v19, %v27_v14 }
  0x20   :  { %v41_v33 = vmul.f32 %v39_v22, %v21_v2  ;;  %v76_v34 = vperm.slane %v39_v22, 0 }
  0x22   :  { %v42_v42 = vsub.f32 %v40_v28, %v41_v33  ;;  %v78_v43 = vmul.f32 %v168_v20, %v76_v34  ;;  %v79_v44 = vmul.f32 %v169_v23, %v76_v34  ;;  %v80_v45 = vmul.f32 %v172_v24, %v76_v34 }
  0x23   :  { %v81_v46 = vmul.f32 %v173_v25, %v76_v34  ;;  %v82_v47 = vmul.f32 %v176_v29, %v76_v34  ;;  %v83_v48 = vmul.f32 %v177_v30, %v76_v34  ;;  %v84_v49 = vmul.f32 %v180_v31, %v76_v34 }
  0x24   :  { %v95_v50 = vperm.slane %v42_v42, 0  ;;  %v85_v51 = vmul.f32 %v181_v32, %v76_v34  ;;  %v86_v54 = vmul.f32 %v184_v35, %v76_v34  ;;  %v87_v55 = vmul.f32 %v185_v36, %v76_v34 }
  0x25   :  { %v88_v56 = vmul.f32 %v188_v37, %v76_v34  ;;  %v89_v57 = vmul.f32 %v189_v38, %v76_v34  ;;  %v90_v8 = vmul.f32 %v192_v39, %v76_v34  ;;  %v91_v9 = vmul.f32 %v193_v40, %v76_v34 }
  0x26   :  { %v97_v58 = vadd.f32 %v95_v50, %v78_v43  ;;  %v98_v59 = vadd.f32 %v95_v50, %v79_v44  ;;  %v99_v60 = vadd.f32 %v95_v50, %v80_v45  ;;  %v100_v61 = vadd.f32 %v95_v50, %v81_v46 }
  0x27   :  { %v101_v62 = vadd.f32 %v95_v50, %v82_v47  ;;  %v102_v63 = vadd.f32 %v95_v50, %v83_v48  ;;  %v103_v0 = vadd.f32 %v95_v50, %v84_v49  ;;  %v104_v1 = vadd.f32 %v95_v50, %v85_v51 }
  0x28   :  { %v113_v2 = vmax.f32 %v97_v58, 0.0  ;;  %v114_v3 = vmax.f32 %v98_v59, 0.0  ;;  %v115_v4 = vmax.f32 %v99_v60, 0.0  ;;  %v116_v5 = vmax.f32 %v100_v61, 0.0 }
  0x29   :  { %v117_v6 = vmax.f32 %v101_v62, 0.0  ;;  %v118_v7 = vmax.f32 %v102_v63, 0.0  ;;  %v119_v13 = vmax.f32 %v103_v0, 0.0  ;;  %v120_v17 = vmax.f32 %v104_v1, 0.0 }
  0x2a   :  { %v129_v10 = vpack.c.bf16 %v113_v2, %v113_v2  ;;  %v130_v11 = vpack.c.bf16 %v114_v3, %v114_v3  ;;  %v131_v12 = vpack.c.bf16 %v115_v4, %v115_v4  ;;  %v132_v14 = vpack.c.bf16 %v116_v5, %v116_v5 }
  0x2b   :  { %v133_v15 = vpack.c.bf16 %v117_v6, %v117_v6  ;;  %v134_v16 = vpack.c.bf16 %v118_v7, %v118_v7  ;;  %v105_v18 = vadd.f32 %v95_v50, %v86_v54  ;;  %v106_v19 = vadd.f32 %v95_v50, %v87_v55 }
  0x2c   :  { %146 = vst.msk [vmem:[%s342_s5] sm:$0xf] %vm145_vm3, %v129_v10  ;;  %v107_v20 = vadd.f32 %v95_v50, %v88_v56  ;;  %v108_v21 = vadd.f32 %v95_v50, %v89_v57  ;;  %v109_v22 = vadd.f32 %v95_v50, %v90_v8  ;;  %v110_v23 = vadd.f32 %v95_v50, %v91_v9 }
  0x2d   :  { %147 = vst.msk [vmem:[%s342_s5 + $0x4] sm:$0xf] %vm145_vm3, %v130_v11  ;;  %v92_v24 = vmul.f32 %v196_v52, %v76_v34  ;;  %v93_v25 = vmul.f32 %v197_v53, %v76_v34  ;;  %v135_v26 = vpack.c.bf16 %v119_v13, %v119_v13  ;;  %v121_v27 = vmax.f32 %v105_v18, 0.0 }
  0x2e   :  { %148 = vst.msk [vmem:[%s342_s5 + $0x8] sm:$0xf] %vm145_vm3, %v131_v12  ;;  %v122_v28 = vmax.f32 %v106_v19, 0.0  ;;  %v123_v29 = vmax.f32 %v107_v20, 0.0  ;;  %v136_v30 = vpack.c.bf16 %v120_v17, %v120_v17  ;;  %v124_v31 = vmax.f32 %v108_v21, 0.0 }
  0x2f   :  { %149 = vst.msk [vmem:[%s342_s5 + $0xc] sm:$0xf] %vm145_vm3, %v132_v14  ;;  %v111_v32 = vadd.f32 %v95_v50, %v92_v24  ;;  %v112_v33 = vadd.f32 %v95_v50, %v93_v25  ;;  %v137_v34 = vpack.c.bf16 %v121_v27, %v121_v27  ;;  %v125_v35 = vmax.f32 %v109_v22, 0.0 }
  0x30   :  { %150 = vst.msk [vmem:[%s342_s5 + $0x10] sm:$0xf] %vm145_vm3, %v133_v15  ;;  %v138_v36 = vpack.c.bf16 %v122_v28, %v122_v28  ;;  %v126_v37 = vmax.f32 %v110_v23, 0.0  ;;  %v139_v38 = vpack.c.bf16 %v123_v29, %v123_v29  ;;  %v140_v40 = vpack.c.bf16 %v124_v31, %v124_v31 }
  0x31   :  { %151 = vst.msk [vmem:[%s342_s5 + $0x14] sm:$0xf] %vm145_vm3, %v134_v16  ;;  %v127_v39 = vmax.f32 %v111_v32, 0.0  ;;  %v128_v41 = vmax.f32 %v112_v33, 0.0  ;;  %v141_v42 = vpack.c.bf16 %v125_v35, %v125_v35 }
  0x32   :  { %152 = vst.msk [vmem:[%s342_s5 + $0x18] sm:$0xf] %vm145_vm3, %v135_v26  ;;  %v142_v43 = vpack.c.bf16 %v126_v37, %v126_v37 }
  0x33   :  { %153 = vst.msk [vmem:[%s342_s5 + $0x1c] sm:$0xf] %vm145_vm3, %v136_v30  ;;  %v143_v44 = vpack.c.bf16 %v127_v39, %v127_v39  ;;  %v144_v45 = vpack.c.bf16 %v128_v41, %v128_v41 }
  0x34   :  { %154 = vst.msk [vmem:[%s342_s5 + $0x20] sm:$0xf] %vm145_vm3, %v137_v34 }
  0x35   :  { %155 = vst.msk [vmem:[%s342_s5 + $0x24] sm:$0xf] %vm145_vm3, %v138_v36 }
  0x36   :  { %156 = vst.msk [vmem:[%s342_s5 + $0x28] sm:$0xf] %vm145_vm3, %v139_v38 }
  0x37   :  { %157 = vst.msk [vmem:[%s342_s5 + $0x2c] sm:$0xf] %vm145_vm3, %v140_v40 }
  0x38   :  { %158 = vst.msk [vmem:[%s342_s5 + $0x30] sm:$0xf] %vm145_vm3, %v141_v42 }
  0x39   :  { %159 = vst.msk [vmem:[%s342_s5 + $0x34] sm:$0xf] %vm145_vm3, %v142_v43 }
  0x3a   :  { %160 = vst.msk [vmem:[%s342_s5 + $0x38] sm:$0xf] %vm145_vm3, %v143_v44 }
  0x3b   :  { %161 = vst.msk [vmem:[%s342_s5 + $0x3c] sm:$0xf] %vm145_vm3, %v144_v45 }

// kernel: generator_forward.19
= control target key start
LH: loop header
LB: loop body
LE: loop exit
PB: predicated region body
PF: predicated region fallthrough
CT: control target
= control target key end

     0   :  { %s741_s9 = smov 0   ;;  %s743_s10 = smov 0   ;;  %s792_s0 = inlined_call_operand.vmem [shape: bf16[4,128,128], index: 0, kind: input, shape index: {}]   ;;  %s793_s1 = inlined_call_operand.vmem [shape: bf16[4,128,128], index: 1, kind: input, shape index: {}]   ;;  %s794_s2 = inlined_call_operand.vmem [shape: bf16[4,128,128], index: 2, kind: output, shape index: {}]  }
   0x1   :  { %s745_s11 = smov 0  }
   0x2 LB: > { %s24_s12 = sadd.s32 1, %s720_s10  ;;  %p515_p0 = scmp.ge.s32.totalorder %s724_s11, 1  ;;  %s724_s11 = sphi %s745_s11, %s12_s11   ;;  %s720_s10 = sphi %s743_s10, %s796_s10   ;;  %s716_s9 = sphi %s741_s9, %s795_s9  }
   0x3   : > { %p26_p1 = scmp.ge.s32.totalorder %s24_s12, 4  ;;  %p143_p2 = scmp.lt.s32.totalorder %s724_s11, 5 }
   0x5   : > { %s798_s12 = smov (%p26_p1, %s24_s12), 0  ;;  %p144_p3 = pnand %p515_p0, %p143_p2 }
   0x6   : > { %p179_p4 = scmp.lt.s32.totalorder (!%p144_p3), %s716_s9, 3 }
   0x7   : > { %147 = sbr.rel (%p144_p3) target bundleno = 208 (0xd0), region = 28 }
   0xc   : > { %s800_s9 = smov (!%p179_p4, %s716_s9), 3 }
   0xd   : > { %s759_s13 = sshll.u32 %s800_s9, 6 }
   0xe   : > { %s765_s16 = scalar_lea.vmem %s793_s1, %s759_s13  ;;  %s186_s19 = scalar_lea.vmem %s792_s0, %s759_s13 }
   0xf   : > { %v606_v0 = vld [vmem:[%s765_s16 + $0x38] sm:$0xff]  ;;  %v605_v1 = vld [vmem:[%s765_s16 + $0x30] sm:$0xff]  ;;  %v604_v2 = vld [vmem:[%s765_s16 + $0x28] sm:$0xff]  ;;  %s201_s22 = scalar_lea.vmem %s794_s2, %s759_s13 }
  0x10   : > { %331 = vmatpush.bf16.msra.mxu0 %v606_v0  ;;  %654 = vmatpush.bf16.msra.mxu1 %v606_v0  ;;  %v603_v3 = vld [vmem:[%s765_s16 + $0x20] sm:$0xff]  ;;  %v602_v4 = vld [vmem:[%s765_s16 + $0x18] sm:$0xff]  ;;  %v601_v5 = vld [vmem:[%s765_s16 + $0x10] sm:$0xff] }
  0x11   : > { %655 = vmatpush.bf16.msra.mxu2 %v606_v0  ;;  %656 = vmatpush.bf16.msra.mxu3 %v606_v0  ;;  %v600_v6 = vld [vmem:[%s765_s16 + $0x8] sm:$0xff]  ;;  %v599_v7 = vld [vmem:[%s765_s16] sm:$0xff]  ;;  %v593_v9 = vld [vmem:[%s186_s19 + $0x10] sm:$0xff] }
  0x12   : > { %v591_v8 = vld [vmem:[%s186_s19] sm:$0xff]  ;;  %v597_v11 = vld [vmem:[%s186_s19 + $0x30] sm:$0xff]  ;;  %v592_v12 = vld [vmem:[%s186_s19 + $0x8] sm:$0xff] }
  0x13   : > { %v595_v10 = vld [vmem:[%s186_s19 + $0x20] sm:$0xff]  ;;  %v594_v13 = vld [vmem:[%s186_s19 + $0x18] sm:$0xff]  ;;  %v596_v14 = vld [vmem:[%s186_s19 + $0x28] sm:$0xff] }
  0x14   : > { %332 = vmatpush.bf16.msra.mxu0 %v605_v1  ;;  %657 = vmatpush.bf16.msra.mxu1 %v605_v1  ;;  %v598_v15 = vld [vmem:[%s186_s19 + $0x38] sm:$0xff] }
  0x15   : > { %658 = vmatpush.bf16.msra.mxu2 %v605_v1  ;;  %659 = vmatpush.bf16.msra.mxu3 %v605_v1 }
  0x18   : > { %333 = vmatpush.bf16.msra.mxu0 %v604_v2  ;;  %660 = vmatpush.bf16.msra.mxu1 %v604_v2 }
  0x19   : > { %661 = vmatpush.bf16.msra.mxu2 %v604_v2  ;;  %662 = vmatpush.bf16.msra.mxu3 %v604_v2 }
  0x1c   : > { %334 = vmatpush.bf16.msra.mxu0 %v603_v3  ;;  %663 = vmatpush.bf16.msra.mxu1 %v603_v3 }
  0x1d   : > { %664 = vmatpush.bf16.msra.mxu2 %v603_v3  ;;  %665 = vmatpush.bf16.msra.mxu3 %v603_v3 }
  0x20   : > { %335 = vmatpush.bf16.msra.mxu0 %v602_v4  ;;  %666 = vmatpush.bf16.msra.mxu1 %v602_v4 }
  0x21   : > { %667 = vmatpush.bf16.msra.mxu2 %v602_v4  ;;  %668 = vmatpush.bf16.msra.mxu3 %v602_v4 }
  0x24   : > { %336 = vmatpush.bf16.msra.mxu0 %v601_v5  ;;  %669 = vmatpush.bf16.msra.mxu1 %v601_v5 }
  0x25   : > { %670 = vmatpush.bf16.msra.mxu2 %v601_v5  ;;  %671 = vmatpush.bf16.msra.mxu3 %v601_v5 }
  0x28   : > { %337 = vmatpush.bf16.msra.mxu0 %v600_v6  ;;  %672 = vmatpush.bf16.msra.mxu1 %v600_v6 }
  0x29   : > { %673 = vmatpush.bf16.msra.mxu2 %v600_v6  ;;  %674 = vmatpush.bf16.msra.mxu3 %v600_v6 }
  0x2c   : > { %338 = vmatpush.bf16.msra.mxu0 %v599_v7  ;;  %675 = vmatpush.bf16.msra.mxu1 %v599_v7 }
  0x2d   : > { %676 = vmatpush.bf16.msra.mxu2 %v599_v7  ;;  %677 = vmatpush.bf16.msra.mxu3 %v599_v7 }
  0x2f   : > { %339 = vmatmul.bf16.vlgmr.msra.gmra.mxu0 %v591_v8  ;;  %349 = vmatmul.bf16.vlgmr.msra.gmra.mxu1 %v593_v9 }
  0x30   : > { %359 = vmatmul.bf16.vlgmr.msra.gmra.mxu2 %v595_v10  ;;  %369 = vmatmul.bf16.vlgmr.msra.gmra.mxu3 %v597_v11 }
  0x3f   : > { %344 = vmatmul.bf16.gmra.mxu0 %v592_v12  ;;  %354 = vmatmul.bf16.gmra.mxu1 %v594_v13 }
  0x40   : > { %364 = vmatmul.bf16.gmra.mxu2 %v596_v14  ;;  %374 = vmatmul.bf16.gmra.mxu3 %v598_v15 }
  0xac   : > { %v340_v16 = vpop.f32.mrf.mxu0  ;;  %v350_v17 = vpop.f32.mrf.mxu1 }
  0xb3   : > { %v360_v18 = vpop.f32.mrf.mxu2  ;;  %v370_v19 = vpop.f32.mrf.mxu3 }
  0xb4   : > { %v342_v20 = vpop.f32.mrf.mxu0  ;;  %v352_v21 = vpop.f32.mrf.mxu1 }
  0xb5   : > { %v610_v22 = vpack.c.bf16 %v342_v20, %v340_v16  ;;  %v620_v23 = vpack.c.bf16 %v352_v21, %v350_v17 }
  0xb7   : > { %611 = vst [vmem:[%s201_s22] sm:$0xff] %v610_v22  }
  0xb8   : > { %648 = vst [vmem:[%s201_s22 + $0x10] sm:$0xff] %v620_v23  }
  0xbb   : > { %v362_v24 = vpop.f32.mrf.mxu2  ;;  %v372_v25 = vpop.f32.mrf.mxu3 }
  0xbc   : > { %v630_v26 = vpack.c.bf16 %v362_v24, %v360_v18  ;;  %v640_v27 = vpack.c.bf16 %v372_v25, %v370_v19  ;;  %v345_v28 = vpop.f32.mrf.mxu0  ;;  %v355_v29 = vpop.f32.mrf.mxu1 }
  0xbe   : > { %650 = vst [vmem:[%s201_s22 + $0x20] sm:$0xff] %v630_v26  }
  0xbf   : > { %652 = vst [vmem:[%s201_s22 + $0x30] sm:$0xff] %v640_v27  }
  0xc3   : > { %v365_v30 = vpop.f32.mrf.mxu2  ;;  %v375_v31 = vpop.f32.mrf.mxu3 }
  0xc4   : > { %v347_v32 = vpop.f32.mrf.mxu0  ;;  %v357_v33 = vpop.f32.mrf.mxu1 }
  0xc5   : > { %v615_v34 = vpack.c.bf16 %v347_v32, %v345_v28  ;;  %v625_v35 = vpack.c.bf16 %v357_v33, %v355_v29 }
  0xc7   : > { %647 = vst [vmem:[%s201_s22 + $0x8] sm:$0xff] %v615_v34  }
  0xc8   : > { %649 = vst [vmem:[%s201_s22 + $0x18] sm:$0xff] %v625_v35  }
  0xcb   : > { %v367_v36 = vpop.f32.mrf.mxu2  ;;  %v377_v37 = vpop.f32.mrf.mxu3 }
  0xcc   : > { %v635_v38 = vpack.c.bf16 %v367_v36, %v365_v30  ;;  %v645_v39 = vpack.c.bf16 %v377_v37, %v375_v31 }
  0xce   : > { %651 = vst [vmem:[%s201_s22 + $0x28] sm:$0xff] %v635_v38  }
  0xcf   : > { %653 = vst [vmem:[%s201_s22 + $0x38] sm:$0xff] %v645_v39  }
  0xd0 PF: > { %s12_s11 = sadd.s32 1, %s724_s11   ;;  %s795_s9 = smov %s720_s10 }
  0xd1   : > { %p9_p5 = scmp.ge.s32.totalorder %s12_s11, 6   ;;  %s796_s10 = smov %s798_s12 }
  0xd3   :  { %11 = sbr.rel (!%p9_p5) target bundleno = 2 (0x2), region = 61 }

// kernel: generator_forward.20
= control target key start
LH: loop header
LB: loop body
LE: loop exit
PB: predicated region body
PF: predicated region fallthrough
CT: control target
= control target key end

     0   :  { %vm14_vm0 = vcmask 122880   ;;  %v651_v0 = vmov 0.0   ;;  %vm146_vm1 = vcmask 130048   ;;  %s913_s1 = inlined_call_operand.vmem [shape: f32[1,16], index: 1, kind: output, shape index: {0}]   ;;  %s914_s2 = inlined_call_operand.vmem [shape: f32[1,16], index: 2, kind: output, shape index: {1}]   ;;  %s915_s0 = inlined_call_operand.vmem [shape: bf16[512,16], index: 0, kind: input, shape index: {}]  }
   0x1   :  { %15 = vst.msk [vmem:[%s913_s1] sm:$0x1] %vm14_vm0, %v651_v0  ;;  %v492_v1 = vld [vmem:[%s915_s0] sm:$0xff]   ;;  %v619_v2 = vld [vmem:[%s915_s0 + $0x8] sm:$0xff]   ;;  %v620_v6 = vld [vmem:[%s915_s0 + $0x10] sm:$0xff]  }
   0x2   :  { %16 = vst.msk [vmem:[%s914_s2] sm:$0x1] %vm14_vm0, %v651_v0  ;;  %v493_v3 = vunpack.c.l.bf16 %v492_v1  ;;  %v494_v4 = vunpack.c.h.bf16 %v492_v1  ;;  %v497_v5 = vunpack.c.l.bf16 %v619_v2  ;;  %v498_v7 = vunpack.c.h.bf16 %v619_v2  ;;  %v621_v14 = vld [vmem:[%s915_s0 + $0x18] sm:$0xff]   ;;  %v622_v21 = vld [vmem:[%s915_s0 + $0x20] sm:$0xff]   ;;  %v623_v31 = vld [vmem:[%s915_s0 + $0x28] sm:$0xff]  }
   0x3   :  { %v501_v12 = vunpack.c.l.bf16 %v620_v6  ;;  %v502_v16 = vunpack.c.h.bf16 %v620_v6  ;;  %v505_v19 = vunpack.c.l.bf16 %v621_v14  ;;  %v506_v23 = vunpack.c.h.bf16 %v621_v14  ;;  %v624_v44 = vld [vmem:[%s915_s0 + $0x30] sm:$0xff]   ;;  %v625_v57 = vld [vmem:[%s915_s0 + $0x38] sm:$0xff]   ;;  %v626_v6 = vld [vmem:[%s915_s0 + $0x40] sm:$0xff]  }
   0x4   :  { %v147_v8 = vsel %vm146_vm1, %v493_v3, 0.0  ;;  %v148_v9 = vsel %vm146_vm1, %v494_v4, 0.0  ;;  %v150_v10 = vsel %vm146_vm1, %v497_v5, 0.0  ;;  %v152_v13 = vsel %vm146_vm1, %v498_v7, 0.0 }
   0x5   :  { %v149_v11 = vadd.f32 %v148_v9, %v147_v8  ;;  %v154_v17 = vsel %vm146_vm1, %v501_v12, 0.0  ;;  %v156_v20 = vsel %vm146_vm1, %v502_v16, 0.0  ;;  %v158_v24 = vsel %vm146_vm1, %v505_v19, 0.0 }
   0x6   :  { %v284_v25 = vmul.f32 %v493_v3, %v493_v3  ;;  %v285_v27 = vmul.f32 %v494_v4, %v494_v4  ;;  %v286_v28 = vmul.f32 %v497_v5, %v497_v5  ;;  %v509_v29 = vunpack.c.l.bf16 %v622_v21 }
   0x7   :  { %v151_v15 = vadd.f32 %v150_v10, %v149_v11  ;;  %v160_v30 = vsel %vm146_vm1, %v506_v23, 0.0  ;;  %v287_v33 = vmul.f32 %v498_v7, %v498_v7  ;;  %v510_v34 = vunpack.c.h.bf16 %v622_v21 }
   0x8   :  { %v162_v35 = vsel %vm146_vm1, %v509_v29, 0.0  ;;  %v348_v36 = vsel %vm146_vm1, %v284_v25, 0.0  ;;  %v288_v38 = vmul.f32 %v501_v12, %v501_v12  ;;  %v349_v39 = vsel %vm146_vm1, %v285_v27, 0.0 }
   0x9   :  { %v153_v18 = vadd.f32 %v152_v13, %v151_v15  ;;  %v351_v40 = vsel %vm146_vm1, %v286_v28, 0.0  ;;  %v513_v41 = vunpack.c.l.bf16 %v623_v31  ;;  %v164_v42 = vsel %vm146_vm1, %v510_v34, 0.0 }
   0xa   :  { %v350_v43 = vadd.f32 %v349_v39, %v348_v36  ;;  %v289_v46 = vmul.f32 %v502_v16, %v502_v16  ;;  %v353_v47 = vsel %vm146_vm1, %v287_v33, 0.0  ;;  %v514_v48 = vunpack.c.h.bf16 %v623_v31 }
   0xb   :  { %v155_v22 = vadd.f32 %v154_v17, %v153_v18  ;;  %v166_v49 = vsel %vm146_vm1, %v513_v41, 0.0  ;;  %v290_v52 = vmul.f32 %v505_v19, %v505_v19  ;;  %v355_v53 = vsel %vm146_vm1, %v288_v38, 0.0  ;;  %v627_v19 = vld [vmem:[%s915_s0 + $0x48] sm:$0xff]  }
   0xc   :  { %v352_v50 = vadd.f32 %v351_v40, %v350_v43  ;;  %v517_v54 = vunpack.c.l.bf16 %v624_v44  ;;  %v168_v55 = vsel %vm146_vm1, %v514_v48, 0.0  ;;  %v291_v59 = vmul.f32 %v506_v23, %v506_v23 }
   0xd   :  { %v157_v26 = vadd.f32 %v156_v20, %v155_v22  ;;  %v357_v60 = vsel %vm146_vm1, %v289_v46, 0.0  ;;  %v518_v61 = vunpack.c.h.bf16 %v624_v44  ;;  %v292_v1 = vmul.f32 %v509_v29, %v509_v29 }
   0xe   :  { %v354_v56 = vadd.f32 %v353_v47, %v352_v50  ;;  %v170_v62 = vsel %vm146_vm1, %v517_v54, 0.0  ;;  %v359_v2 = vsel %vm146_vm1, %v290_v52, 0.0  ;;  %v521_v3 = vunpack.c.l.bf16 %v625_v57 }
   0xf   :  { %v159_v32 = vadd.f32 %v158_v24, %v157_v26  ;;  %v172_v4 = vsel %vm146_vm1, %v518_v61, 0.0  ;;  %v293_v8 = vmul.f32 %v510_v34, %v510_v34  ;;  %v361_v9 = vsel %vm146_vm1, %v291_v59, 0.0 }
  0x10   :  { %v356_v63 = vadd.f32 %v355_v53, %v354_v56  ;;  %v522_v10 = vunpack.c.h.bf16 %v625_v57  ;;  %v174_v11 = vsel %vm146_vm1, %v521_v3, 0.0  ;;  %v294_v14 = vmul.f32 %v513_v41, %v513_v41 }
  0x11   :  { %v161_v37 = vadd.f32 %v160_v30, %v159_v32  ;;  %v363_v15 = vsel %vm146_vm1, %v292_v1, 0.0  ;;  %v525_v16 = vunpack.c.l.bf16 %v626_v6  ;;  %v295_v21 = vmul.f32 %v514_v48, %v514_v48  ;;  %v628_v32 = vld [vmem:[%s915_s0 + $0x50] sm:$0xff]  }
  0x12   :  { %v358_v5 = vadd.f32 %v357_v60, %v356_v63  ;;  %v176_v17 = vsel %vm146_vm1, %v522_v10, 0.0  ;;  %v365_v22 = vsel %vm146_vm1, %v293_v8, 0.0  ;;  %v526_v23 = vunpack.c.h.bf16 %v626_v6 }
  0x13   :  { %v163_v45 = vadd.f32 %v162_v35, %v161_v37  ;;  %v178_v24 = vsel %vm146_vm1, %v525_v16, 0.0  ;;  %v296_v27 = vmul.f32 %v517_v54, %v517_v54  ;;  %v367_v28 = vsel %vm146_vm1, %v294_v14, 0.0 }
  0x14   :  { %v360_v12 = vadd.f32 %v359_v2, %v358_v5  ;;  %v529_v29 = vunpack.c.l.bf16 %v627_v19  ;;  %v180_v30 = vsel %vm146_vm1, %v526_v23, 0.0  ;;  %v297_v34 = vmul.f32 %v518_v61, %v518_v61 }
  0x15   :  { %v165_v51 = vadd.f32 %v164_v42, %v163_v45  ;;  %v369_v35 = vsel %vm146_vm1, %v295_v21, 0.0  ;;  %v530_v36 = vunpack.c.h.bf16 %v627_v19  ;;  %v298_v40 = vmul.f32 %v521_v3, %v521_v3  ;;  %v629_v45 = vld [vmem:[%s915_s0 + $0x58] sm:$0xff]  }
  0x16   :  { %v362_v18 = vadd.f32 %v361_v9, %v360_v12  ;;  %v182_v37 = vsel %vm146_vm1, %v529_v29, 0.0  ;;  %v371_v41 = vsel %vm146_vm1, %v296_v27, 0.0  ;;  %v533_v42 = vunpack.c.l.bf16 %v628_v32 }
  0x17   :  { %v167_v58 = vadd.f32 %v166_v49, %v165_v51  ;;  %v184_v43 = vsel %vm146_vm1, %v530_v36, 0.0  ;;  %v299_v47 = vmul.f32 %v522_v10, %v522_v10  ;;  %v373_v48 = vsel %vm146_vm1, %v297_v34, 0.0 }
  0x18   :  { %v364_v25 = vadd.f32 %v363_v15, %v362_v18  ;;  %v534_v49 = vunpack.c.h.bf16 %v628_v32  ;;  %v186_v50 = vsel %vm146_vm1, %v533_v42, 0.0  ;;  %v300_v53 = vmul.f32 %v525_v16, %v525_v16 }
  0x19   :  { %v169_v0 = vadd.f32 %v168_v55, %v167_v58  ;;  %v375_v54 = vsel %vm146_vm1, %v298_v40, 0.0  ;;  %v537_v55 = vunpack.c.l.bf16 %v629_v45  ;;  %v630_v58 = vld [vmem:[%s915_s0 + $0x60] sm:$0xff]   ;;  %v301_v60 = vmul.f32 %v526_v23, %v526_v23 }
  0x1a   :  { %v366_v31 = vadd.f32 %v365_v22, %v364_v25  ;;  %v188_v56 = vsel %vm146_vm1, %v534_v49, 0.0  ;;  %v377_v61 = vsel %vm146_vm1, %v299_v47, 0.0  ;;  %v302_v2 = vmul.f32 %v529_v29, %v529_v29 }
  0x1b   :  { %v171_v7 = vadd.f32 %v170_v62, %v169_v0  ;;  %v538_v62 = vunpack.c.h.bf16 %v629_v45  ;;  %v190_v63 = vsel %vm146_vm1, %v537_v55, 0.0  ;;  %v379_v3 = vsel %vm146_vm1, %v300_v53, 0.0 }
  0x1c   :  { %v368_v38 = vadd.f32 %v367_v28, %v366_v31  ;;  %v303_v9 = vmul.f32 %v530_v36, %v530_v36  ;;  %v381_v10 = vsel %vm146_vm1, %v301_v60, 0.0  ;;  %v304_v15 = vmul.f32 %v533_v42, %v533_v42 }
  0x1d   :  { %v173_v13 = vadd.f32 %v172_v4, %v171_v7  ;;  %v541_v4 = vunpack.c.l.bf16 %v630_v58  ;;  %v192_v5 = vsel %vm146_vm1, %v538_v62, 0.0  ;;  %v631_v7 = vld [vmem:[%s915_s0 + $0x68] sm:$0xff]   ;;  %v383_v16 = vsel %vm146_vm1, %v302_v2, 0.0 }
  0x1e   :  { %v370_v44 = vadd.f32 %v369_v35, %v368_v38  ;;  %v305_v22 = vmul.f32 %v534_v49, %v534_v49  ;;  %v385_v23 = vsel %vm146_vm1, %v303_v9, 0.0  ;;  %v306_v28 = vmul.f32 %v537_v55, %v537_v55 }
  0x1f   :  { %v175_v20 = vadd.f32 %v174_v11, %v173_v13  ;;  %v542_v11 = vunpack.c.h.bf16 %v630_v58  ;;  %v194_v12 = vsel %vm146_vm1, %v541_v4, 0.0  ;;  %v387_v29 = vsel %vm146_vm1, %v304_v15, 0.0 }
  0x20   :  { %v372_v51 = vadd.f32 %v371_v41, %v370_v44  ;;  %v307_v35 = vmul.f32 %v538_v62, %v538_v62  ;;  %v389_v36 = vsel %vm146_vm1, %v305_v22, 0.0  ;;  %v308_v41 = vmul.f32 %v541_v4, %v541_v4 }
  0x21   :  { %v177_v26 = vadd.f32 %v176_v17, %v175_v20  ;;  %v545_v17 = vunpack.c.l.bf16 %v631_v7  ;;  %v196_v18 = vsel %vm146_vm1, %v542_v11, 0.0  ;;  %v632_v20 = vld [vmem:[%s915_s0 + $0x70] sm:$0xff]   ;;  %v391_v42 = vsel %vm146_vm1, %v306_v28, 0.0 }
  0x22   :  { %v374_v57 = vadd.f32 %v373_v48, %v372_v51  ;;  %v309_v48 = vmul.f32 %v542_v11, %v542_v11  ;;  %v393_v49 = vsel %vm146_vm1, %v307_v35, 0.0  ;;  %v395_v55 = vsel %vm146_vm1, %v308_v41, 0.0 }
  0x23   :  { %v179_v33 = vadd.f32 %v178_v24, %v177_v26  ;;  %v546_v24 = vunpack.c.h.bf16 %v631_v7  ;;  %v198_v25 = vsel %vm146_vm1, %v545_v17, 0.0 }
  0x24   :  { %v376_v0 = vadd.f32 %v375_v54, %v374_v57  ;;  %v310_v54 = vmul.f32 %v545_v17, %v545_v17  ;;  %v397_v62 = vsel %vm146_vm1, %v309_v48, 0.0 }
  0x25   :  { %v181_v39 = vadd.f32 %v180_v30, %v179_v33  ;;  %v549_v30 = vunpack.c.l.bf16 %v632_v20  ;;  %v200_v31 = vsel %vm146_vm1, %v546_v24, 0.0  ;;  %v633_v33 = vld [vmem:[%s915_s0 + $0x78] sm:$0xff]  }
  0x26   :  { %v378_v6 = vadd.f32 %v377_v61, %v376_v0  ;;  %v311_v61 = vmul.f32 %v546_v24, %v546_v24  ;;  %v399_v4 = vsel %vm146_vm1, %v310_v54, 0.0 }
  0x27   :  { %v183_v46 = vadd.f32 %v182_v37, %v181_v39  ;;  %v550_v37 = vunpack.c.h.bf16 %v632_v20  ;;  %v202_v38 = vsel %vm146_vm1, %v549_v30, 0.0 }
  0x28   :  { %v380_v13 = vadd.f32 %v379_v3, %v378_v6  ;;  %v312_v3 = vmul.f32 %v549_v30, %v549_v30  ;;  %v401_v11 = vsel %vm146_vm1, %v311_v61, 0.0 }
  0x29   :  { %v185_v52 = vadd.f32 %v184_v43, %v183_v46  ;;  %v553_v43 = vunpack.c.l.bf16 %v633_v33  ;;  %v204_v44 = vsel %vm146_vm1, %v550_v37, 0.0  ;;  %v634_v46 = vld [vmem:[%s915_s0 + $0x80] sm:$0xff]  }
  0x2a   :  { %v382_v19 = vadd.f32 %v381_v10, %v380_v13  ;;  %v313_v10 = vmul.f32 %v550_v37, %v550_v37  ;;  %v403_v17 = vsel %vm146_vm1, %v312_v3, 0.0 }
  0x2b   :  { %v187_v59 = vadd.f32 %v186_v50, %v185_v52  ;;  %v554_v50 = vunpack.c.h.bf16 %v633_v33  ;;  %v206_v51 = vsel %vm146_vm1, %v553_v43, 0.0 }
  0x2c   :  { %v384_v26 = vadd.f32 %v383_v16, %v382_v19  ;;  %v314_v16 = vmul.f32 %v553_v43, %v553_v43  ;;  %v405_v24 = vsel %vm146_vm1, %v313_v10, 0.0 }
  0x2d   :  { %v189_v1 = vadd.f32 %v188_v56, %v187_v59  ;;  %v557_v56 = vunpack.c.l.bf16 %v634_v46  ;;  %v208_v57 = vsel %vm146_vm1, %v554_v50, 0.0  ;;  %v635_v59 = vld [vmem:[%s915_s0 + $0x88] sm:$0xff]  }
  0x2e   :  { %v386_v32 = vadd.f32 %v385_v23, %v384_v26  ;;  %v315_v23 = vmul.f32 %v554_v50, %v554_v50  ;;  %v407_v30 = vsel %vm146_vm1, %v314_v16, 0.0 }
  0x2f   :  { %v191_v8 = vadd.f32 %v190_v63, %v189_v1  ;;  %v558_v63 = vunpack.c.h.bf16 %v634_v46  ;;  %v210_v0 = vsel %vm146_vm1, %v557_v56, 0.0 }
  0x30   :  { %v388_v39 = vadd.f32 %v387_v29, %v386_v32  ;;  %v316_v29 = vmul.f32 %v557_v56, %v557_v56  ;;  %v409_v37 = vsel %vm146_vm1, %v315_v23, 0.0 }
  0x31   :  { %v193_v14 = vadd.f32 %v192_v5, %v191_v8  ;;  %v561_v5 = vunpack.c.l.bf16 %v635_v59  ;;  %v212_v6 = vsel %vm146_vm1, %v558_v63, 0.0  ;;  %v636_v8 = vld [vmem:[%s915_s0 + $0x90] sm:$0xff]  }
  0x32   :  { %v390_v45 = vadd.f32 %v389_v36, %v388_v39  ;;  %v317_v36 = vmul.f32 %v558_v63, %v558_v63  ;;  %v411_v43 = vsel %vm146_vm1, %v316_v29, 0.0 }
  0x33   :  { %v195_v21 = vadd.f32 %v194_v12, %v193_v14  ;;  %v562_v12 = vunpack.c.h.bf16 %v635_v59  ;;  %v214_v13 = vsel %vm146_vm1, %v561_v5, 0.0 }
  0x34   :  { %v392_v52 = vadd.f32 %v391_v42, %v390_v45  ;;  %v318_v42 = vmul.f32 %v561_v5, %v561_v5  ;;  %v413_v50 = vsel %vm146_vm1, %v317_v36, 0.0 }
  0x35   :  { %v197_v27 = vadd.f32 %v196_v18, %v195_v21  ;;  %v565_v18 = vunpack.c.l.bf16 %v636_v8  ;;  %v216_v19 = vsel %vm146_vm1, %v562_v12, 0.0  ;;  %v637_v21 = vld [vmem:[%s915_s0 + $0x98] sm:$0xff]  }
  0x36   :  { %v394_v58 = vadd.f32 %v393_v49, %v392_v52  ;;  %v319_v49 = vmul.f32 %v562_v12, %v562_v12  ;;  %v415_v56 = vsel %vm146_vm1, %v318_v42, 0.0 }
  0x37   :  { %v199_v34 = vadd.f32 %v198_v25, %v197_v27  ;;  %v566_v25 = vunpack.c.h.bf16 %v636_v8  ;;  %v218_v26 = vsel %vm146_vm1, %v565_v18, 0.0 }
  0x38   :  { %v396_v1 = vadd.f32 %v395_v55, %v394_v58  ;;  %v320_v55 = vmul.f32 %v565_v18, %v565_v18  ;;  %v417_v63 = vsel %vm146_vm1, %v319_v49, 0.0 }
  0x39   :  { %v201_v40 = vadd.f32 %v200_v31, %v199_v34  ;;  %v569_v31 = vunpack.c.l.bf16 %v637_v21  ;;  %v220_v32 = vsel %vm146_vm1, %v566_v25, 0.0  ;;  %v638_v34 = vld [vmem:[%s915_s0 + $0xa0] sm:$0xff]  }
  0x3a   :  { %v398_v7 = vadd.f32 %v397_v62, %v396_v1  ;;  %v321_v62 = vmul.f32 %v566_v25, %v566_v25  ;;  %v419_v5 = vsel %vm146_vm1, %v320_v55, 0.0 }
  0x3b   :  { %v203_v47 = vadd.f32 %v202_v38, %v201_v40  ;;  %v570_v38 = vunpack.c.h.bf16 %v637_v21  ;;  %v222_v39 = vsel %vm146_vm1, %v569_v31, 0.0 }
  0x3c   :  { %v400_v14 = vadd.f32 %v399_v4, %v398_v7  ;;  %v322_v4 = vmul.f32 %v569_v31, %v569_v31  ;;  %v421_v12 = vsel %vm146_vm1, %v321_v62, 0.0 }
  0x3d   :  { %v205_v53 = vadd.f32 %v204_v44, %v203_v47  ;;  %v573_v44 = vunpack.c.l.bf16 %v638_v34  ;;  %v224_v45 = vsel %vm146_vm1, %v570_v38, 0.0  ;;  %v639_v47 = vld [vmem:[%s915_s0 + $0xa8] sm:$0xff]  }
  0x3e   :  { %v402_v20 = vadd.f32 %v401_v11, %v400_v14  ;;  %v323_v11 = vmul.f32 %v570_v38, %v570_v38  ;;  %v423_v18 = vsel %vm146_vm1, %v322_v4, 0.0 }
  0x3f   :  { %v207_v60 = vadd.f32 %v206_v51, %v205_v53  ;;  %v574_v51 = vunpack.c.h.bf16 %v638_v34  ;;  %v226_v52 = vsel %vm146_vm1, %v573_v44, 0.0 }
  0x40   :  { %v404_v27 = vadd.f32 %v403_v17, %v402_v20  ;;  %v324_v17 = vmul.f32 %v573_v44, %v573_v44  ;;  %v425_v25 = vsel %vm146_vm1, %v323_v11, 0.0 }
  0x41   :  { %v209_v2 = vadd.f32 %v208_v57, %v207_v60  ;;  %v577_v57 = vunpack.c.l.bf16 %v639_v47  ;;  %v228_v58 = vsel %vm146_vm1, %v574_v51, 0.0  ;;  %v640_v60 = vld [vmem:[%s915_s0 + $0xb0] sm:$0xff]  }
  0x42   :  { %v406_v33 = vadd.f32 %v405_v24, %v404_v27  ;;  %v325_v24 = vmul.f32 %v574_v51, %v574_v51  ;;  %v427_v31 = vsel %vm146_vm1, %v324_v17, 0.0 }
  0x43   :  { %v211_v9 = vadd.f32 %v210_v0, %v209_v2  ;;  %v578_v0 = vunpack.c.h.bf16 %v639_v47  ;;  %v230_v1 = vsel %vm146_vm1, %v577_v57, 0.0 }
  0x44   :  { %v408_v40 = vadd.f32 %v407_v30, %v406_v33  ;;  %v326_v30 = vmul.f32 %v577_v57, %v577_v57  ;;  %v429_v38 = vsel %vm146_vm1, %v325_v24, 0.0 }
  0x45   :  { %v213_v15 = vadd.f32 %v212_v6, %v211_v9  ;;  %v581_v6 = vunpack.c.l.bf16 %v640_v60  ;;  %v232_v7 = vsel %vm146_vm1, %v578_v0, 0.0  ;;  %v641_v9 = vld [vmem:[%s915_s0 + $0xb8] sm:$0xff]  }
  0x46   :  { %v410_v46 = vadd.f32 %v409_v37, %v408_v40  ;;  %v327_v37 = vmul.f32 %v578_v0, %v578_v0  ;;  %v431_v44 = vsel %vm146_vm1, %v326_v30, 0.0 }
  0x47   :  { %v215_v22 = vadd.f32 %v214_v13, %v213_v15  ;;  %v582_v13 = vunpack.c.h.bf16 %v640_v60  ;;  %v234_v14 = vsel %vm146_vm1, %v581_v6, 0.0 }
  0x48   :  { %v412_v53 = vadd.f32 %v411_v43, %v410_v46  ;;  %v328_v43 = vmul.f32 %v581_v6, %v581_v6  ;;  %v433_v51 = vsel %vm146_vm1, %v327_v37, 0.0 }
  0x49   :  { %v217_v28 = vadd.f32 %v216_v19, %v215_v22  ;;  %v585_v19 = vunpack.c.l.bf16 %v641_v9  ;;  %v236_v20 = vsel %vm146_vm1, %v582_v13, 0.0  ;;  %v642_v22 = vld [vmem:[%s915_s0 + $0xc0] sm:$0xff]  }
  0x4a   :  { %v414_v59 = vadd.f32 %v413_v50, %v412_v53  ;;  %v329_v50 = vmul.f32 %v582_v13, %v582_v13  ;;  %v435_v57 = vsel %vm146_vm1, %v328_v43, 0.0 }
  0x4b   :  { %v219_v35 = vadd.f32 %v218_v26, %v217_v28  ;;  %v586_v26 = vunpack.c.h.bf16 %v641_v9  ;;  %v238_v27 = vsel %vm146_vm1, %v585_v19, 0.0 }
  0x4c   :  { %v416_v2 = vadd.f32 %v415_v56, %v414_v59  ;;  %v330_v56 = vmul.f32 %v585_v19, %v585_v19  ;;  %v437_v0 = vsel %vm146_vm1, %v329_v50, 0.0 }
  0x4d   :  { %v221_v41 = vadd.f32 %v220_v32, %v219_v35  ;;  %v589_v32 = vunpack.c.l.bf16 %v642_v22  ;;  %v240_v33 = vsel %vm146_vm1, %v586_v26, 0.0  ;;  %v643_v35 = vld [vmem:[%s915_s0 + $0xc8] sm:$0xff]  }
  0x4e   :  { %v418_v8 = vadd.f32 %v417_v63, %v416_v2  ;;  %v331_v63 = vmul.f32 %v586_v26, %v586_v26  ;;  %v439_v6 = vsel %vm146_vm1, %v330_v56, 0.0 }
  0x4f   :  { %v223_v48 = vadd.f32 %v222_v39, %v221_v41  ;;  %v590_v39 = vunpack.c.h.bf16 %v642_v22  ;;  %v242_v40 = vsel %vm146_vm1, %v589_v32, 0.0 }
  0x50   :  { %v420_v15 = vadd.f32 %v419_v5, %v418_v8  ;;  %v332_v5 = vmul.f32 %v589_v32, %v589_v32  ;;  %v441_v13 = vsel %vm146_vm1, %v331_v63, 0.0 }
  0x51   :  { %v225_v54 = vadd.f32 %v224_v45, %v223_v48  ;;  %v593_v45 = vunpack.c.l.bf16 %v643_v35  ;;  %v244_v46 = vsel %vm146_vm1, %v590_v39, 0.0  ;;  %v644_v48 = vld [vmem:[%s915_s0 + $0xd0] sm:$0xff]  }
  0x52   :  { %v422_v21 = vadd.f32 %v421_v12, %v420_v15  ;;  %v333_v12 = vmul.f32 %v590_v39, %v590_v39  ;;  %v443_v19 = vsel %vm146_vm1, %v332_v5, 0.0 }
  0x53   :  { %v227_v61 = vadd.f32 %v226_v52, %v225_v54  ;;  %v594_v52 = vunpack.c.h.bf16 %v643_v35  ;;  %v246_v53 = vsel %vm146_vm1, %v593_v45, 0.0 }
  0x54   :  { %v424_v28 = vadd.f32 %v423_v18, %v422_v21  ;;  %v334_v18 = vmul.f32 %v593_v45, %v593_v45  ;;  %v445_v26 = vsel %vm146_vm1, %v333_v12, 0.0 }
  0x55   :  { %v229_v3 = vadd.f32 %v228_v58, %v227_v61  ;;  %v597_v58 = vunpack.c.l.bf16 %v644_v48  ;;  %v248_v59 = vsel %vm146_vm1, %v594_v52, 0.0  ;;  %v645_v61 = vld [vmem:[%s915_s0 + $0xd8] sm:$0xff]  }
  0x56   :  { %v426_v34 = vadd.f32 %v425_v25, %v424_v28  ;;  %v335_v25 = vmul.f32 %v594_v52, %v594_v52  ;;  %v447_v32 = vsel %vm146_vm1, %v334_v18, 0.0 }
  0x57   :  { %v231_v10 = vadd.f32 %v230_v1, %v229_v3  ;;  %v598_v1 = vunpack.c.h.bf16 %v644_v48  ;;  %v250_v2 = vsel %vm146_vm1, %v597_v58, 0.0 }
  0x58   :  { %v428_v41 = vadd.f32 %v427_v31, %v426_v34  ;;  %v336_v31 = vmul.f32 %v597_v58, %v597_v58  ;;  %v449_v39 = vsel %vm146_vm1, %v335_v25, 0.0 }
  0x59   :  { %v233_v16 = vadd.f32 %v232_v7, %v231_v10  ;;  %v601_v7 = vunpack.c.l.bf16 %v645_v61  ;;  %v252_v8 = vsel %vm146_vm1, %v598_v1, 0.0  ;;  %v646_v10 = vld [vmem:[%s915_s0 + $0xe0] sm:$0xff]  }
  0x5a   :  { %v430_v47 = vadd.f32 %v429_v38, %v428_v41  ;;  %v337_v38 = vmul.f32 %v598_v1, %v598_v1  ;;  %v451_v45 = vsel %vm146_vm1, %v336_v31, 0.0 }
  0x5b   :  { %v235_v23 = vadd.f32 %v234_v14, %v233_v16  ;;  %v602_v14 = vunpack.c.h.bf16 %v645_v61  ;;  %v254_v15 = vsel %vm146_vm1, %v601_v7, 0.0 }
  0x5c   :  { %v432_v54 = vadd.f32 %v431_v44, %v430_v47  ;;  %v338_v44 = vmul.f32 %v601_v7, %v601_v7  ;;  %v453_v52 = vsel %vm146_vm1, %v337_v38, 0.0 }
  0x5d   :  { %v237_v29 = vadd.f32 %v236_v20, %v235_v23  ;;  %v605_v20 = vunpack.c.l.bf16 %v646_v10  ;;  %v256_v21 = vsel %vm146_vm1, %v602_v14, 0.0  ;;  %v647_v23 = vld [vmem:[%s915_s0 + $0xe8] sm:$0xff]  }
  0x5e   :  { %v434_v60 = vadd.f32 %v433_v51, %v432_v54  ;;  %v339_v51 = vmul.f32 %v602_v14, %v602_v14  ;;  %v455_v58 = vsel %vm146_vm1, %v338_v44, 0.0  ;;  %v283_v44 = vld [vmem:[%s914_s2] sm:$0x1] }
  0x5f   :  { %v239_v36 = vadd.f32 %v238_v27, %v237_v29  ;;  %v606_v27 = vunpack.c.h.bf16 %v646_v10  ;;  %v258_v28 = vsel %vm146_vm1, %v605_v20, 0.0 }
  0x60   :  { %v436_v3 = vadd.f32 %v435_v57, %v434_v60  ;;  %v340_v57 = vmul.f32 %v605_v20, %v605_v20 }
  0x61   :  { %v241_v42 = vadd.f32 %v240_v33, %v239_v36  ;;  %v609_v33 = vunpack.c.l.bf16 %v647_v23  ;;  %v260_v34 = vsel %vm146_vm1, %v606_v27, 0.0  ;;  %v648_v36 = vld [vmem:[%s915_s0 + $0xf0] sm:$0xff]   ;;  %v341_v63 = vmul.f32 %v606_v27, %v606_v27 }
  0x62   :  { %v438_v9 = vadd.f32 %v437_v0, %v436_v3  ;;  %v457_v0 = vsel %vm146_vm1, %v339_v51, 0.0 }
  0x63   :  { %v243_v49 = vadd.f32 %v242_v40, %v241_v42  ;;  %v610_v40 = vunpack.c.h.bf16 %v647_v23  ;;  %v262_v41 = vsel %vm146_vm1, %v609_v33, 0.0  ;;  %v342_v5 = vmul.f32 %v609_v33, %v609_v33 }
  0x64   :  { %v440_v16 = vadd.f32 %v439_v6, %v438_v9  ;;  %v459_v6 = vsel %vm146_vm1, %v340_v57, 0.0 }
  0x65   :  { %v245_v55 = vadd.f32 %v244_v46, %v243_v49  ;;  %v613_v46 = vunpack.c.l.bf16 %v648_v36  ;;  %v264_v47 = vsel %vm146_vm1, %v610_v40, 0.0  ;;  %v649_v49 = vld [vmem:[%s915_s0 + $0xf8] sm:$0xff]   ;;  %v343_v10 = vmul.f32 %v610_v40, %v610_v40 }
  0x66   :  { %v442_v22 = vadd.f32 %v441_v13, %v440_v16  ;;  %v618_v1 = vunpack.c.h.bf16 %v649_v49 }
  0x67   :  { %v247_v62 = vadd.f32 %v246_v53, %v245_v55  ;;  %v614_v53 = vunpack.c.h.bf16 %v648_v36  ;;  %v266_v54 = vsel %vm146_vm1, %v613_v46, 0.0  ;;  %v344_v14 = vmul.f32 %v613_v46, %v613_v46 }
  0x68   :  { %v444_v29 = vadd.f32 %v443_v19, %v442_v22  ;;  %v272_v7 = vsel %vm146_vm1, %v618_v1, 0.0  ;;  %v465_v19 = vsel %vm146_vm1, %v343_v10, 0.0 }
  0x69   :  { %v249_v4 = vadd.f32 %v248_v59, %v247_v62  ;;  %v617_v59 = vunpack.c.l.bf16 %v649_v49  ;;  %v268_v60 = vsel %vm146_vm1, %v614_v53, 0.0  ;;  %v345_v18 = vmul.f32 %v614_v53, %v614_v53 }
  0x6a   :  { %v446_v35 = vadd.f32 %v445_v26, %v444_v29  ;;  %v467_v23 = vsel %vm146_vm1, %v344_v14, 0.0  ;;  %v347_v26 = vmul.f32 %v618_v1, %v618_v1 }
  0x6b   :  { %v251_v11 = vadd.f32 %v250_v2, %v249_v4  ;;  %v270_v2 = vsel %vm146_vm1, %v617_v59, 0.0  ;;  %v346_v22 = vmul.f32 %v617_v59, %v617_v59  ;;  %v469_v27 = vsel %vm146_vm1, %v345_v18, 0.0 }
  0x6c   :  { %v448_v42 = vadd.f32 %v447_v32, %v446_v35  ;;  %v473_v33 = vsel %vm146_vm1, %v347_v26, 0.0 }
  0x6d   :  { %v253_v17 = vadd.f32 %v252_v8, %v251_v11  ;;  %v461_v11 = vsel %vm146_vm1, %v341_v63, 0.0 }
  0x6e   :  { %v450_v48 = vadd.f32 %v449_v39, %v448_v42 }
  0x6f   :  { %v255_v24 = vadd.f32 %v254_v15, %v253_v17  ;;  %v463_v15 = vsel %vm146_vm1, %v342_v5, 0.0 }
  0x70   :  { %v452_v55 = vadd.f32 %v451_v45, %v450_v48 }
  0x71   :  { %v257_v30 = vadd.f32 %v256_v21, %v255_v24 }
  0x72   :  { %v454_v61 = vadd.f32 %v453_v52, %v452_v55 }
  0x73   :  { %v259_v37 = vadd.f32 %v258_v28, %v257_v30  ;;  %v471_v30 = vsel %vm146_vm1, %v346_v22, 0.0 }
  0x74   :  { %v456_v3 = vadd.f32 %v455_v58, %v454_v61 }
  0x75   :  { %v261_v43 = vadd.f32 %v260_v34, %v259_v37  ;;  %v145_v34 = vld [vmem:[%s913_s1] sm:$0x1] }
  0x76   :  { %v458_v8 = vadd.f32 %v457_v0, %v456_v3 }
  0x77   :  { %v263_v50 = vadd.f32 %v262_v41, %v261_v43 }
  0x78   :  { %v460_v12 = vadd.f32 %v459_v6, %v458_v8 }
  0x79   :  { %v265_v56 = vadd.f32 %v264_v47, %v263_v50 }
  0x7a   :  { %v462_v16 = vadd.f32 %v461_v11, %v460_v12 }
  0x7b   :  { %v267_v62 = vadd.f32 %v266_v54, %v265_v56 }
  0x7c   :  { %v464_v20 = vadd.f32 %v463_v15, %v462_v16 }
  0x7d   :  { %v269_v4 = vadd.f32 %v268_v60, %v267_v62 }
  0x7e   :  { %v466_v24 = vadd.f32 %v465_v19, %v464_v20 }
  0x7f   :  { %v271_v9 = vadd.f32 %v270_v2, %v269_v4 }
  0x80   :  { %v468_v28 = vadd.f32 %v467_v23, %v466_v24 }
  0x81   :  { %v273_v13 = vadd.f32 %v272_v7, %v271_v9 }
  0x82   :  { %v470_v31 = vadd.f32 %v469_v27, %v468_v28 }
  0x83   :  { %v274_v17 = vrot.slane %v273_v13, 4 }
  0x84   :  { %v472_v35 = vadd.f32 %v471_v30, %v470_v31 }
  0x85   :  { %v275_v21 = vadd.f32 %v274_v17, %v273_v13 }
  0x86   :  { %v474_v37 = vadd.f32 %v473_v33, %v472_v35 }
  0x87   :  { %v276_v25 = vrot.slane %v275_v21, 2 }
  0x88   :  { %v475_v39 = vrot.slane %v474_v37, 4 }
  0x89   :  { %v277_v29 = vadd.f32 %v276_v25, %v275_v21 }
  0x8a   :  { %v476_v40 = vadd.f32 %v475_v39, %v474_v37 }
  0x8b   :  { %v278_v32 = vrot.slane %v277_v29, 1 }
  0x8c   :  { %v477_v41 = vrot.slane %v476_v40, 2 }
  0x8d   :  { %v279_v36 = vadd.f32 %v278_v32, %v277_v29 }
  0x8e   :  { %v478_v42 = vadd.f32 %v477_v41, %v476_v40 }
  0x8f   :  { %v280_v38 = vadd.f32 %v279_v36, %v145_v34 }
  0x90   :  { %v479_v43 = vrot.slane %v478_v42, 1 }
  0x91   :  { %282 = vst.msk [vmem:[%s913_s1] sm:$0x1] %vm14_vm0, %v280_v38 }
  0x92   :  { %v480_v45 = vadd.f32 %v479_v43, %v478_v42 }
  0x94   :  { %v481_v46 = vadd.f32 %v480_v45, %v283_v44 }
  0x96   :  { %482 = vst.msk [vmem:[%s914_s2] sm:$0x1] %vm14_vm0, %v481_v46 }

// kernel: generator_forward.21
= control target key start
LH: loop header
LB: loop body
LE: loop exit
PB: predicated region body
PF: predicated region fallthrough
CT: control target
= control target key end

     0   :  { %vm433_vm3 = vcmask 125952   ;;  %s1308_s1 = inlined_call_operand.vmem [shape: f32[1,16], index: 1, kind: input, shape index: {}]   ;;  %s1309_s2 = inlined_call_operand.vmem [shape: f32[1,16], index: 2, kind: input, shape index: {}]   ;;  %s1310_s0 = inlined_call_operand.vmem [shape: bf16[512,16], index: 0, kind: input, shape index: {}]   ;;  %s1311_s3 = inlined_call_operand.vmem [shape: f32[1,16], index: 3, kind: input, shape index: {}]   ;;  %s1312_s4 = inlined_call_operand.vmem [shape: f32[1,16], index: 4, kind: input, shape index: {}]   ;;  %s1313_s5 = inlined_call_operand.vmem [shape: bf16[512,16], index: 5, kind: output, shape index: {}]  }
   0x1   :  { %v20_v0 = vld [vmem:[%s1308_s1] sm:$0x1]  ;;  %v711_v12 = vld [vmem:[%s1310_s0 + $0x8] sm:$0xff]   ;;  %v716_v13 = vld [vmem:[%s1310_s0 + $0x10] sm:$0xff]  }
   0x2   :  { %v22_v1 = vld [vmem:[%s1309_s2] sm:$0x1]  ;;  %v699_v2 = vmul.f32 0.001953125, %v20_v0  ;;  %v721_v15 = vld [vmem:[%s1310_s0 + $0x18] sm:$0xff]   ;;  %v508_v19 = vunpack.c.l.bf16 %v711_v12  ;;  %v734_v20 = vld [vmem:[%s1310_s0 + $0x28] sm:$0xff]   ;;  %v509_v23 = vunpack.c.h.bf16 %v711_v12  ;;  %v512_v24 = vunpack.c.l.bf16 %v716_v13 }
   0x3   :  { %v23_v3 = vmul.f32 0.001953125, %v22_v1  ;;  %v706_v11 = vld [vmem:[%s1310_s0] sm:$0xff]   ;;  %v739_v21 = vld [vmem:[%s1310_s0 + $0x30] sm:$0xff]   ;;  %v513_v25 = vunpack.c.h.bf16 %v716_v13  ;;  %v747_v26 = vld [vmem:[%s1310_s0 + $0x38] sm:$0xff]   ;;  %v516_v29 = vunpack.c.l.bf16 %v721_v15  ;;  %v517_v30 = vunpack.c.h.bf16 %v721_v15 }
   0x4   :  { %v24_v4 = vmul.f32 %v699_v2, %v699_v2  ;;  %v726_v16 = vld [vmem:[%s1310_s0 + $0x20] sm:$0xff]   ;;  %v504_v17 = vunpack.c.l.bf16 %v706_v11  ;;  %v505_v18 = vunpack.c.h.bf16 %v706_v11  ;;  %v767_v33 = vld [vmem:[%s1310_s0 + $0x48] sm:$0xff]   ;;  %v524_v36 = vunpack.c.l.bf16 %v734_v20  ;;  %v778_v39 = vld [vmem:[%s1310_s0 + $0x50] sm:$0xff]  }
   0x5   :  { %v752_v27 = vld [vmem:[%s1310_s0 + $0x40] sm:$0xff]   ;;  %v520_v31 = vunpack.c.l.bf16 %v726_v16  ;;  %v521_v32 = vunpack.c.h.bf16 %v726_v16  ;;  %v525_v37 = vunpack.c.h.bf16 %v734_v20  ;;  %v528_v38 = vunpack.c.l.bf16 %v739_v21  ;;  %v783_v40 = vld [vmem:[%s1310_s0 + $0x58] sm:$0xff]   ;;  %v797_v46 = vld [vmem:[%s1310_s0 + $0x68] sm:$0xff]  }
   0x6   :  { %v25_v5 = vsub.f32 %v23_v3, %v24_v4  ;;  %v27_v34 = vld [vmem:[%s1311_s3] sm:$0x1]  ;;  %v529_v41 = vunpack.c.h.bf16 %v739_v21  ;;  %v532_v42 = vunpack.c.l.bf16 %v747_v26  ;;  %v533_v43 = vunpack.c.h.bf16 %v747_v26  ;;  %v807_v51 = vld [vmem:[%s1310_s0 + $0x70] sm:$0xff]   ;;  %v815_v56 = vld [vmem:[%s1310_s0 + $0x78] sm:$0xff]  }
   0x7   :  { %v536_v44 = vunpack.c.l.bf16 %v752_v27  ;;  %v792_v45 = vld [vmem:[%s1310_s0 + $0x60] sm:$0xff]   ;;  %v537_v48 = vunpack.c.h.bf16 %v752_v27  ;;  %v540_v49 = vunpack.c.l.bf16 %v767_v33  ;;  %v541_v50 = vunpack.c.h.bf16 %v767_v33 }
   0x8   :  { %v26_v6 = vmax.f32 %v25_v5, 0.0  ;;  %v544_v53 = vunpack.c.l.bf16 %v778_v39  ;;  %v545_v54 = vunpack.c.h.bf16 %v778_v39  ;;  %v548_v55 = vunpack.c.l.bf16 %v783_v40  ;;  %v40_v57 = vld [vmem:[%s1312_s4] sm:$0x1] }
   0x9   :  { %v549_v58 = vunpack.c.h.bf16 %v783_v40  ;;  %v552_v59 = vunpack.c.l.bf16 %v792_v45  ;;  %v553_v60 = vunpack.c.h.bf16 %v792_v45  ;;  %v556_v61 = vunpack.c.l.bf16 %v797_v46  ;;  %v832_v3 = vld [vmem:[%s1310_s0 + $0x80] sm:$0xff]  }
   0xa   :  { %v28_v7 = vadd.f32 1e-05, %v26_v6  ;;  %v557_v0 = vunpack.c.h.bf16 %v797_v46  ;;  %v560_v1 = vunpack.c.l.bf16 %v807_v51  ;;  %v561_v4 = vunpack.c.h.bf16 %v807_v51 }
   0xb   :  { %v564_v5 = vunpack.c.l.bf16 %v815_v56  ;;  %v565_v6 = vunpack.c.h.bf16 %v815_v56 }
   0xc   :  { %661 = vrsqrt.f32 %v28_v7  ;;  %vm35_vm0 = vweird.f32 %v28_v7 }
  0x12   :  { %v662_v8 = vpop.eup %661 }
  0x13   :  { %v30_v9 = vmul.f32 %v662_v8, %v28_v7  ;;  %vm36_vm1 = vweird.f32 %v662_v8 }
  0x14   :  { %vm756_vm2 = vmor %vm35_vm0, %vm36_vm1 }
  0x15   :  { %v31_v10 = vmul.f32 %v662_v8, %v30_v9 }
  0x17   :  { %v32_v14 = vmul.f32 0.5, %v31_v10 }
  0x19   :  { %v33_v22 = vsub.f32 1.5, %v32_v14 }
  0x1b   :  { %v34_v35 = vmul.f32 %v662_v8, %v33_v22 }
  0x1d   :  { %v38_v47 = vsel %vm756_vm2, %v662_v8, %v34_v35 }
  0x1e   :  { %v39_v52 = vmul.f32 %v38_v47, %v27_v34 }
  0x20   :  { %v41_v62 = vmul.f32 %v39_v52, %v699_v2  ;;  %v825_v63 = vperm.slane %v39_v52, 0  ;;  %v568_v2 = vunpack.c.l.bf16 %v832_v3 }
  0x22   :  { %v42_v7 = vsub.f32 %v40_v57, %v41_v62  ;;  %v174_v8 = vmul.f32 %v504_v17, %v825_v63  ;;  %v175_v9 = vmul.f32 %v505_v18, %v825_v63  ;;  %v176_v10 = vmul.f32 %v508_v19, %v825_v63 }
  0x23   :  { %v177_v11 = vmul.f32 %v509_v23, %v825_v63  ;;  %v178_v12 = vmul.f32 %v512_v24, %v825_v63  ;;  %v179_v13 = vmul.f32 %v513_v25, %v825_v63  ;;  %v180_v14 = vmul.f32 %v516_v29, %v825_v63 }
  0x24   :  { %v845_v15 = vperm.slane %v42_v7, 0  ;;  %v181_v16 = vmul.f32 %v517_v30, %v825_v63  ;;  %v182_v20 = vmul.f32 %v520_v31, %v825_v63  ;;  %v183_v17 = vmul.f32 %v521_v32, %v825_v63 }
  0x25   :  { %v184_v18 = vmul.f32 %v524_v36, %v825_v63  ;;  %v185_v19 = vmul.f32 %v525_v37, %v825_v63  ;;  %v186_v21 = vmul.f32 %v528_v38, %v825_v63  ;;  %v187_v22 = vmul.f32 %v529_v41, %v825_v63 }
  0x26   :  { %v241_v23 = vadd.f32 %v845_v15, %v174_v8  ;;  %v242_v24 = vadd.f32 %v845_v15, %v175_v9  ;;  %v243_v25 = vadd.f32 %v845_v15, %v176_v10  ;;  %v244_v28 = vadd.f32 %v845_v15, %v177_v11 }
  0x27   :  { %v245_v29 = vadd.f32 %v845_v15, %v178_v12  ;;  %v246_v30 = vadd.f32 %v845_v15, %v179_v13  ;;  %v247_v31 = vadd.f32 %v845_v15, %v180_v14  ;;  %v248_v32 = vadd.f32 %v845_v15, %v181_v16 }
  0x28   :  { %v305_v34 = vmax.f32 %v241_v23, 0.0  ;;  %v306_v35 = vmax.f32 %v242_v24, 0.0  ;;  %v307_v36 = vmax.f32 %v243_v25, 0.0  ;;  %v308_v37 = vmax.f32 %v244_v28, 0.0 }
  0x29   :  { %v309_v38 = vmax.f32 %v245_v29, 0.0  ;;  %v310_v41 = vmax.f32 %v246_v30, 0.0  ;;  %v311_v47 = vmax.f32 %v247_v31, 0.0  ;;  %v312_v52 = vmax.f32 %v248_v32, 0.0 }
  0x2a   :  { %v369_v57 = vpack.c.bf16 %v305_v34, %v305_v34  ;;  %v370_v62 = vpack.c.bf16 %v306_v35, %v306_v35  ;;  %v371_v7 = vpack.c.bf16 %v307_v36, %v307_v36  ;;  %v372_v8 = vpack.c.bf16 %v308_v37, %v308_v37 }
  0x2b   :  { %v373_v9 = vpack.c.bf16 %v309_v38, %v309_v38  ;;  %v374_v10 = vpack.c.bf16 %v310_v41, %v310_v41  ;;  %v375_v11 = vpack.c.bf16 %v311_v47, %v311_v47  ;;  %v376_v12 = vpack.c.bf16 %v312_v52, %v312_v52 }
  0x2c   :  { %434 = vst.msk [vmem:[%s1313_s5] sm:$0xf] %vm433_vm3, %v369_v57  ;;  %v249_v13 = vadd.f32 %v845_v15, %v182_v20  ;;  %v250_v14 = vadd.f32 %v845_v15, %v183_v17  ;;  %v251_v16 = vadd.f32 %v845_v15, %v184_v18  ;;  %v252_v23 = vadd.f32 %v845_v15, %v185_v19 }
  0x2d   :  { %435 = vst.msk [vmem:[%s1313_s5 + $0x4] sm:$0xf] %vm433_vm3, %v370_v62  ;;  %v253_v24 = vadd.f32 %v845_v15, %v186_v21  ;;  %v254_v25 = vadd.f32 %v845_v15, %v187_v22  ;;  %v188_v28 = vmul.f32 %v532_v42, %v825_v63  ;;  %v189_v20 = vmul.f32 %v533_v43, %v825_v63 }
  0x2e   :  { %436 = vst.msk [vmem:[%s1313_s5 + $0x8] sm:$0xf] %vm433_vm3, %v371_v7  ;;  %v313_v17 = vmax.f32 %v249_v13, 0.0  ;;  %v314_v18 = vmax.f32 %v250_v14, 0.0  ;;  %v315_v19 = vmax.f32 %v251_v16, 0.0  ;;  %v316_v29 = vmax.f32 %v252_v23, 0.0 }
  0x2f   :  { %437 = vst.msk [vmem:[%s1313_s5 + $0xc] sm:$0xf] %vm433_vm3, %v372_v8  ;;  %v317_v21 = vmax.f32 %v253_v24, 0.0  ;;  %v318_v42 = vmax.f32 %v254_v25, 0.0  ;;  %v255_v22 = vadd.f32 %v845_v15, %v188_v28  ;;  %v256_v26 = vadd.f32 %v845_v15, %v189_v20 }
  0x30   :  { %438 = vst.msk [vmem:[%s1313_s5 + $0x10] sm:$0xf] %vm433_vm3, %v373_v9  ;;  %v377_v43 = vpack.c.bf16 %v313_v17, %v313_v17  ;;  %v378_v30 = vpack.c.bf16 %v314_v18, %v314_v18  ;;  %v379_v31 = vpack.c.bf16 %v315_v19, %v315_v19  ;;  %v380_v32 = vpack.c.bf16 %v316_v29, %v316_v29 }
  0x31   :  { %439 = vst.msk [vmem:[%s1313_s5 + $0x14] sm:$0xf] %vm433_vm3, %v374_v10  ;;  %v381_v34 = vpack.c.bf16 %v317_v21, %v317_v21  ;;  %v382_v35 = vpack.c.bf16 %v318_v42, %v318_v42  ;;  %v319_v36 = vmax.f32 %v255_v22, 0.0  ;;  %v320_v37 = vmax.f32 %v256_v26, 0.0 }
  0x32   :  { %440 = vst.msk [vmem:[%s1313_s5 + $0x18] sm:$0xf] %vm433_vm3, %v375_v11  ;;  %v190_v38 = vmul.f32 %v536_v44, %v825_v63  ;;  %v191_v41 = vmul.f32 %v537_v48, %v825_v63  ;;  %v192_v47 = vmul.f32 %v540_v49, %v825_v63  ;;  %v193_v52 = vmul.f32 %v541_v50, %v825_v63 }
  0x33   :  { %441 = vst.msk [vmem:[%s1313_s5 + $0x1c] sm:$0xf] %vm433_vm3, %v376_v12  ;;  %v383_v57 = vpack.c.bf16 %v319_v36, %v319_v36  ;;  %v384_v62 = vpack.c.bf16 %v320_v37, %v320_v37  ;;  %v194_v27 = vmul.f32 %v544_v53, %v825_v63  ;;  %v195_v44 = vmul.f32 %v545_v54, %v825_v63 }
  0x34   :  { %442 = vst.msk [vmem:[%s1313_s5 + $0x20] sm:$0xf] %vm433_vm3, %v377_v43  ;;  %v257_v33 = vadd.f32 %v845_v15, %v190_v38  ;;  %v258_v48 = vadd.f32 %v845_v15, %v191_v41  ;;  %v259_v49 = vadd.f32 %v845_v15, %v192_v47  ;;  %v260_v50 = vadd.f32 %v845_v15, %v193_v52  ;;  %v647_v41 = vld [vmem:[%s1310_s0 + $0x90] sm:$0xff]  }
  0x35   :  { %443 = vst.msk [vmem:[%s1313_s5 + $0x24] sm:$0xf] %vm433_vm3, %v378_v30  ;;  %v261_v39 = vadd.f32 %v845_v15, %v194_v27  ;;  %v262_v53 = vadd.f32 %v845_v15, %v195_v44  ;;  %v196_v54 = vmul.f32 %v548_v55, %v825_v63  ;;  %v197_v7 = vmul.f32 %v549_v58, %v825_v63 }
  0x36   :  { %444 = vst.msk [vmem:[%s1313_s5 + $0x28] sm:$0xf] %vm433_vm3, %v379_v31  ;;  %v321_v8 = vmax.f32 %v257_v33, 0.0  ;;  %v322_v9 = vmax.f32 %v258_v48, 0.0  ;;  %v323_v10 = vmax.f32 %v259_v49, 0.0  ;;  %v324_v11 = vmax.f32 %v260_v50, 0.0 }
  0x37   :  { %445 = vst.msk [vmem:[%s1313_s5 + $0x2c] sm:$0xf] %vm433_vm3, %v380_v32  ;;  %v325_v12 = vmax.f32 %v261_v39, 0.0  ;;  %v326_v55 = vmax.f32 %v262_v53, 0.0  ;;  %v263_v13 = vadd.f32 %v845_v15, %v196_v54  ;;  %v264_v40 = vadd.f32 %v845_v15, %v197_v7  ;;  %v648_v49 = vld [vmem:[%s1310_s0 + $0x98] sm:$0xff]  }
  0x38   :  { %446 = vst.msk [vmem:[%s1313_s5 + $0x30] sm:$0xf] %vm433_vm3, %v381_v34  ;;  %v385_v58 = vpack.c.bf16 %v321_v8, %v321_v8  ;;  %v386_v14 = vpack.c.bf16 %v322_v9, %v322_v9  ;;  %v387_v16 = vpack.c.bf16 %v323_v10, %v323_v10  ;;  %v388_v23 = vpack.c.bf16 %v324_v11, %v324_v11 }
  0x39   :  { %447 = vst.msk [vmem:[%s1313_s5 + $0x34] sm:$0xf] %vm433_vm3, %v382_v35  ;;  %v389_v24 = vpack.c.bf16 %v325_v12, %v325_v12  ;;  %v390_v25 = vpack.c.bf16 %v326_v55, %v326_v55  ;;  %v327_v28 = vmax.f32 %v263_v13, 0.0  ;;  %v328_v20 = vmax.f32 %v264_v40, 0.0 }
  0x3a   :  { %448 = vst.msk [vmem:[%s1313_s5 + $0x38] sm:$0xf] %vm433_vm3, %v383_v57  ;;  %v198_v17 = vmul.f32 %v552_v59, %v825_v63  ;;  %v199_v18 = vmul.f32 %v553_v60, %v825_v63  ;;  %v200_v19 = vmul.f32 %v556_v61, %v825_v63  ;;  %v201_v29 = vmul.f32 %v557_v0, %v825_v63 }
  0x3b   :  { %449 = vst.msk [vmem:[%s1313_s5 + $0x3c] sm:$0xf] %vm433_vm3, %v384_v62  ;;  %v391_v21 = vpack.c.bf16 %v327_v28, %v327_v28  ;;  %v392_v42 = vpack.c.bf16 %v328_v20, %v328_v20  ;;  %v202_v45 = vmul.f32 %v560_v1, %v825_v63  ;;  %v203_v59 = vmul.f32 %v561_v4, %v825_v63 }
  0x3c   :  { %450 = vst.msk [vmem:[%s1313_s5 + $0x40] sm:$0xf] %vm433_vm3, %v385_v58  ;;  %v265_v46 = vadd.f32 %v845_v15, %v198_v17  ;;  %v266_v60 = vadd.f32 %v845_v15, %v199_v18  ;;  %v267_v61 = vadd.f32 %v845_v15, %v200_v19  ;;  %v268_v0 = vadd.f32 %v845_v15, %v201_v29 }
  0x3d   :  { %451 = vst.msk [vmem:[%s1313_s5 + $0x44] sm:$0xf] %vm433_vm3, %v386_v14  ;;  %v269_v51 = vadd.f32 %v845_v15, %v202_v45  ;;  %v270_v1 = vadd.f32 %v845_v15, %v203_v59  ;;  %v204_v4 = vmul.f32 %v564_v5, %v825_v63  ;;  %v205_v22 = vmul.f32 %v565_v6, %v825_v63  ;;  %v646_v6 = vld [vmem:[%s1310_s0 + $0x88] sm:$0xff]  }
  0x3e   :  { %452 = vst.msk [vmem:[%s1313_s5 + $0x48] sm:$0xf] %vm433_vm3, %v387_v16  ;;  %v329_v26 = vmax.f32 %v265_v46, 0.0  ;;  %v330_v43 = vmax.f32 %v266_v60, 0.0  ;;  %v331_v30 = vmax.f32 %v267_v61, 0.0  ;;  %v332_v31 = vmax.f32 %v268_v0, 0.0 }
  0x3f   :  { %453 = vst.msk [vmem:[%s1313_s5 + $0x4c] sm:$0xf] %vm433_vm3, %v388_v23  ;;  %v333_v32 = vmax.f32 %v269_v51, 0.0  ;;  %v334_v5 = vmax.f32 %v270_v1, 0.0  ;;  %v271_v34 = vadd.f32 %v845_v15, %v204_v4  ;;  %v272_v56 = vadd.f32 %v845_v15, %v205_v22  ;;  %v650_v45 = vld [vmem:[%s1310_s0 + $0xa8] sm:$0xff]   ;;  %v651_v0 = vld [vmem:[%s1310_s0 + $0xb0] sm:$0xff]  }
  0x40   :  { %454 = vst.msk [vmem:[%s1313_s5 + $0x50] sm:$0xf] %vm433_vm3, %v389_v24  ;;  %v393_v35 = vpack.c.bf16 %v329_v26, %v329_v26  ;;  %v394_v36 = vpack.c.bf16 %v330_v43, %v330_v43  ;;  %v395_v37 = vpack.c.bf16 %v331_v30, %v331_v30  ;;  %v396_v38 = vpack.c.bf16 %v332_v31, %v332_v31 }
  0x41   :  { %455 = vst.msk [vmem:[%s1313_s5 + $0x54] sm:$0xf] %vm433_vm3, %v390_v25  ;;  %v397_v47 = vpack.c.bf16 %v333_v32, %v333_v32  ;;  %v398_v52 = vpack.c.bf16 %v334_v5, %v334_v5  ;;  %v335_v57 = vmax.f32 %v271_v34, 0.0  ;;  %v336_v62 = vmax.f32 %v272_v56, 0.0  ;;  %v649_v25 = vld [vmem:[%s1310_s0 + $0xa0] sm:$0xff]   ;;  %v652_v32 = vld [vmem:[%s1310_s0 + $0xb8] sm:$0xff]  }
  0x42   :  { %456 = vst.msk [vmem:[%s1313_s5 + $0x58] sm:$0xf] %vm433_vm3, %v391_v21  ;;  %v206_v27 = vmul.f32 %v568_v2, %v825_v63  ;;  %v569_v44 = vunpack.c.h.bf16 %v832_v3  ;;  %v572_v33 = vunpack.c.l.bf16 %v646_v6  ;;  %v573_v48 = vunpack.c.h.bf16 %v646_v6 }
  0x43   :  { %457 = vst.msk [vmem:[%s1313_s5 + $0x5c] sm:$0xf] %vm433_vm3, %v392_v42  ;;  %v399_v50 = vpack.c.bf16 %v335_v57, %v335_v57  ;;  %v400_v39 = vpack.c.bf16 %v336_v62, %v336_v62  ;;  %v576_v53 = vunpack.c.l.bf16 %v647_v41  ;;  %v577_v54 = vunpack.c.h.bf16 %v647_v41 }
  0x44   :  { %458 = vst.msk [vmem:[%s1313_s5 + $0x60] sm:$0xf] %vm433_vm3, %v393_v35  ;;  %v273_v3 = vadd.f32 %v845_v15, %v206_v27  ;;  %v207_v2 = vmul.f32 %v569_v44, %v825_v63  ;;  %v208_v7 = vmul.f32 %v572_v33, %v825_v63  ;;  %v209_v8 = vmul.f32 %v573_v48, %v825_v63 }
  0x45   :  { %459 = vst.msk [vmem:[%s1313_s5 + $0x64] sm:$0xf] %vm433_vm3, %v394_v36  ;;  %v210_v9 = vmul.f32 %v576_v53, %v825_v63  ;;  %v211_v10 = vmul.f32 %v577_v54, %v825_v63  ;;  %v580_v11 = vunpack.c.l.bf16 %v648_v49  ;;  %v581_v12 = vunpack.c.h.bf16 %v648_v49  ;;  %v653_v53 = vld [vmem:[%s1310_s0 + $0xc0] sm:$0xff]  }
  0x46   :  { %460 = vst.msk [vmem:[%s1313_s5 + $0x68] sm:$0xf] %vm433_vm3, %v395_v37  ;;  %v337_v55 = vmax.f32 %v273_v3, 0.0  ;;  %v274_v13 = vadd.f32 %v845_v15, %v207_v2  ;;  %v275_v40 = vadd.f32 %v845_v15, %v208_v7  ;;  %v276_v58 = vadd.f32 %v845_v15, %v209_v8 }
  0x47   :  { %461 = vst.msk [vmem:[%s1313_s5 + $0x6c] sm:$0xf] %vm433_vm3, %v396_v38  ;;  %v277_v14 = vadd.f32 %v845_v15, %v210_v9  ;;  %v278_v16 = vadd.f32 %v845_v15, %v211_v10  ;;  %v212_v23 = vmul.f32 %v580_v11, %v825_v63  ;;  %v213_v24 = vmul.f32 %v581_v12, %v825_v63  ;;  %v654_v12 = vld [vmem:[%s1310_s0 + $0xc8] sm:$0xff]  }
  0x48   :  { %462 = vst.msk [vmem:[%s1313_s5 + $0x70] sm:$0xf] %vm433_vm3, %v397_v47  ;;  %v401_v28 = vpack.c.bf16 %v337_v55, %v337_v55  ;;  %v338_v20 = vmax.f32 %v274_v13, 0.0  ;;  %v339_v17 = vmax.f32 %v275_v40, 0.0  ;;  %v340_v18 = vmax.f32 %v276_v58, 0.0 }
  0x49   :  { %463 = vst.msk [vmem:[%s1313_s5 + $0x74] sm:$0xf] %vm433_vm3, %v398_v52  ;;  %v341_v19 = vmax.f32 %v277_v14, 0.0  ;;  %v342_v29 = vmax.f32 %v278_v16, 0.0  ;;  %v279_v21 = vadd.f32 %v845_v15, %v212_v23  ;;  %v280_v42 = vadd.f32 %v845_v15, %v213_v24  ;;  %v655_v14 = vld [vmem:[%s1310_s0 + $0xd0] sm:$0xff]  }
  0x4a   :  { %464 = vst.msk [vmem:[%s1313_s5 + $0x78] sm:$0xf] %vm433_vm3, %v399_v50  ;;  %v402_v59 = vpack.c.bf16 %v338_v20, %v338_v20  ;;  %v403_v46 = vpack.c.bf16 %v339_v17, %v339_v17  ;;  %v404_v60 = vpack.c.bf16 %v340_v18, %v340_v18  ;;  %v584_v61 = vunpack.c.l.bf16 %v649_v25 }
  0x4b   :  { %465 = vst.msk [vmem:[%s1313_s5 + $0x7c] sm:$0xf] %vm433_vm3, %v400_v39  ;;  %v405_v51 = vpack.c.bf16 %v341_v19, %v341_v19  ;;  %v406_v1 = vpack.c.bf16 %v342_v29, %v342_v29  ;;  %v343_v4 = vmax.f32 %v279_v21, 0.0  ;;  %v344_v22 = vmax.f32 %v280_v42, 0.0  ;;  %v656_v19 = vld [vmem:[%s1310_s0 + $0xd8] sm:$0xff]  }
  0x4c   :  { %466 = vst.msk [vmem:[%s1313_s5 + $0x80] sm:$0xf] %vm433_vm3, %v401_v28  ;;  %v214_v26 = vmul.f32 %v584_v61, %v825_v63  ;;  %v585_v43 = vunpack.c.h.bf16 %v649_v25  ;;  %v588_v30 = vunpack.c.l.bf16 %v650_v45  ;;  %v589_v31 = vunpack.c.h.bf16 %v650_v45 }
  0x4d   :  { %467 = vst.msk [vmem:[%s1313_s5 + $0x84] sm:$0xf] %vm433_vm3, %v402_v59  ;;  %v407_v5 = vpack.c.bf16 %v343_v4, %v343_v4  ;;  %v408_v34 = vpack.c.bf16 %v344_v22, %v344_v22  ;;  %v592_v56 = vunpack.c.l.bf16 %v651_v0  ;;  %v593_v6 = vunpack.c.h.bf16 %v651_v0 }
  0x4e   :  { %468 = vst.msk [vmem:[%s1313_s5 + $0x88] sm:$0xf] %vm433_vm3, %v403_v46  ;;  %v281_v35 = vadd.f32 %v845_v15, %v214_v26  ;;  %v215_v36 = vmul.f32 %v585_v43, %v825_v63  ;;  %v216_v37 = vmul.f32 %v588_v30, %v825_v63  ;;  %v217_v38 = vmul.f32 %v589_v31, %v825_v63 }
  0x4f   :  { %469 = vst.msk [vmem:[%s1313_s5 + $0x8c] sm:$0xf] %vm433_vm3, %v404_v60  ;;  %v218_v41 = vmul.f32 %v592_v56, %v825_v63  ;;  %v219_v47 = vmul.f32 %v593_v6, %v825_v63  ;;  %v596_v52 = vunpack.c.l.bf16 %v652_v32  ;;  %v597_v57 = vunpack.c.h.bf16 %v652_v32  ;;  %v657_v56 = vld [vmem:[%s1310_s0 + $0xe0] sm:$0xff]  }
  0x50   :  { %470 = vst.msk [vmem:[%s1313_s5 + $0x90] sm:$0xf] %vm433_vm3, %v405_v51  ;;  %v345_v62 = vmax.f32 %v281_v35, 0.0  ;;  %v282_v27 = vadd.f32 %v845_v15, %v215_v36  ;;  %v283_v44 = vadd.f32 %v845_v15, %v216_v37  ;;  %v284_v33 = vadd.f32 %v845_v15, %v217_v38 }
  0x51   :  { %471 = vst.msk [vmem:[%s1313_s5 + $0x94] sm:$0xf] %vm433_vm3, %v406_v1  ;;  %v285_v48 = vadd.f32 %v845_v15, %v218_v41  ;;  %v286_v49 = vadd.f32 %v845_v15, %v219_v47  ;;  %v220_v50 = vmul.f32 %v596_v52, %v825_v63  ;;  %v221_v39 = vmul.f32 %v597_v57, %v825_v63  ;;  %v658_v57 = vld [vmem:[%s1310_s0 + $0xe8] sm:$0xff]  }
  0x52   :  { %472 = vst.msk [vmem:[%s1313_s5 + $0x98] sm:$0xf] %vm433_vm3, %v407_v5  ;;  %v409_v54 = vpack.c.bf16 %v345_v62, %v345_v62  ;;  %v346_v3 = vmax.f32 %v282_v27, 0.0  ;;  %v347_v2 = vmax.f32 %v283_v44, 0.0  ;;  %v348_v7 = vmax.f32 %v284_v33, 0.0 }
  0x53   :  { %473 = vst.msk [vmem:[%s1313_s5 + $0x9c] sm:$0xf] %vm433_vm3, %v408_v34  ;;  %v349_v8 = vmax.f32 %v285_v48, 0.0  ;;  %v350_v9 = vmax.f32 %v286_v49, 0.0  ;;  %v287_v10 = vadd.f32 %v845_v15, %v220_v50  ;;  %v288_v11 = vadd.f32 %v845_v15, %v221_v39  ;;  %v659_v48 = vld [vmem:[%s1310_s0 + $0xf0] sm:$0xff]  }
  0x54   :  { %474 = vst.msk [vmem:[%s1313_s5 + $0xa0] sm:$0xf] %vm433_vm3, %v409_v54  ;;  %v410_v55 = vpack.c.bf16 %v346_v3, %v346_v3  ;;  %v411_v13 = vpack.c.bf16 %v347_v2, %v347_v2  ;;  %v412_v40 = vpack.c.bf16 %v348_v7, %v348_v7  ;;  %v600_v58 = vunpack.c.l.bf16 %v653_v53 }
  0x55   :  { %v413_v16 = vpack.c.bf16 %v349_v8, %v349_v8  ;;  %v414_v23 = vpack.c.bf16 %v350_v9, %v350_v9  ;;  %v351_v24 = vmax.f32 %v287_v10, 0.0  ;;  %v352_v25 = vmax.f32 %v288_v11, 0.0  ;;  %v660_v8 = vld [vmem:[%s1310_s0 + $0xf8] sm:$0xff]  }
  0x56   :  { %475 = vst.msk [vmem:[%s1313_s5 + $0xa4] sm:$0xf] %vm433_vm3, %v410_v55  ;;  %v222_v28 = vmul.f32 %v600_v58, %v825_v63  ;;  %v601_v20 = vunpack.c.h.bf16 %v653_v53  ;;  %v604_v17 = vunpack.c.l.bf16 %v654_v12  ;;  %v605_v18 = vunpack.c.h.bf16 %v654_v12 }
  0x57   :  { %476 = vst.msk [vmem:[%s1313_s5 + $0xa8] sm:$0xf] %vm433_vm3, %v411_v13  ;;  %v415_v29 = vpack.c.bf16 %v351_v24, %v351_v24  ;;  %v416_v21 = vpack.c.bf16 %v352_v25, %v352_v25  ;;  %v608_v42 = vunpack.c.l.bf16 %v655_v14  ;;  %v609_v45 = vunpack.c.h.bf16 %v655_v14 }
  0x58   :  { %477 = vst.msk [vmem:[%s1313_s5 + $0xac] sm:$0xf] %vm433_vm3, %v412_v40  ;;  %v289_v59 = vadd.f32 %v845_v15, %v222_v28  ;;  %v223_v46 = vmul.f32 %v601_v20, %v825_v63  ;;  %v224_v60 = vmul.f32 %v604_v17, %v825_v63  ;;  %v225_v61 = vmul.f32 %v605_v18, %v825_v63 }
  0x59   :  { %478 = vst.msk [vmem:[%s1313_s5 + $0xb0] sm:$0xf] %vm433_vm3, %v413_v16  ;;  %v226_v0 = vmul.f32 %v608_v42, %v825_v63  ;;  %v227_v51 = vmul.f32 %v609_v45, %v825_v63  ;;  %v612_v1 = vunpack.c.l.bf16 %v656_v19  ;;  %v613_v4 = vunpack.c.h.bf16 %v656_v19 }
  0x5a   :  { %479 = vst.msk [vmem:[%s1313_s5 + $0xb4] sm:$0xf] %vm433_vm3, %v414_v23  ;;  %v353_v22 = vmax.f32 %v289_v59, 0.0  ;;  %v290_v26 = vadd.f32 %v845_v15, %v223_v46  ;;  %v291_v43 = vadd.f32 %v845_v15, %v224_v60  ;;  %v292_v30 = vadd.f32 %v845_v15, %v225_v61 }
  0x5b   :  { %480 = vst.msk [vmem:[%s1313_s5 + $0xb8] sm:$0xf] %vm433_vm3, %v415_v29  ;;  %v293_v31 = vadd.f32 %v845_v15, %v226_v0  ;;  %v294_v32 = vadd.f32 %v845_v15, %v227_v51  ;;  %v228_v5 = vmul.f32 %v612_v1, %v825_v63  ;;  %v229_v34 = vmul.f32 %v613_v4, %v825_v63 }
  0x5c   :  { %481 = vst.msk [vmem:[%s1313_s5 + $0xbc] sm:$0xf] %vm433_vm3, %v416_v21  ;;  %v417_v6 = vpack.c.bf16 %v353_v22, %v353_v22  ;;  %v354_v35 = vmax.f32 %v290_v26, 0.0  ;;  %v355_v36 = vmax.f32 %v291_v43, 0.0  ;;  %v356_v37 = vmax.f32 %v292_v30, 0.0 }
  0x5d   :  { %v357_v38 = vmax.f32 %v293_v31, 0.0  ;;  %v358_v41 = vmax.f32 %v294_v32, 0.0  ;;  %v295_v47 = vadd.f32 %v845_v15, %v228_v5  ;;  %v296_v52 = vadd.f32 %v845_v15, %v229_v34 }
  0x5e   :  { %482 = vst.msk [vmem:[%s1313_s5 + $0xc0] sm:$0xf] %vm433_vm3, %v417_v6  ;;  %v418_v62 = vpack.c.bf16 %v354_v35, %v354_v35  ;;  %v419_v27 = vpack.c.bf16 %v355_v36, %v355_v36  ;;  %v420_v44 = vpack.c.bf16 %v356_v37, %v356_v37  ;;  %v616_v33 = vunpack.c.l.bf16 %v657_v56 }
  0x5f   :  { %v421_v49 = vpack.c.bf16 %v357_v38, %v357_v38  ;;  %v422_v50 = vpack.c.bf16 %v358_v41, %v358_v41  ;;  %v359_v39 = vmax.f32 %v295_v47, 0.0  ;;  %v360_v53 = vmax.f32 %v296_v52, 0.0 }
  0x60   :  { %483 = vst.msk [vmem:[%s1313_s5 + $0xc4] sm:$0xf] %vm433_vm3, %v418_v62  ;;  %v230_v54 = vmul.f32 %v616_v33, %v825_v63  ;;  %v617_v3 = vunpack.c.h.bf16 %v657_v56  ;;  %v620_v2 = vunpack.c.l.bf16 %v658_v57  ;;  %v621_v7 = vunpack.c.h.bf16 %v658_v57 }
  0x61   :  { %484 = vst.msk [vmem:[%s1313_s5 + $0xc8] sm:$0xf] %vm433_vm3, %v419_v27  ;;  %v423_v9 = vpack.c.bf16 %v359_v39, %v359_v39  ;;  %v424_v10 = vpack.c.bf16 %v360_v53, %v360_v53  ;;  %v624_v11 = vunpack.c.l.bf16 %v659_v48  ;;  %v625_v12 = vunpack.c.h.bf16 %v659_v48 }
  0x62   :  { %485 = vst.msk [vmem:[%s1313_s5 + $0xcc] sm:$0xf] %vm433_vm3, %v420_v44  ;;  %v297_v55 = vadd.f32 %v845_v15, %v230_v54  ;;  %v231_v13 = vmul.f32 %v617_v3, %v825_v63  ;;  %v232_v40 = vmul.f32 %v620_v2, %v825_v63  ;;  %v233_v58 = vmul.f32 %v621_v7, %v825_v63 }
  0x63   :  { %486 = vst.msk [vmem:[%s1313_s5 + $0xd0] sm:$0xf] %vm433_vm3, %v421_v49  ;;  %v234_v14 = vmul.f32 %v624_v11, %v825_v63  ;;  %v235_v16 = vmul.f32 %v625_v12, %v825_v63  ;;  %v628_v23 = vunpack.c.l.bf16 %v660_v8  ;;  %v629_v24 = vunpack.c.h.bf16 %v660_v8 }
  0x64   :  { %487 = vst.msk [vmem:[%s1313_s5 + $0xd4] sm:$0xf] %vm433_vm3, %v422_v50  ;;  %v361_v25 = vmax.f32 %v297_v55, 0.0  ;;  %v298_v28 = vadd.f32 %v845_v15, %v231_v13  ;;  %v299_v20 = vadd.f32 %v845_v15, %v232_v40  ;;  %v300_v17 = vadd.f32 %v845_v15, %v233_v58 }
  0x65   :  { %488 = vst.msk [vmem:[%s1313_s5 + $0xd8] sm:$0xf] %vm433_vm3, %v423_v9  ;;  %v301_v18 = vadd.f32 %v845_v15, %v234_v14  ;;  %v302_v19 = vadd.f32 %v845_v15, %v235_v16  ;;  %v236_v29 = vmul.f32 %v628_v23, %v825_v63  ;;  %v237_v21 = vmul.f32 %v629_v24, %v825_v63 }
  0x66   :  { %489 = vst.msk [vmem:[%s1313_s5 + $0xdc] sm:$0xf] %vm433_vm3, %v424_v10  ;;  %v425_v42 = vpack.c.bf16 %v361_v25, %v361_v25  ;;  %v362_v45 = vmax.f32 %v298_v28, 0.0  ;;  %v363_v59 = vmax.f32 %v299_v20, 0.0  ;;  %v364_v46 = vmax.f32 %v300_v17, 0.0 }
  0x67   :  { %v365_v60 = vmax.f32 %v301_v18, 0.0  ;;  %v366_v61 = vmax.f32 %v302_v19, 0.0  ;;  %v303_v0 = vadd.f32 %v845_v15, %v236_v29  ;;  %v304_v51 = vadd.f32 %v845_v15, %v237_v21 }
  0x68   :  { %490 = vst.msk [vmem:[%s1313_s5 + $0xe0] sm:$0xf] %vm433_vm3, %v425_v42  ;;  %v426_v63 = vpack.c.bf16 %v362_v45, %v362_v45  ;;  %v427_v1 = vpack.c.bf16 %v363_v59, %v363_v59  ;;  %v428_v4 = vpack.c.bf16 %v364_v46, %v364_v46 }
  0x69   :  { %v429_v22 = vpack.c.bf16 %v365_v60, %v365_v60  ;;  %v367_v26 = vmax.f32 %v303_v0, 0.0  ;;  %v368_v43 = vmax.f32 %v304_v51, 0.0  ;;  %v430_v30 = vpack.c.bf16 %v366_v61, %v366_v61 }
  0x6a   :  { %491 = vst.msk [vmem:[%s1313_s5 + $0xe4] sm:$0xf] %vm433_vm3, %v426_v63 }
  0x6b   :  { %492 = vst.msk [vmem:[%s1313_s5 + $0xe8] sm:$0xf] %vm433_vm3, %v427_v1  ;;  %v431_v15 = vpack.c.bf16 %v367_v26, %v367_v26  ;;  %v432_v31 = vpack.c.bf16 %v368_v43, %v368_v43 }
  0x6c   :  { %493 = vst.msk [vmem:[%s1313_s5 + $0xec] sm:$0xf] %vm433_vm3, %v428_v4 }
  0x6d   :  { %494 = vst.msk [vmem:[%s1313_s5 + $0xf0] sm:$0xf] %vm433_vm3, %v429_v22 }
  0x6e   :  { %495 = vst.msk [vmem:[%s1313_s5 + $0xf4] sm:$0xf] %vm433_vm3, %v430_v30 }
  0x6f   :  { %496 = vst.msk [vmem:[%s1313_s5 + $0xf8] sm:$0xf] %vm433_vm3, %v431_v15 }
  0x70   :  { %497 = vst.msk [vmem:[%s1313_s5 + $0xfc] sm:$0xf] %vm433_vm3, %v432_v31 }

// kernel: generator_forward.22
= control target key start
LH: loop header
LB: loop body
LE: loop exit
PB: predicated region body
PF: predicated region fallthrough
CT: control target
= control target key end

     0   :  { %s1447_s9 = smov 0   ;;  %s1449_s10 = smov 0   ;;  %s1591_s0 = inlined_call_operand.vmem [shape: bf16[4,512,64], index: 0, kind: input, shape index: {}]   ;;  %s1592_s1 = inlined_call_operand.vmem [shape: bf16[4,64,128], index: 1, kind: input, shape index: {}]   ;;  %s1593_s2 = inlined_call_operand.vmem [shape: bf16[4,512,128], index: 2, kind: output, shape index: {}]  }
   0x1   :  { %s1451_s11 = smov 0  }
   0x2 LB: > { %s24_s12 = sadd.s32 1, %s1426_s10  ;;  %p957_p0 = scmp.ge.s32.totalorder %s1430_s11, 1  ;;  %s1430_s11 = sphi %s1451_s11, %s12_s11   ;;  %s1426_s10 = sphi %s1449_s10, %s1595_s10   ;;  %s1422_s9 = sphi %s1447_s9, %s1594_s9  }
   0x3   : > { %p26_p1 = scmp.ge.s32.totalorder %s24_s12, 4  ;;  %p143_p2 = scmp.lt.s32.totalorder %s1430_s11, 5 }
   0x5   : > { %s1597_s12 = smov (%p26_p1, %s24_s12), 0  ;;  %p144_p3 = pnand %p957_p0, %p143_p2 }
   0x6   : > { %p179_p4 = scmp.lt.s32.totalorder (!%p144_p3), %s1422_s9, 3 }
   0x7   : > { %147 = sbr.rel (%p144_p3) target bundleno = 288 (0x120), region = 28 }
   0xc   : > { %s1599_s9 = smov (!%p179_p4, %s1422_s9), 3  ;;  %vm460_vm0 = vcmask 523264  }
   0xd   : > { %s1143_s13 = sshll.u32 %s1599_s9, 5  ;;  %s1142_s17 = sshll.u32 %s1599_s9, 8 }
   0xe   : > { %s192_s16 = scalar_lea.vmem %s1592_s1, %s1143_s13  ;;  %s1477_s20 = scalar_lea.vmem %s1591_s0, %s1142_s17 }
   0xf   : > { %v1180_v0 = vld [vmem:[%s192_s16 + $0x18] sm:$0xff]  ;;  %v1179_v1 = vld [vmem:[%s192_s16 + $0x10] sm:$0xff]  ;;  %v1178_v2 = vld [vmem:[%s192_s16 + $0x8] sm:$0xff]  ;;  %s1548_s23 = scalar_lea.vmem %s1593_s2, %s1142_s17 }
  0x10   : > { %561 = vmatpush.bf16.msra.mxu0 %v1180_v0  ;;  %1372 = vmatpush.bf16.msra.mxu1 %v1180_v0  ;;  %v1177_v3 = vld [vmem:[%s192_s16] sm:$0xff]  ;;  %v1146_v8 = vld [vmem:[%s1477_s20 + $0x8] sm:$0xff]  ;;  %v1147_v12 = vld [vmem:[%s1477_s20 + $0x10] sm:$0xff] }
  0x11   : > { %1373 = vmatpush.bf16.msra.mxu2 %v1180_v0  ;;  %1374 = vmatpush.bf16.msra.mxu3 %v1180_v0  ;;  %v1145_v4 = vld [vmem:[%s1477_s20] sm:$0xff]  ;;  %v1154_v9 = vld [vmem:[%s1477_s20 + $0x48] sm:$0xff]  ;;  %v1155_v13 = vld [vmem:[%s1477_s20 + $0x50] sm:$0xff] }
  0x12   : > { %v1153_v5 = vld [vmem:[%s1477_s20 + $0x40] sm:$0xff]  ;;  %v1162_v10 = vld [vmem:[%s1477_s20 + $0x88] sm:$0xff]  ;;  %v1163_v14 = vld [vmem:[%s1477_s20 + $0x90] sm:$0xff] }
  0x13   : > { %v1161_v6 = vld [vmem:[%s1477_s20 + $0x80] sm:$0xff]  ;;  %v1170_v11 = vld [vmem:[%s1477_s20 + $0xc8] sm:$0xff]  ;;  %v1171_v15 = vld [vmem:[%s1477_s20 + $0xd0] sm:$0xff] }
  0x14   : > { %562 = vmatpush.bf16.msra.mxu0 %v1179_v1  ;;  %1375 = vmatpush.bf16.msra.mxu1 %v1179_v1  ;;  %v1169_v7 = vld [vmem:[%s1477_s20 + $0xc0] sm:$0xff]  ;;  %v1148_v16 = vld [vmem:[%s1477_s20 + $0x18] sm:$0xff]  ;;  %v1150_v24 = vld [vmem:[%s1477_s20 + $0x28] sm:$0xff] }
  0x15   : > { %1376 = vmatpush.bf16.msra.mxu2 %v1179_v1  ;;  %1377 = vmatpush.bf16.msra.mxu3 %v1179_v1  ;;  %v1156_v17 = vld [vmem:[%s1477_s20 + $0x58] sm:$0xff]  ;;  %v1149_v20 = vld [vmem:[%s1477_s20 + $0x20] sm:$0xff]  ;;  %v1158_v25 = vld [vmem:[%s1477_s20 + $0x68] sm:$0xff] }
  0x16   : > { %v1164_v18 = vld [vmem:[%s1477_s20 + $0x98] sm:$0xff]  ;;  %v1157_v21 = vld [vmem:[%s1477_s20 + $0x60] sm:$0xff]  ;;  %v1166_v26 = vld [vmem:[%s1477_s20 + $0xa8] sm:$0xff] }
  0x17   : > { %v1172_v19 = vld [vmem:[%s1477_s20 + $0xd8] sm:$0xff]  ;;  %v1165_v22 = vld [vmem:[%s1477_s20 + $0xa0] sm:$0xff]  ;;  %v1174_v27 = vld [vmem:[%s1477_s20 + $0xe8] sm:$0xff] }
  0x18   : > { %563 = vmatpush.bf16.msra.mxu0 %v1178_v2  ;;  %1378 = vmatpush.bf16.msra.mxu1 %v1178_v2  ;;  %v1173_v23 = vld [vmem:[%s1477_s20 + $0xe0] sm:$0xff]  ;;  %v1151_v28 = vld [vmem:[%s1477_s20 + $0x30] sm:$0xff]  ;;  %v1152_v32 = vld [vmem:[%s1477_s20 + $0x38] sm:$0xff] }
  0x19   : > { %1379 = vmatpush.bf16.msra.mxu2 %v1178_v2  ;;  %1380 = vmatpush.bf16.msra.mxu3 %v1178_v2  ;;  %v1159_v29 = vld [vmem:[%s1477_s20 + $0x70] sm:$0xff]  ;;  %v1160_v33 = vld [vmem:[%s1477_s20 + $0x78] sm:$0xff] }
  0x1a   : > { %v1167_v30 = vld [vmem:[%s1477_s20 + $0xb0] sm:$0xff]  ;;  %v1168_v34 = vld [vmem:[%s1477_s20 + $0xb8] sm:$0xff] }
  0x1b   : > { %v1175_v31 = vld [vmem:[%s1477_s20 + $0xf0] sm:$0xff]  ;;  %v1176_v35 = vld [vmem:[%s1477_s20 + $0xf8] sm:$0xff] }
  0x1c   : > { %564 = vmatpush.bf16.msra.mxu0 %v1177_v3  ;;  %1381 = vmatpush.bf16.msra.mxu1 %v1177_v3 }
  0x1d   : > { %1382 = vmatpush.bf16.msra.mxu2 %v1177_v3  ;;  %1383 = vmatpush.bf16.msra.mxu3 %v1177_v3 }
  0x1f   : > { %1108 = vmatmul.msk.bf16.vlgmr.msra.gmra.mxu0 %vm460_vm0, %v1145_v4  ;;  %1116 = vmatmul.msk.bf16.vlgmr.msra.gmra.mxu1 %vm460_vm0, %v1153_v5 }
  0x20   : > { %1124 = vmatmul.msk.bf16.vlgmr.msra.gmra.mxu2 %vm460_vm0, %v1161_v6  ;;  %1132 = vmatmul.msk.bf16.vlgmr.msra.gmra.mxu3 %vm460_vm0, %v1169_v7 }
  0x2f   : > { %1109 = vmatmul.msk.bf16.gmra.mxu0 %vm460_vm0, %v1146_v8  ;;  %1117 = vmatmul.msk.bf16.gmra.mxu1 %vm460_vm0, %v1154_v9 }
  0x30   : > { %1125 = vmatmul.msk.bf16.gmra.mxu2 %vm460_vm0, %v1162_v10  ;;  %1133 = vmatmul.msk.bf16.gmra.mxu3 %vm460_vm0, %v1170_v11 }
  0x3f   : > { %1110 = vmatmul.msk.bf16.gmra.mxu0 %vm460_vm0, %v1147_v12  ;;  %1118 = vmatmul.msk.bf16.gmra.mxu1 %vm460_vm0, %v1155_v13 }
  0x40   : > { %1126 = vmatmul.msk.bf16.gmra.mxu2 %vm460_vm0, %v1163_v14  ;;  %1134 = vmatmul.msk.bf16.gmra.mxu3 %vm460_vm0, %v1171_v15 }
  0x4f   : > { %1111 = vmatmul.msk.bf16.gmra.mxu0 %vm460_vm0, %v1148_v16  ;;  %1119 = vmatmul.msk.bf16.gmra.mxu1 %vm460_vm0, %v1156_v17 }
  0x50   : > { %1127 = vmatmul.msk.bf16.gmra.mxu2 %vm460_vm0, %v1164_v18  ;;  %1135 = vmatmul.msk.bf16.gmra.mxu3 %vm460_vm0, %v1172_v19 }
  0x5f   : > { %1112 = vmatmul.msk.bf16.gmra.mxu0 %vm460_vm0, %v1149_v20  ;;  %1120 = vmatmul.msk.bf16.gmra.mxu1 %vm460_vm0, %v1157_v21 }
  0x60   : > { %1128 = vmatmul.msk.bf16.gmra.mxu2 %vm460_vm0, %v1165_v22  ;;  %1136 = vmatmul.msk.bf16.gmra.mxu3 %vm460_vm0, %v1173_v23 }
  0x6f   : > { %1113 = vmatmul.msk.bf16.gmra.mxu0 %vm460_vm0, %v1150_v24  ;;  %1121 = vmatmul.msk.bf16.gmra.mxu1 %vm460_vm0, %v1158_v25 }
  0x70   : > { %1129 = vmatmul.msk.bf16.gmra.mxu2 %vm460_vm0, %v1166_v26  ;;  %1137 = vmatmul.msk.bf16.gmra.mxu3 %vm460_vm0, %v1174_v27 }
  0x7f   : > { %1114 = vmatmul.msk.bf16.gmra.mxu0 %vm460_vm0, %v1151_v28  ;;  %1122 = vmatmul.msk.bf16.gmra.mxu1 %vm460_vm0, %v1159_v29 }
  0x80   : > { %1130 = vmatmul.msk.bf16.gmra.mxu2 %vm460_vm0, %v1167_v30  ;;  %1138 = vmatmul.msk.bf16.gmra.mxu3 %vm460_vm0, %v1175_v31 }
  0x8f   : > { %1115 = vmatmul.msk.bf16.gmra.mxu0 %vm460_vm0, %v1152_v32  ;;  %1123 = vmatmul.msk.bf16.gmra.mxu1 %vm460_vm0, %v1160_v33 }
  0x90   : > { %1131 = vmatmul.msk.bf16.gmra.mxu2 %vm460_vm0, %v1168_v34  ;;  %1139 = vmatmul.msk.bf16.gmra.mxu3 %vm460_vm0, %v1176_v35 }
  0x9c   : > { %v566_v36 = vpop.f32.mrf.mxu0  ;;  %v606_v37 = vpop.f32.mrf.mxu1 }
  0xa3   : > { %v646_v38 = vpop.f32.mrf.mxu2  ;;  %v686_v39 = vpop.f32.mrf.mxu3 }
  0xa4   : > { %v568_v40 = vpop.f32.mrf.mxu0  ;;  %v608_v41 = vpop.f32.mrf.mxu1 }
  0xa5   : > { %v1184_v42 = vpack.c.bf16 %v568_v40, %v566_v36  ;;  %v1224_v43 = vpack.c.bf16 %v608_v41, %v606_v37 }
  0xa7   : > { %1185 = vst [vmem:[%s1548_s23] sm:$0xff] %v1184_v42  }
  0xa8   : > { %1348 = vst [vmem:[%s1548_s23 + $0x40] sm:$0xff] %v1224_v43  }
  0xab   : > { %v648_v44 = vpop.f32.mrf.mxu2  ;;  %v688_v45 = vpop.f32.mrf.mxu3 }
  0xac   : > { %v1264_v46 = vpack.c.bf16 %v648_v44, %v646_v38  ;;  %v1304_v47 = vpack.c.bf16 %v688_v45, %v686_v39  ;;  %v571_v48 = vpop.f32.mrf.mxu0  ;;  %v611_v49 = vpop.f32.mrf.mxu1 }
  0xae   : > { %1356 = vst [vmem:[%s1548_s23 + $0x80] sm:$0xff] %v1264_v46  }
  0xaf   : > { %1364 = vst [vmem:[%s1548_s23 + $0xc0] sm:$0xff] %v1304_v47  }
  0xb3   : > { %v651_v50 = vpop.f32.mrf.mxu2  ;;  %v691_v51 = vpop.f32.mrf.mxu3 }
  0xb4   : > { %v573_v52 = vpop.f32.mrf.mxu0  ;;  %v613_v53 = vpop.f32.mrf.mxu1 }
  0xb5   : > { %v1189_v54 = vpack.c.bf16 %v573_v52, %v571_v48  ;;  %v1229_v55 = vpack.c.bf16 %v613_v53, %v611_v49 }
  0xb7   : > { %1341 = vst [vmem:[%s1548_s23 + $0x8] sm:$0xff] %v1189_v54  }
  0xb8   : > { %1349 = vst [vmem:[%s1548_s23 + $0x48] sm:$0xff] %v1229_v55  }
  0xbb   : > { %v653_v56 = vpop.f32.mrf.mxu2  ;;  %v693_v57 = vpop.f32.mrf.mxu3 }
  0xbc   : > { %v1269_v58 = vpack.c.bf16 %v653_v56, %v651_v50  ;;  %v1309_v59 = vpack.c.bf16 %v693_v57, %v691_v51  ;;  %v576_v60 = vpop.f32.mrf.mxu0  ;;  %v616_v61 = vpop.f32.mrf.mxu1 }
  0xbe   : > { %1357 = vst [vmem:[%s1548_s23 + $0x88] sm:$0xff] %v1269_v58  }
  0xbf   : > { %1365 = vst [vmem:[%s1548_s23 + $0xc8] sm:$0xff] %v1309_v59  }
  0xc3   : > { %v656_v62 = vpop.f32.mrf.mxu2  ;;  %v696_v63 = vpop.f32.mrf.mxu3 }
  0xc4   : > { %v578_v0 = vpop.f32.mrf.mxu0  ;;  %v618_v1 = vpop.f32.mrf.mxu1 }
  0xc5   : > { %v1194_v2 = vpack.c.bf16 %v578_v0, %v576_v60  ;;  %v1234_v3 = vpack.c.bf16 %v618_v1, %v616_v61 }
  0xc7   : > { %1342 = vst [vmem:[%s1548_s23 + $0x10] sm:$0xff] %v1194_v2  }
  0xc8   : > { %1350 = vst [vmem:[%s1548_s23 + $0x50] sm:$0xff] %v1234_v3  }
  0xcb   : > { %v658_v4 = vpop.f32.mrf.mxu2  ;;  %v698_v5 = vpop.f32.mrf.mxu3 }
  0xcc   : > { %v1274_v6 = vpack.c.bf16 %v658_v4, %v656_v62  ;;  %v1314_v7 = vpack.c.bf16 %v698_v5, %v696_v63  ;;  %v581_v8 = vpop.f32.mrf.mxu0  ;;  %v621_v9 = vpop.f32.mrf.mxu1 }
  0xce   : > { %1358 = vst [vmem:[%s1548_s23 + $0x90] sm:$0xff] %v1274_v6  }
  0xcf   : > { %1366 = vst [vmem:[%s1548_s23 + $0xd0] sm:$0xff] %v1314_v7  }
  0xd3   : > { %v661_v10 = vpop.f32.mrf.mxu2  ;;  %v701_v11 = vpop.f32.mrf.mxu3 }
  0xd4   : > { %v583_v12 = vpop.f32.mrf.mxu0  ;;  %v623_v13 = vpop.f32.mrf.mxu1 }
  0xd5   : > { %v1199_v14 = vpack.c.bf16 %v583_v12, %v581_v8  ;;  %v1239_v15 = vpack.c.bf16 %v623_v13, %v621_v9 }
  0xd7   : > { %1343 = vst [vmem:[%s1548_s23 + $0x18] sm:$0xff] %v1199_v14  }
  0xd8   : > { %1351 = vst [vmem:[%s1548_s23 + $0x58] sm:$0xff] %v1239_v15  }
  0xdb   : > { %v663_v16 = vpop.f32.mrf.mxu2  ;;  %v703_v17 = vpop.f32.mrf.mxu3 }
  0xdc   : > { %v1279_v18 = vpack.c.bf16 %v663_v16, %v661_v10  ;;  %v1319_v19 = vpack.c.bf16 %v703_v17, %v701_v11  ;;  %v586_v20 = vpop.f32.mrf.mxu0  ;;  %v626_v21 = vpop.f32.mrf.mxu1 }
  0xde   : > { %1359 = vst [vmem:[%s1548_s23 + $0x98] sm:$0xff] %v1279_v18  }
  0xdf   : > { %1367 = vst [vmem:[%s1548_s23 + $0xd8] sm:$0xff] %v1319_v19  }
  0xe3   : > { %v666_v22 = vpop.f32.mrf.mxu2  ;;  %v706_v23 = vpop.f32.mrf.mxu3 }
  0xe4   : > { %v588_v24 = vpop.f32.mrf.mxu0  ;;  %v628_v25 = vpop.f32.mrf.mxu1 }
  0xe5   : > { %v1204_v26 = vpack.c.bf16 %v588_v24, %v586_v20  ;;  %v1244_v27 = vpack.c.bf16 %v628_v25, %v626_v21 }
  0xe7   : > { %1344 = vst [vmem:[%s1548_s23 + $0x20] sm:$0xff] %v1204_v26  }
  0xe8   : > { %1352 = vst [vmem:[%s1548_s23 + $0x60] sm:$0xff] %v1244_v27  }
  0xeb   : > { %v668_v28 = vpop.f32.mrf.mxu2  ;;  %v708_v29 = vpop.f32.mrf.mxu3 }
  0xec   : > { %v1284_v30 = vpack.c.bf16 %v668_v28, %v666_v22  ;;  %v1324_v31 = vpack.c.bf16 %v708_v29, %v706_v23  ;;  %v591_v32 = vpop.f32.mrf.mxu0  ;;  %v631_v33 = vpop.f32.mrf.mxu1 }
  0xee   : > { %1360 = vst [vmem:[%s1548_s23 + $0xa0] sm:$0xff] %v1284_v30  }
  0xef   : > { %1368 = vst [vmem:[%s1548_s23 + $0xe0] sm:$0xff] %v1324_v31  }
  0xf3   : > { %v671_v34 = vpop.f32.mrf.mxu2  ;;  %v711_v35 = vpop.f32.mrf.mxu3 }
  0xf4   : > { %v593_v36 = vpop.f32.mrf.mxu0  ;;  %v633_v37 = vpop.f32.mrf.mxu1 }
  0xf5   : > { %v1209_v38 = vpack.c.bf16 %v593_v36, %v591_v32  ;;  %v1249_v39 = vpack.c.bf16 %v633_v37, %v631_v33 }
  0xf7   : > { %1345 = vst [vmem:[%s1548_s23 + $0x28] sm:$0xff] %v1209_v38  }
  0xf8   : > { %1353 = vst [vmem:[%s1548_s23 + $0x68] sm:$0xff] %v1249_v39  }
  0xfb   : > { %v673_v40 = vpop.f32.mrf.mxu2  ;;  %v713_v41 = vpop.f32.mrf.mxu3 }
  0xfc   : > { %v1289_v42 = vpack.c.bf16 %v673_v40, %v671_v34  ;;  %v1329_v43 = vpack.c.bf16 %v713_v41, %v711_v35  ;;  %v596_v44 = vpop.f32.mrf.mxu0  ;;  %v636_v45 = vpop.f32.mrf.mxu1 }
  0xfe   : > { %1361 = vst [vmem:[%s1548_s23 + $0xa8] sm:$0xff] %v1289_v42  }
  0xff   : > { %1369 = vst [vmem:[%s1548_s23 + $0xe8] sm:$0xff] %v1329_v43  }
 0x103   : > { %v676_v46 = vpop.f32.mrf.mxu2  ;;  %v716_v47 = vpop.f32.mrf.mxu3 }
 0x104   : > { %v598_v48 = vpop.f32.mrf.mxu0  ;;  %v638_v49 = vpop.f32.mrf.mxu1 }
 0x105   : > { %v1214_v50 = vpack.c.bf16 %v598_v48, %v596_v44  ;;  %v1254_v51 = vpack.c.bf16 %v638_v49, %v636_v45 }
 0x107   : > { %1346 = vst [vmem:[%s1548_s23 + $0x30] sm:$0xff] %v1214_v50  }
 0x108   : > { %1354 = vst [vmem:[%s1548_s23 + $0x70] sm:$0xff] %v1254_v51  }
 0x10b   : > { %v678_v52 = vpop.f32.mrf.mxu2  ;;  %v718_v53 = vpop.f32.mrf.mxu3 }
 0x10c   : > { %v1294_v54 = vpack.c.bf16 %v678_v52, %v676_v46  ;;  %v1334_v55 = vpack.c.bf16 %v718_v53, %v716_v47  ;;  %v601_v56 = vpop.f32.mrf.mxu0  ;;  %v641_v57 = vpop.f32.mrf.mxu1 }
 0x10e   : > { %1362 = vst [vmem:[%s1548_s23 + $0xb0] sm:$0xff] %v1294_v54  }
 0x10f   : > { %1370 = vst [vmem:[%s1548_s23 + $0xf0] sm:$0xff] %v1334_v55  }
 0x113   : > { %v681_v58 = vpop.f32.mrf.mxu2  ;;  %v721_v59 = vpop.f32.mrf.mxu3 }
 0x114   : > { %v603_v60 = vpop.f32.mrf.mxu0  ;;  %v643_v61 = vpop.f32.mrf.mxu1 }
 0x115   : > { %v1219_v62 = vpack.c.bf16 %v603_v60, %v601_v56  ;;  %v1259_v63 = vpack.c.bf16 %v643_v61, %v641_v57 }
 0x117   : > { %1347 = vst [vmem:[%s1548_s23 + $0x38] sm:$0xff] %v1219_v62  }
 0x118   : > { %1355 = vst [vmem:[%s1548_s23 + $0x78] sm:$0xff] %v1259_v63  }
 0x11b   : > { %v683_v0 = vpop.f32.mrf.mxu2  ;;  %v723_v1 = vpop.f32.mrf.mxu3 }
 0x11c   : > { %v1299_v2 = vpack.c.bf16 %v683_v0, %v681_v58  ;;  %v1339_v3 = vpack.c.bf16 %v723_v1, %v721_v59 }
 0x11e   : > { %1363 = vst [vmem:[%s1548_s23 + $0xb8] sm:$0xff] %v1299_v2  }
 0x11f   : > { %1371 = vst [vmem:[%s1548_s23 + $0xf8] sm:$0xff] %v1339_v3  }
 0x120 PF: > { %s12_s11 = sadd.s32 1, %s1430_s11   ;;  %s1594_s9 = smov %s1426_s10 }
 0x121   : > { %p9_p5 = scmp.ge.s32.totalorder %s12_s11, 6   ;;  %s1595_s10 = smov %s1597_s12 }
 0x123   :  { %11 = sbr.rel (!%p9_p5) target bundleno = 2 (0x2), region = 61 }

// kernel: generator_forward.23
= control target key start
LH: loop header
LB: loop body
LE: loop exit
PB: predicated region body
PF: predicated region fallthrough
CT: control target
= control target key end

     0   :  { %vm14_vm0 = vcmask 57344   ;;  %v2475_v0 = vmov 0.0   ;;  %vm530_vm1 = vcmask 64512   ;;  %s3409_s1 = inlined_call_operand.vmem [shape: f32[1,8], index: 1, kind: output, shape index: {0}]   ;;  %s3410_s2 = inlined_call_operand.vmem [shape: f32[1,8], index: 2, kind: output, shape index: {1}]   ;;  %s3411_s0 = inlined_call_operand.vmem [shape: bf16[2048,8], index: 0, kind: input, shape index: {}]  }
   0x1   :  { %15 = vst.msk [vmem:[%s3409_s1] sm:$0x1] %vm14_vm0, %v2475_v0  ;;  %v1836_v1 = vld [vmem:[%s3411_s0] sm:$0xff]   ;;  %v2347_v2 = vld [vmem:[%s3411_s0 + $0x8] sm:$0xff]   ;;  %v2348_v6 = vld [vmem:[%s3411_s0 + $0x10] sm:$0xff]  }
   0x2   :  { %16 = vst.msk [vmem:[%s3410_s2] sm:$0x1] %vm14_vm0, %v2475_v0  ;;  %v1837_v3 = vunpack.c.l.bf16 %v1836_v1  ;;  %v1838_v4 = vunpack.c.h.bf16 %v1836_v1  ;;  %v1841_v5 = vunpack.c.l.bf16 %v2347_v2  ;;  %v1842_v7 = vunpack.c.h.bf16 %v2347_v2  ;;  %v2349_v14 = vld [vmem:[%s3411_s0 + $0x18] sm:$0xff]   ;;  %v2350_v21 = vld [vmem:[%s3411_s0 + $0x20] sm:$0xff]   ;;  %v2351_v31 = vld [vmem:[%s3411_s0 + $0x28] sm:$0xff]  }
   0x3   :  { %v1845_v12 = vunpack.c.l.bf16 %v2348_v6  ;;  %v1846_v16 = vunpack.c.h.bf16 %v2348_v6  ;;  %v1849_v19 = vunpack.c.l.bf16 %v2349_v14  ;;  %v1850_v23 = vunpack.c.h.bf16 %v2349_v14  ;;  %v2352_v44 = vld [vmem:[%s3411_s0 + $0x30] sm:$0xff]   ;;  %v2353_v57 = vld [vmem:[%s3411_s0 + $0x38] sm:$0xff]   ;;  %v2354_v6 = vld [vmem:[%s3411_s0 + $0x40] sm:$0xff]  }
   0x4   :  { %v531_v8 = vsel %vm530_vm1, %v1837_v3, 0.0  ;;  %v532_v9 = vsel %vm530_vm1, %v1838_v4, 0.0  ;;  %v534_v10 = vsel %vm530_vm1, %v1841_v5, 0.0  ;;  %v536_v13 = vsel %vm530_vm1, %v1842_v7, 0.0 }
   0x5   :  { %v533_v11 = vadd.f32 %v532_v9, %v531_v8  ;;  %v538_v17 = vsel %vm530_vm1, %v1845_v12, 0.0  ;;  %v540_v20 = vsel %vm530_vm1, %v1846_v16, 0.0  ;;  %v542_v24 = vsel %vm530_vm1, %v1849_v19, 0.0 }
   0x6   :  { %v1052_v25 = vmul.f32 %v1837_v3, %v1837_v3  ;;  %v1053_v27 = vmul.f32 %v1838_v4, %v1838_v4  ;;  %v1054_v28 = vmul.f32 %v1841_v5, %v1841_v5  ;;  %v1853_v29 = vunpack.c.l.bf16 %v2350_v21 }
   0x7   :  { %v535_v15 = vadd.f32 %v534_v10, %v533_v11  ;;  %v544_v30 = vsel %vm530_vm1, %v1850_v23, 0.0  ;;  %v1055_v33 = vmul.f32 %v1842_v7, %v1842_v7  ;;  %v1854_v34 = vunpack.c.h.bf16 %v2350_v21 }
   0x8   :  { %v546_v35 = vsel %vm530_vm1, %v1853_v29, 0.0  ;;  %v1308_v36 = vsel %vm530_vm1, %v1052_v25, 0.0  ;;  %v1056_v38 = vmul.f32 %v1845_v12, %v1845_v12  ;;  %v1309_v39 = vsel %vm530_vm1, %v1053_v27, 0.0 }
   0x9   :  { %v537_v18 = vadd.f32 %v536_v13, %v535_v15  ;;  %v1311_v40 = vsel %vm530_vm1, %v1054_v28, 0.0  ;;  %v1857_v41 = vunpack.c.l.bf16 %v2351_v31  ;;  %v548_v42 = vsel %vm530_vm1, %v1854_v34, 0.0 }
   0xa   :  { %v1310_v43 = vadd.f32 %v1309_v39, %v1308_v36  ;;  %v1057_v46 = vmul.f32 %v1846_v16, %v1846_v16  ;;  %v1313_v47 = vsel %vm530_vm1, %v1055_v33, 0.0  ;;  %v1858_v48 = vunpack.c.h.bf16 %v2351_v31 }
   0xb   :  { %v539_v22 = vadd.f32 %v538_v17, %v537_v18  ;;  %v550_v49 = vsel %vm530_vm1, %v1857_v41, 0.0  ;;  %v1058_v52 = vmul.f32 %v1849_v19, %v1849_v19  ;;  %v1315_v53 = vsel %vm530_vm1, %v1056_v38, 0.0  ;;  %v2355_v19 = vld [vmem:[%s3411_s0 + $0x48] sm:$0xff]  }
   0xc   :  { %v1312_v50 = vadd.f32 %v1311_v40, %v1310_v43  ;;  %v1861_v54 = vunpack.c.l.bf16 %v2352_v44  ;;  %v552_v55 = vsel %vm530_vm1, %v1858_v48, 0.0  ;;  %v1059_v59 = vmul.f32 %v1850_v23, %v1850_v23 }
   0xd   :  { %v541_v26 = vadd.f32 %v540_v20, %v539_v22  ;;  %v1317_v60 = vsel %vm530_vm1, %v1057_v46, 0.0  ;;  %v1862_v61 = vunpack.c.h.bf16 %v2352_v44  ;;  %v1060_v1 = vmul.f32 %v1853_v29, %v1853_v29 }
   0xe   :  { %v1314_v56 = vadd.f32 %v1313_v47, %v1312_v50  ;;  %v554_v62 = vsel %vm530_vm1, %v1861_v54, 0.0  ;;  %v1319_v2 = vsel %vm530_vm1, %v1058_v52, 0.0  ;;  %v1865_v3 = vunpack.c.l.bf16 %v2353_v57 }
   0xf   :  { %v543_v32 = vadd.f32 %v542_v24, %v541_v26  ;;  %v556_v4 = vsel %vm530_vm1, %v1862_v61, 0.0  ;;  %v1061_v8 = vmul.f32 %v1854_v34, %v1854_v34  ;;  %v1321_v9 = vsel %vm530_vm1, %v1059_v59, 0.0 }
  0x10   :  { %v1316_v63 = vadd.f32 %v1315_v53, %v1314_v56  ;;  %v1866_v10 = vunpack.c.h.bf16 %v2353_v57  ;;  %v558_v11 = vsel %vm530_vm1, %v1865_v3, 0.0  ;;  %v1062_v14 = vmul.f32 %v1857_v41, %v1857_v41 }
  0x11   :  { %v545_v37 = vadd.f32 %v544_v30, %v543_v32  ;;  %v1323_v15 = vsel %vm530_vm1, %v1060_v1, 0.0  ;;  %v1869_v16 = vunpack.c.l.bf16 %v2354_v6  ;;  %v1063_v21 = vmul.f32 %v1858_v48, %v1858_v48  ;;  %v2356_v32 = vld [vmem:[%s3411_s0 + $0x50] sm:$0xff]  }
  0x12   :  { %v1318_v5 = vadd.f32 %v1317_v60, %v1316_v63  ;;  %v560_v17 = vsel %vm530_vm1, %v1866_v10, 0.0  ;;  %v1325_v22 = vsel %vm530_vm1, %v1061_v8, 0.0  ;;  %v1870_v23 = vunpack.c.h.bf16 %v2354_v6 }
  0x13   :  { %v547_v45 = vadd.f32 %v546_v35, %v545_v37  ;;  %v562_v24 = vsel %vm530_vm1, %v1869_v16, 0.0  ;;  %v1064_v27 = vmul.f32 %v1861_v54, %v1861_v54  ;;  %v1327_v28 = vsel %vm530_vm1, %v1062_v14, 0.0 }
  0x14   :  { %v1320_v12 = vadd.f32 %v1319_v2, %v1318_v5  ;;  %v1873_v29 = vunpack.c.l.bf16 %v2355_v19  ;;  %v564_v30 = vsel %vm530_vm1, %v1870_v23, 0.0  ;;  %v1065_v34 = vmul.f32 %v1862_v61, %v1862_v61 }
  0x15   :  { %v549_v51 = vadd.f32 %v548_v42, %v547_v45  ;;  %v1329_v35 = vsel %vm530_vm1, %v1063_v21, 0.0  ;;  %v1874_v36 = vunpack.c.h.bf16 %v2355_v19  ;;  %v1066_v40 = vmul.f32 %v1865_v3, %v1865_v3  ;;  %v2357_v45 = vld [vmem:[%s3411_s0 + $0x58] sm:$0xff]  }
  0x16   :  { %v1322_v18 = vadd.f32 %v1321_v9, %v1320_v12  ;;  %v566_v37 = vsel %vm530_vm1, %v1873_v29, 0.0  ;;  %v1331_v41 = vsel %vm530_vm1, %v1064_v27, 0.0  ;;  %v1877_v42 = vunpack.c.l.bf16 %v2356_v32 }
  0x17   :  { %v551_v58 = vadd.f32 %v550_v49, %v549_v51  ;;  %v568_v43 = vsel %vm530_vm1, %v1874_v36, 0.0  ;;  %v1067_v47 = vmul.f32 %v1866_v10, %v1866_v10  ;;  %v1333_v48 = vsel %vm530_vm1, %v1065_v34, 0.0 }
  0x18   :  { %v1324_v25 = vadd.f32 %v1323_v15, %v1322_v18  ;;  %v1878_v49 = vunpack.c.h.bf16 %v2356_v32  ;;  %v570_v50 = vsel %vm530_vm1, %v1877_v42, 0.0  ;;  %v1068_v53 = vmul.f32 %v1869_v16, %v1869_v16 }
  0x19   :  { %v553_v0 = vadd.f32 %v552_v55, %v551_v58  ;;  %v1335_v54 = vsel %vm530_vm1, %v1066_v40, 0.0  ;;  %v1881_v55 = vunpack.c.l.bf16 %v2357_v45  ;;  %v2358_v58 = vld [vmem:[%s3411_s0 + $0x60] sm:$0xff]   ;;  %v1069_v60 = vmul.f32 %v1870_v23, %v1870_v23 }
  0x1a   :  { %v1326_v31 = vadd.f32 %v1325_v22, %v1324_v25  ;;  %v572_v56 = vsel %vm530_vm1, %v1878_v49, 0.0  ;;  %v1337_v61 = vsel %vm530_vm1, %v1067_v47, 0.0  ;;  %v1070_v2 = vmul.f32 %v1873_v29, %v1873_v29 }
  0x1b   :  { %v555_v7 = vadd.f32 %v554_v62, %v553_v0  ;;  %v1882_v62 = vunpack.c.h.bf16 %v2357_v45  ;;  %v574_v63 = vsel %vm530_vm1, %v1881_v55, 0.0  ;;  %v1339_v3 = vsel %vm530_vm1, %v1068_v53, 0.0 }
  0x1c   :  { %v1328_v38 = vadd.f32 %v1327_v28, %v1326_v31  ;;  %v1071_v9 = vmul.f32 %v1874_v36, %v1874_v36  ;;  %v1341_v10 = vsel %vm530_vm1, %v1069_v60, 0.0  ;;  %v1072_v15 = vmul.f32 %v1877_v42, %v1877_v42 }
  0x1d   :  { %v557_v13 = vadd.f32 %v556_v4, %v555_v7  ;;  %v1885_v4 = vunpack.c.l.bf16 %v2358_v58  ;;  %v576_v5 = vsel %vm530_vm1, %v1882_v62, 0.0  ;;  %v2359_v7 = vld [vmem:[%s3411_s0 + $0x68] sm:$0xff]   ;;  %v1343_v16 = vsel %vm530_vm1, %v1070_v2, 0.0 }
  0x1e   :  { %v1330_v44 = vadd.f32 %v1329_v35, %v1328_v38  ;;  %v1073_v22 = vmul.f32 %v1878_v49, %v1878_v49  ;;  %v1345_v23 = vsel %vm530_vm1, %v1071_v9, 0.0  ;;  %v1074_v28 = vmul.f32 %v1881_v55, %v1881_v55 }
  0x1f   :  { %v559_v20 = vadd.f32 %v558_v11, %v557_v13  ;;  %v1886_v11 = vunpack.c.h.bf16 %v2358_v58  ;;  %v578_v12 = vsel %vm530_vm1, %v1885_v4, 0.0  ;;  %v1347_v29 = vsel %vm530_vm1, %v1072_v15, 0.0 }
  0x20   :  { %v1332_v51 = vadd.f32 %v1331_v41, %v1330_v44  ;;  %v1075_v35 = vmul.f32 %v1882_v62, %v1882_v62  ;;  %v1349_v36 = vsel %vm530_vm1, %v1073_v22, 0.0  ;;  %v1076_v41 = vmul.f32 %v1885_v4, %v1885_v4 }
  0x21   :  { %v561_v26 = vadd.f32 %v560_v17, %v559_v20  ;;  %v1889_v17 = vunpack.c.l.bf16 %v2359_v7  ;;  %v580_v18 = vsel %vm530_vm1, %v1886_v11, 0.0  ;;  %v2360_v20 = vld [vmem:[%s3411_s0 + $0x70] sm:$0xff]   ;;  %v1351_v42 = vsel %vm530_vm1, %v1074_v28, 0.0 }
  0x22   :  { %v1334_v57 = vadd.f32 %v1333_v48, %v1332_v51  ;;  %v1077_v48 = vmul.f32 %v1886_v11, %v1886_v11  ;;  %v1353_v49 = vsel %vm530_vm1, %v1075_v35, 0.0  ;;  %v1355_v55 = vsel %vm530_vm1, %v1076_v41, 0.0 }
  0x23   :  { %v563_v33 = vadd.f32 %v562_v24, %v561_v26  ;;  %v1890_v24 = vunpack.c.h.bf16 %v2359_v7  ;;  %v582_v25 = vsel %vm530_vm1, %v1889_v17, 0.0 }
  0x24   :  { %v1336_v0 = vadd.f32 %v1335_v54, %v1334_v57  ;;  %v1078_v54 = vmul.f32 %v1889_v17, %v1889_v17  ;;  %v1357_v62 = vsel %vm530_vm1, %v1077_v48, 0.0 }
  0x25   :  { %v565_v39 = vadd.f32 %v564_v30, %v563_v33  ;;  %v1893_v30 = vunpack.c.l.bf16 %v2360_v20  ;;  %v584_v31 = vsel %vm530_vm1, %v1890_v24, 0.0  ;;  %v2361_v33 = vld [vmem:[%s3411_s0 + $0x78] sm:$0xff]  }
  0x26   :  { %v1338_v6 = vadd.f32 %v1337_v61, %v1336_v0  ;;  %v1079_v61 = vmul.f32 %v1890_v24, %v1890_v24  ;;  %v1359_v4 = vsel %vm530_vm1, %v1078_v54, 0.0 }
  0x27   :  { %v567_v46 = vadd.f32 %v566_v37, %v565_v39  ;;  %v1894_v37 = vunpack.c.h.bf16 %v2360_v20  ;;  %v586_v38 = vsel %vm530_vm1, %v1893_v30, 0.0 }
  0x28   :  { %v1340_v13 = vadd.f32 %v1339_v3, %v1338_v6  ;;  %v1080_v3 = vmul.f32 %v1893_v30, %v1893_v30  ;;  %v1361_v11 = vsel %vm530_vm1, %v1079_v61, 0.0 }
  0x29   :  { %v569_v52 = vadd.f32 %v568_v43, %v567_v46  ;;  %v1897_v43 = vunpack.c.l.bf16 %v2361_v33  ;;  %v588_v44 = vsel %vm530_vm1, %v1894_v37, 0.0  ;;  %v2362_v46 = vld [vmem:[%s3411_s0 + $0x80] sm:$0xff]  }
  0x2a   :  { %v1342_v19 = vadd.f32 %v1341_v10, %v1340_v13  ;;  %v1081_v10 = vmul.f32 %v1894_v37, %v1894_v37  ;;  %v1363_v17 = vsel %vm530_vm1, %v1080_v3, 0.0 }
  0x2b   :  { %v571_v59 = vadd.f32 %v570_v50, %v569_v52  ;;  %v1898_v50 = vunpack.c.h.bf16 %v2361_v33  ;;  %v590_v51 = vsel %vm530_vm1, %v1897_v43, 0.0 }
  0x2c   :  { %v1344_v26 = vadd.f32 %v1343_v16, %v1342_v19  ;;  %v1082_v16 = vmul.f32 %v1897_v43, %v1897_v43  ;;  %v1365_v24 = vsel %vm530_vm1, %v1081_v10, 0.0 }
  0x2d   :  { %v573_v1 = vadd.f32 %v572_v56, %v571_v59  ;;  %v1901_v56 = vunpack.c.l.bf16 %v2362_v46  ;;  %v592_v57 = vsel %vm530_vm1, %v1898_v50, 0.0  ;;  %v2363_v59 = vld [vmem:[%s3411_s0 + $0x88] sm:$0xff]  }
  0x2e   :  { %v1346_v32 = vadd.f32 %v1345_v23, %v1344_v26  ;;  %v1083_v23 = vmul.f32 %v1898_v50, %v1898_v50  ;;  %v1367_v30 = vsel %vm530_vm1, %v1082_v16, 0.0 }
  0x2f   :  { %v575_v8 = vadd.f32 %v574_v63, %v573_v1  ;;  %v1902_v63 = vunpack.c.h.bf16 %v2362_v46  ;;  %v594_v0 = vsel %vm530_vm1, %v1901_v56, 0.0 }
  0x30   :  { %v1348_v39 = vadd.f32 %v1347_v29, %v1346_v32  ;;  %v1084_v29 = vmul.f32 %v1901_v56, %v1901_v56  ;;  %v1369_v37 = vsel %vm530_vm1, %v1083_v23, 0.0 }
  0x31   :  { %v577_v14 = vadd.f32 %v576_v5, %v575_v8  ;;  %v1905_v5 = vunpack.c.l.bf16 %v2363_v59  ;;  %v596_v6 = vsel %vm530_vm1, %v1902_v63, 0.0  ;;  %v2364_v8 = vld [vmem:[%s3411_s0 + $0x90] sm:$0xff]  }
  0x32   :  { %v1350_v45 = vadd.f32 %v1349_v36, %v1348_v39  ;;  %v1085_v36 = vmul.f32 %v1902_v63, %v1902_v63  ;;  %v1371_v43 = vsel %vm530_vm1, %v1084_v29, 0.0 }
  0x33   :  { %v579_v21 = vadd.f32 %v578_v12, %v577_v14  ;;  %v1906_v12 = vunpack.c.h.bf16 %v2363_v59  ;;  %v598_v13 = vsel %vm530_vm1, %v1905_v5, 0.0 }
  0x34   :  { %v1352_v52 = vadd.f32 %v1351_v42, %v1350_v45  ;;  %v1086_v42 = vmul.f32 %v1905_v5, %v1905_v5  ;;  %v1373_v50 = vsel %vm530_vm1, %v1085_v36, 0.0 }
  0x35   :  { %v581_v27 = vadd.f32 %v580_v18, %v579_v21  ;;  %v1909_v18 = vunpack.c.l.bf16 %v2364_v8  ;;  %v600_v19 = vsel %vm530_vm1, %v1906_v12, 0.0  ;;  %v2365_v21 = vld [vmem:[%s3411_s0 + $0x98] sm:$0xff]  }
  0x36   :  { %v1354_v58 = vadd.f32 %v1353_v49, %v1352_v52  ;;  %v1087_v49 = vmul.f32 %v1906_v12, %v1906_v12  ;;  %v1375_v56 = vsel %vm530_vm1, %v1086_v42, 0.0 }
  0x37   :  { %v583_v34 = vadd.f32 %v582_v25, %v581_v27  ;;  %v1910_v25 = vunpack.c.h.bf16 %v2364_v8  ;;  %v602_v26 = vsel %vm530_vm1, %v1909_v18, 0.0 }
  0x38   :  { %v1356_v1 = vadd.f32 %v1355_v55, %v1354_v58  ;;  %v1088_v55 = vmul.f32 %v1909_v18, %v1909_v18  ;;  %v1377_v63 = vsel %vm530_vm1, %v1087_v49, 0.0 }
  0x39   :  { %v585_v40 = vadd.f32 %v584_v31, %v583_v34  ;;  %v1913_v31 = vunpack.c.l.bf16 %v2365_v21  ;;  %v604_v32 = vsel %vm530_vm1, %v1910_v25, 0.0  ;;  %v2366_v34 = vld [vmem:[%s3411_s0 + $0xa0] sm:$0xff]  }
  0x3a   :  { %v1358_v7 = vadd.f32 %v1357_v62, %v1356_v1  ;;  %v1089_v62 = vmul.f32 %v1910_v25, %v1910_v25  ;;  %v1379_v5 = vsel %vm530_vm1, %v1088_v55, 0.0 }
  0x3b   :  { %v587_v47 = vadd.f32 %v586_v38, %v585_v40  ;;  %v1914_v38 = vunpack.c.h.bf16 %v2365_v21  ;;  %v606_v39 = vsel %vm530_vm1, %v1913_v31, 0.0 }
  0x3c   :  { %v1360_v14 = vadd.f32 %v1359_v4, %v1358_v7  ;;  %v1090_v4 = vmul.f32 %v1913_v31, %v1913_v31  ;;  %v1381_v12 = vsel %vm530_vm1, %v1089_v62, 0.0 }
  0x3d   :  { %v589_v53 = vadd.f32 %v588_v44, %v587_v47  ;;  %v1917_v44 = vunpack.c.l.bf16 %v2366_v34  ;;  %v608_v45 = vsel %vm530_vm1, %v1914_v38, 0.0  ;;  %v2367_v47 = vld [vmem:[%s3411_s0 + $0xa8] sm:$0xff]  }
  0x3e   :  { %v1362_v20 = vadd.f32 %v1361_v11, %v1360_v14  ;;  %v1091_v11 = vmul.f32 %v1914_v38, %v1914_v38  ;;  %v1383_v18 = vsel %vm530_vm1, %v1090_v4, 0.0 }
  0x3f   :  { %v591_v60 = vadd.f32 %v590_v51, %v589_v53  ;;  %v1918_v51 = vunpack.c.h.bf16 %v2366_v34  ;;  %v610_v52 = vsel %vm530_vm1, %v1917_v44, 0.0 }
  0x40   :  { %v1364_v27 = vadd.f32 %v1363_v17, %v1362_v20  ;;  %v1092_v17 = vmul.f32 %v1917_v44, %v1917_v44  ;;  %v1385_v25 = vsel %vm530_vm1, %v1091_v11, 0.0 }
  0x41   :  { %v593_v2 = vadd.f32 %v592_v57, %v591_v60  ;;  %v1921_v57 = vunpack.c.l.bf16 %v2367_v47  ;;  %v612_v58 = vsel %vm530_vm1, %v1918_v51, 0.0  ;;  %v2368_v60 = vld [vmem:[%s3411_s0 + $0xb0] sm:$0xff]  }
  0x42   :  { %v1366_v33 = vadd.f32 %v1365_v24, %v1364_v27  ;;  %v1093_v24 = vmul.f32 %v1918_v51, %v1918_v51  ;;  %v1387_v31 = vsel %vm530_vm1, %v1092_v17, 0.0 }
  0x43   :  { %v595_v9 = vadd.f32 %v594_v0, %v593_v2  ;;  %v1922_v0 = vunpack.c.h.bf16 %v2367_v47  ;;  %v614_v1 = vsel %vm530_vm1, %v1921_v57, 0.0 }
  0x44   :  { %v1368_v40 = vadd.f32 %v1367_v30, %v1366_v33  ;;  %v1094_v30 = vmul.f32 %v1921_v57, %v1921_v57  ;;  %v1389_v38 = vsel %vm530_vm1, %v1093_v24, 0.0 }
  0x45   :  { %v597_v15 = vadd.f32 %v596_v6, %v595_v9  ;;  %v1925_v6 = vunpack.c.l.bf16 %v2368_v60  ;;  %v616_v7 = vsel %vm530_vm1, %v1922_v0, 0.0  ;;  %v2369_v9 = vld [vmem:[%s3411_s0 + $0xb8] sm:$0xff]  }
  0x46   :  { %v1370_v46 = vadd.f32 %v1369_v37, %v1368_v40  ;;  %v1095_v37 = vmul.f32 %v1922_v0, %v1922_v0  ;;  %v1391_v44 = vsel %vm530_vm1, %v1094_v30, 0.0 }
  0x47   :  { %v599_v22 = vadd.f32 %v598_v13, %v597_v15  ;;  %v1926_v13 = vunpack.c.h.bf16 %v2368_v60  ;;  %v618_v14 = vsel %vm530_vm1, %v1925_v6, 0.0 }
  0x48   :  { %v1372_v53 = vadd.f32 %v1371_v43, %v1370_v46  ;;  %v1096_v43 = vmul.f32 %v1925_v6, %v1925_v6  ;;  %v1393_v51 = vsel %vm530_vm1, %v1095_v37, 0.0 }
  0x49   :  { %v601_v28 = vadd.f32 %v600_v19, %v599_v22  ;;  %v1929_v19 = vunpack.c.l.bf16 %v2369_v9  ;;  %v620_v20 = vsel %vm530_vm1, %v1926_v13, 0.0  ;;  %v2370_v22 = vld [vmem:[%s3411_s0 + $0xc0] sm:$0xff]  }
  0x4a   :  { %v1374_v59 = vadd.f32 %v1373_v50, %v1372_v53  ;;  %v1097_v50 = vmul.f32 %v1926_v13, %v1926_v13  ;;  %v1395_v57 = vsel %vm530_vm1, %v1096_v43, 0.0 }
  0x4b   :  { %v603_v35 = vadd.f32 %v602_v26, %v601_v28  ;;  %v1930_v26 = vunpack.c.h.bf16 %v2369_v9  ;;  %v622_v27 = vsel %vm530_vm1, %v1929_v19, 0.0 }
  0x4c   :  { %v1376_v2 = vadd.f32 %v1375_v56, %v1374_v59  ;;  %v1098_v56 = vmul.f32 %v1929_v19, %v1929_v19  ;;  %v1397_v0 = vsel %vm530_vm1, %v1097_v50, 0.0 }
  0x4d   :  { %v605_v41 = vadd.f32 %v604_v32, %v603_v35  ;;  %v1933_v32 = vunpack.c.l.bf16 %v2370_v22  ;;  %v624_v33 = vsel %vm530_vm1, %v1930_v26, 0.0  ;;  %v2371_v35 = vld [vmem:[%s3411_s0 + $0xc8] sm:$0xff]  }
  0x4e   :  { %v1378_v8 = vadd.f32 %v1377_v63, %v1376_v2  ;;  %v1099_v63 = vmul.f32 %v1930_v26, %v1930_v26  ;;  %v1399_v6 = vsel %vm530_vm1, %v1098_v56, 0.0 }
  0x4f   :  { %v607_v48 = vadd.f32 %v606_v39, %v605_v41  ;;  %v1934_v39 = vunpack.c.h.bf16 %v2370_v22  ;;  %v626_v40 = vsel %vm530_vm1, %v1933_v32, 0.0 }
  0x50   :  { %v1380_v15 = vadd.f32 %v1379_v5, %v1378_v8  ;;  %v1100_v5 = vmul.f32 %v1933_v32, %v1933_v32  ;;  %v1401_v13 = vsel %vm530_vm1, %v1099_v63, 0.0 }
  0x51   :  { %v609_v54 = vadd.f32 %v608_v45, %v607_v48  ;;  %v1937_v45 = vunpack.c.l.bf16 %v2371_v35  ;;  %v628_v46 = vsel %vm530_vm1, %v1934_v39, 0.0  ;;  %v2372_v48 = vld [vmem:[%s3411_s0 + $0xd0] sm:$0xff]  }
  0x52   :  { %v1382_v21 = vadd.f32 %v1381_v12, %v1380_v15  ;;  %v1101_v12 = vmul.f32 %v1934_v39, %v1934_v39  ;;  %v1403_v19 = vsel %vm530_vm1, %v1100_v5, 0.0 }
  0x53   :  { %v611_v61 = vadd.f32 %v610_v52, %v609_v54  ;;  %v1938_v52 = vunpack.c.h.bf16 %v2371_v35  ;;  %v630_v53 = vsel %vm530_vm1, %v1937_v45, 0.0 }
  0x54   :  { %v1384_v28 = vadd.f32 %v1383_v18, %v1382_v21  ;;  %v1102_v18 = vmul.f32 %v1937_v45, %v1937_v45  ;;  %v1405_v26 = vsel %vm530_vm1, %v1101_v12, 0.0 }
  0x55   :  { %v613_v3 = vadd.f32 %v612_v58, %v611_v61  ;;  %v1941_v58 = vunpack.c.l.bf16 %v2372_v48  ;;  %v632_v59 = vsel %vm530_vm1, %v1938_v52, 0.0  ;;  %v2373_v61 = vld [vmem:[%s3411_s0 + $0xd8] sm:$0xff]  }
  0x56   :  { %v1386_v34 = vadd.f32 %v1385_v25, %v1384_v28  ;;  %v1103_v25 = vmul.f32 %v1938_v52, %v1938_v52  ;;  %v1407_v32 = vsel %vm530_vm1, %v1102_v18, 0.0 }
  0x57   :  { %v615_v10 = vadd.f32 %v614_v1, %v613_v3  ;;  %v1942_v1 = vunpack.c.h.bf16 %v2372_v48  ;;  %v634_v2 = vsel %vm530_vm1, %v1941_v58, 0.0 }
  0x58   :  { %v1388_v41 = vadd.f32 %v1387_v31, %v1386_v34  ;;  %v1104_v31 = vmul.f32 %v1941_v58, %v1941_v58  ;;  %v1409_v39 = vsel %vm530_vm1, %v1103_v25, 0.0 }
  0x59   :  { %v617_v16 = vadd.f32 %v616_v7, %v615_v10  ;;  %v1945_v7 = vunpack.c.l.bf16 %v2373_v61  ;;  %v636_v8 = vsel %vm530_vm1, %v1942_v1, 0.0  ;;  %v2374_v10 = vld [vmem:[%s3411_s0 + $0xe0] sm:$0xff]  }
  0x5a   :  { %v1390_v47 = vadd.f32 %v1389_v38, %v1388_v41  ;;  %v1105_v38 = vmul.f32 %v1942_v1, %v1942_v1  ;;  %v1411_v45 = vsel %vm530_vm1, %v1104_v31, 0.0 }
  0x5b   :  { %v619_v23 = vadd.f32 %v618_v14, %v617_v16  ;;  %v1946_v14 = vunpack.c.h.bf16 %v2373_v61  ;;  %v638_v15 = vsel %vm530_vm1, %v1945_v7, 0.0 }
  0x5c   :  { %v1392_v54 = vadd.f32 %v1391_v44, %v1390_v47  ;;  %v1106_v44 = vmul.f32 %v1945_v7, %v1945_v7  ;;  %v1413_v52 = vsel %vm530_vm1, %v1105_v38, 0.0 }
  0x5d   :  { %v621_v29 = vadd.f32 %v620_v20, %v619_v23  ;;  %v1949_v20 = vunpack.c.l.bf16 %v2374_v10  ;;  %v640_v21 = vsel %vm530_vm1, %v1946_v14, 0.0  ;;  %v2375_v23 = vld [vmem:[%s3411_s0 + $0xe8] sm:$0xff]  }
  0x5e   :  { %v1394_v60 = vadd.f32 %v1393_v51, %v1392_v54  ;;  %v1107_v51 = vmul.f32 %v1946_v14, %v1946_v14  ;;  %v1415_v58 = vsel %vm530_vm1, %v1106_v44, 0.0 }
  0x5f   :  { %v623_v36 = vadd.f32 %v622_v27, %v621_v29  ;;  %v1950_v27 = vunpack.c.h.bf16 %v2374_v10  ;;  %v642_v28 = vsel %vm530_vm1, %v1949_v20, 0.0 }
  0x60   :  { %v1396_v3 = vadd.f32 %v1395_v57, %v1394_v60  ;;  %v1108_v57 = vmul.f32 %v1949_v20, %v1949_v20  ;;  %v1417_v1 = vsel %vm530_vm1, %v1107_v51, 0.0 }
  0x61   :  { %v625_v42 = vadd.f32 %v624_v33, %v623_v36  ;;  %v1953_v33 = vunpack.c.l.bf16 %v2375_v23  ;;  %v644_v34 = vsel %vm530_vm1, %v1950_v27, 0.0  ;;  %v2376_v36 = vld [vmem:[%s3411_s0 + $0xf0] sm:$0xff]  }
  0x62   :  { %v1398_v9 = vadd.f32 %v1397_v0, %v1396_v3  ;;  %v1109_v0 = vmul.f32 %v1950_v27, %v1950_v27  ;;  %v1419_v7 = vsel %vm530_vm1, %v1108_v57, 0.0 }
  0x63   :  { %v627_v49 = vadd.f32 %v626_v40, %v625_v42  ;;  %v1954_v40 = vunpack.c.h.bf16 %v2375_v23  ;;  %v646_v41 = vsel %vm530_vm1, %v1953_v33, 0.0 }
  0x64   :  { %v1400_v16 = vadd.f32 %v1399_v6, %v1398_v9  ;;  %v1110_v6 = vmul.f32 %v1953_v33, %v1953_v33  ;;  %v1421_v14 = vsel %vm530_vm1, %v1109_v0, 0.0 }
  0x65   :  { %v629_v55 = vadd.f32 %v628_v46, %v627_v49  ;;  %v1957_v46 = vunpack.c.l.bf16 %v2376_v36  ;;  %v648_v47 = vsel %vm530_vm1, %v1954_v40, 0.0  ;;  %v2377_v49 = vld [vmem:[%s3411_s0 + $0xf8] sm:$0xff]  }
  0x66   :  { %v1402_v22 = vadd.f32 %v1401_v13, %v1400_v16  ;;  %v1111_v13 = vmul.f32 %v1954_v40, %v1954_v40  ;;  %v1423_v20 = vsel %vm530_vm1, %v1110_v6, 0.0 }
  0x67   :  { %v631_v62 = vadd.f32 %v630_v53, %v629_v55  ;;  %v1958_v53 = vunpack.c.h.bf16 %v2376_v36  ;;  %v650_v54 = vsel %vm530_vm1, %v1957_v46, 0.0 }
  0x68   :  { %v1404_v29 = vadd.f32 %v1403_v19, %v1402_v22  ;;  %v1112_v19 = vmul.f32 %v1957_v46, %v1957_v46  ;;  %v1425_v27 = vsel %vm530_vm1, %v1111_v13, 0.0 }
  0x69   :  { %v633_v4 = vadd.f32 %v632_v59, %v631_v62  ;;  %v1961_v59 = vunpack.c.l.bf16 %v2377_v49  ;;  %v652_v60 = vsel %vm530_vm1, %v1958_v53, 0.0  ;;  %v2378_v62 = vld [vmem:[%s3411_s0 + $0x100] sm:$0xff]  }
  0x6a   :  { %v1406_v35 = vadd.f32 %v1405_v26, %v1404_v29  ;;  %v1113_v26 = vmul.f32 %v1958_v53, %v1958_v53  ;;  %v1427_v33 = vsel %vm530_vm1, %v1112_v19, 0.0 }
  0x6b   :  { %v635_v11 = vadd.f32 %v634_v2, %v633_v4  ;;  %v1962_v2 = vunpack.c.h.bf16 %v2377_v49  ;;  %v654_v3 = vsel %vm530_vm1, %v1961_v59, 0.0 }
  0x6c   :  { %v1408_v42 = vadd.f32 %v1407_v32, %v1406_v35  ;;  %v1114_v32 = vmul.f32 %v1961_v59, %v1961_v59  ;;  %v1429_v40 = vsel %vm530_vm1, %v1113_v26, 0.0 }
  0x6d   :  { %v637_v17 = vadd.f32 %v636_v8, %v635_v11  ;;  %v1965_v8 = vunpack.c.l.bf16 %v2378_v62  ;;  %v656_v9 = vsel %vm530_vm1, %v1962_v2, 0.0  ;;  %v2379_v11 = vld [vmem:[%s3411_s0 + $0x108] sm:$0xff]  }
  0x6e   :  { %v1410_v48 = vadd.f32 %v1409_v39, %v1408_v42  ;;  %v1115_v39 = vmul.f32 %v1962_v2, %v1962_v2  ;;  %v1431_v46 = vsel %vm530_vm1, %v1114_v32, 0.0 }
  0x6f   :  { %v639_v24 = vadd.f32 %v638_v15, %v637_v17  ;;  %v1966_v15 = vunpack.c.h.bf16 %v2378_v62  ;;  %v658_v16 = vsel %vm530_vm1, %v1965_v8, 0.0 }
  0x70   :  { %v1412_v55 = vadd.f32 %v1411_v45, %v1410_v48  ;;  %v1116_v45 = vmul.f32 %v1965_v8, %v1965_v8  ;;  %v1433_v53 = vsel %vm530_vm1, %v1115_v39, 0.0 }
  0x71   :  { %v641_v30 = vadd.f32 %v640_v21, %v639_v24  ;;  %v1969_v21 = vunpack.c.l.bf16 %v2379_v11  ;;  %v660_v22 = vsel %vm530_vm1, %v1966_v15, 0.0  ;;  %v2380_v24 = vld [vmem:[%s3411_s0 + $0x110] sm:$0xff]  }
  0x72   :  { %v1414_v61 = vadd.f32 %v1413_v52, %v1412_v55  ;;  %v1117_v52 = vmul.f32 %v1966_v15, %v1966_v15  ;;  %v1435_v59 = vsel %vm530_vm1, %v1116_v45, 0.0 }
  0x73   :  { %v643_v37 = vadd.f32 %v642_v28, %v641_v30  ;;  %v1970_v28 = vunpack.c.h.bf16 %v2379_v11  ;;  %v662_v29 = vsel %vm530_vm1, %v1969_v21, 0.0 }
  0x74   :  { %v1416_v4 = vadd.f32 %v1415_v58, %v1414_v61  ;;  %v1118_v58 = vmul.f32 %v1969_v21, %v1969_v21  ;;  %v1437_v2 = vsel %vm530_vm1, %v1117_v52, 0.0 }
  0x75   :  { %v645_v43 = vadd.f32 %v644_v34, %v643_v37  ;;  %v1973_v34 = vunpack.c.l.bf16 %v2380_v24  ;;  %v664_v35 = vsel %vm530_vm1, %v1970_v28, 0.0  ;;  %v2381_v37 = vld [vmem:[%s3411_s0 + $0x118] sm:$0xff]  }
  0x76   :  { %v1418_v10 = vadd.f32 %v1417_v1, %v1416_v4  ;;  %v1119_v1 = vmul.f32 %v1970_v28, %v1970_v28  ;;  %v1439_v8 = vsel %vm530_vm1, %v1118_v58, 0.0 }
  0x77   :  { %v647_v50 = vadd.f32 %v646_v41, %v645_v43  ;;  %v1974_v41 = vunpack.c.h.bf16 %v2380_v24  ;;  %v666_v42 = vsel %vm530_vm1, %v1973_v34, 0.0 }
  0x78   :  { %v1420_v17 = vadd.f32 %v1419_v7, %v1418_v10  ;;  %v1120_v7 = vmul.f32 %v1973_v34, %v1973_v34  ;;  %v1441_v15 = vsel %vm530_vm1, %v1119_v1, 0.0 }
  0x79   :  { %v649_v56 = vadd.f32 %v648_v47, %v647_v50  ;;  %v1977_v47 = vunpack.c.l.bf16 %v2381_v37  ;;  %v668_v48 = vsel %vm530_vm1, %v1974_v41, 0.0  ;;  %v2382_v50 = vld [vmem:[%s3411_s0 + $0x120] sm:$0xff]  }
  0x7a   :  { %v1422_v23 = vadd.f32 %v1421_v14, %v1420_v17  ;;  %v1121_v14 = vmul.f32 %v1974_v41, %v1974_v41  ;;  %v1443_v21 = vsel %vm530_vm1, %v1120_v7, 0.0 }
  0x7b   :  { %v651_v63 = vadd.f32 %v650_v54, %v649_v56  ;;  %v1978_v54 = vunpack.c.h.bf16 %v2381_v37  ;;  %v670_v55 = vsel %vm530_vm1, %v1977_v47, 0.0 }
  0x7c   :  { %v1424_v30 = vadd.f32 %v1423_v20, %v1422_v23  ;;  %v1122_v20 = vmul.f32 %v1977_v47, %v1977_v47  ;;  %v1445_v28 = vsel %vm530_vm1, %v1121_v14, 0.0 }
  0x7d   :  { %v653_v5 = vadd.f32 %v652_v60, %v651_v63  ;;  %v1981_v60 = vunpack.c.l.bf16 %v2382_v50  ;;  %v672_v61 = vsel %vm530_vm1, %v1978_v54, 0.0  ;;  %v2383_v63 = vld [vmem:[%s3411_s0 + $0x128] sm:$0xff]  }
  0x7e   :  { %v1426_v36 = vadd.f32 %v1425_v27, %v1424_v30  ;;  %v1123_v27 = vmul.f32 %v1978_v54, %v1978_v54  ;;  %v1447_v34 = vsel %vm530_vm1, %v1122_v20, 0.0 }
  0x7f   :  { %v655_v12 = vadd.f32 %v654_v3, %v653_v5  ;;  %v1982_v3 = vunpack.c.h.bf16 %v2382_v50  ;;  %v674_v4 = vsel %vm530_vm1, %v1981_v60, 0.0 }
  0x80   :  { %v1428_v43 = vadd.f32 %v1427_v33, %v1426_v36  ;;  %v1124_v33 = vmul.f32 %v1981_v60, %v1981_v60  ;;  %v1449_v41 = vsel %vm530_vm1, %v1123_v27, 0.0 }
  0x81   :  { %v657_v18 = vadd.f32 %v656_v9, %v655_v12  ;;  %v1985_v9 = vunpack.c.l.bf16 %v2383_v63  ;;  %v676_v10 = vsel %vm530_vm1, %v1982_v3, 0.0  ;;  %v2384_v12 = vld [vmem:[%s3411_s0 + $0x130] sm:$0xff]  }
  0x82   :  { %v1430_v49 = vadd.f32 %v1429_v40, %v1428_v43  ;;  %v1125_v40 = vmul.f32 %v1982_v3, %v1982_v3  ;;  %v1451_v47 = vsel %vm530_vm1, %v1124_v33, 0.0 }
  0x83   :  { %v659_v25 = vadd.f32 %v658_v16, %v657_v18  ;;  %v1986_v16 = vunpack.c.h.bf16 %v2383_v63  ;;  %v678_v17 = vsel %vm530_vm1, %v1985_v9, 0.0 }
  0x84   :  { %v1432_v56 = vadd.f32 %v1431_v46, %v1430_v49  ;;  %v1126_v46 = vmul.f32 %v1985_v9, %v1985_v9  ;;  %v1453_v54 = vsel %vm530_vm1, %v1125_v40, 0.0 }
  0x85   :  { %v661_v31 = vadd.f32 %v660_v22, %v659_v25  ;;  %v1989_v22 = vunpack.c.l.bf16 %v2384_v12  ;;  %v680_v23 = vsel %vm530_vm1, %v1986_v16, 0.0  ;;  %v2385_v25 = vld [vmem:[%s3411_s0 + $0x138] sm:$0xff]  }
  0x86   :  { %v1434_v62 = vadd.f32 %v1433_v53, %v1432_v56  ;;  %v1127_v53 = vmul.f32 %v1986_v16, %v1986_v16  ;;  %v1455_v60 = vsel %vm530_vm1, %v1126_v46, 0.0 }
  0x87   :  { %v663_v38 = vadd.f32 %v662_v29, %v661_v31  ;;  %v1990_v29 = vunpack.c.h.bf16 %v2384_v12  ;;  %v682_v30 = vsel %vm530_vm1, %v1989_v22, 0.0 }
  0x88   :  { %v1436_v5 = vadd.f32 %v1435_v59, %v1434_v62  ;;  %v1128_v59 = vmul.f32 %v1989_v22, %v1989_v22  ;;  %v1457_v3 = vsel %vm530_vm1, %v1127_v53, 0.0 }
  0x89   :  { %v665_v44 = vadd.f32 %v664_v35, %v663_v38  ;;  %v1993_v35 = vunpack.c.l.bf16 %v2385_v25  ;;  %v684_v36 = vsel %vm530_vm1, %v1990_v29, 0.0  ;;  %v2386_v38 = vld [vmem:[%s3411_s0 + $0x140] sm:$0xff]  }
  0x8a   :  { %v1438_v11 = vadd.f32 %v1437_v2, %v1436_v5  ;;  %v1129_v2 = vmul.f32 %v1990_v29, %v1990_v29  ;;  %v1459_v9 = vsel %vm530_vm1, %v1128_v59, 0.0 }
  0x8b   :  { %v667_v51 = vadd.f32 %v666_v42, %v665_v44  ;;  %v1994_v42 = vunpack.c.h.bf16 %v2385_v25  ;;  %v686_v43 = vsel %vm530_vm1, %v1993_v35, 0.0 }
  0x8c   :  { %v1440_v18 = vadd.f32 %v1439_v8, %v1438_v11  ;;  %v1130_v8 = vmul.f32 %v1993_v35, %v1993_v35  ;;  %v1461_v16 = vsel %vm530_vm1, %v1129_v2, 0.0 }
  0x8d   :  { %v669_v57 = vadd.f32 %v668_v48, %v667_v51  ;;  %v1997_v48 = vunpack.c.l.bf16 %v2386_v38  ;;  %v688_v49 = vsel %vm530_vm1, %v1994_v42, 0.0  ;;  %v2387_v51 = vld [vmem:[%s3411_s0 + $0x148] sm:$0xff]  }
  0x8e   :  { %v1442_v24 = vadd.f32 %v1441_v15, %v1440_v18  ;;  %v1131_v15 = vmul.f32 %v1994_v42, %v1994_v42  ;;  %v1463_v22 = vsel %vm530_vm1, %v1130_v8, 0.0 }
  0x8f   :  { %v671_v0 = vadd.f32 %v670_v55, %v669_v57  ;;  %v1998_v55 = vunpack.c.h.bf16 %v2386_v38  ;;  %v690_v56 = vsel %vm530_vm1, %v1997_v48, 0.0 }
  0x90   :  { %v1444_v31 = vadd.f32 %v1443_v21, %v1442_v24  ;;  %v1132_v21 = vmul.f32 %v1997_v48, %v1997_v48  ;;  %v1465_v29 = vsel %vm530_vm1, %v1131_v15, 0.0 }
  0x91   :  { %v673_v6 = vadd.f32 %v672_v61, %v671_v0  ;;  %v2001_v61 = vunpack.c.l.bf16 %v2387_v51  ;;  %v692_v62 = vsel %vm530_vm1, %v1998_v55, 0.0  ;;  %v2388_v0 = vld [vmem:[%s3411_s0 + $0x150] sm:$0xff]  }
  0x92   :  { %v1446_v37 = vadd.f32 %v1445_v28, %v1444_v31  ;;  %v1133_v28 = vmul.f32 %v1998_v55, %v1998_v55  ;;  %v1467_v35 = vsel %vm530_vm1, %v1132_v21, 0.0 }
  0x93   :  { %v675_v13 = vadd.f32 %v674_v4, %v673_v6  ;;  %v2002_v4 = vunpack.c.h.bf16 %v2387_v51  ;;  %v694_v5 = vsel %vm530_vm1, %v2001_v61, 0.0 }
  0x94   :  { %v1448_v44 = vadd.f32 %v1447_v34, %v1446_v37  ;;  %v1134_v34 = vmul.f32 %v2001_v61, %v2001_v61  ;;  %v1469_v42 = vsel %vm530_vm1, %v1133_v28, 0.0 }
  0x95   :  { %v677_v19 = vadd.f32 %v676_v10, %v675_v13  ;;  %v2005_v10 = vunpack.c.l.bf16 %v2388_v0  ;;  %v696_v11 = vsel %vm530_vm1, %v2002_v4, 0.0  ;;  %v2389_v13 = vld [vmem:[%s3411_s0 + $0x158] sm:$0xff]  }
  0x96   :  { %v1450_v50 = vadd.f32 %v1449_v41, %v1448_v44  ;;  %v1135_v41 = vmul.f32 %v2002_v4, %v2002_v4  ;;  %v1471_v48 = vsel %vm530_vm1, %v1134_v34, 0.0 }
  0x97   :  { %v679_v26 = vadd.f32 %v678_v17, %v677_v19  ;;  %v2006_v17 = vunpack.c.h.bf16 %v2388_v0  ;;  %v698_v18 = vsel %vm530_vm1, %v2005_v10, 0.0 }
  0x98   :  { %v1452_v57 = vadd.f32 %v1451_v47, %v1450_v50  ;;  %v1136_v47 = vmul.f32 %v2005_v10, %v2005_v10  ;;  %v1473_v55 = vsel %vm530_vm1, %v1135_v41, 0.0 }
  0x99   :  { %v681_v32 = vadd.f32 %v680_v23, %v679_v26  ;;  %v2009_v23 = vunpack.c.l.bf16 %v2389_v13  ;;  %v700_v24 = vsel %vm530_vm1, %v2006_v17, 0.0  ;;  %v2390_v26 = vld [vmem:[%s3411_s0 + $0x160] sm:$0xff]  }
  0x9a   :  { %v1454_v63 = vadd.f32 %v1453_v54, %v1452_v57  ;;  %v1137_v54 = vmul.f32 %v2006_v17, %v2006_v17  ;;  %v1475_v61 = vsel %vm530_vm1, %v1136_v47, 0.0 }
  0x9b   :  { %v683_v39 = vadd.f32 %v682_v30, %v681_v32  ;;  %v2010_v30 = vunpack.c.h.bf16 %v2389_v13  ;;  %v702_v31 = vsel %vm530_vm1, %v2009_v23, 0.0 }
  0x9c   :  { %v1456_v6 = vadd.f32 %v1455_v60, %v1454_v63  ;;  %v1138_v60 = vmul.f32 %v2009_v23, %v2009_v23  ;;  %v1477_v4 = vsel %vm530_vm1, %v1137_v54, 0.0 }
  0x9d   :  { %v685_v45 = vadd.f32 %v684_v36, %v683_v39  ;;  %v2013_v36 = vunpack.c.l.bf16 %v2390_v26  ;;  %v704_v37 = vsel %vm530_vm1, %v2010_v30, 0.0  ;;  %v2391_v39 = vld [vmem:[%s3411_s0 + $0x168] sm:$0xff]  }
  0x9e   :  { %v1458_v12 = vadd.f32 %v1457_v3, %v1456_v6  ;;  %v1139_v3 = vmul.f32 %v2010_v30, %v2010_v30  ;;  %v1479_v10 = vsel %vm530_vm1, %v1138_v60, 0.0 }
  0x9f   :  { %v687_v52 = vadd.f32 %v686_v43, %v685_v45  ;;  %v2014_v43 = vunpack.c.h.bf16 %v2390_v26  ;;  %v706_v44 = vsel %vm530_vm1, %v2013_v36, 0.0 }
  0xa0   :  { %v1460_v19 = vadd.f32 %v1459_v9, %v1458_v12  ;;  %v1140_v9 = vmul.f32 %v2013_v36, %v2013_v36  ;;  %v1481_v17 = vsel %vm530_vm1, %v1139_v3, 0.0 }
  0xa1   :  { %v689_v58 = vadd.f32 %v688_v49, %v687_v52  ;;  %v2017_v49 = vunpack.c.l.bf16 %v2391_v39  ;;  %v708_v50 = vsel %vm530_vm1, %v2014_v43, 0.0  ;;  %v2392_v52 = vld [vmem:[%s3411_s0 + $0x170] sm:$0xff]  }
  0xa2   :  { %v1462_v25 = vadd.f32 %v1461_v16, %v1460_v19  ;;  %v1141_v16 = vmul.f32 %v2014_v43, %v2014_v43  ;;  %v1483_v23 = vsel %vm530_vm1, %v1140_v9, 0.0 }
  0xa3   :  { %v691_v1 = vadd.f32 %v690_v56, %v689_v58  ;;  %v2018_v56 = vunpack.c.h.bf16 %v2391_v39  ;;  %v710_v57 = vsel %vm530_vm1, %v2017_v49, 0.0 }
  0xa4   :  { %v1464_v32 = vadd.f32 %v1463_v22, %v1462_v25  ;;  %v1142_v22 = vmul.f32 %v2017_v49, %v2017_v49  ;;  %v1485_v30 = vsel %vm530_vm1, %v1141_v16, 0.0 }
  0xa5   :  { %v693_v7 = vadd.f32 %v692_v62, %v691_v1  ;;  %v2021_v62 = vunpack.c.l.bf16 %v2392_v52  ;;  %v712_v63 = vsel %vm530_vm1, %v2018_v56, 0.0  ;;  %v2393_v1 = vld [vmem:[%s3411_s0 + $0x178] sm:$0xff]  }
  0xa6   :  { %v1466_v38 = vadd.f32 %v1465_v29, %v1464_v32  ;;  %v1143_v29 = vmul.f32 %v2018_v56, %v2018_v56  ;;  %v1487_v36 = vsel %vm530_vm1, %v1142_v22, 0.0 }
  0xa7   :  { %v695_v14 = vadd.f32 %v694_v5, %v693_v7  ;;  %v2022_v5 = vunpack.c.h.bf16 %v2392_v52  ;;  %v714_v6 = vsel %vm530_vm1, %v2021_v62, 0.0 }
  0xa8   :  { %v1468_v45 = vadd.f32 %v1467_v35, %v1466_v38  ;;  %v1144_v35 = vmul.f32 %v2021_v62, %v2021_v62  ;;  %v1489_v43 = vsel %vm530_vm1, %v1143_v29, 0.0 }
  0xa9   :  { %v697_v20 = vadd.f32 %v696_v11, %v695_v14  ;;  %v2025_v11 = vunpack.c.l.bf16 %v2393_v1  ;;  %v716_v12 = vsel %vm530_vm1, %v2022_v5, 0.0  ;;  %v2394_v14 = vld [vmem:[%s3411_s0 + $0x180] sm:$0xff]  }
  0xaa   :  { %v1470_v51 = vadd.f32 %v1469_v42, %v1468_v45  ;;  %v1145_v42 = vmul.f32 %v2022_v5, %v2022_v5  ;;  %v1491_v49 = vsel %vm530_vm1, %v1144_v35, 0.0 }
  0xab   :  { %v699_v27 = vadd.f32 %v698_v18, %v697_v20  ;;  %v2026_v18 = vunpack.c.h.bf16 %v2393_v1  ;;  %v718_v19 = vsel %vm530_vm1, %v2025_v11, 0.0 }
  0xac   :  { %v1472_v58 = vadd.f32 %v1471_v48, %v1470_v51  ;;  %v1146_v48 = vmul.f32 %v2025_v11, %v2025_v11  ;;  %v1493_v56 = vsel %vm530_vm1, %v1145_v42, 0.0 }
  0xad   :  { %v701_v33 = vadd.f32 %v700_v24, %v699_v27  ;;  %v2029_v24 = vunpack.c.l.bf16 %v2394_v14  ;;  %v720_v25 = vsel %vm530_vm1, %v2026_v18, 0.0  ;;  %v2395_v27 = vld [vmem:[%s3411_s0 + $0x188] sm:$0xff]  }
  0xae   :  { %v1474_v0 = vadd.f32 %v1473_v55, %v1472_v58  ;;  %v1147_v55 = vmul.f32 %v2026_v18, %v2026_v18  ;;  %v1495_v62 = vsel %vm530_vm1, %v1146_v48, 0.0 }
  0xaf   :  { %v703_v40 = vadd.f32 %v702_v31, %v701_v33  ;;  %v2030_v31 = vunpack.c.h.bf16 %v2394_v14  ;;  %v722_v32 = vsel %vm530_vm1, %v2029_v24, 0.0 }
  0xb0   :  { %v1476_v7 = vadd.f32 %v1475_v61, %v1474_v0  ;;  %v1148_v61 = vmul.f32 %v2029_v24, %v2029_v24  ;;  %v1497_v5 = vsel %vm530_vm1, %v1147_v55, 0.0 }
  0xb1   :  { %v705_v46 = vadd.f32 %v704_v37, %v703_v40  ;;  %v2033_v37 = vunpack.c.l.bf16 %v2395_v27  ;;  %v724_v38 = vsel %vm530_vm1, %v2030_v31, 0.0  ;;  %v2396_v40 = vld [vmem:[%s3411_s0 + $0x190] sm:$0xff]  }
  0xb2   :  { %v1478_v13 = vadd.f32 %v1477_v4, %v1476_v7  ;;  %v1149_v4 = vmul.f32 %v2030_v31, %v2030_v31  ;;  %v1499_v11 = vsel %vm530_vm1, %v1148_v61, 0.0 }
  0xb3   :  { %v707_v53 = vadd.f32 %v706_v44, %v705_v46  ;;  %v2034_v44 = vunpack.c.h.bf16 %v2395_v27  ;;  %v726_v45 = vsel %vm530_vm1, %v2033_v37, 0.0 }
  0xb4   :  { %v1480_v20 = vadd.f32 %v1479_v10, %v1478_v13  ;;  %v1150_v10 = vmul.f32 %v2033_v37, %v2033_v37  ;;  %v1501_v18 = vsel %vm530_vm1, %v1149_v4, 0.0 }
  0xb5   :  { %v709_v59 = vadd.f32 %v708_v50, %v707_v53  ;;  %v2037_v50 = vunpack.c.l.bf16 %v2396_v40  ;;  %v728_v51 = vsel %vm530_vm1, %v2034_v44, 0.0  ;;  %v2397_v53 = vld [vmem:[%s3411_s0 + $0x198] sm:$0xff]  }
  0xb6   :  { %v1482_v26 = vadd.f32 %v1481_v17, %v1480_v20  ;;  %v1151_v17 = vmul.f32 %v2034_v44, %v2034_v44  ;;  %v1503_v24 = vsel %vm530_vm1, %v1150_v10, 0.0 }
  0xb7   :  { %v711_v2 = vadd.f32 %v710_v57, %v709_v59  ;;  %v2038_v57 = vunpack.c.h.bf16 %v2396_v40  ;;  %v730_v58 = vsel %vm530_vm1, %v2037_v50, 0.0 }
  0xb8   :  { %v1484_v33 = vadd.f32 %v1483_v23, %v1482_v26  ;;  %v1152_v23 = vmul.f32 %v2037_v50, %v2037_v50  ;;  %v1505_v31 = vsel %vm530_vm1, %v1151_v17, 0.0 }
  0xb9   :  { %v713_v8 = vadd.f32 %v712_v63, %v711_v2  ;;  %v2041_v63 = vunpack.c.l.bf16 %v2397_v53  ;;  %v732_v0 = vsel %vm530_vm1, %v2038_v57, 0.0  ;;  %v2398_v2 = vld [vmem:[%s3411_s0 + $0x1a0] sm:$0xff]  }
  0xba   :  { %v1486_v39 = vadd.f32 %v1485_v30, %v1484_v33  ;;  %v1153_v30 = vmul.f32 %v2038_v57, %v2038_v57  ;;  %v1507_v37 = vsel %vm530_vm1, %v1152_v23, 0.0 }
  0xbb   :  { %v715_v15 = vadd.f32 %v714_v6, %v713_v8  ;;  %v2042_v6 = vunpack.c.h.bf16 %v2397_v53  ;;  %v734_v7 = vsel %vm530_vm1, %v2041_v63, 0.0 }
  0xbc   :  { %v1488_v46 = vadd.f32 %v1487_v36, %v1486_v39  ;;  %v1154_v36 = vmul.f32 %v2041_v63, %v2041_v63  ;;  %v1509_v44 = vsel %vm530_vm1, %v1153_v30, 0.0 }
  0xbd   :  { %v717_v21 = vadd.f32 %v716_v12, %v715_v15  ;;  %v2045_v12 = vunpack.c.l.bf16 %v2398_v2  ;;  %v736_v13 = vsel %vm530_vm1, %v2042_v6, 0.0  ;;  %v2399_v15 = vld [vmem:[%s3411_s0 + $0x1a8] sm:$0xff]  }
  0xbe   :  { %v1490_v52 = vadd.f32 %v1489_v43, %v1488_v46  ;;  %v1155_v43 = vmul.f32 %v2042_v6, %v2042_v6  ;;  %v1511_v50 = vsel %vm530_vm1, %v1154_v36, 0.0 }
  0xbf   :  { %v719_v28 = vadd.f32 %v718_v19, %v717_v21  ;;  %v2046_v19 = vunpack.c.h.bf16 %v2398_v2  ;;  %v738_v20 = vsel %vm530_vm1, %v2045_v12, 0.0 }
  0xc0   :  { %v1492_v59 = vadd.f32 %v1491_v49, %v1490_v52  ;;  %v1156_v49 = vmul.f32 %v2045_v12, %v2045_v12  ;;  %v1513_v57 = vsel %vm530_vm1, %v1155_v43, 0.0 }
  0xc1   :  { %v721_v34 = vadd.f32 %v720_v25, %v719_v28  ;;  %v2049_v25 = vunpack.c.l.bf16 %v2399_v15  ;;  %v740_v26 = vsel %vm530_vm1, %v2046_v19, 0.0  ;;  %v2400_v28 = vld [vmem:[%s3411_s0 + $0x1b0] sm:$0xff]  }
  0xc2   :  { %v1494_v1 = vadd.f32 %v1493_v56, %v1492_v59  ;;  %v1157_v56 = vmul.f32 %v2046_v19, %v2046_v19  ;;  %v1515_v63 = vsel %vm530_vm1, %v1156_v49, 0.0 }
  0xc3   :  { %v723_v41 = vadd.f32 %v722_v32, %v721_v34  ;;  %v2050_v32 = vunpack.c.h.bf16 %v2399_v15  ;;  %v742_v33 = vsel %vm530_vm1, %v2049_v25, 0.0 }
  0xc4   :  { %v1496_v8 = vadd.f32 %v1495_v62, %v1494_v1  ;;  %v1158_v62 = vmul.f32 %v2049_v25, %v2049_v25  ;;  %v1517_v6 = vsel %vm530_vm1, %v1157_v56, 0.0 }
  0xc5   :  { %v725_v47 = vadd.f32 %v724_v38, %v723_v41  ;;  %v2053_v38 = vunpack.c.l.bf16 %v2400_v28  ;;  %v744_v39 = vsel %vm530_vm1, %v2050_v32, 0.0  ;;  %v2401_v41 = vld [vmem:[%s3411_s0 + $0x1b8] sm:$0xff]  }
  0xc6   :  { %v1498_v14 = vadd.f32 %v1497_v5, %v1496_v8  ;;  %v1159_v5 = vmul.f32 %v2050_v32, %v2050_v32  ;;  %v1519_v12 = vsel %vm530_vm1, %v1158_v62, 0.0 }
  0xc7   :  { %v727_v54 = vadd.f32 %v726_v45, %v725_v47  ;;  %v2054_v45 = vunpack.c.h.bf16 %v2400_v28  ;;  %v746_v46 = vsel %vm530_vm1, %v2053_v38, 0.0 }
  0xc8   :  { %v1500_v21 = vadd.f32 %v1499_v11, %v1498_v14  ;;  %v1160_v11 = vmul.f32 %v2053_v38, %v2053_v38  ;;  %v1521_v19 = vsel %vm530_vm1, %v1159_v5, 0.0 }
  0xc9   :  { %v729_v60 = vadd.f32 %v728_v51, %v727_v54  ;;  %v2057_v51 = vunpack.c.l.bf16 %v2401_v41  ;;  %v748_v52 = vsel %vm530_vm1, %v2054_v45, 0.0  ;;  %v2402_v54 = vld [vmem:[%s3411_s0 + $0x1c0] sm:$0xff]  }
  0xca   :  { %v1502_v27 = vadd.f32 %v1501_v18, %v1500_v21  ;;  %v1161_v18 = vmul.f32 %v2054_v45, %v2054_v45  ;;  %v1523_v25 = vsel %vm530_vm1, %v1160_v11, 0.0 }
  0xcb   :  { %v731_v3 = vadd.f32 %v730_v58, %v729_v60  ;;  %v2058_v58 = vunpack.c.h.bf16 %v2401_v41  ;;  %v750_v59 = vsel %vm530_vm1, %v2057_v51, 0.0 }
  0xcc   :  { %v1504_v34 = vadd.f32 %v1503_v24, %v1502_v27  ;;  %v1162_v24 = vmul.f32 %v2057_v51, %v2057_v51  ;;  %v1525_v32 = vsel %vm530_vm1, %v1161_v18, 0.0 }
  0xcd   :  { %v733_v9 = vadd.f32 %v732_v0, %v731_v3  ;;  %v2061_v0 = vunpack.c.l.bf16 %v2402_v54  ;;  %v752_v1 = vsel %vm530_vm1, %v2058_v58, 0.0  ;;  %v2403_v3 = vld [vmem:[%s3411_s0 + $0x1c8] sm:$0xff]  }
  0xce   :  { %v1506_v40 = vadd.f32 %v1505_v31, %v1504_v34  ;;  %v1163_v31 = vmul.f32 %v2058_v58, %v2058_v58  ;;  %v1527_v38 = vsel %vm530_vm1, %v1162_v24, 0.0 }
  0xcf   :  { %v735_v16 = vadd.f32 %v734_v7, %v733_v9  ;;  %v2062_v7 = vunpack.c.h.bf16 %v2402_v54  ;;  %v754_v8 = vsel %vm530_vm1, %v2061_v0, 0.0 }
  0xd0   :  { %v1508_v47 = vadd.f32 %v1507_v37, %v1506_v40  ;;  %v1164_v37 = vmul.f32 %v2061_v0, %v2061_v0  ;;  %v1529_v45 = vsel %vm530_vm1, %v1163_v31, 0.0 }
  0xd1   :  { %v737_v22 = vadd.f32 %v736_v13, %v735_v16  ;;  %v2065_v13 = vunpack.c.l.bf16 %v2403_v3  ;;  %v756_v14 = vsel %vm530_vm1, %v2062_v7, 0.0  ;;  %v2404_v16 = vld [vmem:[%s3411_s0 + $0x1d0] sm:$0xff]  }
  0xd2   :  { %v1510_v53 = vadd.f32 %v1509_v44, %v1508_v47  ;;  %v1165_v44 = vmul.f32 %v2062_v7, %v2062_v7  ;;  %v1531_v51 = vsel %vm530_vm1, %v1164_v37, 0.0 }
  0xd3   :  { %v739_v29 = vadd.f32 %v738_v20, %v737_v22  ;;  %v2066_v20 = vunpack.c.h.bf16 %v2403_v3  ;;  %v758_v21 = vsel %vm530_vm1, %v2065_v13, 0.0 }
  0xd4   :  { %v1512_v60 = vadd.f32 %v1511_v50, %v1510_v53  ;;  %v1166_v50 = vmul.f32 %v2065_v13, %v2065_v13  ;;  %v1533_v58 = vsel %vm530_vm1, %v1165_v44, 0.0 }
  0xd5   :  { %v741_v35 = vadd.f32 %v740_v26, %v739_v29  ;;  %v2069_v26 = vunpack.c.l.bf16 %v2404_v16  ;;  %v760_v27 = vsel %vm530_vm1, %v2066_v20, 0.0  ;;  %v2405_v29 = vld [vmem:[%s3411_s0 + $0x1d8] sm:$0xff]  }
  0xd6   :  { %v1514_v2 = vadd.f32 %v1513_v57, %v1512_v60  ;;  %v1167_v57 = vmul.f32 %v2066_v20, %v2066_v20  ;;  %v1535_v0 = vsel %vm530_vm1, %v1166_v50, 0.0 }
  0xd7   :  { %v743_v42 = vadd.f32 %v742_v33, %v741_v35  ;;  %v2070_v33 = vunpack.c.h.bf16 %v2404_v16  ;;  %v762_v34 = vsel %vm530_vm1, %v2069_v26, 0.0 }
  0xd8   :  { %v1516_v9 = vadd.f32 %v1515_v63, %v1514_v2  ;;  %v1168_v63 = vmul.f32 %v2069_v26, %v2069_v26  ;;  %v1537_v7 = vsel %vm530_vm1, %v1167_v57, 0.0 }
  0xd9   :  { %v745_v48 = vadd.f32 %v744_v39, %v743_v42  ;;  %v2073_v39 = vunpack.c.l.bf16 %v2405_v29  ;;  %v764_v40 = vsel %vm530_vm1, %v2070_v33, 0.0  ;;  %v2406_v42 = vld [vmem:[%s3411_s0 + $0x1e0] sm:$0xff]  }
  0xda   :  { %v1518_v15 = vadd.f32 %v1517_v6, %v1516_v9  ;;  %v1169_v6 = vmul.f32 %v2070_v33, %v2070_v33  ;;  %v1539_v13 = vsel %vm530_vm1, %v1168_v63, 0.0 }
  0xdb   :  { %v747_v55 = vadd.f32 %v746_v46, %v745_v48  ;;  %v2074_v46 = vunpack.c.h.bf16 %v2405_v29  ;;  %v766_v47 = vsel %vm530_vm1, %v2073_v39, 0.0 }
  0xdc   :  { %v1520_v22 = vadd.f32 %v1519_v12, %v1518_v15  ;;  %v1170_v12 = vmul.f32 %v2073_v39, %v2073_v39  ;;  %v1541_v20 = vsel %vm530_vm1, %v1169_v6, 0.0 }
  0xdd   :  { %v749_v61 = vadd.f32 %v748_v52, %v747_v55  ;;  %v2077_v52 = vunpack.c.l.bf16 %v2406_v42  ;;  %v768_v53 = vsel %vm530_vm1, %v2074_v46, 0.0  ;;  %v2407_v55 = vld [vmem:[%s3411_s0 + $0x1e8] sm:$0xff]  }
  0xde   :  { %v1522_v28 = vadd.f32 %v1521_v19, %v1520_v22  ;;  %v1171_v19 = vmul.f32 %v2074_v46, %v2074_v46  ;;  %v1543_v26 = vsel %vm530_vm1, %v1170_v12, 0.0 }
  0xdf   :  { %v751_v4 = vadd.f32 %v750_v59, %v749_v61  ;;  %v2078_v59 = vunpack.c.h.bf16 %v2406_v42  ;;  %v770_v60 = vsel %vm530_vm1, %v2077_v52, 0.0 }
  0xe0   :  { %v1524_v35 = vadd.f32 %v1523_v25, %v1522_v28  ;;  %v1172_v25 = vmul.f32 %v2077_v52, %v2077_v52  ;;  %v1545_v33 = vsel %vm530_vm1, %v1171_v19, 0.0 }
  0xe1   :  { %v753_v10 = vadd.f32 %v752_v1, %v751_v4  ;;  %v2081_v1 = vunpack.c.l.bf16 %v2407_v55  ;;  %v772_v2 = vsel %vm530_vm1, %v2078_v59, 0.0  ;;  %v2408_v4 = vld [vmem:[%s3411_s0 + $0x1f0] sm:$0xff]  }
  0xe2   :  { %v1526_v41 = vadd.f32 %v1525_v32, %v1524_v35  ;;  %v1173_v32 = vmul.f32 %v2078_v59, %v2078_v59  ;;  %v1547_v39 = vsel %vm530_vm1, %v1172_v25, 0.0 }
  0xe3   :  { %v755_v17 = vadd.f32 %v754_v8, %v753_v10  ;;  %v2082_v8 = vunpack.c.h.bf16 %v2407_v55  ;;  %v774_v9 = vsel %vm530_vm1, %v2081_v1, 0.0 }
  0xe4   :  { %v1528_v48 = vadd.f32 %v1527_v38, %v1526_v41  ;;  %v1174_v38 = vmul.f32 %v2081_v1, %v2081_v1  ;;  %v1549_v46 = vsel %vm530_vm1, %v1173_v32, 0.0 }
  0xe5   :  { %v757_v23 = vadd.f32 %v756_v14, %v755_v17  ;;  %v2085_v14 = vunpack.c.l.bf16 %v2408_v4  ;;  %v776_v15 = vsel %vm530_vm1, %v2082_v8, 0.0  ;;  %v2409_v17 = vld [vmem:[%s3411_s0 + $0x1f8] sm:$0xff]  }
  0xe6   :  { %v1530_v54 = vadd.f32 %v1529_v45, %v1528_v48  ;;  %v1175_v45 = vmul.f32 %v2082_v8, %v2082_v8  ;;  %v1551_v52 = vsel %vm530_vm1, %v1174_v38, 0.0 }
  0xe7   :  { %v759_v30 = vadd.f32 %v758_v21, %v757_v23  ;;  %v2086_v21 = vunpack.c.h.bf16 %v2408_v4  ;;  %v778_v22 = vsel %vm530_vm1, %v2085_v14, 0.0 }
  0xe8   :  { %v1532_v61 = vadd.f32 %v1531_v51, %v1530_v54  ;;  %v1176_v51 = vmul.f32 %v2085_v14, %v2085_v14  ;;  %v1553_v59 = vsel %vm530_vm1, %v1175_v45, 0.0 }
  0xe9   :  { %v761_v36 = vadd.f32 %v760_v27, %v759_v30  ;;  %v2089_v27 = vunpack.c.l.bf16 %v2409_v17  ;;  %v780_v28 = vsel %vm530_vm1, %v2086_v21, 0.0  ;;  %v2410_v30 = vld [vmem:[%s3411_s0 + $0x200] sm:$0xff]  }
  0xea   :  { %v1534_v3 = vadd.f32 %v1533_v58, %v1532_v61  ;;  %v1177_v58 = vmul.f32 %v2086_v21, %v2086_v21  ;;  %v1555_v1 = vsel %vm530_vm1, %v1176_v51, 0.0 }
  0xeb   :  { %v763_v43 = vadd.f32 %v762_v34, %v761_v36  ;;  %v2090_v34 = vunpack.c.h.bf16 %v2409_v17  ;;  %v782_v35 = vsel %vm530_vm1, %v2089_v27, 0.0 }
  0xec   :  { %v1536_v10 = vadd.f32 %v1535_v0, %v1534_v3  ;;  %v1178_v0 = vmul.f32 %v2089_v27, %v2089_v27  ;;  %v1557_v8 = vsel %vm530_vm1, %v1177_v58, 0.0 }
  0xed   :  { %v765_v49 = vadd.f32 %v764_v40, %v763_v43  ;;  %v2093_v40 = vunpack.c.l.bf16 %v2410_v30  ;;  %v784_v41 = vsel %vm530_vm1, %v2090_v34, 0.0  ;;  %v2411_v43 = vld [vmem:[%s3411_s0 + $0x208] sm:$0xff]  }
  0xee   :  { %v1538_v16 = vadd.f32 %v1537_v7, %v1536_v10  ;;  %v1179_v7 = vmul.f32 %v2090_v34, %v2090_v34  ;;  %v1559_v14 = vsel %vm530_vm1, %v1178_v0, 0.0 }
  0xef   :  { %v767_v56 = vadd.f32 %v766_v47, %v765_v49  ;;  %v2094_v47 = vunpack.c.h.bf16 %v2410_v30  ;;  %v786_v48 = vsel %vm530_vm1, %v2093_v40, 0.0 }
  0xf0   :  { %v1540_v23 = vadd.f32 %v1539_v13, %v1538_v16  ;;  %v1180_v13 = vmul.f32 %v2093_v40, %v2093_v40  ;;  %v1561_v21 = vsel %vm530_vm1, %v1179_v7, 0.0 }
  0xf1   :  { %v769_v62 = vadd.f32 %v768_v53, %v767_v56  ;;  %v2097_v53 = vunpack.c.l.bf16 %v2411_v43  ;;  %v788_v54 = vsel %vm530_vm1, %v2094_v47, 0.0  ;;  %v2412_v56 = vld [vmem:[%s3411_s0 + $0x210] sm:$0xff]  }
  0xf2   :  { %v1542_v29 = vadd.f32 %v1541_v20, %v1540_v23  ;;  %v1181_v20 = vmul.f32 %v2094_v47, %v2094_v47  ;;  %v1563_v27 = vsel %vm530_vm1, %v1180_v13, 0.0 }
  0xf3   :  { %v771_v5 = vadd.f32 %v770_v60, %v769_v62  ;;  %v2098_v60 = vunpack.c.h.bf16 %v2411_v43  ;;  %v790_v61 = vsel %vm530_vm1, %v2097_v53, 0.0 }
  0xf4   :  { %v1544_v36 = vadd.f32 %v1543_v26, %v1542_v29  ;;  %v1182_v26 = vmul.f32 %v2097_v53, %v2097_v53  ;;  %v1565_v34 = vsel %vm530_vm1, %v1181_v20, 0.0 }
  0xf5   :  { %v773_v11 = vadd.f32 %v772_v2, %v771_v5  ;;  %v2101_v2 = vunpack.c.l.bf16 %v2412_v56  ;;  %v792_v3 = vsel %vm530_vm1, %v2098_v60, 0.0  ;;  %v2413_v5 = vld [vmem:[%s3411_s0 + $0x218] sm:$0xff]  }
  0xf6   :  { %v1546_v42 = vadd.f32 %v1545_v33, %v1544_v36  ;;  %v1183_v33 = vmul.f32 %v2098_v60, %v2098_v60  ;;  %v1567_v40 = vsel %vm530_vm1, %v1182_v26, 0.0 }
  0xf7   :  { %v775_v18 = vadd.f32 %v774_v9, %v773_v11  ;;  %v2102_v9 = vunpack.c.h.bf16 %v2412_v56  ;;  %v794_v10 = vsel %vm530_vm1, %v2101_v2, 0.0 }
  0xf8   :  { %v1548_v49 = vadd.f32 %v1547_v39, %v1546_v42  ;;  %v1184_v39 = vmul.f32 %v2101_v2, %v2101_v2  ;;  %v1569_v47 = vsel %vm530_vm1, %v1183_v33, 0.0 }
  0xf9   :  { %v777_v24 = vadd.f32 %v776_v15, %v775_v18  ;;  %v2105_v15 = vunpack.c.l.bf16 %v2413_v5  ;;  %v796_v16 = vsel %vm530_vm1, %v2102_v9, 0.0  ;;  %v2414_v18 = vld [vmem:[%s3411_s0 + $0x220] sm:$0xff]  }
  0xfa   :  { %v1550_v55 = vadd.f32 %v1549_v46, %v1548_v49  ;;  %v1185_v46 = vmul.f32 %v2102_v9, %v2102_v9  ;;  %v1571_v53 = vsel %vm530_vm1, %v1184_v39, 0.0 }
  0xfb   :  { %v779_v31 = vadd.f32 %v778_v22, %v777_v24  ;;  %v2106_v22 = vunpack.c.h.bf16 %v2413_v5  ;;  %v798_v23 = vsel %vm530_vm1, %v2105_v15, 0.0 }
  0xfc   :  { %v1552_v62 = vadd.f32 %v1551_v52, %v1550_v55  ;;  %v1186_v52 = vmul.f32 %v2105_v15, %v2105_v15  ;;  %v1573_v60 = vsel %vm530_vm1, %v1185_v46, 0.0 }
  0xfd   :  { %v781_v37 = vadd.f32 %v780_v28, %v779_v31  ;;  %v2109_v28 = vunpack.c.l.bf16 %v2414_v18  ;;  %v800_v29 = vsel %vm530_vm1, %v2106_v22, 0.0  ;;  %v2415_v31 = vld [vmem:[%s3411_s0 + $0x228] sm:$0xff]  }
  0xfe   :  { %v1554_v4 = vadd.f32 %v1553_v59, %v1552_v62  ;;  %v1187_v59 = vmul.f32 %v2106_v22, %v2106_v22  ;;  %v1575_v2 = vsel %vm530_vm1, %v1186_v52, 0.0 }
  0xff   :  { %v783_v44 = vadd.f32 %v782_v35, %v781_v37  ;;  %v2110_v35 = vunpack.c.h.bf16 %v2414_v18  ;;  %v802_v36 = vsel %vm530_vm1, %v2109_v28, 0.0 }
 0x100   :  { %v1556_v11 = vadd.f32 %v1555_v1, %v1554_v4  ;;  %v1188_v1 = vmul.f32 %v2109_v28, %v2109_v28  ;;  %v1577_v9 = vsel %vm530_vm1, %v1187_v59, 0.0 }
 0x101   :  { %v785_v50 = vadd.f32 %v784_v41, %v783_v44  ;;  %v2113_v41 = vunpack.c.l.bf16 %v2415_v31  ;;  %v804_v42 = vsel %vm530_vm1, %v2110_v35, 0.0  ;;  %v2416_v44 = vld [vmem:[%s3411_s0 + $0x230] sm:$0xff]  }
 0x102   :  { %v1558_v17 = vadd.f32 %v1557_v8, %v1556_v11  ;;  %v1189_v8 = vmul.f32 %v2110_v35, %v2110_v35  ;;  %v1579_v15 = vsel %vm530_vm1, %v1188_v1, 0.0 }
 0x103   :  { %v787_v57 = vadd.f32 %v786_v48, %v785_v50  ;;  %v2114_v48 = vunpack.c.h.bf16 %v2415_v31  ;;  %v806_v49 = vsel %vm530_vm1, %v2113_v41, 0.0 }
 0x104   :  { %v1560_v24 = vadd.f32 %v1559_v14, %v1558_v17  ;;  %v1190_v14 = vmul.f32 %v2113_v41, %v2113_v41  ;;  %v1581_v22 = vsel %vm530_vm1, %v1189_v8, 0.0 }
 0x105   :  { %v789_v63 = vadd.f32 %v788_v54, %v787_v57  ;;  %v2117_v54 = vunpack.c.l.bf16 %v2416_v44  ;;  %v808_v55 = vsel %vm530_vm1, %v2114_v48, 0.0  ;;  %v2417_v57 = vld [vmem:[%s3411_s0 + $0x238] sm:$0xff]  }
 0x106   :  { %v1562_v30 = vadd.f32 %v1561_v21, %v1560_v24  ;;  %v1191_v21 = vmul.f32 %v2114_v48, %v2114_v48  ;;  %v1583_v28 = vsel %vm530_vm1, %v1190_v14, 0.0 }
 0x107   :  { %v791_v6 = vadd.f32 %v790_v61, %v789_v63  ;;  %v2118_v61 = vunpack.c.h.bf16 %v2416_v44  ;;  %v810_v62 = vsel %vm530_vm1, %v2117_v54, 0.0 }
 0x108   :  { %v1564_v37 = vadd.f32 %v1563_v27, %v1562_v30  ;;  %v1192_v27 = vmul.f32 %v2117_v54, %v2117_v54  ;;  %v1585_v35 = vsel %vm530_vm1, %v1191_v21, 0.0 }
 0x109   :  { %v793_v12 = vadd.f32 %v792_v3, %v791_v6  ;;  %v2121_v3 = vunpack.c.l.bf16 %v2417_v57  ;;  %v812_v4 = vsel %vm530_vm1, %v2118_v61, 0.0  ;;  %v2418_v6 = vld [vmem:[%s3411_s0 + $0x240] sm:$0xff]  }
 0x10a   :  { %v1566_v43 = vadd.f32 %v1565_v34, %v1564_v37  ;;  %v1193_v34 = vmul.f32 %v2118_v61, %v2118_v61  ;;  %v1587_v41 = vsel %vm530_vm1, %v1192_v27, 0.0 }
 0x10b   :  { %v795_v19 = vadd.f32 %v794_v10, %v793_v12  ;;  %v2122_v10 = vunpack.c.h.bf16 %v2417_v57  ;;  %v814_v11 = vsel %vm530_vm1, %v2121_v3, 0.0 }
 0x10c   :  { %v1568_v50 = vadd.f32 %v1567_v40, %v1566_v43  ;;  %v1194_v40 = vmul.f32 %v2121_v3, %v2121_v3  ;;  %v1589_v48 = vsel %vm530_vm1, %v1193_v34, 0.0 }
 0x10d   :  { %v797_v25 = vadd.f32 %v796_v16, %v795_v19  ;;  %v2125_v16 = vunpack.c.l.bf16 %v2418_v6  ;;  %v816_v17 = vsel %vm530_vm1, %v2122_v10, 0.0  ;;  %v2419_v19 = vld [vmem:[%s3411_s0 + $0x248] sm:$0xff]  }
 0x10e   :  { %v1570_v56 = vadd.f32 %v1569_v47, %v1568_v50  ;;  %v1195_v47 = vmul.f32 %v2122_v10, %v2122_v10  ;;  %v1591_v54 = vsel %vm530_vm1, %v1194_v40, 0.0 }
 0x10f   :  { %v799_v32 = vadd.f32 %v798_v23, %v797_v25  ;;  %v2126_v23 = vunpack.c.h.bf16 %v2418_v6  ;;  %v818_v24 = vsel %vm530_vm1, %v2125_v16, 0.0 }
 0x110   :  { %v1572_v63 = vadd.f32 %v1571_v53, %v1570_v56  ;;  %v1196_v53 = vmul.f32 %v2125_v16, %v2125_v16  ;;  %v1593_v61 = vsel %vm530_vm1, %v1195_v47, 0.0 }
 0x111   :  { %v801_v38 = vadd.f32 %v800_v29, %v799_v32  ;;  %v2129_v29 = vunpack.c.l.bf16 %v2419_v19  ;;  %v820_v30 = vsel %vm530_vm1, %v2126_v23, 0.0  ;;  %v2420_v32 = vld [vmem:[%s3411_s0 + $0x250] sm:$0xff]  }
 0x112   :  { %v1574_v5 = vadd.f32 %v1573_v60, %v1572_v63  ;;  %v1197_v60 = vmul.f32 %v2126_v23, %v2126_v23  ;;  %v1595_v3 = vsel %vm530_vm1, %v1196_v53, 0.0 }
 0x113   :  { %v803_v45 = vadd.f32 %v802_v36, %v801_v38  ;;  %v2130_v36 = vunpack.c.h.bf16 %v2419_v19  ;;  %v822_v37 = vsel %vm530_vm1, %v2129_v29, 0.0 }
 0x114   :  { %v1576_v12 = vadd.f32 %v1575_v2, %v1574_v5  ;;  %v1198_v2 = vmul.f32 %v2129_v29, %v2129_v29  ;;  %v1597_v10 = vsel %vm530_vm1, %v1197_v60, 0.0 }
 0x115   :  { %v805_v51 = vadd.f32 %v804_v42, %v803_v45  ;;  %v2133_v42 = vunpack.c.l.bf16 %v2420_v32  ;;  %v824_v43 = vsel %vm530_vm1, %v2130_v36, 0.0  ;;  %v2421_v45 = vld [vmem:[%s3411_s0 + $0x258] sm:$0xff]  }
 0x116   :  { %v1578_v18 = vadd.f32 %v1577_v9, %v1576_v12  ;;  %v1199_v9 = vmul.f32 %v2130_v36, %v2130_v36  ;;  %v1599_v16 = vsel %vm530_vm1, %v1198_v2, 0.0 }
 0x117   :  { %v807_v58 = vadd.f32 %v806_v49, %v805_v51  ;;  %v2134_v49 = vunpack.c.h.bf16 %v2420_v32  ;;  %v826_v50 = vsel %vm530_vm1, %v2133_v42, 0.0 }
 0x118   :  { %v1580_v25 = vadd.f32 %v1579_v15, %v1578_v18  ;;  %v1200_v15 = vmul.f32 %v2133_v42, %v2133_v42  ;;  %v1601_v23 = vsel %vm530_vm1, %v1199_v9, 0.0 }
 0x119   :  { %v809_v0 = vadd.f32 %v808_v55, %v807_v58  ;;  %v2137_v55 = vunpack.c.l.bf16 %v2421_v45  ;;  %v828_v56 = vsel %vm530_vm1, %v2134_v49, 0.0  ;;  %v2422_v58 = vld [vmem:[%s3411_s0 + $0x260] sm:$0xff]  }
 0x11a   :  { %v1582_v31 = vadd.f32 %v1581_v22, %v1580_v25  ;;  %v1201_v22 = vmul.f32 %v2134_v49, %v2134_v49  ;;  %v1603_v29 = vsel %vm530_vm1, %v1200_v15, 0.0 }
 0x11b   :  { %v811_v7 = vadd.f32 %v810_v62, %v809_v0  ;;  %v2138_v62 = vunpack.c.h.bf16 %v2421_v45  ;;  %v830_v63 = vsel %vm530_vm1, %v2137_v55, 0.0 }
 0x11c   :  { %v1584_v38 = vadd.f32 %v1583_v28, %v1582_v31  ;;  %v1202_v28 = vmul.f32 %v2137_v55, %v2137_v55  ;;  %v1605_v36 = vsel %vm530_vm1, %v1201_v22, 0.0 }
 0x11d   :  { %v813_v13 = vadd.f32 %v812_v4, %v811_v7  ;;  %v2141_v4 = vunpack.c.l.bf16 %v2422_v58  ;;  %v832_v5 = vsel %vm530_vm1, %v2138_v62, 0.0  ;;  %v2423_v7 = vld [vmem:[%s3411_s0 + $0x268] sm:$0xff]  }
 0x11e   :  { %v1586_v44 = vadd.f32 %v1585_v35, %v1584_v38  ;;  %v1203_v35 = vmul.f32 %v2138_v62, %v2138_v62  ;;  %v1607_v42 = vsel %vm530_vm1, %v1202_v28, 0.0 }
 0x11f   :  { %v815_v20 = vadd.f32 %v814_v11, %v813_v13  ;;  %v2142_v11 = vunpack.c.h.bf16 %v2422_v58  ;;  %v834_v12 = vsel %vm530_vm1, %v2141_v4, 0.0 }
 0x120   :  { %v1588_v51 = vadd.f32 %v1587_v41, %v1586_v44  ;;  %v1204_v41 = vmul.f32 %v2141_v4, %v2141_v4  ;;  %v1609_v49 = vsel %vm530_vm1, %v1203_v35, 0.0 }
 0x121   :  { %v817_v26 = vadd.f32 %v816_v17, %v815_v20  ;;  %v2145_v17 = vunpack.c.l.bf16 %v2423_v7  ;;  %v836_v18 = vsel %vm530_vm1, %v2142_v11, 0.0  ;;  %v2424_v20 = vld [vmem:[%s3411_s0 + $0x270] sm:$0xff]  }
 0x122   :  { %v1590_v57 = vadd.f32 %v1589_v48, %v1588_v51  ;;  %v1205_v48 = vmul.f32 %v2142_v11, %v2142_v11  ;;  %v1611_v55 = vsel %vm530_vm1, %v1204_v41, 0.0 }
 0x123   :  { %v819_v33 = vadd.f32 %v818_v24, %v817_v26  ;;  %v2146_v24 = vunpack.c.h.bf16 %v2423_v7  ;;  %v838_v25 = vsel %vm530_vm1, %v2145_v17, 0.0 }
 0x124   :  { %v1592_v0 = vadd.f32 %v1591_v54, %v1590_v57  ;;  %v1206_v54 = vmul.f32 %v2145_v17, %v2145_v17  ;;  %v1613_v62 = vsel %vm530_vm1, %v1205_v48, 0.0 }
 0x125   :  { %v821_v39 = vadd.f32 %v820_v30, %v819_v33  ;;  %v2149_v30 = vunpack.c.l.bf16 %v2424_v20  ;;  %v840_v31 = vsel %vm530_vm1, %v2146_v24, 0.0  ;;  %v2425_v33 = vld [vmem:[%s3411_s0 + $0x278] sm:$0xff]  }
 0x126   :  { %v1594_v6 = vadd.f32 %v1593_v61, %v1592_v0  ;;  %v1207_v61 = vmul.f32 %v2146_v24, %v2146_v24  ;;  %v1615_v4 = vsel %vm530_vm1, %v1206_v54, 0.0 }
 0x127   :  { %v823_v46 = vadd.f32 %v822_v37, %v821_v39  ;;  %v2150_v37 = vunpack.c.h.bf16 %v2424_v20  ;;  %v842_v38 = vsel %vm530_vm1, %v2149_v30, 0.0 }
 0x128   :  { %v1596_v13 = vadd.f32 %v1595_v3, %v1594_v6  ;;  %v1208_v3 = vmul.f32 %v2149_v30, %v2149_v30  ;;  %v1617_v11 = vsel %vm530_vm1, %v1207_v61, 0.0 }
 0x129   :  { %v825_v52 = vadd.f32 %v824_v43, %v823_v46  ;;  %v2153_v43 = vunpack.c.l.bf16 %v2425_v33  ;;  %v844_v44 = vsel %vm530_vm1, %v2150_v37, 0.0  ;;  %v2426_v46 = vld [vmem:[%s3411_s0 + $0x280] sm:$0xff]  }
 0x12a   :  { %v1598_v19 = vadd.f32 %v1597_v10, %v1596_v13  ;;  %v1209_v10 = vmul.f32 %v2150_v37, %v2150_v37  ;;  %v1619_v17 = vsel %vm530_vm1, %v1208_v3, 0.0 }
 0x12b   :  { %v827_v59 = vadd.f32 %v826_v50, %v825_v52  ;;  %v2154_v50 = vunpack.c.h.bf16 %v2425_v33  ;;  %v846_v51 = vsel %vm530_vm1, %v2153_v43, 0.0 }
 0x12c   :  { %v1600_v26 = vadd.f32 %v1599_v16, %v1598_v19  ;;  %v1210_v16 = vmul.f32 %v2153_v43, %v2153_v43  ;;  %v1621_v24 = vsel %vm530_vm1, %v1209_v10, 0.0 }
 0x12d   :  { %v829_v1 = vadd.f32 %v828_v56, %v827_v59  ;;  %v2157_v56 = vunpack.c.l.bf16 %v2426_v46  ;;  %v848_v57 = vsel %vm530_vm1, %v2154_v50, 0.0  ;;  %v2427_v59 = vld [vmem:[%s3411_s0 + $0x288] sm:$0xff]  }
 0x12e   :  { %v1602_v32 = vadd.f32 %v1601_v23, %v1600_v26  ;;  %v1211_v23 = vmul.f32 %v2154_v50, %v2154_v50  ;;  %v1623_v30 = vsel %vm530_vm1, %v1210_v16, 0.0 }
 0x12f   :  { %v831_v8 = vadd.f32 %v830_v63, %v829_v1  ;;  %v2158_v63 = vunpack.c.h.bf16 %v2426_v46  ;;  %v850_v0 = vsel %vm530_vm1, %v2157_v56, 0.0 }
 0x130   :  { %v1604_v39 = vadd.f32 %v1603_v29, %v1602_v32  ;;  %v1212_v29 = vmul.f32 %v2157_v56, %v2157_v56  ;;  %v1625_v37 = vsel %vm530_vm1, %v1211_v23, 0.0 }
 0x131   :  { %v833_v14 = vadd.f32 %v832_v5, %v831_v8  ;;  %v2161_v5 = vunpack.c.l.bf16 %v2427_v59  ;;  %v852_v6 = vsel %vm530_vm1, %v2158_v63, 0.0  ;;  %v2428_v8 = vld [vmem:[%s3411_s0 + $0x290] sm:$0xff]  }
 0x132   :  { %v1606_v45 = vadd.f32 %v1605_v36, %v1604_v39  ;;  %v1213_v36 = vmul.f32 %v2158_v63, %v2158_v63  ;;  %v1627_v43 = vsel %vm530_vm1, %v1212_v29, 0.0 }
 0x133   :  { %v835_v21 = vadd.f32 %v834_v12, %v833_v14  ;;  %v2162_v12 = vunpack.c.h.bf16 %v2427_v59  ;;  %v854_v13 = vsel %vm530_vm1, %v2161_v5, 0.0 }
 0x134   :  { %v1608_v52 = vadd.f32 %v1607_v42, %v1606_v45  ;;  %v1214_v42 = vmul.f32 %v2161_v5, %v2161_v5  ;;  %v1629_v50 = vsel %vm530_vm1, %v1213_v36, 0.0 }
 0x135   :  { %v837_v27 = vadd.f32 %v836_v18, %v835_v21  ;;  %v2165_v18 = vunpack.c.l.bf16 %v2428_v8  ;;  %v856_v19 = vsel %vm530_vm1, %v2162_v12, 0.0  ;;  %v2429_v21 = vld [vmem:[%s3411_s0 + $0x298] sm:$0xff]  }
 0x136   :  { %v1610_v58 = vadd.f32 %v1609_v49, %v1608_v52  ;;  %v1215_v49 = vmul.f32 %v2162_v12, %v2162_v12  ;;  %v1631_v56 = vsel %vm530_vm1, %v1214_v42, 0.0 }
 0x137   :  { %v839_v34 = vadd.f32 %v838_v25, %v837_v27  ;;  %v2166_v25 = vunpack.c.h.bf16 %v2428_v8  ;;  %v858_v26 = vsel %vm530_vm1, %v2165_v18, 0.0 }
 0x138   :  { %v1612_v1 = vadd.f32 %v1611_v55, %v1610_v58  ;;  %v1216_v55 = vmul.f32 %v2165_v18, %v2165_v18  ;;  %v1633_v63 = vsel %vm530_vm1, %v1215_v49, 0.0 }
 0x139   :  { %v841_v40 = vadd.f32 %v840_v31, %v839_v34  ;;  %v2169_v31 = vunpack.c.l.bf16 %v2429_v21  ;;  %v860_v32 = vsel %vm530_vm1, %v2166_v25, 0.0  ;;  %v2430_v34 = vld [vmem:[%s3411_s0 + $0x2a0] sm:$0xff]  }
 0x13a   :  { %v1614_v7 = vadd.f32 %v1613_v62, %v1612_v1  ;;  %v1217_v62 = vmul.f32 %v2166_v25, %v2166_v25  ;;  %v1635_v5 = vsel %vm530_vm1, %v1216_v55, 0.0 }
 0x13b   :  { %v843_v47 = vadd.f32 %v842_v38, %v841_v40  ;;  %v2170_v38 = vunpack.c.h.bf16 %v2429_v21  ;;  %v862_v39 = vsel %vm530_vm1, %v2169_v31, 0.0 }
 0x13c   :  { %v1616_v14 = vadd.f32 %v1615_v4, %v1614_v7  ;;  %v1218_v4 = vmul.f32 %v2169_v31, %v2169_v31  ;;  %v1637_v12 = vsel %vm530_vm1, %v1217_v62, 0.0 }
 0x13d   :  { %v845_v53 = vadd.f32 %v844_v44, %v843_v47  ;;  %v2173_v44 = vunpack.c.l.bf16 %v2430_v34  ;;  %v864_v45 = vsel %vm530_vm1, %v2170_v38, 0.0  ;;  %v2431_v47 = vld [vmem:[%s3411_s0 + $0x2a8] sm:$0xff]  }
 0x13e   :  { %v1618_v20 = vadd.f32 %v1617_v11, %v1616_v14  ;;  %v1219_v11 = vmul.f32 %v2170_v38, %v2170_v38  ;;  %v1639_v18 = vsel %vm530_vm1, %v1218_v4, 0.0 }
 0x13f   :  { %v847_v60 = vadd.f32 %v846_v51, %v845_v53  ;;  %v2174_v51 = vunpack.c.h.bf16 %v2430_v34  ;;  %v866_v52 = vsel %vm530_vm1, %v2173_v44, 0.0 }
 0x140   :  { %v1620_v27 = vadd.f32 %v1619_v17, %v1618_v20  ;;  %v1220_v17 = vmul.f32 %v2173_v44, %v2173_v44  ;;  %v1641_v25 = vsel %vm530_vm1, %v1219_v11, 0.0 }
 0x141   :  { %v849_v2 = vadd.f32 %v848_v57, %v847_v60  ;;  %v2177_v57 = vunpack.c.l.bf16 %v2431_v47  ;;  %v868_v58 = vsel %vm530_vm1, %v2174_v51, 0.0  ;;  %v2432_v60 = vld [vmem:[%s3411_s0 + $0x2b0] sm:$0xff]  }
 0x142   :  { %v1622_v33 = vadd.f32 %v1621_v24, %v1620_v27  ;;  %v1221_v24 = vmul.f32 %v2174_v51, %v2174_v51  ;;  %v1643_v31 = vsel %vm530_vm1, %v1220_v17, 0.0 }
 0x143   :  { %v851_v9 = vadd.f32 %v850_v0, %v849_v2  ;;  %v2178_v0 = vunpack.c.h.bf16 %v2431_v47  ;;  %v870_v1 = vsel %vm530_vm1, %v2177_v57, 0.0 }
 0x144   :  { %v1624_v40 = vadd.f32 %v1623_v30, %v1622_v33  ;;  %v1222_v30 = vmul.f32 %v2177_v57, %v2177_v57  ;;  %v1645_v38 = vsel %vm530_vm1, %v1221_v24, 0.0 }
 0x145   :  { %v853_v15 = vadd.f32 %v852_v6, %v851_v9  ;;  %v2181_v6 = vunpack.c.l.bf16 %v2432_v60  ;;  %v872_v7 = vsel %vm530_vm1, %v2178_v0, 0.0  ;;  %v2433_v9 = vld [vmem:[%s3411_s0 + $0x2b8] sm:$0xff]  }
 0x146   :  { %v1626_v46 = vadd.f32 %v1625_v37, %v1624_v40  ;;  %v1223_v37 = vmul.f32 %v2178_v0, %v2178_v0  ;;  %v1647_v44 = vsel %vm530_vm1, %v1222_v30, 0.0 }
 0x147   :  { %v855_v22 = vadd.f32 %v854_v13, %v853_v15  ;;  %v2182_v13 = vunpack.c.h.bf16 %v2432_v60  ;;  %v874_v14 = vsel %vm530_vm1, %v2181_v6, 0.0 }
 0x148   :  { %v1628_v53 = vadd.f32 %v1627_v43, %v1626_v46  ;;  %v1224_v43 = vmul.f32 %v2181_v6, %v2181_v6  ;;  %v1649_v51 = vsel %vm530_vm1, %v1223_v37, 0.0 }
 0x149   :  { %v857_v28 = vadd.f32 %v856_v19, %v855_v22  ;;  %v2185_v19 = vunpack.c.l.bf16 %v2433_v9  ;;  %v876_v20 = vsel %vm530_vm1, %v2182_v13, 0.0  ;;  %v2434_v22 = vld [vmem:[%s3411_s0 + $0x2c0] sm:$0xff]  }
 0x14a   :  { %v1630_v59 = vadd.f32 %v1629_v50, %v1628_v53  ;;  %v1225_v50 = vmul.f32 %v2182_v13, %v2182_v13  ;;  %v1651_v57 = vsel %vm530_vm1, %v1224_v43, 0.0 }
 0x14b   :  { %v859_v35 = vadd.f32 %v858_v26, %v857_v28  ;;  %v2186_v26 = vunpack.c.h.bf16 %v2433_v9  ;;  %v878_v27 = vsel %vm530_vm1, %v2185_v19, 0.0 }
 0x14c   :  { %v1632_v2 = vadd.f32 %v1631_v56, %v1630_v59  ;;  %v1226_v56 = vmul.f32 %v2185_v19, %v2185_v19  ;;  %v1653_v0 = vsel %vm530_vm1, %v1225_v50, 0.0 }
 0x14d   :  { %v861_v41 = vadd.f32 %v860_v32, %v859_v35  ;;  %v2189_v32 = vunpack.c.l.bf16 %v2434_v22  ;;  %v880_v33 = vsel %vm530_vm1, %v2186_v26, 0.0  ;;  %v2435_v35 = vld [vmem:[%s3411_s0 + $0x2c8] sm:$0xff]  }
 0x14e   :  { %v1634_v8 = vadd.f32 %v1633_v63, %v1632_v2  ;;  %v1227_v63 = vmul.f32 %v2186_v26, %v2186_v26  ;;  %v1655_v6 = vsel %vm530_vm1, %v1226_v56, 0.0 }
 0x14f   :  { %v863_v48 = vadd.f32 %v862_v39, %v861_v41  ;;  %v2190_v39 = vunpack.c.h.bf16 %v2434_v22  ;;  %v882_v40 = vsel %vm530_vm1, %v2189_v32, 0.0 }
 0x150   :  { %v1636_v15 = vadd.f32 %v1635_v5, %v1634_v8  ;;  %v1228_v5 = vmul.f32 %v2189_v32, %v2189_v32  ;;  %v1657_v13 = vsel %vm530_vm1, %v1227_v63, 0.0 }
 0x151   :  { %v865_v54 = vadd.f32 %v864_v45, %v863_v48  ;;  %v2193_v45 = vunpack.c.l.bf16 %v2435_v35  ;;  %v884_v46 = vsel %vm530_vm1, %v2190_v39, 0.0  ;;  %v2436_v48 = vld [vmem:[%s3411_s0 + $0x2d0] sm:$0xff]  }
 0x152   :  { %v1638_v21 = vadd.f32 %v1637_v12, %v1636_v15  ;;  %v1229_v12 = vmul.f32 %v2190_v39, %v2190_v39  ;;  %v1659_v19 = vsel %vm530_vm1, %v1228_v5, 0.0 }
 0x153   :  { %v867_v61 = vadd.f32 %v866_v52, %v865_v54  ;;  %v2194_v52 = vunpack.c.h.bf16 %v2435_v35  ;;  %v886_v53 = vsel %vm530_vm1, %v2193_v45, 0.0 }
 0x154   :  { %v1640_v28 = vadd.f32 %v1639_v18, %v1638_v21  ;;  %v1230_v18 = vmul.f32 %v2193_v45, %v2193_v45  ;;  %v1661_v26 = vsel %vm530_vm1, %v1229_v12, 0.0 }
 0x155   :  { %v869_v3 = vadd.f32 %v868_v58, %v867_v61  ;;  %v2197_v58 = vunpack.c.l.bf16 %v2436_v48  ;;  %v888_v59 = vsel %vm530_vm1, %v2194_v52, 0.0  ;;  %v2437_v61 = vld [vmem:[%s3411_s0 + $0x2d8] sm:$0xff]  }
 0x156   :  { %v1642_v34 = vadd.f32 %v1641_v25, %v1640_v28  ;;  %v1231_v25 = vmul.f32 %v2194_v52, %v2194_v52  ;;  %v1663_v32 = vsel %vm530_vm1, %v1230_v18, 0.0 }
 0x157   :  { %v871_v10 = vadd.f32 %v870_v1, %v869_v3  ;;  %v2198_v1 = vunpack.c.h.bf16 %v2436_v48  ;;  %v890_v2 = vsel %vm530_vm1, %v2197_v58, 0.0 }
 0x158   :  { %v1644_v41 = vadd.f32 %v1643_v31, %v1642_v34  ;;  %v1232_v31 = vmul.f32 %v2197_v58, %v2197_v58  ;;  %v1665_v39 = vsel %vm530_vm1, %v1231_v25, 0.0 }
 0x159   :  { %v873_v16 = vadd.f32 %v872_v7, %v871_v10  ;;  %v2201_v7 = vunpack.c.l.bf16 %v2437_v61  ;;  %v892_v8 = vsel %vm530_vm1, %v2198_v1, 0.0  ;;  %v2438_v10 = vld [vmem:[%s3411_s0 + $0x2e0] sm:$0xff]  }
 0x15a   :  { %v1646_v47 = vadd.f32 %v1645_v38, %v1644_v41  ;;  %v1233_v38 = vmul.f32 %v2198_v1, %v2198_v1  ;;  %v1667_v45 = vsel %vm530_vm1, %v1232_v31, 0.0 }
 0x15b   :  { %v875_v23 = vadd.f32 %v874_v14, %v873_v16  ;;  %v2202_v14 = vunpack.c.h.bf16 %v2437_v61  ;;  %v894_v15 = vsel %vm530_vm1, %v2201_v7, 0.0 }
 0x15c   :  { %v1648_v54 = vadd.f32 %v1647_v44, %v1646_v47  ;;  %v1234_v44 = vmul.f32 %v2201_v7, %v2201_v7  ;;  %v1669_v52 = vsel %vm530_vm1, %v1233_v38, 0.0 }
 0x15d   :  { %v877_v29 = vadd.f32 %v876_v20, %v875_v23  ;;  %v2205_v20 = vunpack.c.l.bf16 %v2438_v10  ;;  %v896_v21 = vsel %vm530_vm1, %v2202_v14, 0.0  ;;  %v2439_v23 = vld [vmem:[%s3411_s0 + $0x2e8] sm:$0xff]  }
 0x15e   :  { %v1650_v60 = vadd.f32 %v1649_v51, %v1648_v54  ;;  %v1235_v51 = vmul.f32 %v2202_v14, %v2202_v14  ;;  %v1671_v58 = vsel %vm530_vm1, %v1234_v44, 0.0 }
 0x15f   :  { %v879_v36 = vadd.f32 %v878_v27, %v877_v29  ;;  %v2206_v27 = vunpack.c.h.bf16 %v2438_v10  ;;  %v898_v28 = vsel %vm530_vm1, %v2205_v20, 0.0 }
 0x160   :  { %v1652_v3 = vadd.f32 %v1651_v57, %v1650_v60  ;;  %v1236_v57 = vmul.f32 %v2205_v20, %v2205_v20  ;;  %v1673_v1 = vsel %vm530_vm1, %v1235_v51, 0.0 }
 0x161   :  { %v881_v42 = vadd.f32 %v880_v33, %v879_v36  ;;  %v2209_v33 = vunpack.c.l.bf16 %v2439_v23  ;;  %v900_v34 = vsel %vm530_vm1, %v2206_v27, 0.0  ;;  %v2440_v36 = vld [vmem:[%s3411_s0 + $0x2f0] sm:$0xff]  }
 0x162   :  { %v1654_v9 = vadd.f32 %v1653_v0, %v1652_v3  ;;  %v1237_v0 = vmul.f32 %v2206_v27, %v2206_v27  ;;  %v1675_v7 = vsel %vm530_vm1, %v1236_v57, 0.0 }
 0x163   :  { %v883_v49 = vadd.f32 %v882_v40, %v881_v42  ;;  %v2210_v40 = vunpack.c.h.bf16 %v2439_v23  ;;  %v902_v41 = vsel %vm530_vm1, %v2209_v33, 0.0 }
 0x164   :  { %v1656_v16 = vadd.f32 %v1655_v6, %v1654_v9  ;;  %v1238_v6 = vmul.f32 %v2209_v33, %v2209_v33  ;;  %v1677_v14 = vsel %vm530_vm1, %v1237_v0, 0.0 }
 0x165   :  { %v885_v55 = vadd.f32 %v884_v46, %v883_v49  ;;  %v2213_v46 = vunpack.c.l.bf16 %v2440_v36  ;;  %v904_v47 = vsel %vm530_vm1, %v2210_v40, 0.0  ;;  %v2441_v49 = vld [vmem:[%s3411_s0 + $0x2f8] sm:$0xff]  }
 0x166   :  { %v1658_v22 = vadd.f32 %v1657_v13, %v1656_v16  ;;  %v1239_v13 = vmul.f32 %v2210_v40, %v2210_v40  ;;  %v1679_v20 = vsel %vm530_vm1, %v1238_v6, 0.0 }
 0x167   :  { %v887_v62 = vadd.f32 %v886_v53, %v885_v55  ;;  %v2214_v53 = vunpack.c.h.bf16 %v2440_v36  ;;  %v906_v54 = vsel %vm530_vm1, %v2213_v46, 0.0 }
 0x168   :  { %v1660_v29 = vadd.f32 %v1659_v19, %v1658_v22  ;;  %v1240_v19 = vmul.f32 %v2213_v46, %v2213_v46  ;;  %v1681_v27 = vsel %vm530_vm1, %v1239_v13, 0.0 }
 0x169   :  { %v889_v4 = vadd.f32 %v888_v59, %v887_v62  ;;  %v2217_v59 = vunpack.c.l.bf16 %v2441_v49  ;;  %v908_v60 = vsel %vm530_vm1, %v2214_v53, 0.0  ;;  %v2442_v62 = vld [vmem:[%s3411_s0 + $0x300] sm:$0xff]  }
 0x16a   :  { %v1662_v35 = vadd.f32 %v1661_v26, %v1660_v29  ;;  %v1241_v26 = vmul.f32 %v2214_v53, %v2214_v53  ;;  %v1683_v33 = vsel %vm530_vm1, %v1240_v19, 0.0 }
 0x16b   :  { %v891_v11 = vadd.f32 %v890_v2, %v889_v4  ;;  %v2218_v2 = vunpack.c.h.bf16 %v2441_v49  ;;  %v910_v3 = vsel %vm530_vm1, %v2217_v59, 0.0 }
 0x16c   :  { %v1664_v42 = vadd.f32 %v1663_v32, %v1662_v35  ;;  %v1242_v32 = vmul.f32 %v2217_v59, %v2217_v59  ;;  %v1685_v40 = vsel %vm530_vm1, %v1241_v26, 0.0 }
 0x16d   :  { %v893_v17 = vadd.f32 %v892_v8, %v891_v11  ;;  %v2221_v8 = vunpack.c.l.bf16 %v2442_v62  ;;  %v912_v9 = vsel %vm530_vm1, %v2218_v2, 0.0  ;;  %v2443_v11 = vld [vmem:[%s3411_s0 + $0x308] sm:$0xff]  }
 0x16e   :  { %v1666_v48 = vadd.f32 %v1665_v39, %v1664_v42  ;;  %v1243_v39 = vmul.f32 %v2218_v2, %v2218_v2  ;;  %v1687_v46 = vsel %vm530_vm1, %v1242_v32, 0.0 }
 0x16f   :  { %v895_v24 = vadd.f32 %v894_v15, %v893_v17  ;;  %v2222_v15 = vunpack.c.h.bf16 %v2442_v62  ;;  %v914_v16 = vsel %vm530_vm1, %v2221_v8, 0.0 }
 0x170   :  { %v1668_v55 = vadd.f32 %v1667_v45, %v1666_v48  ;;  %v1244_v45 = vmul.f32 %v2221_v8, %v2221_v8  ;;  %v1689_v53 = vsel %vm530_vm1, %v1243_v39, 0.0 }
 0x171   :  { %v897_v30 = vadd.f32 %v896_v21, %v895_v24  ;;  %v2225_v21 = vunpack.c.l.bf16 %v2443_v11  ;;  %v916_v22 = vsel %vm530_vm1, %v2222_v15, 0.0  ;;  %v2444_v24 = vld [vmem:[%s3411_s0 + $0x310] sm:$0xff]  }
 0x172   :  { %v1670_v61 = vadd.f32 %v1669_v52, %v1668_v55  ;;  %v1245_v52 = vmul.f32 %v2222_v15, %v2222_v15  ;;  %v1691_v59 = vsel %vm530_vm1, %v1244_v45, 0.0 }
 0x173   :  { %v899_v37 = vadd.f32 %v898_v28, %v897_v30  ;;  %v2226_v28 = vunpack.c.h.bf16 %v2443_v11  ;;  %v918_v29 = vsel %vm530_vm1, %v2225_v21, 0.0 }
 0x174   :  { %v1672_v4 = vadd.f32 %v1671_v58, %v1670_v61  ;;  %v1246_v58 = vmul.f32 %v2225_v21, %v2225_v21  ;;  %v1693_v2 = vsel %vm530_vm1, %v1245_v52, 0.0 }
 0x175   :  { %v901_v43 = vadd.f32 %v900_v34, %v899_v37  ;;  %v2229_v34 = vunpack.c.l.bf16 %v2444_v24  ;;  %v920_v35 = vsel %vm530_vm1, %v2226_v28, 0.0  ;;  %v2445_v37 = vld [vmem:[%s3411_s0 + $0x318] sm:$0xff]  }
 0x176   :  { %v1674_v10 = vadd.f32 %v1673_v1, %v1672_v4  ;;  %v1247_v1 = vmul.f32 %v2226_v28, %v2226_v28  ;;  %v1695_v8 = vsel %vm530_vm1, %v1246_v58, 0.0 }
 0x177   :  { %v903_v50 = vadd.f32 %v902_v41, %v901_v43  ;;  %v2230_v41 = vunpack.c.h.bf16 %v2444_v24  ;;  %v922_v42 = vsel %vm530_vm1, %v2229_v34, 0.0 }
 0x178   :  { %v1676_v17 = vadd.f32 %v1675_v7, %v1674_v10  ;;  %v1248_v7 = vmul.f32 %v2229_v34, %v2229_v34  ;;  %v1697_v15 = vsel %vm530_vm1, %v1247_v1, 0.0 }
 0x179   :  { %v905_v56 = vadd.f32 %v904_v47, %v903_v50  ;;  %v2233_v47 = vunpack.c.l.bf16 %v2445_v37  ;;  %v924_v48 = vsel %vm530_vm1, %v2230_v41, 0.0  ;;  %v2446_v50 = vld [vmem:[%s3411_s0 + $0x320] sm:$0xff]  }
 0x17a   :  { %v1678_v23 = vadd.f32 %v1677_v14, %v1676_v17  ;;  %v1249_v14 = vmul.f32 %v2230_v41, %v2230_v41  ;;  %v1699_v21 = vsel %vm530_vm1, %v1248_v7, 0.0 }
 0x17b   :  { %v907_v63 = vadd.f32 %v906_v54, %v905_v56  ;;  %v2234_v54 = vunpack.c.h.bf16 %v2445_v37  ;;  %v926_v55 = vsel %vm530_vm1, %v2233_v47, 0.0 }
 0x17c   :  { %v1680_v30 = vadd.f32 %v1679_v20, %v1678_v23  ;;  %v1250_v20 = vmul.f32 %v2233_v47, %v2233_v47  ;;  %v1701_v28 = vsel %vm530_vm1, %v1249_v14, 0.0 }
 0x17d   :  { %v909_v5 = vadd.f32 %v908_v60, %v907_v63  ;;  %v2237_v60 = vunpack.c.l.bf16 %v2446_v50  ;;  %v928_v61 = vsel %vm530_vm1, %v2234_v54, 0.0  ;;  %v2447_v63 = vld [vmem:[%s3411_s0 + $0x328] sm:$0xff]  }
 0x17e   :  { %v1682_v36 = vadd.f32 %v1681_v27, %v1680_v30  ;;  %v1251_v27 = vmul.f32 %v2234_v54, %v2234_v54  ;;  %v1703_v34 = vsel %vm530_vm1, %v1250_v20, 0.0 }
 0x17f   :  { %v911_v12 = vadd.f32 %v910_v3, %v909_v5  ;;  %v2238_v3 = vunpack.c.h.bf16 %v2446_v50  ;;  %v930_v4 = vsel %vm530_vm1, %v2237_v60, 0.0 }
 0x180   :  { %v1684_v43 = vadd.f32 %v1683_v33, %v1682_v36  ;;  %v1252_v33 = vmul.f32 %v2237_v60, %v2237_v60  ;;  %v1705_v41 = vsel %vm530_vm1, %v1251_v27, 0.0 }
 0x181   :  { %v913_v18 = vadd.f32 %v912_v9, %v911_v12  ;;  %v2241_v9 = vunpack.c.l.bf16 %v2447_v63  ;;  %v932_v10 = vsel %vm530_vm1, %v2238_v3, 0.0  ;;  %v2448_v12 = vld [vmem:[%s3411_s0 + $0x330] sm:$0xff]  }
 0x182   :  { %v1686_v49 = vadd.f32 %v1685_v40, %v1684_v43  ;;  %v1253_v40 = vmul.f32 %v2238_v3, %v2238_v3  ;;  %v1707_v47 = vsel %vm530_vm1, %v1252_v33, 0.0 }
 0x183   :  { %v915_v25 = vadd.f32 %v914_v16, %v913_v18  ;;  %v2242_v16 = vunpack.c.h.bf16 %v2447_v63  ;;  %v934_v17 = vsel %vm530_vm1, %v2241_v9, 0.0 }
 0x184   :  { %v1688_v56 = vadd.f32 %v1687_v46, %v1686_v49  ;;  %v1254_v46 = vmul.f32 %v2241_v9, %v2241_v9  ;;  %v1709_v54 = vsel %vm530_vm1, %v1253_v40, 0.0 }
 0x185   :  { %v917_v31 = vadd.f32 %v916_v22, %v915_v25  ;;  %v2245_v22 = vunpack.c.l.bf16 %v2448_v12  ;;  %v936_v23 = vsel %vm530_vm1, %v2242_v16, 0.0  ;;  %v2449_v25 = vld [vmem:[%s3411_s0 + $0x338] sm:$0xff]  }
 0x186   :  { %v1690_v62 = vadd.f32 %v1689_v53, %v1688_v56  ;;  %v1255_v53 = vmul.f32 %v2242_v16, %v2242_v16  ;;  %v1711_v60 = vsel %vm530_vm1, %v1254_v46, 0.0 }
 0x187   :  { %v919_v38 = vadd.f32 %v918_v29, %v917_v31  ;;  %v2246_v29 = vunpack.c.h.bf16 %v2448_v12  ;;  %v938_v30 = vsel %vm530_vm1, %v2245_v22, 0.0 }
 0x188   :  { %v1692_v5 = vadd.f32 %v1691_v59, %v1690_v62  ;;  %v1256_v59 = vmul.f32 %v2245_v22, %v2245_v22  ;;  %v1713_v3 = vsel %vm530_vm1, %v1255_v53, 0.0 }
 0x189   :  { %v921_v44 = vadd.f32 %v920_v35, %v919_v38  ;;  %v2249_v35 = vunpack.c.l.bf16 %v2449_v25  ;;  %v940_v36 = vsel %vm530_vm1, %v2246_v29, 0.0  ;;  %v2450_v38 = vld [vmem:[%s3411_s0 + $0x340] sm:$0xff]  }
 0x18a   :  { %v1694_v11 = vadd.f32 %v1693_v2, %v1692_v5  ;;  %v1257_v2 = vmul.f32 %v2246_v29, %v2246_v29  ;;  %v1715_v9 = vsel %vm530_vm1, %v1256_v59, 0.0 }
 0x18b   :  { %v923_v51 = vadd.f32 %v922_v42, %v921_v44  ;;  %v2250_v42 = vunpack.c.h.bf16 %v2449_v25  ;;  %v942_v43 = vsel %vm530_vm1, %v2249_v35, 0.0 }
 0x18c   :  { %v1696_v18 = vadd.f32 %v1695_v8, %v1694_v11  ;;  %v1258_v8 = vmul.f32 %v2249_v35, %v2249_v35  ;;  %v1717_v16 = vsel %vm530_vm1, %v1257_v2, 0.0 }
 0x18d   :  { %v925_v57 = vadd.f32 %v924_v48, %v923_v51  ;;  %v2253_v48 = vunpack.c.l.bf16 %v2450_v38  ;;  %v944_v49 = vsel %vm530_vm1, %v2250_v42, 0.0  ;;  %v2451_v51 = vld [vmem:[%s3411_s0 + $0x348] sm:$0xff]  }
 0x18e   :  { %v1698_v24 = vadd.f32 %v1697_v15, %v1696_v18  ;;  %v1259_v15 = vmul.f32 %v2250_v42, %v2250_v42  ;;  %v1719_v22 = vsel %vm530_vm1, %v1258_v8, 0.0 }
 0x18f   :  { %v927_v0 = vadd.f32 %v926_v55, %v925_v57  ;;  %v2254_v55 = vunpack.c.h.bf16 %v2450_v38  ;;  %v946_v56 = vsel %vm530_vm1, %v2253_v48, 0.0 }
 0x190   :  { %v1700_v31 = vadd.f32 %v1699_v21, %v1698_v24  ;;  %v1260_v21 = vmul.f32 %v2253_v48, %v2253_v48  ;;  %v1721_v29 = vsel %vm530_vm1, %v1259_v15, 0.0 }
 0x191   :  { %v929_v6 = vadd.f32 %v928_v61, %v927_v0  ;;  %v2257_v61 = vunpack.c.l.bf16 %v2451_v51  ;;  %v948_v62 = vsel %vm530_vm1, %v2254_v55, 0.0  ;;  %v2452_v0 = vld [vmem:[%s3411_s0 + $0x350] sm:$0xff]  }
 0x192   :  { %v1702_v37 = vadd.f32 %v1701_v28, %v1700_v31  ;;  %v1261_v28 = vmul.f32 %v2254_v55, %v2254_v55  ;;  %v1723_v35 = vsel %vm530_vm1, %v1260_v21, 0.0 }
 0x193   :  { %v931_v13 = vadd.f32 %v930_v4, %v929_v6  ;;  %v2258_v4 = vunpack.c.h.bf16 %v2451_v51  ;;  %v950_v5 = vsel %vm530_vm1, %v2257_v61, 0.0 }
 0x194   :  { %v1704_v44 = vadd.f32 %v1703_v34, %v1702_v37  ;;  %v1262_v34 = vmul.f32 %v2257_v61, %v2257_v61  ;;  %v1725_v42 = vsel %vm530_vm1, %v1261_v28, 0.0 }
 0x195   :  { %v933_v19 = vadd.f32 %v932_v10, %v931_v13  ;;  %v2261_v10 = vunpack.c.l.bf16 %v2452_v0  ;;  %v952_v11 = vsel %vm530_vm1, %v2258_v4, 0.0  ;;  %v2453_v13 = vld [vmem:[%s3411_s0 + $0x358] sm:$0xff]  }
 0x196   :  { %v1706_v50 = vadd.f32 %v1705_v41, %v1704_v44  ;;  %v1263_v41 = vmul.f32 %v2258_v4, %v2258_v4  ;;  %v1727_v48 = vsel %vm530_vm1, %v1262_v34, 0.0 }
 0x197   :  { %v935_v26 = vadd.f32 %v934_v17, %v933_v19  ;;  %v2262_v17 = vunpack.c.h.bf16 %v2452_v0  ;;  %v954_v18 = vsel %vm530_vm1, %v2261_v10, 0.0 }
 0x198   :  { %v1708_v57 = vadd.f32 %v1707_v47, %v1706_v50  ;;  %v1264_v47 = vmul.f32 %v2261_v10, %v2261_v10  ;;  %v1729_v55 = vsel %vm530_vm1, %v1263_v41, 0.0 }
 0x199   :  { %v937_v32 = vadd.f32 %v936_v23, %v935_v26  ;;  %v2265_v23 = vunpack.c.l.bf16 %v2453_v13  ;;  %v956_v24 = vsel %vm530_vm1, %v2262_v17, 0.0  ;;  %v2454_v26 = vld [vmem:[%s3411_s0 + $0x360] sm:$0xff]  }
 0x19a   :  { %v1710_v63 = vadd.f32 %v1709_v54, %v1708_v57  ;;  %v1265_v54 = vmul.f32 %v2262_v17, %v2262_v17  ;;  %v1731_v61 = vsel %vm530_vm1, %v1264_v47, 0.0 }
 0x19b   :  { %v939_v39 = vadd.f32 %v938_v30, %v937_v32  ;;  %v2266_v30 = vunpack.c.h.bf16 %v2453_v13  ;;  %v958_v31 = vsel %vm530_vm1, %v2265_v23, 0.0 }
 0x19c   :  { %v1712_v6 = vadd.f32 %v1711_v60, %v1710_v63  ;;  %v1266_v60 = vmul.f32 %v2265_v23, %v2265_v23  ;;  %v1733_v4 = vsel %vm530_vm1, %v1265_v54, 0.0 }
 0x19d   :  { %v941_v45 = vadd.f32 %v940_v36, %v939_v39  ;;  %v2269_v36 = vunpack.c.l.bf16 %v2454_v26  ;;  %v960_v37 = vsel %vm530_vm1, %v2266_v30, 0.0  ;;  %v2455_v39 = vld [vmem:[%s3411_s0 + $0x368] sm:$0xff]  }
 0x19e   :  { %v1714_v12 = vadd.f32 %v1713_v3, %v1712_v6  ;;  %v1267_v3 = vmul.f32 %v2266_v30, %v2266_v30  ;;  %v1735_v10 = vsel %vm530_vm1, %v1266_v60, 0.0 }
 0x19f   :  { %v943_v52 = vadd.f32 %v942_v43, %v941_v45  ;;  %v2270_v43 = vunpack.c.h.bf16 %v2454_v26  ;;  %v962_v44 = vsel %vm530_vm1, %v2269_v36, 0.0 }
 0x1a0   :  { %v1716_v19 = vadd.f32 %v1715_v9, %v1714_v12  ;;  %v1268_v9 = vmul.f32 %v2269_v36, %v2269_v36  ;;  %v1737_v17 = vsel %vm530_vm1, %v1267_v3, 0.0 }
 0x1a1   :  { %v945_v58 = vadd.f32 %v944_v49, %v943_v52  ;;  %v2273_v49 = vunpack.c.l.bf16 %v2455_v39  ;;  %v964_v50 = vsel %vm530_vm1, %v2270_v43, 0.0  ;;  %v2456_v52 = vld [vmem:[%s3411_s0 + $0x370] sm:$0xff]  }
 0x1a2   :  { %v1718_v25 = vadd.f32 %v1717_v16, %v1716_v19  ;;  %v1269_v16 = vmul.f32 %v2270_v43, %v2270_v43  ;;  %v1739_v23 = vsel %vm530_vm1, %v1268_v9, 0.0 }
 0x1a3   :  { %v947_v1 = vadd.f32 %v946_v56, %v945_v58  ;;  %v2274_v56 = vunpack.c.h.bf16 %v2455_v39  ;;  %v966_v57 = vsel %vm530_vm1, %v2273_v49, 0.0 }
 0x1a4   :  { %v1720_v32 = vadd.f32 %v1719_v22, %v1718_v25  ;;  %v1270_v22 = vmul.f32 %v2273_v49, %v2273_v49  ;;  %v1741_v30 = vsel %vm530_vm1, %v1269_v16, 0.0 }
 0x1a5   :  { %v949_v7 = vadd.f32 %v948_v62, %v947_v1  ;;  %v2277_v62 = vunpack.c.l.bf16 %v2456_v52  ;;  %v968_v63 = vsel %vm530_vm1, %v2274_v56, 0.0  ;;  %v2457_v1 = vld [vmem:[%s3411_s0 + $0x378] sm:$0xff]  }
 0x1a6   :  { %v1722_v38 = vadd.f32 %v1721_v29, %v1720_v32  ;;  %v1271_v29 = vmul.f32 %v2274_v56, %v2274_v56  ;;  %v1743_v36 = vsel %vm530_vm1, %v1270_v22, 0.0 }
 0x1a7   :  { %v951_v14 = vadd.f32 %v950_v5, %v949_v7  ;;  %v2278_v5 = vunpack.c.h.bf16 %v2456_v52  ;;  %v970_v6 = vsel %vm530_vm1, %v2277_v62, 0.0 }
 0x1a8   :  { %v1724_v45 = vadd.f32 %v1723_v35, %v1722_v38  ;;  %v1272_v35 = vmul.f32 %v2277_v62, %v2277_v62  ;;  %v1745_v43 = vsel %vm530_vm1, %v1271_v29, 0.0 }
 0x1a9   :  { %v953_v20 = vadd.f32 %v952_v11, %v951_v14  ;;  %v2281_v11 = vunpack.c.l.bf16 %v2457_v1  ;;  %v972_v12 = vsel %vm530_vm1, %v2278_v5, 0.0  ;;  %v2458_v14 = vld [vmem:[%s3411_s0 + $0x380] sm:$0xff]  }
 0x1aa   :  { %v1726_v51 = vadd.f32 %v1725_v42, %v1724_v45  ;;  %v1273_v42 = vmul.f32 %v2278_v5, %v2278_v5  ;;  %v1747_v49 = vsel %vm530_vm1, %v1272_v35, 0.0 }
 0x1ab   :  { %v955_v27 = vadd.f32 %v954_v18, %v953_v20  ;;  %v2282_v18 = vunpack.c.h.bf16 %v2457_v1  ;;  %v974_v19 = vsel %vm530_vm1, %v2281_v11, 0.0 }
 0x1ac   :  { %v1728_v58 = vadd.f32 %v1727_v48, %v1726_v51  ;;  %v1274_v48 = vmul.f32 %v2281_v11, %v2281_v11  ;;  %v1749_v56 = vsel %vm530_vm1, %v1273_v42, 0.0 }
 0x1ad   :  { %v957_v33 = vadd.f32 %v956_v24, %v955_v27  ;;  %v2285_v24 = vunpack.c.l.bf16 %v2458_v14  ;;  %v976_v25 = vsel %vm530_vm1, %v2282_v18, 0.0  ;;  %v2459_v27 = vld [vmem:[%s3411_s0 + $0x388] sm:$0xff]  }
 0x1ae   :  { %v1730_v0 = vadd.f32 %v1729_v55, %v1728_v58  ;;  %v1275_v55 = vmul.f32 %v2282_v18, %v2282_v18  ;;  %v1751_v62 = vsel %vm530_vm1, %v1274_v48, 0.0 }
 0x1af   :  { %v959_v40 = vadd.f32 %v958_v31, %v957_v33  ;;  %v2286_v31 = vunpack.c.h.bf16 %v2458_v14  ;;  %v978_v32 = vsel %vm530_vm1, %v2285_v24, 0.0 }
 0x1b0   :  { %v1732_v7 = vadd.f32 %v1731_v61, %v1730_v0  ;;  %v1276_v61 = vmul.f32 %v2285_v24, %v2285_v24  ;;  %v1753_v5 = vsel %vm530_vm1, %v1275_v55, 0.0 }
 0x1b1   :  { %v961_v46 = vadd.f32 %v960_v37, %v959_v40  ;;  %v2289_v37 = vunpack.c.l.bf16 %v2459_v27  ;;  %v980_v38 = vsel %vm530_vm1, %v2286_v31, 0.0  ;;  %v2460_v40 = vld [vmem:[%s3411_s0 + $0x390] sm:$0xff]  }
 0x1b2   :  { %v1734_v13 = vadd.f32 %v1733_v4, %v1732_v7  ;;  %v1277_v4 = vmul.f32 %v2286_v31, %v2286_v31  ;;  %v1755_v11 = vsel %vm530_vm1, %v1276_v61, 0.0 }
 0x1b3   :  { %v963_v53 = vadd.f32 %v962_v44, %v961_v46  ;;  %v2290_v44 = vunpack.c.h.bf16 %v2459_v27  ;;  %v982_v45 = vsel %vm530_vm1, %v2289_v37, 0.0 }
 0x1b4   :  { %v1736_v20 = vadd.f32 %v1735_v10, %v1734_v13  ;;  %v1278_v10 = vmul.f32 %v2289_v37, %v2289_v37  ;;  %v1757_v18 = vsel %vm530_vm1, %v1277_v4, 0.0 }
 0x1b5   :  { %v965_v59 = vadd.f32 %v964_v50, %v963_v53  ;;  %v2293_v50 = vunpack.c.l.bf16 %v2460_v40  ;;  %v984_v51 = vsel %vm530_vm1, %v2290_v44, 0.0  ;;  %v2461_v53 = vld [vmem:[%s3411_s0 + $0x398] sm:$0xff]  }
 0x1b6   :  { %v1738_v26 = vadd.f32 %v1737_v17, %v1736_v20  ;;  %v1279_v17 = vmul.f32 %v2290_v44, %v2290_v44  ;;  %v1759_v24 = vsel %vm530_vm1, %v1278_v10, 0.0 }
 0x1b7   :  { %v967_v2 = vadd.f32 %v966_v57, %v965_v59  ;;  %v2294_v57 = vunpack.c.h.bf16 %v2460_v40  ;;  %v986_v58 = vsel %vm530_vm1, %v2293_v50, 0.0 }
 0x1b8   :  { %v1740_v33 = vadd.f32 %v1739_v23, %v1738_v26  ;;  %v1280_v23 = vmul.f32 %v2293_v50, %v2293_v50  ;;  %v1761_v31 = vsel %vm530_vm1, %v1279_v17, 0.0 }
 0x1b9   :  { %v969_v8 = vadd.f32 %v968_v63, %v967_v2  ;;  %v2297_v63 = vunpack.c.l.bf16 %v2461_v53  ;;  %v988_v0 = vsel %vm530_vm1, %v2294_v57, 0.0  ;;  %v2462_v2 = vld [vmem:[%s3411_s0 + $0x3a0] sm:$0xff]  }
 0x1ba   :  { %v1742_v39 = vadd.f32 %v1741_v30, %v1740_v33  ;;  %v1281_v30 = vmul.f32 %v2294_v57, %v2294_v57  ;;  %v1763_v37 = vsel %vm530_vm1, %v1280_v23, 0.0 }
 0x1bb   :  { %v971_v15 = vadd.f32 %v970_v6, %v969_v8  ;;  %v2298_v6 = vunpack.c.h.bf16 %v2461_v53  ;;  %v990_v7 = vsel %vm530_vm1, %v2297_v63, 0.0 }
 0x1bc   :  { %v1744_v46 = vadd.f32 %v1743_v36, %v1742_v39  ;;  %v1282_v36 = vmul.f32 %v2297_v63, %v2297_v63  ;;  %v1765_v44 = vsel %vm530_vm1, %v1281_v30, 0.0 }
 0x1bd   :  { %v973_v21 = vadd.f32 %v972_v12, %v971_v15  ;;  %v2301_v12 = vunpack.c.l.bf16 %v2462_v2  ;;  %v992_v13 = vsel %vm530_vm1, %v2298_v6, 0.0  ;;  %v2463_v15 = vld [vmem:[%s3411_s0 + $0x3a8] sm:$0xff]  }
 0x1be   :  { %v1746_v52 = vadd.f32 %v1745_v43, %v1744_v46  ;;  %v1283_v43 = vmul.f32 %v2298_v6, %v2298_v6  ;;  %v1767_v50 = vsel %vm530_vm1, %v1282_v36, 0.0 }
 0x1bf   :  { %v975_v28 = vadd.f32 %v974_v19, %v973_v21  ;;  %v2302_v19 = vunpack.c.h.bf16 %v2462_v2  ;;  %v994_v20 = vsel %vm530_vm1, %v2301_v12, 0.0 }
 0x1c0   :  { %v1748_v59 = vadd.f32 %v1747_v49, %v1746_v52  ;;  %v1284_v49 = vmul.f32 %v2301_v12, %v2301_v12  ;;  %v1769_v57 = vsel %vm530_vm1, %v1283_v43, 0.0 }
 0x1c1   :  { %v977_v34 = vadd.f32 %v976_v25, %v975_v28  ;;  %v2305_v25 = vunpack.c.l.bf16 %v2463_v15  ;;  %v996_v26 = vsel %vm530_vm1, %v2302_v19, 0.0  ;;  %v2464_v28 = vld [vmem:[%s3411_s0 + $0x3b0] sm:$0xff]  }
 0x1c2   :  { %v1750_v1 = vadd.f32 %v1749_v56, %v1748_v59  ;;  %v1285_v56 = vmul.f32 %v2302_v19, %v2302_v19  ;;  %v1771_v63 = vsel %vm530_vm1, %v1284_v49, 0.0 }
 0x1c3   :  { %v979_v41 = vadd.f32 %v978_v32, %v977_v34  ;;  %v2306_v32 = vunpack.c.h.bf16 %v2463_v15  ;;  %v998_v33 = vsel %vm530_vm1, %v2305_v25, 0.0 }
 0x1c4   :  { %v1752_v8 = vadd.f32 %v1751_v62, %v1750_v1  ;;  %v1286_v62 = vmul.f32 %v2305_v25, %v2305_v25  ;;  %v1773_v6 = vsel %vm530_vm1, %v1285_v56, 0.0 }
 0x1c5   :  { %v981_v47 = vadd.f32 %v980_v38, %v979_v41  ;;  %v2309_v38 = vunpack.c.l.bf16 %v2464_v28  ;;  %v1000_v39 = vsel %vm530_vm1, %v2306_v32, 0.0  ;;  %v2465_v41 = vld [vmem:[%s3411_s0 + $0x3b8] sm:$0xff]  }
 0x1c6   :  { %v1754_v14 = vadd.f32 %v1753_v5, %v1752_v8  ;;  %v1287_v5 = vmul.f32 %v2306_v32, %v2306_v32  ;;  %v1775_v12 = vsel %vm530_vm1, %v1286_v62, 0.0 }
 0x1c7   :  { %v983_v54 = vadd.f32 %v982_v45, %v981_v47  ;;  %v2310_v45 = vunpack.c.h.bf16 %v2464_v28  ;;  %v1002_v46 = vsel %vm530_vm1, %v2309_v38, 0.0 }
 0x1c8   :  { %v1756_v21 = vadd.f32 %v1755_v11, %v1754_v14  ;;  %v1288_v11 = vmul.f32 %v2309_v38, %v2309_v38  ;;  %v1777_v19 = vsel %vm530_vm1, %v1287_v5, 0.0 }
 0x1c9   :  { %v985_v60 = vadd.f32 %v984_v51, %v983_v54  ;;  %v2313_v51 = vunpack.c.l.bf16 %v2465_v41  ;;  %v1004_v52 = vsel %vm530_vm1, %v2310_v45, 0.0  ;;  %v2466_v54 = vld [vmem:[%s3411_s0 + $0x3c0] sm:$0xff]  }
 0x1ca   :  { %v1758_v27 = vadd.f32 %v1757_v18, %v1756_v21  ;;  %v1289_v18 = vmul.f32 %v2310_v45, %v2310_v45  ;;  %v1779_v25 = vsel %vm530_vm1, %v1288_v11, 0.0 }
 0x1cb   :  { %v987_v3 = vadd.f32 %v986_v58, %v985_v60  ;;  %v2314_v58 = vunpack.c.h.bf16 %v2465_v41  ;;  %v1006_v59 = vsel %vm530_vm1, %v2313_v51, 0.0 }
 0x1cc   :  { %v1760_v34 = vadd.f32 %v1759_v24, %v1758_v27  ;;  %v1290_v24 = vmul.f32 %v2313_v51, %v2313_v51  ;;  %v1781_v32 = vsel %vm530_vm1, %v1289_v18, 0.0 }
 0x1cd   :  { %v989_v9 = vadd.f32 %v988_v0, %v987_v3  ;;  %v2317_v0 = vunpack.c.l.bf16 %v2466_v54  ;;  %v1008_v1 = vsel %vm530_vm1, %v2314_v58, 0.0  ;;  %v2467_v3 = vld [vmem:[%s3411_s0 + $0x3c8] sm:$0xff]  }
 0x1ce   :  { %v1762_v40 = vadd.f32 %v1761_v31, %v1760_v34  ;;  %v1291_v31 = vmul.f32 %v2314_v58, %v2314_v58  ;;  %v1783_v38 = vsel %vm530_vm1, %v1290_v24, 0.0 }
 0x1cf   :  { %v991_v16 = vadd.f32 %v990_v7, %v989_v9  ;;  %v2318_v7 = vunpack.c.h.bf16 %v2466_v54  ;;  %v1010_v8 = vsel %vm530_vm1, %v2317_v0, 0.0 }
 0x1d0   :  { %v1764_v47 = vadd.f32 %v1763_v37, %v1762_v40  ;;  %v1292_v37 = vmul.f32 %v2317_v0, %v2317_v0  ;;  %v1785_v45 = vsel %vm530_vm1, %v1291_v31, 0.0 }
 0x1d1   :  { %v993_v22 = vadd.f32 %v992_v13, %v991_v16  ;;  %v2321_v13 = vunpack.c.l.bf16 %v2467_v3  ;;  %v1012_v14 = vsel %vm530_vm1, %v2318_v7, 0.0  ;;  %v2468_v16 = vld [vmem:[%s3411_s0 + $0x3d0] sm:$0xff]  }
 0x1d2   :  { %v1766_v53 = vadd.f32 %v1765_v44, %v1764_v47  ;;  %v1293_v44 = vmul.f32 %v2318_v7, %v2318_v7  ;;  %v1787_v51 = vsel %vm530_vm1, %v1292_v37, 0.0 }
 0x1d3   :  { %v995_v29 = vadd.f32 %v994_v20, %v993_v22  ;;  %v2322_v20 = vunpack.c.h.bf16 %v2467_v3  ;;  %v1014_v21 = vsel %vm530_vm1, %v2321_v13, 0.0 }
 0x1d4   :  { %v1768_v60 = vadd.f32 %v1767_v50, %v1766_v53  ;;  %v1294_v50 = vmul.f32 %v2321_v13, %v2321_v13  ;;  %v1789_v58 = vsel %vm530_vm1, %v1293_v44, 0.0 }
 0x1d5   :  { %v997_v35 = vadd.f32 %v996_v26, %v995_v29  ;;  %v2325_v26 = vunpack.c.l.bf16 %v2468_v16  ;;  %v1016_v27 = vsel %vm530_vm1, %v2322_v20, 0.0  ;;  %v2469_v29 = vld [vmem:[%s3411_s0 + $0x3d8] sm:$0xff]  }
 0x1d6   :  { %v1770_v2 = vadd.f32 %v1769_v57, %v1768_v60  ;;  %v1295_v57 = vmul.f32 %v2322_v20, %v2322_v20  ;;  %v1791_v0 = vsel %vm530_vm1, %v1294_v50, 0.0 }
 0x1d7   :  { %v999_v42 = vadd.f32 %v998_v33, %v997_v35  ;;  %v2326_v33 = vunpack.c.h.bf16 %v2468_v16  ;;  %v1018_v34 = vsel %vm530_vm1, %v2325_v26, 0.0 }
 0x1d8   :  { %v1772_v9 = vadd.f32 %v1771_v63, %v1770_v2  ;;  %v1296_v63 = vmul.f32 %v2325_v26, %v2325_v26  ;;  %v1793_v7 = vsel %vm530_vm1, %v1295_v57, 0.0 }
 0x1d9   :  { %v1001_v48 = vadd.f32 %v1000_v39, %v999_v42  ;;  %v2329_v39 = vunpack.c.l.bf16 %v2469_v29  ;;  %v1020_v40 = vsel %vm530_vm1, %v2326_v33, 0.0  ;;  %v2470_v42 = vld [vmem:[%s3411_s0 + $0x3e0] sm:$0xff]  }
 0x1da   :  { %v1774_v15 = vadd.f32 %v1773_v6, %v1772_v9  ;;  %v1297_v6 = vmul.f32 %v2326_v33, %v2326_v33  ;;  %v1795_v13 = vsel %vm530_vm1, %v1296_v63, 0.0 }
 0x1db   :  { %v1003_v55 = vadd.f32 %v1002_v46, %v1001_v48  ;;  %v2330_v46 = vunpack.c.h.bf16 %v2469_v29  ;;  %v1022_v47 = vsel %vm530_vm1, %v2329_v39, 0.0 }
 0x1dc   :  { %v1776_v22 = vadd.f32 %v1775_v12, %v1774_v15  ;;  %v1298_v12 = vmul.f32 %v2329_v39, %v2329_v39  ;;  %v1797_v20 = vsel %vm530_vm1, %v1297_v6, 0.0 }
 0x1dd   :  { %v1005_v61 = vadd.f32 %v1004_v52, %v1003_v55  ;;  %v2333_v52 = vunpack.c.l.bf16 %v2470_v42  ;;  %v1024_v53 = vsel %vm530_vm1, %v2330_v46, 0.0  ;;  %v2471_v55 = vld [vmem:[%s3411_s0 + $0x3e8] sm:$0xff]  }
 0x1de   :  { %v1778_v28 = vadd.f32 %v1777_v19, %v1776_v22  ;;  %v1299_v19 = vmul.f32 %v2330_v46, %v2330_v46  ;;  %v1799_v26 = vsel %vm530_vm1, %v1298_v12, 0.0  ;;  %v1051_v12 = vld [vmem:[%s3410_s2] sm:$0x1] }
 0x1df   :  { %v1007_v4 = vadd.f32 %v1006_v59, %v1005_v61  ;;  %v2334_v59 = vunpack.c.h.bf16 %v2470_v42  ;;  %v1026_v60 = vsel %vm530_vm1, %v2333_v52, 0.0 }
 0x1e0   :  { %v1780_v35 = vadd.f32 %v1779_v25, %v1778_v28  ;;  %v1300_v25 = vmul.f32 %v2333_v52, %v2333_v52 }
 0x1e1   :  { %v1009_v10 = vadd.f32 %v1008_v1, %v1007_v4  ;;  %v2337_v1 = vunpack.c.l.bf16 %v2471_v55  ;;  %v1028_v2 = vsel %vm530_vm1, %v2334_v59, 0.0  ;;  %v2472_v4 = vld [vmem:[%s3411_s0 + $0x3f0] sm:$0xff]   ;;  %v1301_v31 = vmul.f32 %v2334_v59, %v2334_v59 }
 0x1e2   :  { %v1782_v41 = vadd.f32 %v1781_v32, %v1780_v35  ;;  %v1801_v32 = vsel %vm530_vm1, %v1299_v19, 0.0 }
 0x1e3   :  { %v1011_v17 = vadd.f32 %v1010_v8, %v1009_v10  ;;  %v2338_v8 = vunpack.c.h.bf16 %v2471_v55  ;;  %v1030_v9 = vsel %vm530_vm1, %v2337_v1, 0.0  ;;  %v1302_v37 = vmul.f32 %v2337_v1, %v2337_v1 }
 0x1e4   :  { %v1784_v48 = vadd.f32 %v1783_v38, %v1782_v41  ;;  %v1803_v38 = vsel %vm530_vm1, %v1300_v25, 0.0 }
 0x1e5   :  { %v1013_v23 = vadd.f32 %v1012_v14, %v1011_v17  ;;  %v2341_v14 = vunpack.c.l.bf16 %v2472_v4  ;;  %v1032_v15 = vsel %vm530_vm1, %v2338_v8, 0.0  ;;  %v2473_v17 = vld [vmem:[%s3411_s0 + $0x3f8] sm:$0xff]   ;;  %v1303_v42 = vmul.f32 %v2338_v8, %v2338_v8 }
 0x1e6   :  { %v1786_v54 = vadd.f32 %v1785_v45, %v1784_v48  ;;  %v2346_v33 = vunpack.c.h.bf16 %v2473_v17 }
 0x1e7   :  { %v1015_v30 = vadd.f32 %v1014_v21, %v1013_v23  ;;  %v2342_v21 = vunpack.c.h.bf16 %v2472_v4  ;;  %v1034_v22 = vsel %vm530_vm1, %v2341_v14, 0.0  ;;  %v1304_v46 = vmul.f32 %v2341_v14, %v2341_v14 }
 0x1e8   :  { %v1788_v61 = vadd.f32 %v1787_v51, %v1786_v54  ;;  %v1040_v39 = vsel %vm530_vm1, %v2346_v33, 0.0  ;;  %v1809_v51 = vsel %vm530_vm1, %v1303_v42, 0.0 }
 0x1e9   :  { %v1017_v36 = vadd.f32 %v1016_v27, %v1015_v30  ;;  %v2345_v27 = vunpack.c.l.bf16 %v2473_v17  ;;  %v1036_v28 = vsel %vm530_vm1, %v2342_v21, 0.0  ;;  %v1305_v50 = vmul.f32 %v2342_v21, %v2342_v21 }
 0x1ea   :  { %v1790_v3 = vadd.f32 %v1789_v58, %v1788_v61  ;;  %v1811_v55 = vsel %vm530_vm1, %v1304_v46, 0.0  ;;  %v1307_v58 = vmul.f32 %v2346_v33, %v2346_v33 }
 0x1eb   :  { %v1019_v43 = vadd.f32 %v1018_v34, %v1017_v36  ;;  %v1038_v34 = vsel %vm530_vm1, %v2345_v27, 0.0  ;;  %v1306_v54 = vmul.f32 %v2345_v27, %v2345_v27  ;;  %v1813_v59 = vsel %vm530_vm1, %v1305_v50, 0.0 }
 0x1ec   :  { %v1792_v10 = vadd.f32 %v1791_v0, %v1790_v3  ;;  %v1817_v1 = vsel %vm530_vm1, %v1307_v58, 0.0 }
 0x1ed   :  { %v1021_v49 = vadd.f32 %v1020_v40, %v1019_v43  ;;  %v1805_v43 = vsel %vm530_vm1, %v1301_v31, 0.0 }
 0x1ee   :  { %v1794_v16 = vadd.f32 %v1793_v7, %v1792_v10 }
 0x1ef   :  { %v1023_v56 = vadd.f32 %v1022_v47, %v1021_v49  ;;  %v1807_v47 = vsel %vm530_vm1, %v1302_v37, 0.0 }
 0x1f0   :  { %v1796_v23 = vadd.f32 %v1795_v13, %v1794_v16 }
 0x1f1   :  { %v1025_v62 = vadd.f32 %v1024_v53, %v1023_v56 }
 0x1f2   :  { %v1798_v29 = vadd.f32 %v1797_v20, %v1796_v23 }
 0x1f3   :  { %v1027_v5 = vadd.f32 %v1026_v60, %v1025_v62  ;;  %v1815_v62 = vsel %vm530_vm1, %v1306_v54, 0.0 }
 0x1f4   :  { %v1800_v35 = vadd.f32 %v1799_v26, %v1798_v29 }
 0x1f5   :  { %v1029_v11 = vadd.f32 %v1028_v2, %v1027_v5  ;;  %v529_v2 = vld [vmem:[%s3409_s1] sm:$0x1] }
 0x1f6   :  { %v1802_v40 = vadd.f32 %v1801_v32, %v1800_v35 }
 0x1f7   :  { %v1031_v18 = vadd.f32 %v1030_v9, %v1029_v11 }
 0x1f8   :  { %v1804_v44 = vadd.f32 %v1803_v38, %v1802_v40 }
 0x1f9   :  { %v1033_v24 = vadd.f32 %v1032_v15, %v1031_v18 }
 0x1fa   :  { %v1806_v48 = vadd.f32 %v1805_v43, %v1804_v44 }
 0x1fb   :  { %v1035_v30 = vadd.f32 %v1034_v22, %v1033_v24 }
 0x1fc   :  { %v1808_v52 = vadd.f32 %v1807_v47, %v1806_v48 }
 0x1fd   :  { %v1037_v36 = vadd.f32 %v1036_v28, %v1035_v30 }
 0x1fe   :  { %v1810_v56 = vadd.f32 %v1809_v51, %v1808_v52 }
 0x1ff   :  { %v1039_v41 = vadd.f32 %v1038_v34, %v1037_v36 }
 0x200   :  { %v1812_v60 = vadd.f32 %v1811_v55, %v1810_v56 }
 0x201   :  { %v1041_v45 = vadd.f32 %v1040_v39, %v1039_v41 }
 0x202   :  { %v1814_v63 = vadd.f32 %v1813_v59, %v1812_v60 }
 0x203   :  { %v1042_v49 = vrot.slane %v1041_v45, 4 }
 0x204   :  { %v1816_v3 = vadd.f32 %v1815_v62, %v1814_v63 }
 0x205   :  { %v1043_v53 = vadd.f32 %v1042_v49, %v1041_v45 }
 0x206   :  { %v1818_v5 = vadd.f32 %v1817_v1, %v1816_v3 }
 0x207   :  { %v1044_v57 = vrot.slane %v1043_v53, 2 }
 0x208   :  { %v1819_v7 = vrot.slane %v1818_v5, 4 }
 0x209   :  { %v1045_v61 = vadd.f32 %v1044_v57, %v1043_v53 }
 0x20a   :  { %v1820_v8 = vadd.f32 %v1819_v7, %v1818_v5 }
 0x20b   :  { %v1046_v0 = vrot.slane %v1045_v61, 1 }
 0x20c   :  { %v1821_v9 = vrot.slane %v1820_v8, 2 }
 0x20d   :  { %v1047_v4 = vadd.f32 %v1046_v0, %v1045_v61 }
 0x20e   :  { %v1822_v10 = vadd.f32 %v1821_v9, %v1820_v8 }
 0x20f   :  { %v1048_v6 = vadd.f32 %v1047_v4, %v529_v2 }
 0x210   :  { %v1823_v11 = vrot.slane %v1822_v10, 1 }
 0x211   :  { %1050 = vst.msk [vmem:[%s3409_s1] sm:$0x1] %vm14_vm0, %v1048_v6 }
 0x212   :  { %v1824_v13 = vadd.f32 %v1823_v11, %v1822_v10 }
 0x214   :  { %v1825_v14 = vadd.f32 %v1824_v13, %v1051_v12 }
 0x216   :  { %1826 = vst.msk [vmem:[%s3410_s2] sm:$0x1] %vm14_vm0, %v1825_v14 }

// kernel: generator_forward.24
= control target key start
LH: loop header
LB: loop body
LE: loop exit
PB: predicated region body
PF: predicated region fallthrough
CT: control target
= control target key end

     0   :  { %vm1585_vm3 = vcmask 60416   ;;  %s4572_s1 = inlined_call_operand.vmem [shape: f32[1,8], index: 1, kind: input, shape index: {}]   ;;  %s4573_s2 = inlined_call_operand.vmem [shape: f32[1,8], index: 2, kind: input, shape index: {}]   ;;  %s4574_s0 = inlined_call_operand.vmem [shape: bf16[2048,8], index: 0, kind: input, shape index: {}]   ;;  %s4575_s3 = inlined_call_operand.vmem [shape: f32[1,8], index: 3, kind: input, shape index: {}]   ;;  %s4576_s4 = inlined_call_operand.vmem [shape: f32[1,8], index: 4, kind: input, shape index: {}]   ;;  %s4577_s5 = inlined_call_operand.vmem [shape: bf16[2048,8], index: 5, kind: output, shape index: {}]  }
   0x1   :  { %v20_v0 = vld [vmem:[%s4572_s1] sm:$0x1]  ;;  %v2535_v12 = vld [vmem:[%s4574_s0 + $0x8] sm:$0xff]   ;;  %v2540_v13 = vld [vmem:[%s4574_s0 + $0x10] sm:$0xff]  }
   0x2   :  { %v22_v1 = vld [vmem:[%s4573_s2] sm:$0x1]  ;;  %v2523_v2 = vmul.f32 0.00048828125, %v20_v0  ;;  %v2545_v15 = vld [vmem:[%s4574_s0 + $0x18] sm:$0xff]   ;;  %v1852_v19 = vunpack.c.l.bf16 %v2535_v12  ;;  %v2558_v20 = vld [vmem:[%s4574_s0 + $0x28] sm:$0xff]   ;;  %v1853_v23 = vunpack.c.h.bf16 %v2535_v12  ;;  %v1856_v24 = vunpack.c.l.bf16 %v2540_v13 }
   0x3   :  { %v23_v3 = vmul.f32 0.00048828125, %v22_v1  ;;  %v2530_v11 = vld [vmem:[%s4574_s0] sm:$0xff]   ;;  %v2563_v21 = vld [vmem:[%s4574_s0 + $0x30] sm:$0xff]   ;;  %v1857_v25 = vunpack.c.h.bf16 %v2540_v13  ;;  %v2571_v26 = vld [vmem:[%s4574_s0 + $0x38] sm:$0xff]   ;;  %v1860_v29 = vunpack.c.l.bf16 %v2545_v15  ;;  %v1861_v30 = vunpack.c.h.bf16 %v2545_v15 }
   0x4   :  { %v24_v4 = vmul.f32 %v2523_v2, %v2523_v2  ;;  %v2550_v16 = vld [vmem:[%s4574_s0 + $0x20] sm:$0xff]   ;;  %v1848_v17 = vunpack.c.l.bf16 %v2530_v11  ;;  %v1849_v18 = vunpack.c.h.bf16 %v2530_v11  ;;  %v2591_v33 = vld [vmem:[%s4574_s0 + $0x48] sm:$0xff]   ;;  %v1868_v36 = vunpack.c.l.bf16 %v2558_v20  ;;  %v2602_v39 = vld [vmem:[%s4574_s0 + $0x50] sm:$0xff]  }
   0x5   :  { %v2576_v27 = vld [vmem:[%s4574_s0 + $0x40] sm:$0xff]   ;;  %v1864_v31 = vunpack.c.l.bf16 %v2550_v16  ;;  %v1865_v32 = vunpack.c.h.bf16 %v2550_v16  ;;  %v1869_v37 = vunpack.c.h.bf16 %v2558_v20  ;;  %v1872_v38 = vunpack.c.l.bf16 %v2563_v21  ;;  %v2607_v40 = vld [vmem:[%s4574_s0 + $0x58] sm:$0xff]   ;;  %v2621_v46 = vld [vmem:[%s4574_s0 + $0x68] sm:$0xff]  }
   0x6   :  { %v25_v5 = vsub.f32 %v23_v3, %v24_v4  ;;  %v27_v34 = vld [vmem:[%s4575_s3] sm:$0x1]  ;;  %v1873_v41 = vunpack.c.h.bf16 %v2563_v21  ;;  %v1876_v42 = vunpack.c.l.bf16 %v2571_v26  ;;  %v1877_v43 = vunpack.c.h.bf16 %v2571_v26  ;;  %v2631_v51 = vld [vmem:[%s4574_s0 + $0x70] sm:$0xff]   ;;  %v2639_v56 = vld [vmem:[%s4574_s0 + $0x78] sm:$0xff]  }
   0x7   :  { %v1880_v44 = vunpack.c.l.bf16 %v2576_v27  ;;  %v2616_v45 = vld [vmem:[%s4574_s0 + $0x60] sm:$0xff]   ;;  %v1881_v48 = vunpack.c.h.bf16 %v2576_v27  ;;  %v1884_v49 = vunpack.c.l.bf16 %v2591_v33  ;;  %v1885_v50 = vunpack.c.h.bf16 %v2591_v33 }
   0x8   :  { %v26_v6 = vmax.f32 %v25_v5, 0.0  ;;  %v1888_v53 = vunpack.c.l.bf16 %v2602_v39  ;;  %v1889_v54 = vunpack.c.h.bf16 %v2602_v39  ;;  %v1892_v55 = vunpack.c.l.bf16 %v2607_v40  ;;  %v40_v57 = vld [vmem:[%s4576_s4] sm:$0x1] }
   0x9   :  { %v1893_v58 = vunpack.c.h.bf16 %v2607_v40  ;;  %v1896_v59 = vunpack.c.l.bf16 %v2616_v45  ;;  %v1897_v60 = vunpack.c.h.bf16 %v2616_v45  ;;  %v1900_v61 = vunpack.c.l.bf16 %v2621_v46  ;;  %v2656_v3 = vld [vmem:[%s4574_s0 + $0x80] sm:$0xff]  }
   0xa   :  { %v28_v7 = vadd.f32 1e-05, %v26_v6  ;;  %v1901_v0 = vunpack.c.h.bf16 %v2621_v46  ;;  %v1904_v1 = vunpack.c.l.bf16 %v2631_v51  ;;  %v1905_v4 = vunpack.c.h.bf16 %v2631_v51 }
   0xb   :  { %v1908_v5 = vunpack.c.l.bf16 %v2639_v56  ;;  %v1909_v6 = vunpack.c.h.bf16 %v2639_v56 }
   0xc   :  { %2485 = vrsqrt.f32 %v28_v7  ;;  %vm35_vm0 = vweird.f32 %v28_v7 }
  0x12   :  { %v2486_v8 = vpop.eup %2485 }
  0x13   :  { %v30_v9 = vmul.f32 %v2486_v8, %v28_v7  ;;  %vm36_vm1 = vweird.f32 %v2486_v8 }
  0x14   :  { %vm2580_vm2 = vmor %vm35_vm0, %vm36_vm1 }
  0x15   :  { %v31_v10 = vmul.f32 %v2486_v8, %v30_v9 }
  0x17   :  { %v32_v14 = vmul.f32 0.5, %v31_v10 }
  0x19   :  { %v33_v22 = vsub.f32 1.5, %v32_v14 }
  0x1b   :  { %v34_v35 = vmul.f32 %v2486_v8, %v33_v22 }
  0x1d   :  { %v38_v47 = vsel %vm2580_vm2, %v2486_v8, %v34_v35 }
  0x1e   :  { %v39_v52 = vmul.f32 %v38_v47, %v27_v34 }
  0x20   :  { %v41_v62 = vmul.f32 %v39_v52, %v2523_v2  ;;  %v2649_v63 = vperm.slane %v39_v52, 0  ;;  %v1912_v2 = vunpack.c.l.bf16 %v2656_v3 }
  0x22   :  { %v42_v7 = vsub.f32 %v40_v57, %v41_v62  ;;  %v558_v8 = vmul.f32 %v1848_v17, %v2649_v63  ;;  %v559_v9 = vmul.f32 %v1849_v18, %v2649_v63  ;;  %v560_v10 = vmul.f32 %v1852_v19, %v2649_v63 }
  0x23   :  { %v561_v11 = vmul.f32 %v1853_v23, %v2649_v63  ;;  %v562_v12 = vmul.f32 %v1856_v24, %v2649_v63  ;;  %v563_v13 = vmul.f32 %v1857_v25, %v2649_v63  ;;  %v564_v14 = vmul.f32 %v1860_v29, %v2649_v63 }
  0x24   :  { %v2669_v15 = vperm.slane %v42_v7, 0  ;;  %v565_v16 = vmul.f32 %v1861_v30, %v2649_v63  ;;  %v566_v20 = vmul.f32 %v1864_v31, %v2649_v63  ;;  %v567_v17 = vmul.f32 %v1865_v32, %v2649_v63 }
  0x25   :  { %v568_v18 = vmul.f32 %v1868_v36, %v2649_v63  ;;  %v569_v19 = vmul.f32 %v1869_v37, %v2649_v63  ;;  %v570_v21 = vmul.f32 %v1872_v38, %v2649_v63  ;;  %v571_v22 = vmul.f32 %v1873_v41, %v2649_v63 }
  0x26   :  { %v817_v23 = vadd.f32 %v2669_v15, %v558_v8  ;;  %v818_v24 = vadd.f32 %v2669_v15, %v559_v9  ;;  %v819_v25 = vadd.f32 %v2669_v15, %v560_v10  ;;  %v820_v28 = vadd.f32 %v2669_v15, %v561_v11 }
  0x27   :  { %v821_v29 = vadd.f32 %v2669_v15, %v562_v12  ;;  %v822_v30 = vadd.f32 %v2669_v15, %v563_v13  ;;  %v823_v31 = vadd.f32 %v2669_v15, %v564_v14  ;;  %v824_v32 = vadd.f32 %v2669_v15, %v565_v16 }
  0x28   :  { %v1073_v34 = vmax.f32 %v817_v23, 0.0  ;;  %v1074_v35 = vmax.f32 %v818_v24, 0.0  ;;  %v1075_v36 = vmax.f32 %v819_v25, 0.0  ;;  %v1076_v37 = vmax.f32 %v820_v28, 0.0 }
  0x29   :  { %v1077_v38 = vmax.f32 %v821_v29, 0.0  ;;  %v1078_v41 = vmax.f32 %v822_v30, 0.0  ;;  %v1079_v47 = vmax.f32 %v823_v31, 0.0  ;;  %v1080_v52 = vmax.f32 %v824_v32, 0.0 }
  0x2a   :  { %v1329_v57 = vpack.c.bf16 %v1073_v34, %v1073_v34  ;;  %v1330_v62 = vpack.c.bf16 %v1074_v35, %v1074_v35  ;;  %v1331_v7 = vpack.c.bf16 %v1075_v36, %v1075_v36  ;;  %v1332_v8 = vpack.c.bf16 %v1076_v37, %v1076_v37 }
  0x2b   :  { %v1333_v9 = vpack.c.bf16 %v1077_v38, %v1077_v38  ;;  %v1334_v10 = vpack.c.bf16 %v1078_v41, %v1078_v41  ;;  %v1335_v11 = vpack.c.bf16 %v1079_v47, %v1079_v47  ;;  %v1336_v12 = vpack.c.bf16 %v1080_v52, %v1080_v52 }
  0x2c   :  { %1586 = vst.msk [vmem:[%s4577_s5] sm:$0xf] %vm1585_vm3, %v1329_v57  ;;  %v825_v13 = vadd.f32 %v2669_v15, %v566_v20  ;;  %v826_v14 = vadd.f32 %v2669_v15, %v567_v17  ;;  %v827_v16 = vadd.f32 %v2669_v15, %v568_v18  ;;  %v828_v23 = vadd.f32 %v2669_v15, %v569_v19 }
  0x2d   :  { %1587 = vst.msk [vmem:[%s4577_s5 + $0x4] sm:$0xf] %vm1585_vm3, %v1330_v62  ;;  %v829_v24 = vadd.f32 %v2669_v15, %v570_v21  ;;  %v830_v25 = vadd.f32 %v2669_v15, %v571_v22  ;;  %v572_v28 = vmul.f32 %v1876_v42, %v2649_v63  ;;  %v573_v20 = vmul.f32 %v1877_v43, %v2649_v63 }
  0x2e   :  { %1588 = vst.msk [vmem:[%s4577_s5 + $0x8] sm:$0xf] %vm1585_vm3, %v1331_v7  ;;  %v1081_v17 = vmax.f32 %v825_v13, 0.0  ;;  %v1082_v18 = vmax.f32 %v826_v14, 0.0  ;;  %v1083_v19 = vmax.f32 %v827_v16, 0.0  ;;  %v1084_v29 = vmax.f32 %v828_v23, 0.0 }
  0x2f   :  { %1589 = vst.msk [vmem:[%s4577_s5 + $0xc] sm:$0xf] %vm1585_vm3, %v1332_v8  ;;  %v1085_v21 = vmax.f32 %v829_v24, 0.0  ;;  %v1086_v42 = vmax.f32 %v830_v25, 0.0  ;;  %v831_v22 = vadd.f32 %v2669_v15, %v572_v28  ;;  %v832_v26 = vadd.f32 %v2669_v15, %v573_v20 }
  0x30   :  { %1590 = vst.msk [vmem:[%s4577_s5 + $0x10] sm:$0xf] %vm1585_vm3, %v1333_v9  ;;  %v1337_v43 = vpack.c.bf16 %v1081_v17, %v1081_v17  ;;  %v1338_v30 = vpack.c.bf16 %v1082_v18, %v1082_v18  ;;  %v1339_v31 = vpack.c.bf16 %v1083_v19, %v1083_v19  ;;  %v1340_v32 = vpack.c.bf16 %v1084_v29, %v1084_v29 }
  0x31   :  { %1591 = vst.msk [vmem:[%s4577_s5 + $0x14] sm:$0xf] %vm1585_vm3, %v1334_v10  ;;  %v1341_v34 = vpack.c.bf16 %v1085_v21, %v1085_v21  ;;  %v1342_v35 = vpack.c.bf16 %v1086_v42, %v1086_v42  ;;  %v1087_v36 = vmax.f32 %v831_v22, 0.0  ;;  %v1088_v37 = vmax.f32 %v832_v26, 0.0 }
  0x32   :  { %1592 = vst.msk [vmem:[%s4577_s5 + $0x18] sm:$0xf] %vm1585_vm3, %v1335_v11  ;;  %v574_v38 = vmul.f32 %v1880_v44, %v2649_v63  ;;  %v575_v41 = vmul.f32 %v1881_v48, %v2649_v63  ;;  %v576_v47 = vmul.f32 %v1884_v49, %v2649_v63  ;;  %v577_v52 = vmul.f32 %v1885_v50, %v2649_v63 }
  0x33   :  { %1593 = vst.msk [vmem:[%s4577_s5 + $0x1c] sm:$0xf] %vm1585_vm3, %v1336_v12  ;;  %v1343_v57 = vpack.c.bf16 %v1087_v36, %v1087_v36  ;;  %v1344_v62 = vpack.c.bf16 %v1088_v37, %v1088_v37  ;;  %v578_v27 = vmul.f32 %v1888_v53, %v2649_v63  ;;  %v579_v44 = vmul.f32 %v1889_v54, %v2649_v63 }
  0x34   :  { %1594 = vst.msk [vmem:[%s4577_s5 + $0x20] sm:$0xf] %vm1585_vm3, %v1337_v43  ;;  %v833_v33 = vadd.f32 %v2669_v15, %v574_v38  ;;  %v834_v48 = vadd.f32 %v2669_v15, %v575_v41  ;;  %v835_v49 = vadd.f32 %v2669_v15, %v576_v47  ;;  %v836_v50 = vadd.f32 %v2669_v15, %v577_v52  ;;  %v2375_v41 = vld [vmem:[%s4574_s0 + $0x90] sm:$0xff]  }
  0x35   :  { %1595 = vst.msk [vmem:[%s4577_s5 + $0x24] sm:$0xf] %vm1585_vm3, %v1338_v30  ;;  %v837_v39 = vadd.f32 %v2669_v15, %v578_v27  ;;  %v838_v53 = vadd.f32 %v2669_v15, %v579_v44  ;;  %v580_v54 = vmul.f32 %v1892_v55, %v2649_v63  ;;  %v581_v7 = vmul.f32 %v1893_v58, %v2649_v63 }
  0x36   :  { %1596 = vst.msk [vmem:[%s4577_s5 + $0x28] sm:$0xf] %vm1585_vm3, %v1339_v31  ;;  %v1089_v8 = vmax.f32 %v833_v33, 0.0  ;;  %v1090_v9 = vmax.f32 %v834_v48, 0.0  ;;  %v1091_v10 = vmax.f32 %v835_v49, 0.0  ;;  %v1092_v11 = vmax.f32 %v836_v50, 0.0 }
  0x37   :  { %1597 = vst.msk [vmem:[%s4577_s5 + $0x2c] sm:$0xf] %vm1585_vm3, %v1340_v32  ;;  %v1093_v12 = vmax.f32 %v837_v39, 0.0  ;;  %v1094_v55 = vmax.f32 %v838_v53, 0.0  ;;  %v839_v13 = vadd.f32 %v2669_v15, %v580_v54  ;;  %v840_v40 = vadd.f32 %v2669_v15, %v581_v7  ;;  %v2376_v49 = vld [vmem:[%s4574_s0 + $0x98] sm:$0xff]  }
  0x38   :  { %1598 = vst.msk [vmem:[%s4577_s5 + $0x30] sm:$0xf] %vm1585_vm3, %v1341_v34  ;;  %v1345_v58 = vpack.c.bf16 %v1089_v8, %v1089_v8  ;;  %v1346_v14 = vpack.c.bf16 %v1090_v9, %v1090_v9  ;;  %v1347_v16 = vpack.c.bf16 %v1091_v10, %v1091_v10  ;;  %v1348_v23 = vpack.c.bf16 %v1092_v11, %v1092_v11 }
  0x39   :  { %1599 = vst.msk [vmem:[%s4577_s5 + $0x34] sm:$0xf] %vm1585_vm3, %v1342_v35  ;;  %v1349_v24 = vpack.c.bf16 %v1093_v12, %v1093_v12  ;;  %v1350_v25 = vpack.c.bf16 %v1094_v55, %v1094_v55  ;;  %v1095_v28 = vmax.f32 %v839_v13, 0.0  ;;  %v1096_v20 = vmax.f32 %v840_v40, 0.0 }
  0x3a   :  { %1600 = vst.msk [vmem:[%s4577_s5 + $0x38] sm:$0xf] %vm1585_vm3, %v1343_v57  ;;  %v582_v17 = vmul.f32 %v1896_v59, %v2649_v63  ;;  %v583_v18 = vmul.f32 %v1897_v60, %v2649_v63  ;;  %v584_v19 = vmul.f32 %v1900_v61, %v2649_v63  ;;  %v585_v29 = vmul.f32 %v1901_v0, %v2649_v63 }
  0x3b   :  { %1601 = vst.msk [vmem:[%s4577_s5 + $0x3c] sm:$0xf] %vm1585_vm3, %v1344_v62  ;;  %v1351_v21 = vpack.c.bf16 %v1095_v28, %v1095_v28  ;;  %v1352_v42 = vpack.c.bf16 %v1096_v20, %v1096_v20  ;;  %v586_v45 = vmul.f32 %v1904_v1, %v2649_v63  ;;  %v587_v59 = vmul.f32 %v1905_v4, %v2649_v63 }
  0x3c   :  { %1602 = vst.msk [vmem:[%s4577_s5 + $0x40] sm:$0xf] %vm1585_vm3, %v1345_v58  ;;  %v841_v46 = vadd.f32 %v2669_v15, %v582_v17  ;;  %v842_v60 = vadd.f32 %v2669_v15, %v583_v18  ;;  %v843_v61 = vadd.f32 %v2669_v15, %v584_v19  ;;  %v844_v0 = vadd.f32 %v2669_v15, %v585_v29 }
  0x3d   :  { %1603 = vst.msk [vmem:[%s4577_s5 + $0x44] sm:$0xf] %vm1585_vm3, %v1346_v14  ;;  %v845_v51 = vadd.f32 %v2669_v15, %v586_v45  ;;  %v846_v1 = vadd.f32 %v2669_v15, %v587_v59  ;;  %v588_v4 = vmul.f32 %v1908_v5, %v2649_v63  ;;  %v589_v22 = vmul.f32 %v1909_v6, %v2649_v63  ;;  %v2374_v6 = vld [vmem:[%s4574_s0 + $0x88] sm:$0xff]  }
  0x3e   :  { %1604 = vst.msk [vmem:[%s4577_s5 + $0x48] sm:$0xf] %vm1585_vm3, %v1347_v16  ;;  %v1097_v26 = vmax.f32 %v841_v46, 0.0  ;;  %v1098_v43 = vmax.f32 %v842_v60, 0.0  ;;  %v1099_v30 = vmax.f32 %v843_v61, 0.0  ;;  %v1100_v31 = vmax.f32 %v844_v0, 0.0 }
  0x3f   :  { %1605 = vst.msk [vmem:[%s4577_s5 + $0x4c] sm:$0xf] %vm1585_vm3, %v1348_v23  ;;  %v1101_v32 = vmax.f32 %v845_v51, 0.0  ;;  %v1102_v5 = vmax.f32 %v846_v1, 0.0  ;;  %v847_v34 = vadd.f32 %v2669_v15, %v588_v4  ;;  %v848_v56 = vadd.f32 %v2669_v15, %v589_v22  ;;  %v2378_v45 = vld [vmem:[%s4574_s0 + $0xa8] sm:$0xff]   ;;  %v2379_v0 = vld [vmem:[%s4574_s0 + $0xb0] sm:$0xff]  }
  0x40   :  { %1606 = vst.msk [vmem:[%s4577_s5 + $0x50] sm:$0xf] %vm1585_vm3, %v1349_v24  ;;  %v1353_v35 = vpack.c.bf16 %v1097_v26, %v1097_v26  ;;  %v1354_v36 = vpack.c.bf16 %v1098_v43, %v1098_v43  ;;  %v1355_v37 = vpack.c.bf16 %v1099_v30, %v1099_v30  ;;  %v1356_v38 = vpack.c.bf16 %v1100_v31, %v1100_v31 }
  0x41   :  { %1607 = vst.msk [vmem:[%s4577_s5 + $0x54] sm:$0xf] %vm1585_vm3, %v1350_v25  ;;  %v1357_v47 = vpack.c.bf16 %v1101_v32, %v1101_v32  ;;  %v1358_v52 = vpack.c.bf16 %v1102_v5, %v1102_v5  ;;  %v1103_v57 = vmax.f32 %v847_v34, 0.0  ;;  %v1104_v62 = vmax.f32 %v848_v56, 0.0  ;;  %v2377_v25 = vld [vmem:[%s4574_s0 + $0xa0] sm:$0xff]   ;;  %v2380_v32 = vld [vmem:[%s4574_s0 + $0xb8] sm:$0xff]  }
  0x42   :  { %1608 = vst.msk [vmem:[%s4577_s5 + $0x58] sm:$0xf] %vm1585_vm3, %v1351_v21  ;;  %v590_v27 = vmul.f32 %v1912_v2, %v2649_v63  ;;  %v1913_v44 = vunpack.c.h.bf16 %v2656_v3  ;;  %v1916_v33 = vunpack.c.l.bf16 %v2374_v6  ;;  %v1917_v48 = vunpack.c.h.bf16 %v2374_v6 }
  0x43   :  { %1609 = vst.msk [vmem:[%s4577_s5 + $0x5c] sm:$0xf] %vm1585_vm3, %v1352_v42  ;;  %v1359_v50 = vpack.c.bf16 %v1103_v57, %v1103_v57  ;;  %v1360_v39 = vpack.c.bf16 %v1104_v62, %v1104_v62  ;;  %v1920_v53 = vunpack.c.l.bf16 %v2375_v41  ;;  %v1921_v54 = vunpack.c.h.bf16 %v2375_v41 }
  0x44   :  { %1610 = vst.msk [vmem:[%s4577_s5 + $0x60] sm:$0xf] %vm1585_vm3, %v1353_v35  ;;  %v849_v3 = vadd.f32 %v2669_v15, %v590_v27  ;;  %v591_v2 = vmul.f32 %v1913_v44, %v2649_v63  ;;  %v592_v7 = vmul.f32 %v1916_v33, %v2649_v63  ;;  %v593_v8 = vmul.f32 %v1917_v48, %v2649_v63 }
  0x45   :  { %1611 = vst.msk [vmem:[%s4577_s5 + $0x64] sm:$0xf] %vm1585_vm3, %v1354_v36  ;;  %v594_v9 = vmul.f32 %v1920_v53, %v2649_v63  ;;  %v595_v10 = vmul.f32 %v1921_v54, %v2649_v63  ;;  %v1924_v11 = vunpack.c.l.bf16 %v2376_v49  ;;  %v1925_v12 = vunpack.c.h.bf16 %v2376_v49  ;;  %v2381_v53 = vld [vmem:[%s4574_s0 + $0xc0] sm:$0xff]  }
  0x46   :  { %1612 = vst.msk [vmem:[%s4577_s5 + $0x68] sm:$0xf] %vm1585_vm3, %v1355_v37  ;;  %v1105_v55 = vmax.f32 %v849_v3, 0.0  ;;  %v850_v13 = vadd.f32 %v2669_v15, %v591_v2  ;;  %v851_v40 = vadd.f32 %v2669_v15, %v592_v7  ;;  %v852_v58 = vadd.f32 %v2669_v15, %v593_v8 }
  0x47   :  { %1613 = vst.msk [vmem:[%s4577_s5 + $0x6c] sm:$0xf] %vm1585_vm3, %v1356_v38  ;;  %v853_v14 = vadd.f32 %v2669_v15, %v594_v9  ;;  %v854_v16 = vadd.f32 %v2669_v15, %v595_v10  ;;  %v596_v23 = vmul.f32 %v1924_v11, %v2649_v63  ;;  %v597_v24 = vmul.f32 %v1925_v12, %v2649_v63  ;;  %v2382_v12 = vld [vmem:[%s4574_s0 + $0xc8] sm:$0xff]  }
  0x48   :  { %1614 = vst.msk [vmem:[%s4577_s5 + $0x70] sm:$0xf] %vm1585_vm3, %v1357_v47  ;;  %v1361_v28 = vpack.c.bf16 %v1105_v55, %v1105_v55  ;;  %v1106_v20 = vmax.f32 %v850_v13, 0.0  ;;  %v1107_v17 = vmax.f32 %v851_v40, 0.0  ;;  %v1108_v18 = vmax.f32 %v852_v58, 0.0 }
  0x49   :  { %1615 = vst.msk [vmem:[%s4577_s5 + $0x74] sm:$0xf] %vm1585_vm3, %v1358_v52  ;;  %v1109_v19 = vmax.f32 %v853_v14, 0.0  ;;  %v1110_v29 = vmax.f32 %v854_v16, 0.0  ;;  %v855_v21 = vadd.f32 %v2669_v15, %v596_v23  ;;  %v856_v42 = vadd.f32 %v2669_v15, %v597_v24  ;;  %v2383_v14 = vld [vmem:[%s4574_s0 + $0xd0] sm:$0xff]  }
  0x4a   :  { %1616 = vst.msk [vmem:[%s4577_s5 + $0x78] sm:$0xf] %vm1585_vm3, %v1359_v50  ;;  %v1362_v59 = vpack.c.bf16 %v1106_v20, %v1106_v20  ;;  %v1363_v46 = vpack.c.bf16 %v1107_v17, %v1107_v17  ;;  %v1364_v60 = vpack.c.bf16 %v1108_v18, %v1108_v18  ;;  %v1928_v61 = vunpack.c.l.bf16 %v2377_v25 }
  0x4b   :  { %1617 = vst.msk [vmem:[%s4577_s5 + $0x7c] sm:$0xf] %vm1585_vm3, %v1360_v39  ;;  %v1365_v51 = vpack.c.bf16 %v1109_v19, %v1109_v19  ;;  %v1366_v1 = vpack.c.bf16 %v1110_v29, %v1110_v29  ;;  %v1111_v4 = vmax.f32 %v855_v21, 0.0  ;;  %v1112_v22 = vmax.f32 %v856_v42, 0.0  ;;  %v2384_v19 = vld [vmem:[%s4574_s0 + $0xd8] sm:$0xff]  }
  0x4c   :  { %1618 = vst.msk [vmem:[%s4577_s5 + $0x80] sm:$0xf] %vm1585_vm3, %v1361_v28  ;;  %v598_v26 = vmul.f32 %v1928_v61, %v2649_v63  ;;  %v1929_v43 = vunpack.c.h.bf16 %v2377_v25  ;;  %v1932_v30 = vunpack.c.l.bf16 %v2378_v45  ;;  %v1933_v31 = vunpack.c.h.bf16 %v2378_v45 }
  0x4d   :  { %1619 = vst.msk [vmem:[%s4577_s5 + $0x84] sm:$0xf] %vm1585_vm3, %v1362_v59  ;;  %v1367_v5 = vpack.c.bf16 %v1111_v4, %v1111_v4  ;;  %v1368_v34 = vpack.c.bf16 %v1112_v22, %v1112_v22  ;;  %v1936_v56 = vunpack.c.l.bf16 %v2379_v0  ;;  %v1937_v6 = vunpack.c.h.bf16 %v2379_v0 }
  0x4e   :  { %1620 = vst.msk [vmem:[%s4577_s5 + $0x88] sm:$0xf] %vm1585_vm3, %v1363_v46  ;;  %v857_v35 = vadd.f32 %v2669_v15, %v598_v26  ;;  %v599_v36 = vmul.f32 %v1929_v43, %v2649_v63  ;;  %v600_v37 = vmul.f32 %v1932_v30, %v2649_v63  ;;  %v601_v38 = vmul.f32 %v1933_v31, %v2649_v63 }
  0x4f   :  { %1621 = vst.msk [vmem:[%s4577_s5 + $0x8c] sm:$0xf] %vm1585_vm3, %v1364_v60  ;;  %v602_v41 = vmul.f32 %v1936_v56, %v2649_v63  ;;  %v603_v47 = vmul.f32 %v1937_v6, %v2649_v63  ;;  %v1940_v52 = vunpack.c.l.bf16 %v2380_v32  ;;  %v1941_v57 = vunpack.c.h.bf16 %v2380_v32  ;;  %v2385_v56 = vld [vmem:[%s4574_s0 + $0xe0] sm:$0xff]  }
  0x50   :  { %1622 = vst.msk [vmem:[%s4577_s5 + $0x90] sm:$0xf] %vm1585_vm3, %v1365_v51  ;;  %v1113_v62 = vmax.f32 %v857_v35, 0.0  ;;  %v858_v27 = vadd.f32 %v2669_v15, %v599_v36  ;;  %v859_v44 = vadd.f32 %v2669_v15, %v600_v37  ;;  %v860_v33 = vadd.f32 %v2669_v15, %v601_v38 }
  0x51   :  { %1623 = vst.msk [vmem:[%s4577_s5 + $0x94] sm:$0xf] %vm1585_vm3, %v1366_v1  ;;  %v861_v48 = vadd.f32 %v2669_v15, %v602_v41  ;;  %v862_v49 = vadd.f32 %v2669_v15, %v603_v47  ;;  %v604_v50 = vmul.f32 %v1940_v52, %v2649_v63  ;;  %v605_v39 = vmul.f32 %v1941_v57, %v2649_v63  ;;  %v2386_v57 = vld [vmem:[%s4574_s0 + $0xe8] sm:$0xff]  }
  0x52   :  { %1624 = vst.msk [vmem:[%s4577_s5 + $0x98] sm:$0xf] %vm1585_vm3, %v1367_v5  ;;  %v1369_v54 = vpack.c.bf16 %v1113_v62, %v1113_v62  ;;  %v1114_v3 = vmax.f32 %v858_v27, 0.0  ;;  %v1115_v2 = vmax.f32 %v859_v44, 0.0  ;;  %v1116_v7 = vmax.f32 %v860_v33, 0.0 }
  0x53   :  { %1625 = vst.msk [vmem:[%s4577_s5 + $0x9c] sm:$0xf] %vm1585_vm3, %v1368_v34  ;;  %v1117_v8 = vmax.f32 %v861_v48, 0.0  ;;  %v1118_v9 = vmax.f32 %v862_v49, 0.0  ;;  %v863_v10 = vadd.f32 %v2669_v15, %v604_v50  ;;  %v864_v11 = vadd.f32 %v2669_v15, %v605_v39  ;;  %v2387_v48 = vld [vmem:[%s4574_s0 + $0xf0] sm:$0xff]  }
  0x54   :  { %1626 = vst.msk [vmem:[%s4577_s5 + $0xa0] sm:$0xf] %vm1585_vm3, %v1369_v54  ;;  %v1370_v55 = vpack.c.bf16 %v1114_v3, %v1114_v3  ;;  %v1371_v13 = vpack.c.bf16 %v1115_v2, %v1115_v2  ;;  %v1372_v40 = vpack.c.bf16 %v1116_v7, %v1116_v7  ;;  %v1944_v58 = vunpack.c.l.bf16 %v2381_v53 }
  0x55   :  { %v1373_v16 = vpack.c.bf16 %v1117_v8, %v1117_v8  ;;  %v1374_v23 = vpack.c.bf16 %v1118_v9, %v1118_v9  ;;  %v1119_v24 = vmax.f32 %v863_v10, 0.0  ;;  %v1120_v25 = vmax.f32 %v864_v11, 0.0  ;;  %v2388_v8 = vld [vmem:[%s4574_s0 + $0xf8] sm:$0xff]  }
  0x56   :  { %1627 = vst.msk [vmem:[%s4577_s5 + $0xa4] sm:$0xf] %vm1585_vm3, %v1370_v55  ;;  %v606_v28 = vmul.f32 %v1944_v58, %v2649_v63  ;;  %v1945_v20 = vunpack.c.h.bf16 %v2381_v53  ;;  %v1948_v17 = vunpack.c.l.bf16 %v2382_v12  ;;  %v1949_v18 = vunpack.c.h.bf16 %v2382_v12 }
  0x57   :  { %1628 = vst.msk [vmem:[%s4577_s5 + $0xa8] sm:$0xf] %vm1585_vm3, %v1371_v13  ;;  %v1375_v29 = vpack.c.bf16 %v1119_v24, %v1119_v24  ;;  %v1376_v21 = vpack.c.bf16 %v1120_v25, %v1120_v25  ;;  %v1952_v42 = vunpack.c.l.bf16 %v2383_v14  ;;  %v1953_v45 = vunpack.c.h.bf16 %v2383_v14 }
  0x58   :  { %1629 = vst.msk [vmem:[%s4577_s5 + $0xac] sm:$0xf] %vm1585_vm3, %v1372_v40  ;;  %v865_v59 = vadd.f32 %v2669_v15, %v606_v28  ;;  %v607_v46 = vmul.f32 %v1945_v20, %v2649_v63  ;;  %v608_v60 = vmul.f32 %v1948_v17, %v2649_v63  ;;  %v609_v61 = vmul.f32 %v1949_v18, %v2649_v63 }
  0x59   :  { %1630 = vst.msk [vmem:[%s4577_s5 + $0xb0] sm:$0xf] %vm1585_vm3, %v1373_v16  ;;  %v610_v0 = vmul.f32 %v1952_v42, %v2649_v63  ;;  %v611_v51 = vmul.f32 %v1953_v45, %v2649_v63  ;;  %v1956_v1 = vunpack.c.l.bf16 %v2384_v19  ;;  %v1957_v4 = vunpack.c.h.bf16 %v2384_v19  ;;  %v2389_v42 = vld [vmem:[%s4574_s0 + $0x100] sm:$0xff]  }
  0x5a   :  { %1631 = vst.msk [vmem:[%s4577_s5 + $0xb4] sm:$0xf] %vm1585_vm3, %v1374_v23  ;;  %v1121_v22 = vmax.f32 %v865_v59, 0.0  ;;  %v866_v26 = vadd.f32 %v2669_v15, %v607_v46  ;;  %v867_v43 = vadd.f32 %v2669_v15, %v608_v60  ;;  %v868_v30 = vadd.f32 %v2669_v15, %v609_v61 }
  0x5b   :  { %1632 = vst.msk [vmem:[%s4577_s5 + $0xb8] sm:$0xf] %vm1585_vm3, %v1375_v29  ;;  %v869_v31 = vadd.f32 %v2669_v15, %v610_v0  ;;  %v870_v32 = vadd.f32 %v2669_v15, %v611_v51  ;;  %v612_v5 = vmul.f32 %v1956_v1, %v2649_v63  ;;  %v613_v34 = vmul.f32 %v1957_v4, %v2649_v63  ;;  %v2390_v4 = vld [vmem:[%s4574_s0 + $0x108] sm:$0xff]  }
  0x5c   :  { %1633 = vst.msk [vmem:[%s4577_s5 + $0xbc] sm:$0xf] %vm1585_vm3, %v1376_v21  ;;  %v1377_v6 = vpack.c.bf16 %v1121_v22, %v1121_v22  ;;  %v1122_v35 = vmax.f32 %v866_v26, 0.0  ;;  %v1123_v36 = vmax.f32 %v867_v43, 0.0  ;;  %v1124_v37 = vmax.f32 %v868_v30, 0.0 }
  0x5d   :  { %v1125_v38 = vmax.f32 %v869_v31, 0.0  ;;  %v1126_v41 = vmax.f32 %v870_v32, 0.0  ;;  %v871_v47 = vadd.f32 %v2669_v15, %v612_v5  ;;  %v872_v52 = vadd.f32 %v2669_v15, %v613_v34  ;;  %v2391_v31 = vld [vmem:[%s4574_s0 + $0x110] sm:$0xff]  }
  0x5e   :  { %1634 = vst.msk [vmem:[%s4577_s5 + $0xc0] sm:$0xf] %vm1585_vm3, %v1377_v6  ;;  %v1378_v62 = vpack.c.bf16 %v1122_v35, %v1122_v35  ;;  %v1379_v27 = vpack.c.bf16 %v1123_v36, %v1123_v36  ;;  %v1380_v44 = vpack.c.bf16 %v1124_v37, %v1124_v37  ;;  %v1960_v33 = vunpack.c.l.bf16 %v2385_v56 }
  0x5f   :  { %v1381_v49 = vpack.c.bf16 %v1125_v38, %v1125_v38  ;;  %v1382_v50 = vpack.c.bf16 %v1126_v41, %v1126_v41  ;;  %v1127_v39 = vmax.f32 %v871_v47, 0.0  ;;  %v1128_v53 = vmax.f32 %v872_v52, 0.0  ;;  %v2392_v38 = vld [vmem:[%s4574_s0 + $0x118] sm:$0xff]  }
  0x60   :  { %1635 = vst.msk [vmem:[%s4577_s5 + $0xc4] sm:$0xf] %vm1585_vm3, %v1378_v62  ;;  %v614_v54 = vmul.f32 %v1960_v33, %v2649_v63  ;;  %v1961_v3 = vunpack.c.h.bf16 %v2385_v56  ;;  %v1964_v2 = vunpack.c.l.bf16 %v2386_v57  ;;  %v1965_v7 = vunpack.c.h.bf16 %v2386_v57 }
  0x61   :  { %1636 = vst.msk [vmem:[%s4577_s5 + $0xc8] sm:$0xf] %vm1585_vm3, %v1379_v27  ;;  %v1383_v9 = vpack.c.bf16 %v1127_v39, %v1127_v39  ;;  %v1384_v10 = vpack.c.bf16 %v1128_v53, %v1128_v53  ;;  %v1968_v11 = vunpack.c.l.bf16 %v2387_v48  ;;  %v1969_v12 = vunpack.c.h.bf16 %v2387_v48 }
  0x62   :  { %1637 = vst.msk [vmem:[%s4577_s5 + $0xcc] sm:$0xf] %vm1585_vm3, %v1380_v44  ;;  %v873_v55 = vadd.f32 %v2669_v15, %v614_v54  ;;  %v615_v13 = vmul.f32 %v1961_v3, %v2649_v63  ;;  %v616_v40 = vmul.f32 %v1964_v2, %v2649_v63  ;;  %v617_v58 = vmul.f32 %v1965_v7, %v2649_v63 }
  0x63   :  { %1638 = vst.msk [vmem:[%s4577_s5 + $0xd0] sm:$0xf] %vm1585_vm3, %v1381_v49  ;;  %v618_v14 = vmul.f32 %v1968_v11, %v2649_v63  ;;  %v619_v16 = vmul.f32 %v1969_v12, %v2649_v63  ;;  %v1972_v23 = vunpack.c.l.bf16 %v2388_v8  ;;  %v1973_v24 = vunpack.c.h.bf16 %v2388_v8  ;;  %v2393_v11 = vld [vmem:[%s4574_s0 + $0x120] sm:$0xff]  }
  0x64   :  { %1639 = vst.msk [vmem:[%s4577_s5 + $0xd4] sm:$0xf] %vm1585_vm3, %v1382_v50  ;;  %v1129_v25 = vmax.f32 %v873_v55, 0.0  ;;  %v874_v28 = vadd.f32 %v2669_v15, %v615_v13  ;;  %v875_v20 = vadd.f32 %v2669_v15, %v616_v40  ;;  %v876_v17 = vadd.f32 %v2669_v15, %v617_v58 }
  0x65   :  { %1640 = vst.msk [vmem:[%s4577_s5 + $0xd8] sm:$0xf] %vm1585_vm3, %v1383_v9  ;;  %v877_v18 = vadd.f32 %v2669_v15, %v618_v14  ;;  %v878_v19 = vadd.f32 %v2669_v15, %v619_v16  ;;  %v620_v29 = vmul.f32 %v1972_v23, %v2649_v63  ;;  %v621_v21 = vmul.f32 %v1973_v24, %v2649_v63  ;;  %v2394_v24 = vld [vmem:[%s4574_s0 + $0x128] sm:$0xff]  }
  0x66   :  { %1641 = vst.msk [vmem:[%s4577_s5 + $0xdc] sm:$0xf] %vm1585_vm3, %v1384_v10  ;;  %v1385_v45 = vpack.c.bf16 %v1129_v25, %v1129_v25  ;;  %v1130_v59 = vmax.f32 %v874_v28, 0.0  ;;  %v1131_v46 = vmax.f32 %v875_v20, 0.0  ;;  %v1132_v60 = vmax.f32 %v876_v17, 0.0 }
  0x67   :  { %v1133_v61 = vmax.f32 %v877_v18, 0.0  ;;  %v1134_v0 = vmax.f32 %v878_v19, 0.0  ;;  %v879_v51 = vadd.f32 %v2669_v15, %v620_v29  ;;  %v880_v1 = vadd.f32 %v2669_v15, %v621_v21  ;;  %v2395_v18 = vld [vmem:[%s4574_s0 + $0x130] sm:$0xff]  }
  0x68   :  { %1642 = vst.msk [vmem:[%s4577_s5 + $0xe0] sm:$0xf] %vm1585_vm3, %v1385_v45  ;;  %v1386_v22 = vpack.c.bf16 %v1130_v59, %v1130_v59  ;;  %v1387_v26 = vpack.c.bf16 %v1131_v46, %v1131_v46  ;;  %v1388_v43 = vpack.c.bf16 %v1132_v60, %v1132_v60  ;;  %v1976_v30 = vunpack.c.l.bf16 %v2389_v42 }
  0x69   :  { %v1389_v32 = vpack.c.bf16 %v1133_v61, %v1133_v61  ;;  %v1390_v5 = vpack.c.bf16 %v1134_v0, %v1134_v0  ;;  %v1135_v34 = vmax.f32 %v879_v51, 0.0  ;;  %v1136_v56 = vmax.f32 %v880_v1, 0.0  ;;  %v2396_v61 = vld [vmem:[%s4574_s0 + $0x138] sm:$0xff]  }
  0x6a   :  { %1643 = vst.msk [vmem:[%s4577_s5 + $0xe4] sm:$0xf] %vm1585_vm3, %v1386_v22  ;;  %v622_v6 = vmul.f32 %v1976_v30, %v2649_v63  ;;  %v1977_v35 = vunpack.c.h.bf16 %v2389_v42  ;;  %v1980_v36 = vunpack.c.l.bf16 %v2390_v4  ;;  %v1981_v37 = vunpack.c.h.bf16 %v2390_v4 }
  0x6b   :  { %1644 = vst.msk [vmem:[%s4577_s5 + $0xe8] sm:$0xf] %vm1585_vm3, %v1387_v26  ;;  %v1391_v41 = vpack.c.bf16 %v1135_v34, %v1135_v34  ;;  %v1392_v47 = vpack.c.bf16 %v1136_v56, %v1136_v56  ;;  %v1984_v52 = vunpack.c.l.bf16 %v2391_v31  ;;  %v1985_v57 = vunpack.c.h.bf16 %v2391_v31 }
  0x6c   :  { %1645 = vst.msk [vmem:[%s4577_s5 + $0xec] sm:$0xf] %vm1585_vm3, %v1388_v43  ;;  %v881_v62 = vadd.f32 %v2669_v15, %v622_v6  ;;  %v623_v27 = vmul.f32 %v1977_v35, %v2649_v63  ;;  %v624_v44 = vmul.f32 %v1980_v36, %v2649_v63  ;;  %v625_v33 = vmul.f32 %v1981_v37, %v2649_v63 }
  0x6d   :  { %1646 = vst.msk [vmem:[%s4577_s5 + $0xf0] sm:$0xf] %vm1585_vm3, %v1389_v32  ;;  %v626_v48 = vmul.f32 %v1984_v52, %v2649_v63  ;;  %v627_v49 = vmul.f32 %v1985_v57, %v2649_v63  ;;  %v1988_v50 = vunpack.c.l.bf16 %v2392_v38  ;;  %v1989_v39 = vunpack.c.h.bf16 %v2392_v38  ;;  %v2397_v52 = vld [vmem:[%s4574_s0 + $0x140] sm:$0xff]  }
  0x6e   :  { %1647 = vst.msk [vmem:[%s4577_s5 + $0xf4] sm:$0xf] %vm1585_vm3, %v1390_v5  ;;  %v1137_v53 = vmax.f32 %v881_v62, 0.0  ;;  %v882_v54 = vadd.f32 %v2669_v15, %v623_v27  ;;  %v883_v3 = vadd.f32 %v2669_v15, %v624_v44  ;;  %v884_v2 = vadd.f32 %v2669_v15, %v625_v33 }
  0x6f   :  { %1648 = vst.msk [vmem:[%s4577_s5 + $0xf8] sm:$0xf] %vm1585_vm3, %v1391_v41  ;;  %v885_v7 = vadd.f32 %v2669_v15, %v626_v48  ;;  %v886_v8 = vadd.f32 %v2669_v15, %v627_v49  ;;  %v628_v9 = vmul.f32 %v1988_v50, %v2649_v63  ;;  %v629_v10 = vmul.f32 %v1989_v39, %v2649_v63  ;;  %v2398_v39 = vld [vmem:[%s4574_s0 + $0x148] sm:$0xff]  }
  0x70   :  { %1649 = vst.msk [vmem:[%s4577_s5 + $0xfc] sm:$0xf] %vm1585_vm3, %v1392_v47  ;;  %v1393_v12 = vpack.c.bf16 %v1137_v53, %v1137_v53  ;;  %v1138_v55 = vmax.f32 %v882_v54, 0.0  ;;  %v1139_v13 = vmax.f32 %v883_v3, 0.0  ;;  %v1140_v40 = vmax.f32 %v884_v2, 0.0 }
  0x71   :  { %v1141_v58 = vmax.f32 %v885_v7, 0.0  ;;  %v1142_v14 = vmax.f32 %v886_v8, 0.0  ;;  %v887_v16 = vadd.f32 %v2669_v15, %v628_v9  ;;  %v888_v23 = vadd.f32 %v2669_v15, %v629_v10  ;;  %v2399_v7 = vld [vmem:[%s4574_s0 + $0x150] sm:$0xff]  }
  0x72   :  { %1650 = vst.msk [vmem:[%s4577_s5 + $0x100] sm:$0xf] %vm1585_vm3, %v1393_v12  ;;  %v1394_v25 = vpack.c.bf16 %v1138_v55, %v1138_v55  ;;  %v1395_v28 = vpack.c.bf16 %v1139_v13, %v1139_v13  ;;  %v1396_v20 = vpack.c.bf16 %v1140_v40, %v1140_v40  ;;  %v1992_v17 = vunpack.c.l.bf16 %v2393_v11 }
  0x73   :  { %v1397_v19 = vpack.c.bf16 %v1141_v58, %v1141_v58  ;;  %v1398_v29 = vpack.c.bf16 %v1142_v14, %v1142_v14  ;;  %v1143_v21 = vmax.f32 %v887_v16, 0.0  ;;  %v1144_v42 = vmax.f32 %v888_v23, 0.0  ;;  %v2400_v58 = vld [vmem:[%s4574_s0 + $0x158] sm:$0xff]  }
  0x74   :  { %1651 = vst.msk [vmem:[%s4577_s5 + $0x104] sm:$0xf] %vm1585_vm3, %v1394_v25  ;;  %v630_v45 = vmul.f32 %v1992_v17, %v2649_v63  ;;  %v1993_v59 = vunpack.c.h.bf16 %v2393_v11  ;;  %v1996_v46 = vunpack.c.l.bf16 %v2394_v24  ;;  %v1997_v60 = vunpack.c.h.bf16 %v2394_v24 }
  0x75   :  { %1652 = vst.msk [vmem:[%s4577_s5 + $0x108] sm:$0xf] %vm1585_vm3, %v1395_v28  ;;  %v1399_v0 = vpack.c.bf16 %v1143_v21, %v1143_v21  ;;  %v1400_v51 = vpack.c.bf16 %v1144_v42, %v1144_v42  ;;  %v2000_v1 = vunpack.c.l.bf16 %v2395_v18  ;;  %v2001_v4 = vunpack.c.h.bf16 %v2395_v18 }
  0x76   :  { %1653 = vst.msk [vmem:[%s4577_s5 + $0x10c] sm:$0xf] %vm1585_vm3, %v1396_v20  ;;  %v889_v22 = vadd.f32 %v2669_v15, %v630_v45  ;;  %v631_v26 = vmul.f32 %v1993_v59, %v2649_v63  ;;  %v632_v43 = vmul.f32 %v1996_v46, %v2649_v63  ;;  %v633_v30 = vmul.f32 %v1997_v60, %v2649_v63 }
  0x77   :  { %1654 = vst.msk [vmem:[%s4577_s5 + $0x110] sm:$0xf] %vm1585_vm3, %v1397_v19  ;;  %v634_v31 = vmul.f32 %v2000_v1, %v2649_v63  ;;  %v635_v32 = vmul.f32 %v2001_v4, %v2649_v63  ;;  %v2004_v5 = vunpack.c.l.bf16 %v2396_v61  ;;  %v2005_v34 = vunpack.c.h.bf16 %v2396_v61  ;;  %v2401_v1 = vld [vmem:[%s4574_s0 + $0x160] sm:$0xff]  }
  0x78   :  { %1655 = vst.msk [vmem:[%s4577_s5 + $0x114] sm:$0xf] %vm1585_vm3, %v1398_v29  ;;  %v1145_v56 = vmax.f32 %v889_v22, 0.0  ;;  %v890_v6 = vadd.f32 %v2669_v15, %v631_v26  ;;  %v891_v35 = vadd.f32 %v2669_v15, %v632_v43  ;;  %v892_v36 = vadd.f32 %v2669_v15, %v633_v30 }
  0x79   :  { %1656 = vst.msk [vmem:[%s4577_s5 + $0x118] sm:$0xf] %vm1585_vm3, %v1399_v0  ;;  %v893_v37 = vadd.f32 %v2669_v15, %v634_v31  ;;  %v894_v38 = vadd.f32 %v2669_v15, %v635_v32  ;;  %v636_v41 = vmul.f32 %v2004_v5, %v2649_v63  ;;  %v637_v47 = vmul.f32 %v2005_v34, %v2649_v63  ;;  %v2402_v34 = vld [vmem:[%s4574_s0 + $0x168] sm:$0xff]  }
  0x7a   :  { %1657 = vst.msk [vmem:[%s4577_s5 + $0x11c] sm:$0xf] %vm1585_vm3, %v1400_v51  ;;  %v1401_v57 = vpack.c.bf16 %v1145_v56, %v1145_v56  ;;  %v1146_v62 = vmax.f32 %v890_v6, 0.0  ;;  %v1147_v27 = vmax.f32 %v891_v35, 0.0  ;;  %v1148_v44 = vmax.f32 %v892_v36, 0.0 }
  0x7b   :  { %v1149_v33 = vmax.f32 %v893_v37, 0.0  ;;  %v1150_v48 = vmax.f32 %v894_v38, 0.0  ;;  %v895_v49 = vadd.f32 %v2669_v15, %v636_v41  ;;  %v896_v50 = vadd.f32 %v2669_v15, %v637_v47  ;;  %v2403_v37 = vld [vmem:[%s4574_s0 + $0x170] sm:$0xff]  }
  0x7c   :  { %1658 = vst.msk [vmem:[%s4577_s5 + $0x120] sm:$0xf] %vm1585_vm3, %v1401_v57  ;;  %v1402_v53 = vpack.c.bf16 %v1146_v62, %v1146_v62  ;;  %v1403_v54 = vpack.c.bf16 %v1147_v27, %v1147_v27  ;;  %v1404_v3 = vpack.c.bf16 %v1148_v44, %v1148_v44  ;;  %v2008_v2 = vunpack.c.l.bf16 %v2397_v52 }
  0x7d   :  { %v1405_v8 = vpack.c.bf16 %v1149_v33, %v1149_v33  ;;  %v1406_v9 = vpack.c.bf16 %v1150_v48, %v1150_v48  ;;  %v1151_v10 = vmax.f32 %v895_v49, 0.0  ;;  %v1152_v11 = vmax.f32 %v896_v50, 0.0  ;;  %v2404_v33 = vld [vmem:[%s4574_s0 + $0x178] sm:$0xff]  }
  0x7e   :  { %1659 = vst.msk [vmem:[%s4577_s5 + $0x124] sm:$0xf] %vm1585_vm3, %v1402_v53  ;;  %v638_v12 = vmul.f32 %v2008_v2, %v2649_v63  ;;  %v2009_v55 = vunpack.c.h.bf16 %v2397_v52  ;;  %v2012_v13 = vunpack.c.l.bf16 %v2398_v39  ;;  %v2013_v40 = vunpack.c.h.bf16 %v2398_v39 }
  0x7f   :  { %1660 = vst.msk [vmem:[%s4577_s5 + $0x128] sm:$0xf] %vm1585_vm3, %v1403_v54  ;;  %v1407_v14 = vpack.c.bf16 %v1151_v10, %v1151_v10  ;;  %v1408_v16 = vpack.c.bf16 %v1152_v11, %v1152_v11  ;;  %v2016_v23 = vunpack.c.l.bf16 %v2399_v7  ;;  %v2017_v24 = vunpack.c.h.bf16 %v2399_v7 }
  0x80   :  { %1661 = vst.msk [vmem:[%s4577_s5 + $0x12c] sm:$0xf] %vm1585_vm3, %v1404_v3  ;;  %v897_v25 = vadd.f32 %v2669_v15, %v638_v12  ;;  %v639_v28 = vmul.f32 %v2009_v55, %v2649_v63  ;;  %v640_v20 = vmul.f32 %v2012_v13, %v2649_v63  ;;  %v641_v17 = vmul.f32 %v2013_v40, %v2649_v63 }
  0x81   :  { %1662 = vst.msk [vmem:[%s4577_s5 + $0x130] sm:$0xf] %vm1585_vm3, %v1405_v8  ;;  %v642_v18 = vmul.f32 %v2016_v23, %v2649_v63  ;;  %v643_v19 = vmul.f32 %v2017_v24, %v2649_v63  ;;  %v2020_v29 = vunpack.c.l.bf16 %v2400_v58  ;;  %v2021_v21 = vunpack.c.h.bf16 %v2400_v58  ;;  %v2405_v23 = vld [vmem:[%s4574_s0 + $0x180] sm:$0xff]  }
  0x82   :  { %1663 = vst.msk [vmem:[%s4577_s5 + $0x134] sm:$0xf] %vm1585_vm3, %v1406_v9  ;;  %v1153_v42 = vmax.f32 %v897_v25, 0.0  ;;  %v898_v45 = vadd.f32 %v2669_v15, %v639_v28  ;;  %v899_v59 = vadd.f32 %v2669_v15, %v640_v20  ;;  %v900_v46 = vadd.f32 %v2669_v15, %v641_v17 }
  0x83   :  { %1664 = vst.msk [vmem:[%s4577_s5 + $0x138] sm:$0xf] %vm1585_vm3, %v1407_v14  ;;  %v901_v60 = vadd.f32 %v2669_v15, %v642_v18  ;;  %v902_v61 = vadd.f32 %v2669_v15, %v643_v19  ;;  %v644_v0 = vmul.f32 %v2020_v29, %v2649_v63  ;;  %v645_v51 = vmul.f32 %v2021_v21, %v2649_v63  ;;  %v2406_v21 = vld [vmem:[%s4574_s0 + $0x188] sm:$0xff]  }
  0x84   :  { %1665 = vst.msk [vmem:[%s4577_s5 + $0x13c] sm:$0xf] %vm1585_vm3, %v1408_v16  ;;  %v1409_v4 = vpack.c.bf16 %v1153_v42, %v1153_v42  ;;  %v1154_v22 = vmax.f32 %v898_v45, 0.0  ;;  %v1155_v26 = vmax.f32 %v899_v59, 0.0  ;;  %v1156_v43 = vmax.f32 %v900_v46, 0.0 }
  0x85   :  { %v1157_v30 = vmax.f32 %v901_v60, 0.0  ;;  %v1158_v31 = vmax.f32 %v902_v61, 0.0  ;;  %v903_v32 = vadd.f32 %v2669_v15, %v644_v0  ;;  %v904_v5 = vadd.f32 %v2669_v15, %v645_v51  ;;  %v2407_v60 = vld [vmem:[%s4574_s0 + $0x190] sm:$0xff]  }
  0x86   :  { %1666 = vst.msk [vmem:[%s4577_s5 + $0x140] sm:$0xf] %vm1585_vm3, %v1409_v4  ;;  %v1410_v56 = vpack.c.bf16 %v1154_v22, %v1154_v22  ;;  %v1411_v6 = vpack.c.bf16 %v1155_v26, %v1155_v26  ;;  %v1412_v35 = vpack.c.bf16 %v1156_v43, %v1156_v43  ;;  %v2024_v36 = vunpack.c.l.bf16 %v2401_v1 }
  0x87   :  { %v1413_v38 = vpack.c.bf16 %v1157_v30, %v1157_v30  ;;  %v1414_v41 = vpack.c.bf16 %v1158_v31, %v1158_v31  ;;  %v1159_v47 = vmax.f32 %v903_v32, 0.0  ;;  %v1160_v52 = vmax.f32 %v904_v5, 0.0  ;;  %v2408_v30 = vld [vmem:[%s4574_s0 + $0x198] sm:$0xff]  }
  0x88   :  { %1667 = vst.msk [vmem:[%s4577_s5 + $0x144] sm:$0xf] %vm1585_vm3, %v1410_v56  ;;  %v646_v57 = vmul.f32 %v2024_v36, %v2649_v63  ;;  %v2025_v62 = vunpack.c.h.bf16 %v2401_v1  ;;  %v2028_v27 = vunpack.c.l.bf16 %v2402_v34  ;;  %v2029_v44 = vunpack.c.h.bf16 %v2402_v34 }
  0x89   :  { %1668 = vst.msk [vmem:[%s4577_s5 + $0x148] sm:$0xf] %vm1585_vm3, %v1411_v6  ;;  %v1415_v48 = vpack.c.bf16 %v1159_v47, %v1159_v47  ;;  %v1416_v49 = vpack.c.bf16 %v1160_v52, %v1160_v52  ;;  %v2032_v50 = vunpack.c.l.bf16 %v2403_v37  ;;  %v2033_v39 = vunpack.c.h.bf16 %v2403_v37 }
  0x8a   :  { %1669 = vst.msk [vmem:[%s4577_s5 + $0x14c] sm:$0xf] %vm1585_vm3, %v1412_v35  ;;  %v905_v53 = vadd.f32 %v2669_v15, %v646_v57  ;;  %v647_v54 = vmul.f32 %v2025_v62, %v2649_v63  ;;  %v648_v3 = vmul.f32 %v2028_v27, %v2649_v63  ;;  %v649_v2 = vmul.f32 %v2029_v44, %v2649_v63 }
  0x8b   :  { %1670 = vst.msk [vmem:[%s4577_s5 + $0x150] sm:$0xf] %vm1585_vm3, %v1413_v38  ;;  %v650_v7 = vmul.f32 %v2032_v50, %v2649_v63  ;;  %v651_v8 = vmul.f32 %v2033_v39, %v2649_v63  ;;  %v2036_v9 = vunpack.c.l.bf16 %v2404_v33  ;;  %v2037_v10 = vunpack.c.h.bf16 %v2404_v33  ;;  %v2409_v50 = vld [vmem:[%s4574_s0 + $0x1a0] sm:$0xff]  }
  0x8c   :  { %1671 = vst.msk [vmem:[%s4577_s5 + $0x154] sm:$0xf] %vm1585_vm3, %v1414_v41  ;;  %v1161_v11 = vmax.f32 %v905_v53, 0.0  ;;  %v906_v12 = vadd.f32 %v2669_v15, %v647_v54  ;;  %v907_v55 = vadd.f32 %v2669_v15, %v648_v3  ;;  %v908_v13 = vadd.f32 %v2669_v15, %v649_v2 }
  0x8d   :  { %1672 = vst.msk [vmem:[%s4577_s5 + $0x158] sm:$0xf] %vm1585_vm3, %v1415_v48  ;;  %v909_v40 = vadd.f32 %v2669_v15, %v650_v7  ;;  %v910_v58 = vadd.f32 %v2669_v15, %v651_v8  ;;  %v652_v14 = vmul.f32 %v2036_v9, %v2649_v63  ;;  %v653_v16 = vmul.f32 %v2037_v10, %v2649_v63  ;;  %v2410_v10 = vld [vmem:[%s4574_s0 + $0x1a8] sm:$0xff]  }
  0x8e   :  { %1673 = vst.msk [vmem:[%s4577_s5 + $0x15c] sm:$0xf] %vm1585_vm3, %v1416_v49  ;;  %v1417_v24 = vpack.c.bf16 %v1161_v11, %v1161_v11  ;;  %v1162_v25 = vmax.f32 %v906_v12, 0.0  ;;  %v1163_v28 = vmax.f32 %v907_v55, 0.0  ;;  %v1164_v20 = vmax.f32 %v908_v13, 0.0 }
  0x8f   :  { %v1165_v17 = vmax.f32 %v909_v40, 0.0  ;;  %v1166_v18 = vmax.f32 %v910_v58, 0.0  ;;  %v911_v19 = vadd.f32 %v2669_v15, %v652_v14  ;;  %v912_v29 = vadd.f32 %v2669_v15, %v653_v16  ;;  %v2411_v40 = vld [vmem:[%s4574_s0 + $0x1b0] sm:$0xff]  }
  0x90   :  { %1674 = vst.msk [vmem:[%s4577_s5 + $0x160] sm:$0xf] %vm1585_vm3, %v1417_v24  ;;  %v1418_v42 = vpack.c.bf16 %v1162_v25, %v1162_v25  ;;  %v1419_v45 = vpack.c.bf16 %v1163_v28, %v1163_v28  ;;  %v1420_v59 = vpack.c.bf16 %v1164_v20, %v1164_v20  ;;  %v2040_v46 = vunpack.c.l.bf16 %v2405_v23 }
  0x91   :  { %v1421_v61 = vpack.c.bf16 %v1165_v17, %v1165_v17  ;;  %v1422_v0 = vpack.c.bf16 %v1166_v18, %v1166_v18  ;;  %v1167_v51 = vmax.f32 %v911_v19, 0.0  ;;  %v1168_v1 = vmax.f32 %v912_v29, 0.0  ;;  %v2412_v17 = vld [vmem:[%s4574_s0 + $0x1b8] sm:$0xff]  }
  0x92   :  { %1675 = vst.msk [vmem:[%s4577_s5 + $0x164] sm:$0xf] %vm1585_vm3, %v1418_v42  ;;  %v654_v4 = vmul.f32 %v2040_v46, %v2649_v63  ;;  %v2041_v22 = vunpack.c.h.bf16 %v2405_v23  ;;  %v2044_v26 = vunpack.c.l.bf16 %v2406_v21  ;;  %v2045_v43 = vunpack.c.h.bf16 %v2406_v21 }
  0x93   :  { %1676 = vst.msk [vmem:[%s4577_s5 + $0x168] sm:$0xf] %vm1585_vm3, %v1419_v45  ;;  %v1423_v31 = vpack.c.bf16 %v1167_v51, %v1167_v51  ;;  %v1424_v32 = vpack.c.bf16 %v1168_v1, %v1168_v1  ;;  %v2048_v5 = vunpack.c.l.bf16 %v2407_v60  ;;  %v2049_v34 = vunpack.c.h.bf16 %v2407_v60 }
  0x94   :  { %1677 = vst.msk [vmem:[%s4577_s5 + $0x16c] sm:$0xf] %vm1585_vm3, %v1420_v59  ;;  %v913_v56 = vadd.f32 %v2669_v15, %v654_v4  ;;  %v655_v6 = vmul.f32 %v2041_v22, %v2649_v63  ;;  %v656_v35 = vmul.f32 %v2044_v26, %v2649_v63  ;;  %v657_v36 = vmul.f32 %v2045_v43, %v2649_v63 }
  0x95   :  { %1678 = vst.msk [vmem:[%s4577_s5 + $0x170] sm:$0xf] %vm1585_vm3, %v1421_v61  ;;  %v658_v37 = vmul.f32 %v2048_v5, %v2649_v63  ;;  %v659_v38 = vmul.f32 %v2049_v34, %v2649_v63  ;;  %v2052_v41 = vunpack.c.l.bf16 %v2408_v30  ;;  %v2053_v47 = vunpack.c.h.bf16 %v2408_v30  ;;  %v2413_v5 = vld [vmem:[%s4574_s0 + $0x1c0] sm:$0xff]  }
  0x96   :  { %1679 = vst.msk [vmem:[%s4577_s5 + $0x174] sm:$0xf] %vm1585_vm3, %v1422_v0  ;;  %v1169_v52 = vmax.f32 %v913_v56, 0.0  ;;  %v914_v57 = vadd.f32 %v2669_v15, %v655_v6  ;;  %v915_v62 = vadd.f32 %v2669_v15, %v656_v35  ;;  %v916_v27 = vadd.f32 %v2669_v15, %v657_v36 }
  0x97   :  { %1680 = vst.msk [vmem:[%s4577_s5 + $0x178] sm:$0xf] %vm1585_vm3, %v1423_v31  ;;  %v917_v44 = vadd.f32 %v2669_v15, %v658_v37  ;;  %v918_v33 = vadd.f32 %v2669_v15, %v659_v38  ;;  %v660_v48 = vmul.f32 %v2052_v41, %v2649_v63  ;;  %v661_v49 = vmul.f32 %v2053_v47, %v2649_v63  ;;  %v2414_v47 = vld [vmem:[%s4574_s0 + $0x1c8] sm:$0xff]  }
  0x98   :  { %1681 = vst.msk [vmem:[%s4577_s5 + $0x17c] sm:$0xf] %vm1585_vm3, %v1424_v32  ;;  %v1425_v39 = vpack.c.bf16 %v1169_v52, %v1169_v52  ;;  %v1170_v53 = vmax.f32 %v914_v57, 0.0  ;;  %v1171_v54 = vmax.f32 %v915_v62, 0.0  ;;  %v1172_v3 = vmax.f32 %v916_v27, 0.0 }
  0x99   :  { %v1173_v2 = vmax.f32 %v917_v44, 0.0  ;;  %v1174_v7 = vmax.f32 %v918_v33, 0.0  ;;  %v919_v8 = vadd.f32 %v2669_v15, %v660_v48  ;;  %v920_v9 = vadd.f32 %v2669_v15, %v661_v49  ;;  %v2415_v44 = vld [vmem:[%s4574_s0 + $0x1d0] sm:$0xff]  }
  0x9a   :  { %1682 = vst.msk [vmem:[%s4577_s5 + $0x180] sm:$0xf] %vm1585_vm3, %v1425_v39  ;;  %v1426_v11 = vpack.c.bf16 %v1170_v53, %v1170_v53  ;;  %v1427_v12 = vpack.c.bf16 %v1171_v54, %v1171_v54  ;;  %v1428_v55 = vpack.c.bf16 %v1172_v3, %v1172_v3  ;;  %v2056_v13 = vunpack.c.l.bf16 %v2409_v50 }
  0x9b   :  { %v1429_v58 = vpack.c.bf16 %v1173_v2, %v1173_v2  ;;  %v1430_v14 = vpack.c.bf16 %v1174_v7, %v1174_v7  ;;  %v1175_v16 = vmax.f32 %v919_v8, 0.0  ;;  %v1176_v23 = vmax.f32 %v920_v9, 0.0  ;;  %v2416_v2 = vld [vmem:[%s4574_s0 + $0x1d8] sm:$0xff]  }
  0x9c   :  { %1683 = vst.msk [vmem:[%s4577_s5 + $0x184] sm:$0xf] %vm1585_vm3, %v1426_v11  ;;  %v662_v24 = vmul.f32 %v2056_v13, %v2649_v63  ;;  %v2057_v25 = vunpack.c.h.bf16 %v2409_v50  ;;  %v2060_v28 = vunpack.c.l.bf16 %v2410_v10  ;;  %v2061_v20 = vunpack.c.h.bf16 %v2410_v10 }
  0x9d   :  { %1684 = vst.msk [vmem:[%s4577_s5 + $0x188] sm:$0xf] %vm1585_vm3, %v1427_v12  ;;  %v1431_v18 = vpack.c.bf16 %v1175_v16, %v1175_v16  ;;  %v1432_v19 = vpack.c.bf16 %v1176_v23, %v1176_v23  ;;  %v2064_v29 = vunpack.c.l.bf16 %v2411_v40  ;;  %v2065_v21 = vunpack.c.h.bf16 %v2411_v40 }
  0x9e   :  { %1685 = vst.msk [vmem:[%s4577_s5 + $0x18c] sm:$0xf] %vm1585_vm3, %v1428_v55  ;;  %v921_v42 = vadd.f32 %v2669_v15, %v662_v24  ;;  %v663_v45 = vmul.f32 %v2057_v25, %v2649_v63  ;;  %v664_v59 = vmul.f32 %v2060_v28, %v2649_v63  ;;  %v665_v46 = vmul.f32 %v2061_v20, %v2649_v63 }
  0x9f   :  { %1686 = vst.msk [vmem:[%s4577_s5 + $0x190] sm:$0xf] %vm1585_vm3, %v1429_v58  ;;  %v666_v60 = vmul.f32 %v2064_v29, %v2649_v63  ;;  %v667_v61 = vmul.f32 %v2065_v21, %v2649_v63  ;;  %v2068_v0 = vunpack.c.l.bf16 %v2412_v17  ;;  %v2069_v51 = vunpack.c.h.bf16 %v2412_v17  ;;  %v2417_v29 = vld [vmem:[%s4574_s0 + $0x1e0] sm:$0xff]  }
  0xa0   :  { %1687 = vst.msk [vmem:[%s4577_s5 + $0x194] sm:$0xf] %vm1585_vm3, %v1430_v14  ;;  %v1177_v1 = vmax.f32 %v921_v42, 0.0  ;;  %v922_v4 = vadd.f32 %v2669_v15, %v663_v45  ;;  %v923_v22 = vadd.f32 %v2669_v15, %v664_v59  ;;  %v924_v26 = vadd.f32 %v2669_v15, %v665_v46 }
  0xa1   :  { %1688 = vst.msk [vmem:[%s4577_s5 + $0x198] sm:$0xf] %vm1585_vm3, %v1431_v18  ;;  %v925_v43 = vadd.f32 %v2669_v15, %v666_v60  ;;  %v926_v30 = vadd.f32 %v2669_v15, %v667_v61  ;;  %v668_v31 = vmul.f32 %v2068_v0, %v2649_v63  ;;  %v669_v32 = vmul.f32 %v2069_v51, %v2649_v63  ;;  %v2418_v51 = vld [vmem:[%s4574_s0 + $0x1e8] sm:$0xff]  }
  0xa2   :  { %1689 = vst.msk [vmem:[%s4577_s5 + $0x19c] sm:$0xf] %vm1585_vm3, %v1432_v19  ;;  %v1433_v34 = vpack.c.bf16 %v1177_v1, %v1177_v1  ;;  %v1178_v56 = vmax.f32 %v922_v4, 0.0  ;;  %v1179_v6 = vmax.f32 %v923_v22, 0.0  ;;  %v1180_v35 = vmax.f32 %v924_v26, 0.0 }
  0xa3   :  { %v1181_v36 = vmax.f32 %v925_v43, 0.0  ;;  %v1182_v37 = vmax.f32 %v926_v30, 0.0  ;;  %v927_v38 = vadd.f32 %v2669_v15, %v668_v31  ;;  %v928_v41 = vadd.f32 %v2669_v15, %v669_v32  ;;  %v2419_v43 = vld [vmem:[%s4574_s0 + $0x1f0] sm:$0xff]  }
  0xa4   :  { %1690 = vst.msk [vmem:[%s4577_s5 + $0x1a0] sm:$0xf] %vm1585_vm3, %v1433_v34  ;;  %v1434_v52 = vpack.c.bf16 %v1178_v56, %v1178_v56  ;;  %v1435_v57 = vpack.c.bf16 %v1179_v6, %v1179_v6  ;;  %v1436_v62 = vpack.c.bf16 %v1180_v35, %v1180_v35  ;;  %v2072_v27 = vunpack.c.l.bf16 %v2413_v5 }
  0xa5   :  { %v1437_v33 = vpack.c.bf16 %v1181_v36, %v1181_v36  ;;  %v1438_v48 = vpack.c.bf16 %v1182_v37, %v1182_v37  ;;  %v1183_v49 = vmax.f32 %v927_v38, 0.0  ;;  %v1184_v50 = vmax.f32 %v928_v41, 0.0  ;;  %v2420_v36 = vld [vmem:[%s4574_s0 + $0x1f8] sm:$0xff]  }
  0xa6   :  { %1691 = vst.msk [vmem:[%s4577_s5 + $0x1a4] sm:$0xf] %vm1585_vm3, %v1434_v52  ;;  %v670_v39 = vmul.f32 %v2072_v27, %v2649_v63  ;;  %v2073_v53 = vunpack.c.h.bf16 %v2413_v5  ;;  %v2076_v54 = vunpack.c.l.bf16 %v2414_v47  ;;  %v2077_v3 = vunpack.c.h.bf16 %v2414_v47 }
  0xa7   :  { %1692 = vst.msk [vmem:[%s4577_s5 + $0x1a8] sm:$0xf] %vm1585_vm3, %v1435_v57  ;;  %v1439_v7 = vpack.c.bf16 %v1183_v49, %v1183_v49  ;;  %v1440_v8 = vpack.c.bf16 %v1184_v50, %v1184_v50  ;;  %v2080_v9 = vunpack.c.l.bf16 %v2415_v44  ;;  %v2081_v10 = vunpack.c.h.bf16 %v2415_v44 }
  0xa8   :  { %1693 = vst.msk [vmem:[%s4577_s5 + $0x1ac] sm:$0xf] %vm1585_vm3, %v1436_v62  ;;  %v929_v11 = vadd.f32 %v2669_v15, %v670_v39  ;;  %v671_v12 = vmul.f32 %v2073_v53, %v2649_v63  ;;  %v672_v55 = vmul.f32 %v2076_v54, %v2649_v63  ;;  %v673_v13 = vmul.f32 %v2077_v3, %v2649_v63 }
  0xa9   :  { %1694 = vst.msk [vmem:[%s4577_s5 + $0x1b0] sm:$0xf] %vm1585_vm3, %v1437_v33  ;;  %v674_v40 = vmul.f32 %v2080_v9, %v2649_v63  ;;  %v675_v58 = vmul.f32 %v2081_v10, %v2649_v63  ;;  %v2084_v14 = vunpack.c.l.bf16 %v2416_v2  ;;  %v2085_v16 = vunpack.c.h.bf16 %v2416_v2  ;;  %v2421_v9 = vld [vmem:[%s4574_s0 + $0x200] sm:$0xff]  }
  0xaa   :  { %1695 = vst.msk [vmem:[%s4577_s5 + $0x1b4] sm:$0xf] %vm1585_vm3, %v1438_v48  ;;  %v1185_v23 = vmax.f32 %v929_v11, 0.0  ;;  %v930_v24 = vadd.f32 %v2669_v15, %v671_v12  ;;  %v931_v25 = vadd.f32 %v2669_v15, %v672_v55  ;;  %v932_v28 = vadd.f32 %v2669_v15, %v673_v13 }
  0xab   :  { %1696 = vst.msk [vmem:[%s4577_s5 + $0x1b8] sm:$0xf] %vm1585_vm3, %v1439_v7  ;;  %v933_v20 = vadd.f32 %v2669_v15, %v674_v40  ;;  %v934_v17 = vadd.f32 %v2669_v15, %v675_v58  ;;  %v676_v18 = vmul.f32 %v2084_v14, %v2649_v63  ;;  %v677_v19 = vmul.f32 %v2085_v16, %v2649_v63  ;;  %v2422_v16 = vld [vmem:[%s4574_s0 + $0x208] sm:$0xff]  }
  0xac   :  { %1697 = vst.msk [vmem:[%s4577_s5 + $0x1bc] sm:$0xf] %vm1585_vm3, %v1440_v8  ;;  %v1441_v21 = vpack.c.bf16 %v1185_v23, %v1185_v23  ;;  %v1186_v42 = vmax.f32 %v930_v24, 0.0  ;;  %v1187_v45 = vmax.f32 %v931_v25, 0.0  ;;  %v1188_v59 = vmax.f32 %v932_v28, 0.0 }
  0xad   :  { %v1189_v46 = vmax.f32 %v933_v20, 0.0  ;;  %v1190_v60 = vmax.f32 %v934_v17, 0.0  ;;  %v935_v61 = vadd.f32 %v2669_v15, %v676_v18  ;;  %v936_v0 = vadd.f32 %v2669_v15, %v677_v19  ;;  %v2423_v20 = vld [vmem:[%s4574_s0 + $0x210] sm:$0xff]  }
  0xae   :  { %1698 = vst.msk [vmem:[%s4577_s5 + $0x1c0] sm:$0xf] %vm1585_vm3, %v1441_v21  ;;  %v1442_v1 = vpack.c.bf16 %v1186_v42, %v1186_v42  ;;  %v1443_v4 = vpack.c.bf16 %v1187_v45, %v1187_v45  ;;  %v1444_v22 = vpack.c.bf16 %v1188_v59, %v1188_v59  ;;  %v2088_v26 = vunpack.c.l.bf16 %v2417_v29 }
  0xaf   :  { %v1445_v30 = vpack.c.bf16 %v1189_v46, %v1189_v46  ;;  %v1446_v31 = vpack.c.bf16 %v1190_v60, %v1190_v60  ;;  %v1191_v32 = vmax.f32 %v935_v61, 0.0  ;;  %v1192_v5 = vmax.f32 %v936_v0, 0.0  ;;  %v2424_v46 = vld [vmem:[%s4574_s0 + $0x218] sm:$0xff]  }
  0xb0   :  { %1699 = vst.msk [vmem:[%s4577_s5 + $0x1c4] sm:$0xf] %vm1585_vm3, %v1442_v1  ;;  %v678_v34 = vmul.f32 %v2088_v26, %v2649_v63  ;;  %v2089_v56 = vunpack.c.h.bf16 %v2417_v29  ;;  %v2092_v6 = vunpack.c.l.bf16 %v2418_v51  ;;  %v2093_v35 = vunpack.c.h.bf16 %v2418_v51 }
  0xb1   :  { %1700 = vst.msk [vmem:[%s4577_s5 + $0x1c8] sm:$0xf] %vm1585_vm3, %v1443_v4  ;;  %v1447_v37 = vpack.c.bf16 %v1191_v32, %v1191_v32  ;;  %v1448_v38 = vpack.c.bf16 %v1192_v5, %v1192_v5  ;;  %v2096_v41 = vunpack.c.l.bf16 %v2419_v43  ;;  %v2097_v47 = vunpack.c.h.bf16 %v2419_v43 }
  0xb2   :  { %1701 = vst.msk [vmem:[%s4577_s5 + $0x1cc] sm:$0xf] %vm1585_vm3, %v1444_v22  ;;  %v937_v52 = vadd.f32 %v2669_v15, %v678_v34  ;;  %v679_v57 = vmul.f32 %v2089_v56, %v2649_v63  ;;  %v680_v62 = vmul.f32 %v2092_v6, %v2649_v63  ;;  %v681_v27 = vmul.f32 %v2093_v35, %v2649_v63 }
  0xb3   :  { %1702 = vst.msk [vmem:[%s4577_s5 + $0x1d0] sm:$0xf] %vm1585_vm3, %v1445_v30  ;;  %v682_v44 = vmul.f32 %v2096_v41, %v2649_v63  ;;  %v683_v33 = vmul.f32 %v2097_v47, %v2649_v63  ;;  %v2100_v48 = vunpack.c.l.bf16 %v2420_v36  ;;  %v2101_v49 = vunpack.c.h.bf16 %v2420_v36  ;;  %v2425_v41 = vld [vmem:[%s4574_s0 + $0x220] sm:$0xff]  }
  0xb4   :  { %1703 = vst.msk [vmem:[%s4577_s5 + $0x1d4] sm:$0xf] %vm1585_vm3, %v1446_v31  ;;  %v1193_v50 = vmax.f32 %v937_v52, 0.0  ;;  %v938_v39 = vadd.f32 %v2669_v15, %v679_v57  ;;  %v939_v53 = vadd.f32 %v2669_v15, %v680_v62  ;;  %v940_v54 = vadd.f32 %v2669_v15, %v681_v27 }
  0xb5   :  { %1704 = vst.msk [vmem:[%s4577_s5 + $0x1d8] sm:$0xf] %vm1585_vm3, %v1447_v37  ;;  %v941_v3 = vadd.f32 %v2669_v15, %v682_v44  ;;  %v942_v2 = vadd.f32 %v2669_v15, %v683_v33  ;;  %v684_v7 = vmul.f32 %v2100_v48, %v2649_v63  ;;  %v685_v8 = vmul.f32 %v2101_v49, %v2649_v63  ;;  %v2426_v49 = vld [vmem:[%s4574_s0 + $0x228] sm:$0xff]  }
  0xb6   :  { %1705 = vst.msk [vmem:[%s4577_s5 + $0x1dc] sm:$0xf] %vm1585_vm3, %v1448_v38  ;;  %v1449_v10 = vpack.c.bf16 %v1193_v50, %v1193_v50  ;;  %v1194_v11 = vmax.f32 %v938_v39, 0.0  ;;  %v1195_v12 = vmax.f32 %v939_v53, 0.0  ;;  %v1196_v55 = vmax.f32 %v940_v54, 0.0 }
  0xb7   :  { %v1197_v13 = vmax.f32 %v941_v3, 0.0  ;;  %v1198_v40 = vmax.f32 %v942_v2, 0.0  ;;  %v943_v58 = vadd.f32 %v2669_v15, %v684_v7  ;;  %v944_v14 = vadd.f32 %v2669_v15, %v685_v8  ;;  %v2427_v3 = vld [vmem:[%s4574_s0 + $0x230] sm:$0xff]  }
  0xb8   :  { %1706 = vst.msk [vmem:[%s4577_s5 + $0x1e0] sm:$0xf] %vm1585_vm3, %v1449_v10  ;;  %v1450_v23 = vpack.c.bf16 %v1194_v11, %v1194_v11  ;;  %v1451_v24 = vpack.c.bf16 %v1195_v12, %v1195_v12  ;;  %v1452_v25 = vpack.c.bf16 %v1196_v55, %v1196_v55  ;;  %v2104_v28 = vunpack.c.l.bf16 %v2421_v9 }
  0xb9   :  { %v1453_v17 = vpack.c.bf16 %v1197_v13, %v1197_v13  ;;  %v1454_v18 = vpack.c.bf16 %v1198_v40, %v1198_v40  ;;  %v1199_v19 = vmax.f32 %v943_v58, 0.0  ;;  %v1200_v29 = vmax.f32 %v944_v14, 0.0  ;;  %v2428_v13 = vld [vmem:[%s4574_s0 + $0x238] sm:$0xff]  }
  0xba   :  { %1707 = vst.msk [vmem:[%s4577_s5 + $0x1e4] sm:$0xf] %vm1585_vm3, %v1450_v23  ;;  %v686_v21 = vmul.f32 %v2104_v28, %v2649_v63  ;;  %v2105_v42 = vunpack.c.h.bf16 %v2421_v9  ;;  %v2108_v45 = vunpack.c.l.bf16 %v2422_v16  ;;  %v2109_v59 = vunpack.c.h.bf16 %v2422_v16 }
  0xbb   :  { %1708 = vst.msk [vmem:[%s4577_s5 + $0x1e8] sm:$0xf] %vm1585_vm3, %v1451_v24  ;;  %v1455_v60 = vpack.c.bf16 %v1199_v19, %v1199_v19  ;;  %v1456_v61 = vpack.c.bf16 %v1200_v29, %v1200_v29  ;;  %v2112_v0 = vunpack.c.l.bf16 %v2423_v20  ;;  %v2113_v51 = vunpack.c.h.bf16 %v2423_v20 }
  0xbc   :  { %1709 = vst.msk [vmem:[%s4577_s5 + $0x1ec] sm:$0xf] %vm1585_vm3, %v1452_v25  ;;  %v945_v1 = vadd.f32 %v2669_v15, %v686_v21  ;;  %v687_v4 = vmul.f32 %v2105_v42, %v2649_v63  ;;  %v688_v22 = vmul.f32 %v2108_v45, %v2649_v63  ;;  %v689_v26 = vmul.f32 %v2109_v59, %v2649_v63 }
  0xbd   :  { %1710 = vst.msk [vmem:[%s4577_s5 + $0x1f0] sm:$0xf] %vm1585_vm3, %v1453_v17  ;;  %v690_v43 = vmul.f32 %v2112_v0, %v2649_v63  ;;  %v691_v30 = vmul.f32 %v2113_v51, %v2649_v63  ;;  %v2116_v31 = vunpack.c.l.bf16 %v2424_v46  ;;  %v2117_v32 = vunpack.c.h.bf16 %v2424_v46  ;;  %v2429_v0 = vld [vmem:[%s4574_s0 + $0x240] sm:$0xff]  }
  0xbe   :  { %1711 = vst.msk [vmem:[%s4577_s5 + $0x1f4] sm:$0xf] %vm1585_vm3, %v1454_v18  ;;  %v1201_v5 = vmax.f32 %v945_v1, 0.0  ;;  %v946_v34 = vadd.f32 %v2669_v15, %v687_v4  ;;  %v947_v56 = vadd.f32 %v2669_v15, %v688_v22  ;;  %v948_v6 = vadd.f32 %v2669_v15, %v689_v26 }
  0xbf   :  { %1712 = vst.msk [vmem:[%s4577_s5 + $0x1f8] sm:$0xf] %vm1585_vm3, %v1455_v60  ;;  %v949_v35 = vadd.f32 %v2669_v15, %v690_v43  ;;  %v950_v36 = vadd.f32 %v2669_v15, %v691_v30  ;;  %v692_v37 = vmul.f32 %v2116_v31, %v2649_v63  ;;  %v693_v38 = vmul.f32 %v2117_v32, %v2649_v63  ;;  %v2430_v32 = vld [vmem:[%s4574_s0 + $0x248] sm:$0xff]  }
  0xc0   :  { %1713 = vst.msk [vmem:[%s4577_s5 + $0x1fc] sm:$0xf] %vm1585_vm3, %v1456_v61  ;;  %v1457_v47 = vpack.c.bf16 %v1201_v5, %v1201_v5  ;;  %v1202_v52 = vmax.f32 %v946_v34, 0.0  ;;  %v1203_v57 = vmax.f32 %v947_v56, 0.0  ;;  %v1204_v62 = vmax.f32 %v948_v6, 0.0 }
  0xc1   :  { %v1205_v27 = vmax.f32 %v949_v35, 0.0  ;;  %v1206_v44 = vmax.f32 %v950_v36, 0.0  ;;  %v951_v33 = vadd.f32 %v2669_v15, %v692_v37  ;;  %v952_v48 = vadd.f32 %v2669_v15, %v693_v38  ;;  %v2431_v35 = vld [vmem:[%s4574_s0 + $0x250] sm:$0xff]  }
  0xc2   :  { %1714 = vst.msk [vmem:[%s4577_s5 + $0x200] sm:$0xf] %vm1585_vm3, %v1457_v47  ;;  %v1458_v50 = vpack.c.bf16 %v1202_v52, %v1202_v52  ;;  %v1459_v39 = vpack.c.bf16 %v1203_v57, %v1203_v57  ;;  %v1460_v53 = vpack.c.bf16 %v1204_v62, %v1204_v62  ;;  %v2120_v54 = vunpack.c.l.bf16 %v2425_v41 }
  0xc3   :  { %v1461_v2 = vpack.c.bf16 %v1205_v27, %v1205_v27  ;;  %v1462_v7 = vpack.c.bf16 %v1206_v44, %v1206_v44  ;;  %v1207_v8 = vmax.f32 %v951_v33, 0.0  ;;  %v1208_v9 = vmax.f32 %v952_v48, 0.0  ;;  %v2432_v27 = vld [vmem:[%s4574_s0 + $0x258] sm:$0xff]  }
  0xc4   :  { %1715 = vst.msk [vmem:[%s4577_s5 + $0x204] sm:$0xf] %vm1585_vm3, %v1458_v50  ;;  %v694_v10 = vmul.f32 %v2120_v54, %v2649_v63  ;;  %v2121_v11 = vunpack.c.h.bf16 %v2425_v41  ;;  %v2124_v12 = vunpack.c.l.bf16 %v2426_v49  ;;  %v2125_v55 = vunpack.c.h.bf16 %v2426_v49 }
  0xc5   :  { %1716 = vst.msk [vmem:[%s4577_s5 + $0x208] sm:$0xf] %vm1585_vm3, %v1459_v39  ;;  %v1463_v40 = vpack.c.bf16 %v1207_v8, %v1207_v8  ;;  %v1464_v58 = vpack.c.bf16 %v1208_v9, %v1208_v9  ;;  %v2128_v14 = vunpack.c.l.bf16 %v2427_v3  ;;  %v2129_v16 = vunpack.c.h.bf16 %v2427_v3 }
  0xc6   :  { %1717 = vst.msk [vmem:[%s4577_s5 + $0x20c] sm:$0xf] %vm1585_vm3, %v1460_v53  ;;  %v953_v23 = vadd.f32 %v2669_v15, %v694_v10  ;;  %v695_v24 = vmul.f32 %v2121_v11, %v2649_v63  ;;  %v696_v25 = vmul.f32 %v2124_v12, %v2649_v63  ;;  %v697_v28 = vmul.f32 %v2125_v55, %v2649_v63 }
  0xc7   :  { %1718 = vst.msk [vmem:[%s4577_s5 + $0x210] sm:$0xf] %vm1585_vm3, %v1461_v2  ;;  %v698_v20 = vmul.f32 %v2128_v14, %v2649_v63  ;;  %v699_v17 = vmul.f32 %v2129_v16, %v2649_v63  ;;  %v2132_v18 = vunpack.c.l.bf16 %v2428_v13  ;;  %v2133_v19 = vunpack.c.h.bf16 %v2428_v13  ;;  %v2433_v14 = vld [vmem:[%s4574_s0 + $0x260] sm:$0xff]  }
  0xc8   :  { %1719 = vst.msk [vmem:[%s4577_s5 + $0x214] sm:$0xf] %vm1585_vm3, %v1462_v7  ;;  %v1209_v29 = vmax.f32 %v953_v23, 0.0  ;;  %v954_v21 = vadd.f32 %v2669_v15, %v695_v24  ;;  %v955_v42 = vadd.f32 %v2669_v15, %v696_v25  ;;  %v956_v45 = vadd.f32 %v2669_v15, %v697_v28 }
  0xc9   :  { %1720 = vst.msk [vmem:[%s4577_s5 + $0x218] sm:$0xf] %vm1585_vm3, %v1463_v40  ;;  %v957_v59 = vadd.f32 %v2669_v15, %v698_v20  ;;  %v958_v46 = vadd.f32 %v2669_v15, %v699_v17  ;;  %v700_v60 = vmul.f32 %v2132_v18, %v2649_v63  ;;  %v701_v61 = vmul.f32 %v2133_v19, %v2649_v63  ;;  %v2434_v19 = vld [vmem:[%s4574_s0 + $0x268] sm:$0xff]  }
  0xca   :  { %1721 = vst.msk [vmem:[%s4577_s5 + $0x21c] sm:$0xf] %vm1585_vm3, %v1464_v58  ;;  %v1465_v51 = vpack.c.bf16 %v1209_v29, %v1209_v29  ;;  %v1210_v1 = vmax.f32 %v954_v21, 0.0  ;;  %v1211_v4 = vmax.f32 %v955_v42, 0.0  ;;  %v1212_v22 = vmax.f32 %v956_v45, 0.0 }
  0xcb   :  { %v1213_v26 = vmax.f32 %v957_v59, 0.0  ;;  %v1214_v43 = vmax.f32 %v958_v46, 0.0  ;;  %v959_v30 = vadd.f32 %v2669_v15, %v700_v60  ;;  %v960_v31 = vadd.f32 %v2669_v15, %v701_v61  ;;  %v2435_v59 = vld [vmem:[%s4574_s0 + $0x270] sm:$0xff]  }
  0xcc   :  { %1722 = vst.msk [vmem:[%s4577_s5 + $0x220] sm:$0xf] %vm1585_vm3, %v1465_v51  ;;  %v1466_v5 = vpack.c.bf16 %v1210_v1, %v1210_v1  ;;  %v1467_v34 = vpack.c.bf16 %v1211_v4, %v1211_v4  ;;  %v1468_v56 = vpack.c.bf16 %v1212_v22, %v1212_v22  ;;  %v2136_v6 = vunpack.c.l.bf16 %v2429_v0 }
  0xcd   :  { %v1469_v36 = vpack.c.bf16 %v1213_v26, %v1213_v26  ;;  %v1470_v37 = vpack.c.bf16 %v1214_v43, %v1214_v43  ;;  %v1215_v38 = vmax.f32 %v959_v30, 0.0  ;;  %v1216_v41 = vmax.f32 %v960_v31, 0.0  ;;  %v2436_v26 = vld [vmem:[%s4574_s0 + $0x278] sm:$0xff]  }
  0xce   :  { %1723 = vst.msk [vmem:[%s4577_s5 + $0x224] sm:$0xf] %vm1585_vm3, %v1466_v5  ;;  %v702_v47 = vmul.f32 %v2136_v6, %v2649_v63  ;;  %v2137_v52 = vunpack.c.h.bf16 %v2429_v0  ;;  %v2140_v57 = vunpack.c.l.bf16 %v2430_v32  ;;  %v2141_v62 = vunpack.c.h.bf16 %v2430_v32 }
  0xcf   :  { %1724 = vst.msk [vmem:[%s4577_s5 + $0x228] sm:$0xf] %vm1585_vm3, %v1467_v34  ;;  %v1471_v44 = vpack.c.bf16 %v1215_v38, %v1215_v38  ;;  %v1472_v33 = vpack.c.bf16 %v1216_v41, %v1216_v41  ;;  %v2144_v48 = vunpack.c.l.bf16 %v2431_v35  ;;  %v2145_v49 = vunpack.c.h.bf16 %v2431_v35 }
  0xd0   :  { %1725 = vst.msk [vmem:[%s4577_s5 + $0x22c] sm:$0xf] %vm1585_vm3, %v1468_v56  ;;  %v961_v50 = vadd.f32 %v2669_v15, %v702_v47  ;;  %v703_v39 = vmul.f32 %v2137_v52, %v2649_v63  ;;  %v704_v53 = vmul.f32 %v2140_v57, %v2649_v63  ;;  %v705_v54 = vmul.f32 %v2141_v62, %v2649_v63 }
  0xd1   :  { %1726 = vst.msk [vmem:[%s4577_s5 + $0x230] sm:$0xf] %vm1585_vm3, %v1469_v36  ;;  %v706_v3 = vmul.f32 %v2144_v48, %v2649_v63  ;;  %v707_v2 = vmul.f32 %v2145_v49, %v2649_v63  ;;  %v2148_v7 = vunpack.c.l.bf16 %v2432_v27  ;;  %v2149_v8 = vunpack.c.h.bf16 %v2432_v27  ;;  %v2437_v48 = vld [vmem:[%s4574_s0 + $0x280] sm:$0xff]  }
  0xd2   :  { %1727 = vst.msk [vmem:[%s4577_s5 + $0x234] sm:$0xf] %vm1585_vm3, %v1470_v37  ;;  %v1217_v9 = vmax.f32 %v961_v50, 0.0  ;;  %v962_v10 = vadd.f32 %v2669_v15, %v703_v39  ;;  %v963_v11 = vadd.f32 %v2669_v15, %v704_v53  ;;  %v964_v12 = vadd.f32 %v2669_v15, %v705_v54 }
  0xd3   :  { %1728 = vst.msk [vmem:[%s4577_s5 + $0x238] sm:$0xf] %vm1585_vm3, %v1471_v44  ;;  %v965_v55 = vadd.f32 %v2669_v15, %v706_v3  ;;  %v966_v13 = vadd.f32 %v2669_v15, %v707_v2  ;;  %v708_v40 = vmul.f32 %v2148_v7, %v2649_v63  ;;  %v709_v58 = vmul.f32 %v2149_v8, %v2649_v63  ;;  %v2438_v8 = vld [vmem:[%s4574_s0 + $0x288] sm:$0xff]  }
  0xd4   :  { %1729 = vst.msk [vmem:[%s4577_s5 + $0x23c] sm:$0xf] %vm1585_vm3, %v1472_v33  ;;  %v1473_v16 = vpack.c.bf16 %v1217_v9, %v1217_v9  ;;  %v1218_v23 = vmax.f32 %v962_v10, 0.0  ;;  %v1219_v24 = vmax.f32 %v963_v11, 0.0  ;;  %v1220_v25 = vmax.f32 %v964_v12, 0.0 }
  0xd5   :  { %v1221_v28 = vmax.f32 %v965_v55, 0.0  ;;  %v1222_v20 = vmax.f32 %v966_v13, 0.0  ;;  %v967_v17 = vadd.f32 %v2669_v15, %v708_v40  ;;  %v968_v18 = vadd.f32 %v2669_v15, %v709_v58  ;;  %v2439_v55 = vld [vmem:[%s4574_s0 + $0x290] sm:$0xff]  }
  0xd6   :  { %1730 = vst.msk [vmem:[%s4577_s5 + $0x240] sm:$0xf] %vm1585_vm3, %v1473_v16  ;;  %v1474_v29 = vpack.c.bf16 %v1218_v23, %v1218_v23  ;;  %v1475_v21 = vpack.c.bf16 %v1219_v24, %v1219_v24  ;;  %v1476_v42 = vpack.c.bf16 %v1220_v25, %v1220_v25  ;;  %v2152_v45 = vunpack.c.l.bf16 %v2433_v14 }
  0xd7   :  { %v1477_v46 = vpack.c.bf16 %v1221_v28, %v1221_v28  ;;  %v1478_v60 = vpack.c.bf16 %v1222_v20, %v1222_v20  ;;  %v1223_v61 = vmax.f32 %v967_v17, 0.0  ;;  %v1224_v0 = vmax.f32 %v968_v18, 0.0  ;;  %v2440_v28 = vld [vmem:[%s4574_s0 + $0x298] sm:$0xff]  }
  0xd8   :  { %1731 = vst.msk [vmem:[%s4577_s5 + $0x244] sm:$0xf] %vm1585_vm3, %v1474_v29  ;;  %v710_v51 = vmul.f32 %v2152_v45, %v2649_v63  ;;  %v2153_v1 = vunpack.c.h.bf16 %v2433_v14  ;;  %v2156_v4 = vunpack.c.l.bf16 %v2434_v19  ;;  %v2157_v22 = vunpack.c.h.bf16 %v2434_v19 }
  0xd9   :  { %1732 = vst.msk [vmem:[%s4577_s5 + $0x248] sm:$0xf] %vm1585_vm3, %v1475_v21  ;;  %v1479_v43 = vpack.c.bf16 %v1223_v61, %v1223_v61  ;;  %v1480_v30 = vpack.c.bf16 %v1224_v0, %v1224_v0  ;;  %v2160_v31 = vunpack.c.l.bf16 %v2435_v59  ;;  %v2161_v32 = vunpack.c.h.bf16 %v2435_v59 }
  0xda   :  { %1733 = vst.msk [vmem:[%s4577_s5 + $0x24c] sm:$0xf] %vm1585_vm3, %v1476_v42  ;;  %v969_v5 = vadd.f32 %v2669_v15, %v710_v51  ;;  %v711_v34 = vmul.f32 %v2153_v1, %v2649_v63  ;;  %v712_v56 = vmul.f32 %v2156_v4, %v2649_v63  ;;  %v713_v6 = vmul.f32 %v2157_v22, %v2649_v63 }
  0xdb   :  { %1734 = vst.msk [vmem:[%s4577_s5 + $0x250] sm:$0xf] %vm1585_vm3, %v1477_v46  ;;  %v714_v35 = vmul.f32 %v2160_v31, %v2649_v63  ;;  %v715_v36 = vmul.f32 %v2161_v32, %v2649_v63  ;;  %v2164_v37 = vunpack.c.l.bf16 %v2436_v26  ;;  %v2165_v38 = vunpack.c.h.bf16 %v2436_v26  ;;  %v2441_v31 = vld [vmem:[%s4574_s0 + $0x2a0] sm:$0xff]  }
  0xdc   :  { %1735 = vst.msk [vmem:[%s4577_s5 + $0x254] sm:$0xf] %vm1585_vm3, %v1478_v60  ;;  %v1225_v41 = vmax.f32 %v969_v5, 0.0  ;;  %v970_v47 = vadd.f32 %v2669_v15, %v711_v34  ;;  %v971_v52 = vadd.f32 %v2669_v15, %v712_v56  ;;  %v972_v57 = vadd.f32 %v2669_v15, %v713_v6 }
  0xdd   :  { %1736 = vst.msk [vmem:[%s4577_s5 + $0x258] sm:$0xf] %vm1585_vm3, %v1479_v43  ;;  %v973_v62 = vadd.f32 %v2669_v15, %v714_v35  ;;  %v974_v27 = vadd.f32 %v2669_v15, %v715_v36  ;;  %v716_v44 = vmul.f32 %v2164_v37, %v2649_v63  ;;  %v717_v33 = vmul.f32 %v2165_v38, %v2649_v63  ;;  %v2442_v38 = vld [vmem:[%s4574_s0 + $0x2a8] sm:$0xff]  }
  0xde   :  { %1737 = vst.msk [vmem:[%s4577_s5 + $0x25c] sm:$0xf] %vm1585_vm3, %v1480_v30  ;;  %v1481_v49 = vpack.c.bf16 %v1225_v41, %v1225_v41  ;;  %v1226_v50 = vmax.f32 %v970_v47, 0.0  ;;  %v1227_v39 = vmax.f32 %v971_v52, 0.0  ;;  %v1228_v53 = vmax.f32 %v972_v57, 0.0 }
  0xdf   :  { %v1229_v54 = vmax.f32 %v973_v62, 0.0  ;;  %v1230_v3 = vmax.f32 %v974_v27, 0.0  ;;  %v975_v2 = vadd.f32 %v2669_v15, %v716_v44  ;;  %v976_v7 = vadd.f32 %v2669_v15, %v717_v33  ;;  %v2443_v62 = vld [vmem:[%s4574_s0 + $0x2b0] sm:$0xff]  }
  0xe0   :  { %1738 = vst.msk [vmem:[%s4577_s5 + $0x260] sm:$0xf] %vm1585_vm3, %v1481_v49  ;;  %v1482_v9 = vpack.c.bf16 %v1226_v50, %v1226_v50  ;;  %v1483_v10 = vpack.c.bf16 %v1227_v39, %v1227_v39  ;;  %v1484_v11 = vpack.c.bf16 %v1228_v53, %v1228_v53  ;;  %v2168_v12 = vunpack.c.l.bf16 %v2437_v48 }
  0xe1   :  { %v1485_v13 = vpack.c.bf16 %v1229_v54, %v1229_v54  ;;  %v1486_v40 = vpack.c.bf16 %v1230_v3, %v1230_v3  ;;  %v1231_v58 = vmax.f32 %v975_v2, 0.0  ;;  %v1232_v14 = vmax.f32 %v976_v7, 0.0  ;;  %v2444_v54 = vld [vmem:[%s4574_s0 + $0x2b8] sm:$0xff]  }
  0xe2   :  { %1739 = vst.msk [vmem:[%s4577_s5 + $0x264] sm:$0xf] %vm1585_vm3, %v1482_v9  ;;  %v718_v16 = vmul.f32 %v2168_v12, %v2649_v63  ;;  %v2169_v23 = vunpack.c.h.bf16 %v2437_v48  ;;  %v2172_v24 = vunpack.c.l.bf16 %v2438_v8  ;;  %v2173_v25 = vunpack.c.h.bf16 %v2438_v8 }
  0xe3   :  { %1740 = vst.msk [vmem:[%s4577_s5 + $0x268] sm:$0xf] %vm1585_vm3, %v1483_v10  ;;  %v1487_v20 = vpack.c.bf16 %v1231_v58, %v1231_v58  ;;  %v1488_v17 = vpack.c.bf16 %v1232_v14, %v1232_v14  ;;  %v2176_v18 = vunpack.c.l.bf16 %v2439_v55  ;;  %v2177_v19 = vunpack.c.h.bf16 %v2439_v55 }
  0xe4   :  { %1741 = vst.msk [vmem:[%s4577_s5 + $0x26c] sm:$0xf] %vm1585_vm3, %v1484_v11  ;;  %v977_v29 = vadd.f32 %v2669_v15, %v718_v16  ;;  %v719_v21 = vmul.f32 %v2169_v23, %v2649_v63  ;;  %v720_v42 = vmul.f32 %v2172_v24, %v2649_v63  ;;  %v721_v45 = vmul.f32 %v2173_v25, %v2649_v63 }
  0xe5   :  { %1742 = vst.msk [vmem:[%s4577_s5 + $0x270] sm:$0xf] %vm1585_vm3, %v1485_v13  ;;  %v722_v59 = vmul.f32 %v2176_v18, %v2649_v63  ;;  %v723_v46 = vmul.f32 %v2177_v19, %v2649_v63  ;;  %v2180_v60 = vunpack.c.l.bf16 %v2440_v28  ;;  %v2181_v61 = vunpack.c.h.bf16 %v2440_v28  ;;  %v2445_v18 = vld [vmem:[%s4574_s0 + $0x2c0] sm:$0xff]  }
  0xe6   :  { %1743 = vst.msk [vmem:[%s4577_s5 + $0x274] sm:$0xf] %vm1585_vm3, %v1486_v40  ;;  %v1233_v0 = vmax.f32 %v977_v29, 0.0  ;;  %v978_v51 = vadd.f32 %v2669_v15, %v719_v21  ;;  %v979_v1 = vadd.f32 %v2669_v15, %v720_v42  ;;  %v980_v4 = vadd.f32 %v2669_v15, %v721_v45 }
  0xe7   :  { %1744 = vst.msk [vmem:[%s4577_s5 + $0x278] sm:$0xf] %vm1585_vm3, %v1487_v20  ;;  %v981_v22 = vadd.f32 %v2669_v15, %v722_v59  ;;  %v982_v26 = vadd.f32 %v2669_v15, %v723_v46  ;;  %v724_v43 = vmul.f32 %v2180_v60, %v2649_v63  ;;  %v725_v30 = vmul.f32 %v2181_v61, %v2649_v63  ;;  %v2446_v61 = vld [vmem:[%s4574_s0 + $0x2c8] sm:$0xff]  }
  0xe8   :  { %1745 = vst.msk [vmem:[%s4577_s5 + $0x27c] sm:$0xf] %vm1585_vm3, %v1488_v17  ;;  %v1489_v32 = vpack.c.bf16 %v1233_v0, %v1233_v0  ;;  %v1234_v5 = vmax.f32 %v978_v51, 0.0  ;;  %v1235_v34 = vmax.f32 %v979_v1, 0.0  ;;  %v1236_v56 = vmax.f32 %v980_v4, 0.0 }
  0xe9   :  { %v1237_v6 = vmax.f32 %v981_v22, 0.0  ;;  %v1238_v35 = vmax.f32 %v982_v26, 0.0  ;;  %v983_v36 = vadd.f32 %v2669_v15, %v724_v43  ;;  %v984_v37 = vadd.f32 %v2669_v15, %v725_v30  ;;  %v2447_v22 = vld [vmem:[%s4574_s0 + $0x2d0] sm:$0xff]  }
  0xea   :  { %1746 = vst.msk [vmem:[%s4577_s5 + $0x280] sm:$0xf] %vm1585_vm3, %v1489_v32  ;;  %v1490_v41 = vpack.c.bf16 %v1234_v5, %v1234_v5  ;;  %v1491_v47 = vpack.c.bf16 %v1235_v34, %v1235_v34  ;;  %v1492_v52 = vpack.c.bf16 %v1236_v56, %v1236_v56  ;;  %v2184_v57 = vunpack.c.l.bf16 %v2441_v31 }
  0xeb   :  { %v1493_v27 = vpack.c.bf16 %v1237_v6, %v1237_v6  ;;  %v1494_v44 = vpack.c.bf16 %v1238_v35, %v1238_v35  ;;  %v1239_v33 = vmax.f32 %v983_v36, 0.0  ;;  %v1240_v48 = vmax.f32 %v984_v37, 0.0  ;;  %v2448_v6 = vld [vmem:[%s4574_s0 + $0x2d8] sm:$0xff]  }
  0xec   :  { %1747 = vst.msk [vmem:[%s4577_s5 + $0x284] sm:$0xf] %vm1585_vm3, %v1490_v41  ;;  %v726_v49 = vmul.f32 %v2184_v57, %v2649_v63  ;;  %v2185_v50 = vunpack.c.h.bf16 %v2441_v31  ;;  %v2188_v39 = vunpack.c.l.bf16 %v2442_v38  ;;  %v2189_v53 = vunpack.c.h.bf16 %v2442_v38 }
  0xed   :  { %1748 = vst.msk [vmem:[%s4577_s5 + $0x288] sm:$0xf] %vm1585_vm3, %v1491_v47  ;;  %v1495_v3 = vpack.c.bf16 %v1239_v33, %v1239_v33  ;;  %v1496_v2 = vpack.c.bf16 %v1240_v48, %v1240_v48  ;;  %v2192_v7 = vunpack.c.l.bf16 %v2443_v62  ;;  %v2193_v8 = vunpack.c.h.bf16 %v2443_v62 }
  0xee   :  { %1749 = vst.msk [vmem:[%s4577_s5 + $0x28c] sm:$0xf] %vm1585_vm3, %v1492_v52  ;;  %v985_v9 = vadd.f32 %v2669_v15, %v726_v49  ;;  %v727_v10 = vmul.f32 %v2185_v50, %v2649_v63  ;;  %v728_v11 = vmul.f32 %v2188_v39, %v2649_v63  ;;  %v729_v12 = vmul.f32 %v2189_v53, %v2649_v63 }
  0xef   :  { %1750 = vst.msk [vmem:[%s4577_s5 + $0x290] sm:$0xf] %vm1585_vm3, %v1493_v27  ;;  %v730_v55 = vmul.f32 %v2192_v7, %v2649_v63  ;;  %v731_v13 = vmul.f32 %v2193_v8, %v2649_v63  ;;  %v2196_v40 = vunpack.c.l.bf16 %v2444_v54  ;;  %v2197_v58 = vunpack.c.h.bf16 %v2444_v54  ;;  %v2449_v7 = vld [vmem:[%s4574_s0 + $0x2e0] sm:$0xff]  }
  0xf0   :  { %1751 = vst.msk [vmem:[%s4577_s5 + $0x294] sm:$0xf] %vm1585_vm3, %v1494_v44  ;;  %v1241_v14 = vmax.f32 %v985_v9, 0.0  ;;  %v986_v16 = vadd.f32 %v2669_v15, %v727_v10  ;;  %v987_v23 = vadd.f32 %v2669_v15, %v728_v11  ;;  %v988_v24 = vadd.f32 %v2669_v15, %v729_v12 }
  0xf1   :  { %1752 = vst.msk [vmem:[%s4577_s5 + $0x298] sm:$0xf] %vm1585_vm3, %v1495_v3  ;;  %v989_v25 = vadd.f32 %v2669_v15, %v730_v55  ;;  %v990_v28 = vadd.f32 %v2669_v15, %v731_v13  ;;  %v732_v20 = vmul.f32 %v2196_v40, %v2649_v63  ;;  %v733_v17 = vmul.f32 %v2197_v58, %v2649_v63  ;;  %v2450_v58 = vld [vmem:[%s4574_s0 + $0x2e8] sm:$0xff]  }
  0xf2   :  { %1753 = vst.msk [vmem:[%s4577_s5 + $0x29c] sm:$0xf] %vm1585_vm3, %v1496_v2  ;;  %v1497_v19 = vpack.c.bf16 %v1241_v14, %v1241_v14  ;;  %v1242_v29 = vmax.f32 %v986_v16, 0.0  ;;  %v1243_v21 = vmax.f32 %v987_v23, 0.0  ;;  %v1244_v42 = vmax.f32 %v988_v24, 0.0 }
  0xf3   :  { %v1245_v45 = vmax.f32 %v989_v25, 0.0  ;;  %v1246_v59 = vmax.f32 %v990_v28, 0.0  ;;  %v991_v46 = vadd.f32 %v2669_v15, %v732_v20  ;;  %v992_v60 = vadd.f32 %v2669_v15, %v733_v17  ;;  %v2451_v25 = vld [vmem:[%s4574_s0 + $0x2f0] sm:$0xff]  }
  0xf4   :  { %1754 = vst.msk [vmem:[%s4577_s5 + $0x2a0] sm:$0xf] %vm1585_vm3, %v1497_v19  ;;  %v1498_v0 = vpack.c.bf16 %v1242_v29, %v1242_v29  ;;  %v1499_v51 = vpack.c.bf16 %v1243_v21, %v1243_v21  ;;  %v1500_v1 = vpack.c.bf16 %v1244_v42, %v1244_v42  ;;  %v2200_v4 = vunpack.c.l.bf16 %v2445_v18 }
  0xf5   :  { %v1501_v26 = vpack.c.bf16 %v1245_v45, %v1245_v45  ;;  %v1502_v43 = vpack.c.bf16 %v1246_v59, %v1246_v59  ;;  %v1247_v30 = vmax.f32 %v991_v46, 0.0  ;;  %v1248_v31 = vmax.f32 %v992_v60, 0.0  ;;  %v2452_v45 = vld [vmem:[%s4574_s0 + $0x2f8] sm:$0xff]  }
  0xf6   :  { %1755 = vst.msk [vmem:[%s4577_s5 + $0x2a4] sm:$0xf] %vm1585_vm3, %v1498_v0  ;;  %v734_v32 = vmul.f32 %v2200_v4, %v2649_v63  ;;  %v2201_v5 = vunpack.c.h.bf16 %v2445_v18  ;;  %v2204_v34 = vunpack.c.l.bf16 %v2446_v61  ;;  %v2205_v56 = vunpack.c.h.bf16 %v2446_v61 }
  0xf7   :  { %1756 = vst.msk [vmem:[%s4577_s5 + $0x2a8] sm:$0xf] %vm1585_vm3, %v1499_v51  ;;  %v1503_v35 = vpack.c.bf16 %v1247_v30, %v1247_v30  ;;  %v1504_v36 = vpack.c.bf16 %v1248_v31, %v1248_v31  ;;  %v2208_v37 = vunpack.c.l.bf16 %v2447_v22  ;;  %v2209_v38 = vunpack.c.h.bf16 %v2447_v22 }
  0xf8   :  { %1757 = vst.msk [vmem:[%s4577_s5 + $0x2ac] sm:$0xf] %vm1585_vm3, %v1500_v1  ;;  %v993_v41 = vadd.f32 %v2669_v15, %v734_v32  ;;  %v735_v47 = vmul.f32 %v2201_v5, %v2649_v63  ;;  %v736_v52 = vmul.f32 %v2204_v34, %v2649_v63  ;;  %v737_v57 = vmul.f32 %v2205_v56, %v2649_v63 }
  0xf9   :  { %1758 = vst.msk [vmem:[%s4577_s5 + $0x2b0] sm:$0xf] %vm1585_vm3, %v1501_v26  ;;  %v738_v62 = vmul.f32 %v2208_v37, %v2649_v63  ;;  %v739_v27 = vmul.f32 %v2209_v38, %v2649_v63  ;;  %v2212_v44 = vunpack.c.l.bf16 %v2448_v6  ;;  %v2213_v33 = vunpack.c.h.bf16 %v2448_v6  ;;  %v2453_v37 = vld [vmem:[%s4574_s0 + $0x300] sm:$0xff]  }
  0xfa   :  { %1759 = vst.msk [vmem:[%s4577_s5 + $0x2b4] sm:$0xf] %vm1585_vm3, %v1502_v43  ;;  %v1249_v48 = vmax.f32 %v993_v41, 0.0  ;;  %v994_v49 = vadd.f32 %v2669_v15, %v735_v47  ;;  %v995_v50 = vadd.f32 %v2669_v15, %v736_v52  ;;  %v996_v39 = vadd.f32 %v2669_v15, %v737_v57 }
  0xfb   :  { %1760 = vst.msk [vmem:[%s4577_s5 + $0x2b8] sm:$0xf] %vm1585_vm3, %v1503_v35  ;;  %v997_v53 = vadd.f32 %v2669_v15, %v738_v62  ;;  %v998_v54 = vadd.f32 %v2669_v15, %v739_v27  ;;  %v740_v3 = vmul.f32 %v2212_v44, %v2649_v63  ;;  %v741_v2 = vmul.f32 %v2213_v33, %v2649_v63  ;;  %v2454_v33 = vld [vmem:[%s4574_s0 + $0x308] sm:$0xff]  }
  0xfc   :  { %1761 = vst.msk [vmem:[%s4577_s5 + $0x2bc] sm:$0xf] %vm1585_vm3, %v1504_v36  ;;  %v1505_v8 = vpack.c.bf16 %v1249_v48, %v1249_v48  ;;  %v1250_v9 = vmax.f32 %v994_v49, 0.0  ;;  %v1251_v10 = vmax.f32 %v995_v50, 0.0  ;;  %v1252_v11 = vmax.f32 %v996_v39, 0.0 }
  0xfd   :  { %v1253_v12 = vmax.f32 %v997_v53, 0.0  ;;  %v1254_v55 = vmax.f32 %v998_v54, 0.0  ;;  %v999_v13 = vadd.f32 %v2669_v15, %v740_v3  ;;  %v1000_v40 = vadd.f32 %v2669_v15, %v741_v2  ;;  %v2455_v53 = vld [vmem:[%s4574_s0 + $0x310] sm:$0xff]  }
  0xfe   :  { %1762 = vst.msk [vmem:[%s4577_s5 + $0x2c0] sm:$0xf] %vm1585_vm3, %v1505_v8  ;;  %v1506_v14 = vpack.c.bf16 %v1250_v9, %v1250_v9  ;;  %v1507_v16 = vpack.c.bf16 %v1251_v10, %v1251_v10  ;;  %v1508_v23 = vpack.c.bf16 %v1252_v11, %v1252_v11  ;;  %v2216_v24 = vunpack.c.l.bf16 %v2449_v7 }
  0xff   :  { %v1509_v28 = vpack.c.bf16 %v1253_v12, %v1253_v12  ;;  %v1510_v20 = vpack.c.bf16 %v1254_v55, %v1254_v55  ;;  %v1255_v17 = vmax.f32 %v999_v13, 0.0  ;;  %v1256_v18 = vmax.f32 %v1000_v40, 0.0  ;;  %v2456_v12 = vld [vmem:[%s4574_s0 + $0x318] sm:$0xff]  }
 0x100   :  { %1763 = vst.msk [vmem:[%s4577_s5 + $0x2c4] sm:$0xf] %vm1585_vm3, %v1506_v14  ;;  %v742_v19 = vmul.f32 %v2216_v24, %v2649_v63  ;;  %v2217_v29 = vunpack.c.h.bf16 %v2449_v7  ;;  %v2220_v21 = vunpack.c.l.bf16 %v2450_v58  ;;  %v2221_v42 = vunpack.c.h.bf16 %v2450_v58 }
 0x101   :  { %1764 = vst.msk [vmem:[%s4577_s5 + $0x2c8] sm:$0xf] %vm1585_vm3, %v1507_v16  ;;  %v1511_v59 = vpack.c.bf16 %v1255_v17, %v1255_v17  ;;  %v1512_v46 = vpack.c.bf16 %v1256_v18, %v1256_v18  ;;  %v2224_v60 = vunpack.c.l.bf16 %v2451_v25  ;;  %v2225_v61 = vunpack.c.h.bf16 %v2451_v25 }
 0x102   :  { %1765 = vst.msk [vmem:[%s4577_s5 + $0x2cc] sm:$0xf] %vm1585_vm3, %v1508_v23  ;;  %v1001_v0 = vadd.f32 %v2669_v15, %v742_v19  ;;  %v743_v51 = vmul.f32 %v2217_v29, %v2649_v63  ;;  %v744_v1 = vmul.f32 %v2220_v21, %v2649_v63  ;;  %v745_v4 = vmul.f32 %v2221_v42, %v2649_v63 }
 0x103   :  { %1766 = vst.msk [vmem:[%s4577_s5 + $0x2d0] sm:$0xf] %vm1585_vm3, %v1509_v28  ;;  %v746_v22 = vmul.f32 %v2224_v60, %v2649_v63  ;;  %v747_v26 = vmul.f32 %v2225_v61, %v2649_v63  ;;  %v2228_v43 = vunpack.c.l.bf16 %v2452_v45  ;;  %v2229_v30 = vunpack.c.h.bf16 %v2452_v45  ;;  %v2457_v60 = vld [vmem:[%s4574_s0 + $0x320] sm:$0xff]  }
 0x104   :  { %1767 = vst.msk [vmem:[%s4577_s5 + $0x2d4] sm:$0xf] %vm1585_vm3, %v1510_v20  ;;  %v1257_v31 = vmax.f32 %v1001_v0, 0.0  ;;  %v1002_v32 = vadd.f32 %v2669_v15, %v743_v51  ;;  %v1003_v5 = vadd.f32 %v2669_v15, %v744_v1  ;;  %v1004_v34 = vadd.f32 %v2669_v15, %v745_v4 }
 0x105   :  { %1768 = vst.msk [vmem:[%s4577_s5 + $0x2d8] sm:$0xf] %vm1585_vm3, %v1511_v59  ;;  %v1005_v56 = vadd.f32 %v2669_v15, %v746_v22  ;;  %v1006_v6 = vadd.f32 %v2669_v15, %v747_v26  ;;  %v748_v35 = vmul.f32 %v2228_v43, %v2649_v63  ;;  %v749_v36 = vmul.f32 %v2229_v30, %v2649_v63  ;;  %v2458_v30 = vld [vmem:[%s4574_s0 + $0x328] sm:$0xff]  }
 0x106   :  { %1769 = vst.msk [vmem:[%s4577_s5 + $0x2dc] sm:$0xf] %vm1585_vm3, %v1512_v46  ;;  %v1513_v38 = vpack.c.bf16 %v1257_v31, %v1257_v31  ;;  %v1258_v41 = vmax.f32 %v1002_v32, 0.0  ;;  %v1259_v47 = vmax.f32 %v1003_v5, 0.0  ;;  %v1260_v52 = vmax.f32 %v1004_v34, 0.0 }
 0x107   :  { %v1261_v57 = vmax.f32 %v1005_v56, 0.0  ;;  %v1262_v62 = vmax.f32 %v1006_v6, 0.0  ;;  %v1007_v27 = vadd.f32 %v2669_v15, %v748_v35  ;;  %v1008_v44 = vadd.f32 %v2669_v15, %v749_v36  ;;  %v2459_v56 = vld [vmem:[%s4574_s0 + $0x330] sm:$0xff]  }
 0x108   :  { %1770 = vst.msk [vmem:[%s4577_s5 + $0x2e0] sm:$0xf] %vm1585_vm3, %v1513_v38  ;;  %v1514_v48 = vpack.c.bf16 %v1258_v41, %v1258_v41  ;;  %v1515_v49 = vpack.c.bf16 %v1259_v47, %v1259_v47  ;;  %v1516_v50 = vpack.c.bf16 %v1260_v52, %v1260_v52  ;;  %v2232_v39 = vunpack.c.l.bf16 %v2453_v37 }
 0x109   :  { %v1517_v54 = vpack.c.bf16 %v1261_v57, %v1261_v57  ;;  %v1518_v3 = vpack.c.bf16 %v1262_v62, %v1262_v62  ;;  %v1263_v2 = vmax.f32 %v1007_v27, 0.0  ;;  %v1264_v7 = vmax.f32 %v1008_v44, 0.0  ;;  %v2460_v57 = vld [vmem:[%s4574_s0 + $0x338] sm:$0xff]  }
 0x10a   :  { %1771 = vst.msk [vmem:[%s4577_s5 + $0x2e4] sm:$0xf] %vm1585_vm3, %v1514_v48  ;;  %v750_v8 = vmul.f32 %v2232_v39, %v2649_v63  ;;  %v2233_v9 = vunpack.c.h.bf16 %v2453_v37  ;;  %v2236_v10 = vunpack.c.l.bf16 %v2454_v33  ;;  %v2237_v11 = vunpack.c.h.bf16 %v2454_v33 }
 0x10b   :  { %1772 = vst.msk [vmem:[%s4577_s5 + $0x2e8] sm:$0xf] %vm1585_vm3, %v1515_v49  ;;  %v1519_v55 = vpack.c.bf16 %v1263_v2, %v1263_v2  ;;  %v1520_v13 = vpack.c.bf16 %v1264_v7, %v1264_v7  ;;  %v2240_v40 = vunpack.c.l.bf16 %v2455_v53  ;;  %v2241_v58 = vunpack.c.h.bf16 %v2455_v53 }
 0x10c   :  { %1773 = vst.msk [vmem:[%s4577_s5 + $0x2ec] sm:$0xf] %vm1585_vm3, %v1516_v50  ;;  %v1009_v14 = vadd.f32 %v2669_v15, %v750_v8  ;;  %v751_v16 = vmul.f32 %v2233_v9, %v2649_v63  ;;  %v752_v23 = vmul.f32 %v2236_v10, %v2649_v63  ;;  %v753_v24 = vmul.f32 %v2237_v11, %v2649_v63 }
 0x10d   :  { %1774 = vst.msk [vmem:[%s4577_s5 + $0x2f0] sm:$0xf] %vm1585_vm3, %v1517_v54  ;;  %v754_v25 = vmul.f32 %v2240_v40, %v2649_v63  ;;  %v755_v28 = vmul.f32 %v2241_v58, %v2649_v63  ;;  %v2244_v20 = vunpack.c.l.bf16 %v2456_v12  ;;  %v2245_v17 = vunpack.c.h.bf16 %v2456_v12  ;;  %v2461_v40 = vld [vmem:[%s4574_s0 + $0x340] sm:$0xff]  }
 0x10e   :  { %1775 = vst.msk [vmem:[%s4577_s5 + $0x2f4] sm:$0xf] %vm1585_vm3, %v1518_v3  ;;  %v1265_v18 = vmax.f32 %v1009_v14, 0.0  ;;  %v1010_v19 = vadd.f32 %v2669_v15, %v751_v16  ;;  %v1011_v29 = vadd.f32 %v2669_v15, %v752_v23  ;;  %v1012_v21 = vadd.f32 %v2669_v15, %v753_v24 }
 0x10f   :  { %1776 = vst.msk [vmem:[%s4577_s5 + $0x2f8] sm:$0xf] %vm1585_vm3, %v1519_v55  ;;  %v1013_v42 = vadd.f32 %v2669_v15, %v754_v25  ;;  %v1014_v45 = vadd.f32 %v2669_v15, %v755_v28  ;;  %v756_v59 = vmul.f32 %v2244_v20, %v2649_v63  ;;  %v757_v46 = vmul.f32 %v2245_v17, %v2649_v63  ;;  %v2462_v17 = vld [vmem:[%s4574_s0 + $0x348] sm:$0xff]  }
 0x110   :  { %1777 = vst.msk [vmem:[%s4577_s5 + $0x2fc] sm:$0xf] %vm1585_vm3, %v1520_v13  ;;  %v1521_v61 = vpack.c.bf16 %v1265_v18, %v1265_v18  ;;  %v1266_v0 = vmax.f32 %v1010_v19, 0.0  ;;  %v1267_v51 = vmax.f32 %v1011_v29, 0.0  ;;  %v1268_v1 = vmax.f32 %v1012_v21, 0.0 }
 0x111   :  { %v1269_v4 = vmax.f32 %v1013_v42, 0.0  ;;  %v1270_v22 = vmax.f32 %v1014_v45, 0.0  ;;  %v1015_v26 = vadd.f32 %v2669_v15, %v756_v59  ;;  %v1016_v43 = vadd.f32 %v2669_v15, %v757_v46  ;;  %v2463_v42 = vld [vmem:[%s4574_s0 + $0x350] sm:$0xff]  }
 0x112   :  { %1778 = vst.msk [vmem:[%s4577_s5 + $0x300] sm:$0xf] %vm1585_vm3, %v1521_v61  ;;  %v1522_v31 = vpack.c.bf16 %v1266_v0, %v1266_v0  ;;  %v1523_v32 = vpack.c.bf16 %v1267_v51, %v1267_v51  ;;  %v1524_v5 = vpack.c.bf16 %v1268_v1, %v1268_v1  ;;  %v2248_v34 = vunpack.c.l.bf16 %v2457_v60 }
 0x113   :  { %v1525_v6 = vpack.c.bf16 %v1269_v4, %v1269_v4  ;;  %v1526_v35 = vpack.c.bf16 %v1270_v22, %v1270_v22  ;;  %v1271_v36 = vmax.f32 %v1015_v26, 0.0  ;;  %v1272_v37 = vmax.f32 %v1016_v43, 0.0  ;;  %v2464_v4 = vld [vmem:[%s4574_s0 + $0x358] sm:$0xff]  }
 0x114   :  { %1779 = vst.msk [vmem:[%s4577_s5 + $0x304] sm:$0xf] %vm1585_vm3, %v1522_v31  ;;  %v758_v38 = vmul.f32 %v2248_v34, %v2649_v63  ;;  %v2249_v41 = vunpack.c.h.bf16 %v2457_v60  ;;  %v2252_v47 = vunpack.c.l.bf16 %v2458_v30  ;;  %v2253_v52 = vunpack.c.h.bf16 %v2458_v30 }
 0x115   :  { %1780 = vst.msk [vmem:[%s4577_s5 + $0x308] sm:$0xf] %vm1585_vm3, %v1523_v32  ;;  %v1527_v62 = vpack.c.bf16 %v1271_v36, %v1271_v36  ;;  %v1528_v27 = vpack.c.bf16 %v1272_v37, %v1272_v37  ;;  %v2256_v44 = vunpack.c.l.bf16 %v2459_v56  ;;  %v2257_v33 = vunpack.c.h.bf16 %v2459_v56 }
 0x116   :  { %1781 = vst.msk [vmem:[%s4577_s5 + $0x30c] sm:$0xf] %vm1585_vm3, %v1524_v5  ;;  %v1017_v48 = vadd.f32 %v2669_v15, %v758_v38  ;;  %v759_v49 = vmul.f32 %v2249_v41, %v2649_v63  ;;  %v760_v50 = vmul.f32 %v2252_v47, %v2649_v63  ;;  %v761_v39 = vmul.f32 %v2253_v52, %v2649_v63 }
 0x117   :  { %1782 = vst.msk [vmem:[%s4577_s5 + $0x310] sm:$0xf] %vm1585_vm3, %v1525_v6  ;;  %v762_v53 = vmul.f32 %v2256_v44, %v2649_v63  ;;  %v763_v54 = vmul.f32 %v2257_v33, %v2649_v63  ;;  %v2260_v3 = vunpack.c.l.bf16 %v2460_v57  ;;  %v2261_v2 = vunpack.c.h.bf16 %v2460_v57  ;;  %v2465_v44 = vld [vmem:[%s4574_s0 + $0x360] sm:$0xff]  }
 0x118   :  { %1783 = vst.msk [vmem:[%s4577_s5 + $0x314] sm:$0xf] %vm1585_vm3, %v1526_v35  ;;  %v1273_v7 = vmax.f32 %v1017_v48, 0.0  ;;  %v1018_v8 = vadd.f32 %v2669_v15, %v759_v49  ;;  %v1019_v9 = vadd.f32 %v2669_v15, %v760_v50  ;;  %v1020_v10 = vadd.f32 %v2669_v15, %v761_v39 }
 0x119   :  { %1784 = vst.msk [vmem:[%s4577_s5 + $0x318] sm:$0xf] %vm1585_vm3, %v1527_v62  ;;  %v1021_v11 = vadd.f32 %v2669_v15, %v762_v53  ;;  %v1022_v12 = vadd.f32 %v2669_v15, %v763_v54  ;;  %v764_v55 = vmul.f32 %v2260_v3, %v2649_v63  ;;  %v765_v13 = vmul.f32 %v2261_v2, %v2649_v63  ;;  %v2466_v2 = vld [vmem:[%s4574_s0 + $0x368] sm:$0xff]  }
 0x11a   :  { %1785 = vst.msk [vmem:[%s4577_s5 + $0x31c] sm:$0xf] %vm1585_vm3, %v1528_v27  ;;  %v1529_v58 = vpack.c.bf16 %v1273_v7, %v1273_v7  ;;  %v1274_v14 = vmax.f32 %v1018_v8, 0.0  ;;  %v1275_v16 = vmax.f32 %v1019_v9, 0.0  ;;  %v1276_v23 = vmax.f32 %v1020_v10, 0.0 }
 0x11b   :  { %v1277_v24 = vmax.f32 %v1021_v11, 0.0  ;;  %v1278_v25 = vmax.f32 %v1022_v12, 0.0  ;;  %v1023_v28 = vadd.f32 %v2669_v15, %v764_v55  ;;  %v1024_v20 = vadd.f32 %v2669_v15, %v765_v13  ;;  %v2467_v11 = vld [vmem:[%s4574_s0 + $0x370] sm:$0xff]  }
 0x11c   :  { %1786 = vst.msk [vmem:[%s4577_s5 + $0x320] sm:$0xf] %vm1585_vm3, %v1529_v58  ;;  %v1530_v18 = vpack.c.bf16 %v1274_v14, %v1274_v14  ;;  %v1531_v19 = vpack.c.bf16 %v1275_v16, %v1275_v16  ;;  %v1532_v29 = vpack.c.bf16 %v1276_v23, %v1276_v23  ;;  %v2264_v21 = vunpack.c.l.bf16 %v2461_v40 }
 0x11d   :  { %v1533_v45 = vpack.c.bf16 %v1277_v24, %v1277_v24  ;;  %v1534_v59 = vpack.c.bf16 %v1278_v25, %v1278_v25  ;;  %v1279_v46 = vmax.f32 %v1023_v28, 0.0  ;;  %v1280_v60 = vmax.f32 %v1024_v20, 0.0  ;;  %v2468_v24 = vld [vmem:[%s4574_s0 + $0x378] sm:$0xff]  }
 0x11e   :  { %1787 = vst.msk [vmem:[%s4577_s5 + $0x324] sm:$0xf] %vm1585_vm3, %v1530_v18  ;;  %v766_v61 = vmul.f32 %v2264_v21, %v2649_v63  ;;  %v2265_v0 = vunpack.c.h.bf16 %v2461_v40  ;;  %v2268_v51 = vunpack.c.l.bf16 %v2462_v17  ;;  %v2269_v1 = vunpack.c.h.bf16 %v2462_v17 }
 0x11f   :  { %1788 = vst.msk [vmem:[%s4577_s5 + $0x328] sm:$0xf] %vm1585_vm3, %v1531_v19  ;;  %v1535_v22 = vpack.c.bf16 %v1279_v46, %v1279_v46  ;;  %v1536_v26 = vpack.c.bf16 %v1280_v60, %v1280_v60  ;;  %v2272_v43 = vunpack.c.l.bf16 %v2463_v42  ;;  %v2273_v30 = vunpack.c.h.bf16 %v2463_v42 }
 0x120   :  { %1789 = vst.msk [vmem:[%s4577_s5 + $0x32c] sm:$0xf] %vm1585_vm3, %v1532_v29  ;;  %v1025_v31 = vadd.f32 %v2669_v15, %v766_v61  ;;  %v767_v32 = vmul.f32 %v2265_v0, %v2649_v63  ;;  %v768_v5 = vmul.f32 %v2268_v51, %v2649_v63  ;;  %v769_v34 = vmul.f32 %v2269_v1, %v2649_v63 }
 0x121   :  { %1790 = vst.msk [vmem:[%s4577_s5 + $0x330] sm:$0xf] %vm1585_vm3, %v1533_v45  ;;  %v770_v56 = vmul.f32 %v2272_v43, %v2649_v63  ;;  %v771_v6 = vmul.f32 %v2273_v30, %v2649_v63  ;;  %v2276_v35 = vunpack.c.l.bf16 %v2464_v4  ;;  %v2277_v36 = vunpack.c.h.bf16 %v2464_v4  ;;  %v2469_v43 = vld [vmem:[%s4574_s0 + $0x380] sm:$0xff]  }
 0x122   :  { %1791 = vst.msk [vmem:[%s4577_s5 + $0x334] sm:$0xf] %vm1585_vm3, %v1534_v59  ;;  %v1281_v37 = vmax.f32 %v1025_v31, 0.0  ;;  %v1026_v38 = vadd.f32 %v2669_v15, %v767_v32  ;;  %v1027_v41 = vadd.f32 %v2669_v15, %v768_v5  ;;  %v1028_v47 = vadd.f32 %v2669_v15, %v769_v34 }
 0x123   :  { %1792 = vst.msk [vmem:[%s4577_s5 + $0x338] sm:$0xf] %vm1585_vm3, %v1535_v22  ;;  %v1029_v52 = vadd.f32 %v2669_v15, %v770_v56  ;;  %v1030_v57 = vadd.f32 %v2669_v15, %v771_v6  ;;  %v772_v62 = vmul.f32 %v2276_v35, %v2649_v63  ;;  %v773_v27 = vmul.f32 %v2277_v36, %v2649_v63  ;;  %v2470_v36 = vld [vmem:[%s4574_s0 + $0x388] sm:$0xff]  }
 0x124   :  { %1793 = vst.msk [vmem:[%s4577_s5 + $0x33c] sm:$0xf] %vm1585_vm3, %v1536_v26  ;;  %v1537_v33 = vpack.c.bf16 %v1281_v37, %v1281_v37  ;;  %v1282_v48 = vmax.f32 %v1026_v38, 0.0  ;;  %v1283_v49 = vmax.f32 %v1027_v41, 0.0  ;;  %v1284_v50 = vmax.f32 %v1028_v47, 0.0 }
 0x125   :  { %v1285_v39 = vmax.f32 %v1029_v52, 0.0  ;;  %v1286_v53 = vmax.f32 %v1030_v57, 0.0  ;;  %v1031_v54 = vadd.f32 %v2669_v15, %v772_v62  ;;  %v1032_v3 = vadd.f32 %v2669_v15, %v773_v27  ;;  %v2471_v52 = vld [vmem:[%s4574_s0 + $0x390] sm:$0xff]  }
 0x126   :  { %1794 = vst.msk [vmem:[%s4577_s5 + $0x340] sm:$0xf] %vm1585_vm3, %v1537_v33  ;;  %v1538_v7 = vpack.c.bf16 %v1282_v48, %v1282_v48  ;;  %v1539_v8 = vpack.c.bf16 %v1283_v49, %v1283_v49  ;;  %v1540_v9 = vpack.c.bf16 %v1284_v50, %v1284_v50  ;;  %v2280_v10 = vunpack.c.l.bf16 %v2465_v44 }
 0x127   :  { %v1541_v12 = vpack.c.bf16 %v1285_v39, %v1285_v39  ;;  %v1542_v55 = vpack.c.bf16 %v1286_v53, %v1286_v53  ;;  %v1287_v13 = vmax.f32 %v1031_v54, 0.0  ;;  %v1288_v40 = vmax.f32 %v1032_v3, 0.0  ;;  %v2472_v39 = vld [vmem:[%s4574_s0 + $0x398] sm:$0xff]  }
 0x128   :  { %1795 = vst.msk [vmem:[%s4577_s5 + $0x344] sm:$0xf] %vm1585_vm3, %v1538_v7  ;;  %v774_v58 = vmul.f32 %v2280_v10, %v2649_v63  ;;  %v2281_v14 = vunpack.c.h.bf16 %v2465_v44  ;;  %v2284_v16 = vunpack.c.l.bf16 %v2466_v2  ;;  %v2285_v23 = vunpack.c.h.bf16 %v2466_v2 }
 0x129   :  { %1796 = vst.msk [vmem:[%s4577_s5 + $0x348] sm:$0xf] %vm1585_vm3, %v1539_v8  ;;  %v1543_v25 = vpack.c.bf16 %v1287_v13, %v1287_v13  ;;  %v1544_v28 = vpack.c.bf16 %v1288_v40, %v1288_v40  ;;  %v2288_v20 = vunpack.c.l.bf16 %v2467_v11  ;;  %v2289_v17 = vunpack.c.h.bf16 %v2467_v11 }
 0x12a   :  { %1797 = vst.msk [vmem:[%s4577_s5 + $0x34c] sm:$0xf] %vm1585_vm3, %v1540_v9  ;;  %v1033_v18 = vadd.f32 %v2669_v15, %v774_v58  ;;  %v775_v19 = vmul.f32 %v2281_v14, %v2649_v63  ;;  %v776_v29 = vmul.f32 %v2284_v16, %v2649_v63  ;;  %v777_v21 = vmul.f32 %v2285_v23, %v2649_v63 }
 0x12b   :  { %1798 = vst.msk [vmem:[%s4577_s5 + $0x350] sm:$0xf] %vm1585_vm3, %v1541_v12  ;;  %v778_v42 = vmul.f32 %v2288_v20, %v2649_v63  ;;  %v779_v45 = vmul.f32 %v2289_v17, %v2649_v63  ;;  %v2292_v59 = vunpack.c.l.bf16 %v2468_v24  ;;  %v2293_v46 = vunpack.c.h.bf16 %v2468_v24  ;;  %v2473_v20 = vld [vmem:[%s4574_s0 + $0x3a0] sm:$0xff]  }
 0x12c   :  { %1799 = vst.msk [vmem:[%s4577_s5 + $0x354] sm:$0xf] %vm1585_vm3, %v1542_v55  ;;  %v1289_v60 = vmax.f32 %v1033_v18, 0.0  ;;  %v1034_v61 = vadd.f32 %v2669_v15, %v775_v19  ;;  %v1035_v0 = vadd.f32 %v2669_v15, %v776_v29  ;;  %v1036_v51 = vadd.f32 %v2669_v15, %v777_v21 }
 0x12d   :  { %1800 = vst.msk [vmem:[%s4577_s5 + $0x358] sm:$0xf] %vm1585_vm3, %v1543_v25  ;;  %v1037_v1 = vadd.f32 %v2669_v15, %v778_v42  ;;  %v1038_v4 = vadd.f32 %v2669_v15, %v779_v45  ;;  %v780_v22 = vmul.f32 %v2292_v59, %v2649_v63  ;;  %v781_v26 = vmul.f32 %v2293_v46, %v2649_v63  ;;  %v2474_v46 = vld [vmem:[%s4574_s0 + $0x3a8] sm:$0xff]  }
 0x12e   :  { %1801 = vst.msk [vmem:[%s4577_s5 + $0x35c] sm:$0xf] %vm1585_vm3, %v1544_v28  ;;  %v1545_v30 = vpack.c.bf16 %v1289_v60, %v1289_v60  ;;  %v1290_v31 = vmax.f32 %v1034_v61, 0.0  ;;  %v1291_v32 = vmax.f32 %v1035_v0, 0.0  ;;  %v1292_v5 = vmax.f32 %v1036_v51, 0.0 }
 0x12f   :  { %v1293_v34 = vmax.f32 %v1037_v1, 0.0  ;;  %v1294_v56 = vmax.f32 %v1038_v4, 0.0  ;;  %v1039_v6 = vadd.f32 %v2669_v15, %v780_v22  ;;  %v1040_v35 = vadd.f32 %v2669_v15, %v781_v26  ;;  %v2475_v1 = vld [vmem:[%s4574_s0 + $0x3b0] sm:$0xff]  }
 0x130   :  { %1802 = vst.msk [vmem:[%s4577_s5 + $0x360] sm:$0xf] %vm1585_vm3, %v1545_v30  ;;  %v1546_v37 = vpack.c.bf16 %v1290_v31, %v1290_v31  ;;  %v1547_v38 = vpack.c.bf16 %v1291_v32, %v1291_v32  ;;  %v1548_v41 = vpack.c.bf16 %v1292_v5, %v1292_v5  ;;  %v2296_v47 = vunpack.c.l.bf16 %v2469_v43 }
 0x131   :  { %v1549_v57 = vpack.c.bf16 %v1293_v34, %v1293_v34  ;;  %v1550_v62 = vpack.c.bf16 %v1294_v56, %v1294_v56  ;;  %v1295_v27 = vmax.f32 %v1039_v6, 0.0  ;;  %v1296_v44 = vmax.f32 %v1040_v35, 0.0  ;;  %v2476_v34 = vld [vmem:[%s4574_s0 + $0x3b8] sm:$0xff]  }
 0x132   :  { %1803 = vst.msk [vmem:[%s4577_s5 + $0x364] sm:$0xf] %vm1585_vm3, %v1546_v37  ;;  %v782_v33 = vmul.f32 %v2296_v47, %v2649_v63  ;;  %v2297_v48 = vunpack.c.h.bf16 %v2469_v43  ;;  %v2300_v49 = vunpack.c.l.bf16 %v2470_v36  ;;  %v2301_v50 = vunpack.c.h.bf16 %v2470_v36 }
 0x133   :  { %1804 = vst.msk [vmem:[%s4577_s5 + $0x368] sm:$0xf] %vm1585_vm3, %v1547_v38  ;;  %v1551_v53 = vpack.c.bf16 %v1295_v27, %v1295_v27  ;;  %v1552_v54 = vpack.c.bf16 %v1296_v44, %v1296_v44  ;;  %v2304_v3 = vunpack.c.l.bf16 %v2471_v52  ;;  %v2305_v2 = vunpack.c.h.bf16 %v2471_v52 }
 0x134   :  { %1805 = vst.msk [vmem:[%s4577_s5 + $0x36c] sm:$0xf] %vm1585_vm3, %v1548_v41  ;;  %v1041_v7 = vadd.f32 %v2669_v15, %v782_v33  ;;  %v783_v8 = vmul.f32 %v2297_v48, %v2649_v63  ;;  %v784_v9 = vmul.f32 %v2300_v49, %v2649_v63  ;;  %v785_v10 = vmul.f32 %v2301_v50, %v2649_v63 }
 0x135   :  { %1806 = vst.msk [vmem:[%s4577_s5 + $0x370] sm:$0xf] %vm1585_vm3, %v1549_v57  ;;  %v786_v11 = vmul.f32 %v2304_v3, %v2649_v63  ;;  %v787_v12 = vmul.f32 %v2305_v2, %v2649_v63  ;;  %v2308_v55 = vunpack.c.l.bf16 %v2472_v39  ;;  %v2309_v13 = vunpack.c.h.bf16 %v2472_v39  ;;  %v2477_v3 = vld [vmem:[%s4574_s0 + $0x3c0] sm:$0xff]  }
 0x136   :  { %1807 = vst.msk [vmem:[%s4577_s5 + $0x374] sm:$0xf] %vm1585_vm3, %v1550_v62  ;;  %v1297_v40 = vmax.f32 %v1041_v7, 0.0  ;;  %v1042_v58 = vadd.f32 %v2669_v15, %v783_v8  ;;  %v1043_v14 = vadd.f32 %v2669_v15, %v784_v9  ;;  %v1044_v16 = vadd.f32 %v2669_v15, %v785_v10 }
 0x137   :  { %1808 = vst.msk [vmem:[%s4577_s5 + $0x378] sm:$0xf] %vm1585_vm3, %v1551_v53  ;;  %v1045_v23 = vadd.f32 %v2669_v15, %v786_v11  ;;  %v1046_v24 = vadd.f32 %v2669_v15, %v787_v12  ;;  %v788_v25 = vmul.f32 %v2308_v55, %v2649_v63  ;;  %v789_v28 = vmul.f32 %v2309_v13, %v2649_v63  ;;  %v2478_v13 = vld [vmem:[%s4574_s0 + $0x3c8] sm:$0xff]  }
 0x138   :  { %1809 = vst.msk [vmem:[%s4577_s5 + $0x37c] sm:$0xf] %vm1585_vm3, %v1552_v54  ;;  %v1553_v17 = vpack.c.bf16 %v1297_v40, %v1297_v40  ;;  %v1298_v18 = vmax.f32 %v1042_v58, 0.0  ;;  %v1299_v19 = vmax.f32 %v1043_v14, 0.0  ;;  %v1300_v29 = vmax.f32 %v1044_v16, 0.0 }
 0x139   :  { %v1301_v21 = vmax.f32 %v1045_v23, 0.0  ;;  %v1302_v42 = vmax.f32 %v1046_v24, 0.0  ;;  %v1047_v45 = vadd.f32 %v2669_v15, %v788_v25  ;;  %v1048_v59 = vadd.f32 %v2669_v15, %v789_v28  ;;  %v2479_v23 = vld [vmem:[%s4574_s0 + $0x3d0] sm:$0xff]  }
 0x13a   :  { %1810 = vst.msk [vmem:[%s4577_s5 + $0x380] sm:$0xf] %vm1585_vm3, %v1553_v17  ;;  %v1554_v60 = vpack.c.bf16 %v1298_v18, %v1298_v18  ;;  %v1555_v61 = vpack.c.bf16 %v1299_v19, %v1299_v19  ;;  %v1556_v0 = vpack.c.bf16 %v1300_v29, %v1300_v29  ;;  %v2312_v51 = vunpack.c.l.bf16 %v2473_v20 }
 0x13b   :  { %v1557_v4 = vpack.c.bf16 %v1301_v21, %v1301_v21  ;;  %v1558_v22 = vpack.c.bf16 %v1302_v42, %v1302_v42  ;;  %v1303_v26 = vmax.f32 %v1047_v45, 0.0  ;;  %v1304_v43 = vmax.f32 %v1048_v59, 0.0  ;;  %v2480_v21 = vld [vmem:[%s4574_s0 + $0x3d8] sm:$0xff]  }
 0x13c   :  { %1811 = vst.msk [vmem:[%s4577_s5 + $0x384] sm:$0xf] %vm1585_vm3, %v1554_v60  ;;  %v790_v30 = vmul.f32 %v2312_v51, %v2649_v63  ;;  %v2313_v31 = vunpack.c.h.bf16 %v2473_v20  ;;  %v2316_v32 = vunpack.c.l.bf16 %v2474_v46  ;;  %v2317_v5 = vunpack.c.h.bf16 %v2474_v46 }
 0x13d   :  { %1812 = vst.msk [vmem:[%s4577_s5 + $0x388] sm:$0xf] %vm1585_vm3, %v1555_v61  ;;  %v1559_v56 = vpack.c.bf16 %v1303_v26, %v1303_v26  ;;  %v1560_v6 = vpack.c.bf16 %v1304_v43, %v1304_v43  ;;  %v2320_v35 = vunpack.c.l.bf16 %v2475_v1  ;;  %v2321_v36 = vunpack.c.h.bf16 %v2475_v1 }
 0x13e   :  { %1813 = vst.msk [vmem:[%s4577_s5 + $0x38c] sm:$0xf] %vm1585_vm3, %v1556_v0  ;;  %v1049_v37 = vadd.f32 %v2669_v15, %v790_v30  ;;  %v791_v38 = vmul.f32 %v2313_v31, %v2649_v63  ;;  %v792_v41 = vmul.f32 %v2316_v32, %v2649_v63  ;;  %v793_v47 = vmul.f32 %v2317_v5, %v2649_v63 }
 0x13f   :  { %1814 = vst.msk [vmem:[%s4577_s5 + $0x390] sm:$0xf] %vm1585_vm3, %v1557_v4  ;;  %v794_v52 = vmul.f32 %v2320_v35, %v2649_v63  ;;  %v795_v57 = vmul.f32 %v2321_v36, %v2649_v63  ;;  %v2324_v62 = vunpack.c.l.bf16 %v2476_v34  ;;  %v2325_v27 = vunpack.c.h.bf16 %v2476_v34  ;;  %v2481_v35 = vld [vmem:[%s4574_s0 + $0x3e0] sm:$0xff]  }
 0x140   :  { %1815 = vst.msk [vmem:[%s4577_s5 + $0x394] sm:$0xf] %vm1585_vm3, %v1558_v22  ;;  %v1305_v44 = vmax.f32 %v1049_v37, 0.0  ;;  %v1050_v33 = vadd.f32 %v2669_v15, %v791_v38  ;;  %v1051_v48 = vadd.f32 %v2669_v15, %v792_v41  ;;  %v1052_v49 = vadd.f32 %v2669_v15, %v793_v47 }
 0x141   :  { %1816 = vst.msk [vmem:[%s4577_s5 + $0x398] sm:$0xf] %vm1585_vm3, %v1559_v56  ;;  %v1053_v50 = vadd.f32 %v2669_v15, %v794_v52  ;;  %v1054_v39 = vadd.f32 %v2669_v15, %v795_v57  ;;  %v796_v53 = vmul.f32 %v2324_v62, %v2649_v63  ;;  %v797_v54 = vmul.f32 %v2325_v27, %v2649_v63  ;;  %v2482_v27 = vld [vmem:[%s4574_s0 + $0x3e8] sm:$0xff]  }
 0x142   :  { %1817 = vst.msk [vmem:[%s4577_s5 + $0x39c] sm:$0xf] %vm1585_vm3, %v1560_v6  ;;  %v1561_v2 = vpack.c.bf16 %v1305_v44, %v1305_v44  ;;  %v1306_v7 = vmax.f32 %v1050_v33, 0.0  ;;  %v1307_v8 = vmax.f32 %v1051_v48, 0.0  ;;  %v1308_v9 = vmax.f32 %v1052_v49, 0.0 }
 0x143   :  { %v1309_v10 = vmax.f32 %v1053_v50, 0.0  ;;  %v1310_v11 = vmax.f32 %v1054_v39, 0.0  ;;  %v1055_v12 = vadd.f32 %v2669_v15, %v796_v53  ;;  %v1056_v55 = vadd.f32 %v2669_v15, %v797_v54  ;;  %v2483_v50 = vld [vmem:[%s4574_s0 + $0x3f0] sm:$0xff]  }
 0x144   :  { %1818 = vst.msk [vmem:[%s4577_s5 + $0x3a0] sm:$0xf] %vm1585_vm3, %v1561_v2  ;;  %v1562_v40 = vpack.c.bf16 %v1306_v7, %v1306_v7  ;;  %v1563_v58 = vpack.c.bf16 %v1307_v8, %v1307_v8  ;;  %v1564_v14 = vpack.c.bf16 %v1308_v9, %v1308_v9  ;;  %v2328_v16 = vunpack.c.l.bf16 %v2477_v3 }
 0x145   :  { %v1565_v24 = vpack.c.bf16 %v1309_v10, %v1309_v10  ;;  %v1566_v25 = vpack.c.bf16 %v1310_v11, %v1310_v11  ;;  %v1311_v28 = vmax.f32 %v1055_v12, 0.0  ;;  %v1312_v20 = vmax.f32 %v1056_v55, 0.0  ;;  %v2484_v10 = vld [vmem:[%s4574_s0 + $0x3f8] sm:$0xff]  }
 0x146   :  { %1819 = vst.msk [vmem:[%s4577_s5 + $0x3a4] sm:$0xf] %vm1585_vm3, %v1562_v40  ;;  %v798_v17 = vmul.f32 %v2328_v16, %v2649_v63  ;;  %v2329_v18 = vunpack.c.h.bf16 %v2477_v3  ;;  %v2332_v19 = vunpack.c.l.bf16 %v2478_v13  ;;  %v2333_v29 = vunpack.c.h.bf16 %v2478_v13 }
 0x147   :  { %1820 = vst.msk [vmem:[%s4577_s5 + $0x3a8] sm:$0xf] %vm1585_vm3, %v1563_v58  ;;  %v1567_v42 = vpack.c.bf16 %v1311_v28, %v1311_v28  ;;  %v1568_v45 = vpack.c.bf16 %v1312_v20, %v1312_v20  ;;  %v2336_v59 = vunpack.c.l.bf16 %v2479_v23  ;;  %v2337_v46 = vunpack.c.h.bf16 %v2479_v23 }
 0x148   :  { %1821 = vst.msk [vmem:[%s4577_s5 + $0x3ac] sm:$0xf] %vm1585_vm3, %v1564_v14  ;;  %v1057_v60 = vadd.f32 %v2669_v15, %v798_v17  ;;  %v799_v61 = vmul.f32 %v2329_v18, %v2649_v63  ;;  %v800_v0 = vmul.f32 %v2332_v19, %v2649_v63  ;;  %v801_v51 = vmul.f32 %v2333_v29, %v2649_v63 }
 0x149   :  { %1822 = vst.msk [vmem:[%s4577_s5 + $0x3b0] sm:$0xf] %vm1585_vm3, %v1565_v24  ;;  %v802_v1 = vmul.f32 %v2336_v59, %v2649_v63  ;;  %v803_v4 = vmul.f32 %v2337_v46, %v2649_v63  ;;  %v2340_v22 = vunpack.c.l.bf16 %v2480_v21  ;;  %v2341_v26 = vunpack.c.h.bf16 %v2480_v21 }
 0x14a   :  { %1823 = vst.msk [vmem:[%s4577_s5 + $0x3b4] sm:$0xf] %vm1585_vm3, %v1566_v25  ;;  %v1313_v43 = vmax.f32 %v1057_v60, 0.0  ;;  %v1058_v30 = vadd.f32 %v2669_v15, %v799_v61  ;;  %v1059_v31 = vadd.f32 %v2669_v15, %v800_v0  ;;  %v1060_v32 = vadd.f32 %v2669_v15, %v801_v51 }
 0x14b   :  { %1824 = vst.msk [vmem:[%s4577_s5 + $0x3b8] sm:$0xf] %vm1585_vm3, %v1567_v42  ;;  %v1061_v5 = vadd.f32 %v2669_v15, %v802_v1  ;;  %v1062_v34 = vadd.f32 %v2669_v15, %v803_v4  ;;  %v804_v56 = vmul.f32 %v2340_v22, %v2649_v63  ;;  %v805_v6 = vmul.f32 %v2341_v26, %v2649_v63 }
 0x14c   :  { %1825 = vst.msk [vmem:[%s4577_s5 + $0x3bc] sm:$0xf] %vm1585_vm3, %v1568_v45  ;;  %v1569_v36 = vpack.c.bf16 %v1313_v43, %v1313_v43  ;;  %v1314_v37 = vmax.f32 %v1058_v30, 0.0  ;;  %v1315_v38 = vmax.f32 %v1059_v31, 0.0  ;;  %v1316_v41 = vmax.f32 %v1060_v32, 0.0 }
 0x14d   :  { %v1317_v47 = vmax.f32 %v1061_v5, 0.0  ;;  %v1318_v52 = vmax.f32 %v1062_v34, 0.0  ;;  %v1063_v57 = vadd.f32 %v2669_v15, %v804_v56  ;;  %v1064_v62 = vadd.f32 %v2669_v15, %v805_v6 }
 0x14e   :  { %1826 = vst.msk [vmem:[%s4577_s5 + $0x3c0] sm:$0xf] %vm1585_vm3, %v1569_v36  ;;  %v1570_v44 = vpack.c.bf16 %v1314_v37, %v1314_v37  ;;  %v1571_v33 = vpack.c.bf16 %v1315_v38, %v1315_v38  ;;  %v1572_v48 = vpack.c.bf16 %v1316_v41, %v1316_v41  ;;  %v2344_v49 = vunpack.c.l.bf16 %v2481_v35 }
 0x14f   :  { %v1573_v39 = vpack.c.bf16 %v1317_v47, %v1317_v47  ;;  %v1574_v53 = vpack.c.bf16 %v1318_v52, %v1318_v52  ;;  %v1319_v54 = vmax.f32 %v1063_v57, 0.0  ;;  %v1320_v3 = vmax.f32 %v1064_v62, 0.0 }
 0x150   :  { %1827 = vst.msk [vmem:[%s4577_s5 + $0x3c4] sm:$0xf] %vm1585_vm3, %v1570_v44  ;;  %v806_v2 = vmul.f32 %v2344_v49, %v2649_v63  ;;  %v2345_v7 = vunpack.c.h.bf16 %v2481_v35  ;;  %v2348_v8 = vunpack.c.l.bf16 %v2482_v27  ;;  %v2349_v9 = vunpack.c.h.bf16 %v2482_v27 }
 0x151   :  { %1828 = vst.msk [vmem:[%s4577_s5 + $0x3c8] sm:$0xf] %vm1585_vm3, %v1571_v33  ;;  %v1575_v11 = vpack.c.bf16 %v1319_v54, %v1319_v54  ;;  %v1576_v12 = vpack.c.bf16 %v1320_v3, %v1320_v3  ;;  %v2352_v55 = vunpack.c.l.bf16 %v2483_v50  ;;  %v2353_v13 = vunpack.c.h.bf16 %v2483_v50 }
 0x152   :  { %1829 = vst.msk [vmem:[%s4577_s5 + $0x3cc] sm:$0xf] %vm1585_vm3, %v1572_v48  ;;  %v1065_v40 = vadd.f32 %v2669_v15, %v806_v2  ;;  %v807_v58 = vmul.f32 %v2345_v7, %v2649_v63  ;;  %v808_v14 = vmul.f32 %v2348_v8, %v2649_v63  ;;  %v809_v16 = vmul.f32 %v2349_v9, %v2649_v63 }
 0x153   :  { %1830 = vst.msk [vmem:[%s4577_s5 + $0x3d0] sm:$0xf] %vm1585_vm3, %v1573_v39  ;;  %v810_v23 = vmul.f32 %v2352_v55, %v2649_v63  ;;  %v811_v24 = vmul.f32 %v2353_v13, %v2649_v63  ;;  %v2356_v25 = vunpack.c.l.bf16 %v2484_v10  ;;  %v2357_v28 = vunpack.c.h.bf16 %v2484_v10 }
 0x154   :  { %1831 = vst.msk [vmem:[%s4577_s5 + $0x3d4] sm:$0xf] %vm1585_vm3, %v1574_v53  ;;  %v1321_v20 = vmax.f32 %v1065_v40, 0.0  ;;  %v1066_v17 = vadd.f32 %v2669_v15, %v807_v58  ;;  %v1067_v18 = vadd.f32 %v2669_v15, %v808_v14  ;;  %v1068_v19 = vadd.f32 %v2669_v15, %v809_v16 }
 0x155   :  { %1832 = vst.msk [vmem:[%s4577_s5 + $0x3d8] sm:$0xf] %vm1585_vm3, %v1575_v11  ;;  %v1069_v29 = vadd.f32 %v2669_v15, %v810_v23  ;;  %v1070_v21 = vadd.f32 %v2669_v15, %v811_v24  ;;  %v812_v42 = vmul.f32 %v2356_v25, %v2649_v63  ;;  %v813_v45 = vmul.f32 %v2357_v28, %v2649_v63 }
 0x156   :  { %1833 = vst.msk [vmem:[%s4577_s5 + $0x3dc] sm:$0xf] %vm1585_vm3, %v1576_v12  ;;  %v1577_v59 = vpack.c.bf16 %v1321_v20, %v1321_v20  ;;  %v1322_v46 = vmax.f32 %v1066_v17, 0.0  ;;  %v1323_v60 = vmax.f32 %v1067_v18, 0.0  ;;  %v1324_v61 = vmax.f32 %v1068_v19, 0.0 }
 0x157   :  { %v1325_v0 = vmax.f32 %v1069_v29, 0.0  ;;  %v1326_v51 = vmax.f32 %v1070_v21, 0.0  ;;  %v1071_v1 = vadd.f32 %v2669_v15, %v812_v42  ;;  %v1072_v4 = vadd.f32 %v2669_v15, %v813_v45 }
 0x158   :  { %1834 = vst.msk [vmem:[%s4577_s5 + $0x3e0] sm:$0xf] %vm1585_vm3, %v1577_v59  ;;  %v1578_v63 = vpack.c.bf16 %v1322_v46, %v1322_v46  ;;  %v1579_v22 = vpack.c.bf16 %v1323_v60, %v1323_v60  ;;  %v1580_v26 = vpack.c.bf16 %v1324_v61, %v1324_v61 }
 0x159   :  { %v1581_v43 = vpack.c.bf16 %v1325_v0, %v1325_v0  ;;  %v1327_v30 = vmax.f32 %v1071_v1, 0.0  ;;  %v1328_v31 = vmax.f32 %v1072_v4, 0.0  ;;  %v1582_v32 = vpack.c.bf16 %v1326_v51, %v1326_v51 }
 0x15a   :  { %1835 = vst.msk [vmem:[%s4577_s5 + $0x3e4] sm:$0xf] %vm1585_vm3, %v1578_v63 }
 0x15b   :  { %1836 = vst.msk [vmem:[%s4577_s5 + $0x3e8] sm:$0xf] %vm1585_vm3, %v1579_v22  ;;  %v1583_v15 = vpack.c.bf16 %v1327_v30, %v1327_v30  ;;  %v1584_v5 = vpack.c.bf16 %v1328_v31, %v1328_v31 }
 0x15c   :  { %1837 = vst.msk [vmem:[%s4577_s5 + $0x3ec] sm:$0xf] %vm1585_vm3, %v1580_v26 }
 0x15d   :  { %1838 = vst.msk [vmem:[%s4577_s5 + $0x3f0] sm:$0xf] %vm1585_vm3, %v1581_v43 }
 0x15e   :  { %1839 = vst.msk [vmem:[%s4577_s5 + $0x3f4] sm:$0xf] %vm1585_vm3, %v1582_v32 }
 0x15f   :  { %1840 = vst.msk [vmem:[%s4577_s5 + $0x3f8] sm:$0xf] %vm1585_vm3, %v1583_v15 }
 0x160   :  { %1841 = vst.msk [vmem:[%s4577_s5 + $0x3fc] sm:$0xf] %vm1585_vm3, %v1584_v5 }

// kernel: generator_forward.25
= control target key start
LH: loop header
LB: loop body
LE: loop exit
PB: predicated region body
PF: predicated region fallthrough
CT: control target
= control target key end

     0   :  { %s1387_s9 = smov 0   ;;  %s1389_s10 = smov 0   ;;  %s1577_s0 = inlined_call_operand.vmem [shape: bf16[4,2048,32], index: 0, kind: input, shape index: {}]   ;;  %s1578_s1 = inlined_call_operand.vmem [shape: bf16[4,32,128], index: 1, kind: input, shape index: {}]   ;;  %s1579_s2 = inlined_call_operand.vmem [shape: f32[4,2048,128], index: 2, kind: output, shape index: {}]  }
   0x1   :  { %s1391_s11 = smov 0   ;;  %s1393_s12 = smov 0  }
   0x2   :  { %s1395_s13 = smov 0  }
   0x3 LB: > { %s21_s14 = sadd.s32 1, %s1362_s11  ;;  %s24_s15 = sadd.s32 1, %s1366_s12  ;;  %s1370_s13 = sphi %s1395_s13, %s12_s13   ;;  %s1366_s12 = sphi %s1393_s12, %s1583_s12   ;;  %s1362_s11 = sphi %s1391_s11, %s1582_s11   ;;  %s1358_s10 = sphi %s1389_s10, %s1581_s10   ;;  %s1354_s9 = sphi %s1387_s9, %s1580_s9  }
   0x4   : > { %p22_p0 = scmp.ge.s32.totalorder %s21_s14, 4  ;;  %p944_p1 = scmp.ge.s32.totalorder %s1370_s13, 1 }
   0x5   : > { %p143_p2 = scmp.lt.s32.totalorder %s1370_s13, 17 }
   0x6   : > { %s1585_s14 = smov (%p22_p0, %s21_s14), 0  ;;  %s1587_s15 = smov (!%p22_p0, %s24_s15), %s1366_s12 }
   0x7   : > { %p144_p3 = pnand %p944_p1, %p143_p2  ;;  %p26_p4 = scmp.ge.s32.totalorder %s1587_s15, 4 }
   0x8   : > { %s945_s16 = sshll.u32 (!%p144_p3), %s1354_s9, 6  ;;  %p179_p5 = scmp.lt.s32.totalorder (!%p144_p3), %s1358_s10, 3 }
   0x9   : > { %s1589_s15 = smov (%p26_p4, %s1587_s15), 0  ;;  %147 = sbr.rel (%p144_p3) target bundleno = 287 (0x11f), region = 28 }
   0xa   : > { %p181_p6 = scmp.lt.s32.totalorder (!%p144_p3), %s945_s16, 255 }
   0xe   : > { %s1591_s10 = smov (!%p179_p5, %s1358_s10), 3  ;;  %s1593_s16 = smov (!%p181_p6, %s945_s16), 255  ;;  %vm444_vm0 = vcmask 261120  }
   0xf   : > { %s946_s17 = sshll.u32 %s1591_s10, 8  ;;  %s1123_s18 = sshll.u32 %s1591_s10, 4 }
  0x10   : > { %s1417_s19 = sadd.s32 %s946_s17, %s1593_s16  ;;  %s192_s22 = scalar_lea.vmem %s1578_s1, %s1123_s18 }
  0x11   : > { %s947_s23 = sshll.u32 %s1417_s19, 2  ;;  %v1157_v0 = vld [vmem:[%s192_s22 + $0x8] sm:$0xff]  ;;  %v1156_v1 = vld [vmem:[%s192_s22] sm:$0xff]  ;;  %s952_s27 = sshll.u32 %s1417_s19, 3 }
  0x12   : > { %s1426_s26 = scalar_lea.vmem %s1577_s0, %s947_s23  ;;  %547 = vmatpush.bf16.msra.mxu0 %v1157_v0  ;;  %1158 = vmatpush.bf16.msra.mxu1 %v1157_v0  ;;  %s1496_s30 = scalar_lea.vmem %s1579_s2, %s952_s27 }
  0x13   : > { %1159 = vmatpush.bf16.msra.mxu2 %v1157_v0  ;;  %1160 = vmatpush.bf16.msra.mxu3 %v1157_v0  ;;  %v1124_v2 = vld [vmem:[%s1426_s26] sm:$0xff]  ;;  %v1125_v6 = vld [vmem:[%s1426_s26 + $0x8] sm:$0xff]  ;;  %v1126_v10 = vld [vmem:[%s1426_s26 + $0x10] sm:$0xff] }
  0x14   : > { %v1132_v3 = vld [vmem:[%s1426_s26 + $0x40] sm:$0xff]  ;;  %v1133_v7 = vld [vmem:[%s1426_s26 + $0x48] sm:$0xff]  ;;  %v1134_v11 = vld [vmem:[%s1426_s26 + $0x50] sm:$0xff] }
  0x15   : > { %v1140_v4 = vld [vmem:[%s1426_s26 + $0x80] sm:$0xff]  ;;  %v1141_v8 = vld [vmem:[%s1426_s26 + $0x88] sm:$0xff]  ;;  %v1142_v12 = vld [vmem:[%s1426_s26 + $0x90] sm:$0xff] }
  0x16   : > { %548 = vmatpush.bf16.msra.mxu0 %v1156_v1  ;;  %1161 = vmatpush.bf16.msra.mxu1 %v1156_v1  ;;  %v1148_v5 = vld [vmem:[%s1426_s26 + $0xc0] sm:$0xff]  ;;  %v1149_v9 = vld [vmem:[%s1426_s26 + $0xc8] sm:$0xff]  ;;  %v1150_v13 = vld [vmem:[%s1426_s26 + $0xd0] sm:$0xff] }
  0x17   : > { %1162 = vmatpush.bf16.msra.mxu2 %v1156_v1  ;;  %1163 = vmatpush.bf16.msra.mxu3 %v1156_v1  ;;  %v1127_v14 = vld [vmem:[%s1426_s26 + $0x18] sm:$0xff]  ;;  %v1128_v18 = vld [vmem:[%s1426_s26 + $0x20] sm:$0xff]  ;;  %v1129_v22 = vld [vmem:[%s1426_s26 + $0x28] sm:$0xff] }
  0x18   : > { %v1135_v15 = vld [vmem:[%s1426_s26 + $0x58] sm:$0xff]  ;;  %v1136_v19 = vld [vmem:[%s1426_s26 + $0x60] sm:$0xff]  ;;  %v1137_v23 = vld [vmem:[%s1426_s26 + $0x68] sm:$0xff] }
  0x19   : > { %1089 = vmatmul.msk.bf16.vlgmr.msra.gmra.mxu0 %vm444_vm0, %v1124_v2  ;;  %1097 = vmatmul.msk.bf16.vlgmr.msra.gmra.mxu1 %vm444_vm0, %v1132_v3  ;;  %v1143_v16 = vld [vmem:[%s1426_s26 + $0x98] sm:$0xff]  ;;  %v1144_v20 = vld [vmem:[%s1426_s26 + $0xa0] sm:$0xff]  ;;  %v1145_v24 = vld [vmem:[%s1426_s26 + $0xa8] sm:$0xff] }
  0x1a   : > { %1105 = vmatmul.msk.bf16.vlgmr.msra.gmra.mxu2 %vm444_vm0, %v1140_v4  ;;  %1113 = vmatmul.msk.bf16.vlgmr.msra.gmra.mxu3 %vm444_vm0, %v1148_v5  ;;  %v1151_v17 = vld [vmem:[%s1426_s26 + $0xd8] sm:$0xff]  ;;  %v1152_v21 = vld [vmem:[%s1426_s26 + $0xe0] sm:$0xff]  ;;  %v1153_v25 = vld [vmem:[%s1426_s26 + $0xe8] sm:$0xff] }
  0x1b   : > { %v1130_v26 = vld [vmem:[%s1426_s26 + $0x30] sm:$0xff]  ;;  %v1131_v30 = vld [vmem:[%s1426_s26 + $0x38] sm:$0xff] }
  0x1c   : > { %v1138_v27 = vld [vmem:[%s1426_s26 + $0x70] sm:$0xff]  ;;  %v1139_v31 = vld [vmem:[%s1426_s26 + $0x78] sm:$0xff] }
  0x1d   : > { %v1146_v28 = vld [vmem:[%s1426_s26 + $0xb0] sm:$0xff]  ;;  %v1147_v32 = vld [vmem:[%s1426_s26 + $0xb8] sm:$0xff] }
  0x1e   : > { %v1154_v29 = vld [vmem:[%s1426_s26 + $0xf0] sm:$0xff]  ;;  %v1155_v33 = vld [vmem:[%s1426_s26 + $0xf8] sm:$0xff] }
  0x29   : > { %1090 = vmatmul.msk.bf16.gmra.mxu0 %vm444_vm0, %v1125_v6  ;;  %1098 = vmatmul.msk.bf16.gmra.mxu1 %vm444_vm0, %v1133_v7 }
  0x2a   : > { %1106 = vmatmul.msk.bf16.gmra.mxu2 %vm444_vm0, %v1141_v8  ;;  %1114 = vmatmul.msk.bf16.gmra.mxu3 %vm444_vm0, %v1149_v9 }
  0x39   : > { %1091 = vmatmul.msk.bf16.gmra.mxu0 %vm444_vm0, %v1126_v10  ;;  %1099 = vmatmul.msk.bf16.gmra.mxu1 %vm444_vm0, %v1134_v11 }
  0x3a   : > { %1107 = vmatmul.msk.bf16.gmra.mxu2 %vm444_vm0, %v1142_v12  ;;  %1115 = vmatmul.msk.bf16.gmra.mxu3 %vm444_vm0, %v1150_v13 }
  0x49   : > { %1092 = vmatmul.msk.bf16.gmra.mxu0 %vm444_vm0, %v1127_v14  ;;  %1100 = vmatmul.msk.bf16.gmra.mxu1 %vm444_vm0, %v1135_v15 }
  0x4a   : > { %1108 = vmatmul.msk.bf16.gmra.mxu2 %vm444_vm0, %v1143_v16  ;;  %1116 = vmatmul.msk.bf16.gmra.mxu3 %vm444_vm0, %v1151_v17 }
  0x59   : > { %1093 = vmatmul.msk.bf16.gmra.mxu0 %vm444_vm0, %v1128_v18  ;;  %1101 = vmatmul.msk.bf16.gmra.mxu1 %vm444_vm0, %v1136_v19 }
  0x5a   : > { %1109 = vmatmul.msk.bf16.gmra.mxu2 %vm444_vm0, %v1144_v20  ;;  %1117 = vmatmul.msk.bf16.gmra.mxu3 %vm444_vm0, %v1152_v21 }
  0x69   : > { %1094 = vmatmul.msk.bf16.gmra.mxu0 %vm444_vm0, %v1129_v22  ;;  %1102 = vmatmul.msk.bf16.gmra.mxu1 %vm444_vm0, %v1137_v23 }
  0x6a   : > { %1110 = vmatmul.msk.bf16.gmra.mxu2 %vm444_vm0, %v1145_v24  ;;  %1118 = vmatmul.msk.bf16.gmra.mxu3 %vm444_vm0, %v1153_v25 }
  0x79   : > { %1095 = vmatmul.msk.bf16.gmra.mxu0 %vm444_vm0, %v1130_v26  ;;  %1103 = vmatmul.msk.bf16.gmra.mxu1 %vm444_vm0, %v1138_v27 }
  0x7a   : > { %1111 = vmatmul.msk.bf16.gmra.mxu2 %vm444_vm0, %v1146_v28  ;;  %1119 = vmatmul.msk.bf16.gmra.mxu3 %vm444_vm0, %v1154_v29 }
  0x89   : > { %1096 = vmatmul.msk.bf16.gmra.mxu0 %vm444_vm0, %v1131_v30  ;;  %1104 = vmatmul.msk.bf16.gmra.mxu1 %vm444_vm0, %v1139_v31 }
  0x8a   : > { %1112 = vmatmul.msk.bf16.gmra.mxu2 %vm444_vm0, %v1147_v32  ;;  %1120 = vmatmul.msk.bf16.gmra.mxu3 %vm444_vm0, %v1155_v33 }
  0x96   : > { %v550_v34 = vpop.f32.mrf.mxu0  ;;  %v590_v35 = vpop.f32.mrf.mxu1 }
  0x97   : > { %1204 = vtanh.f32 %v550_v34 }
  0x98   : > { %1206 = vtanh.f32 %v590_v35 }
  0x9d   : > { %v1205_v36 = vpop.eup %1204  ;;  %v630_v37 = vpop.f32.mrf.mxu2 }
  0x9e   : > { %v670_v38 = vpop.f32.mrf.mxu3  ;;  %v1207_v39 = vpop.eup %1206  ;;  %774 = vst [vmem:[%s1496_s30] sm:$0xff] %v1205_v36  ;;  %1208 = vtanh.f32 %v630_v37 }
  0x9f   : > { %v552_v40 = vpop.f32.mrf.mxu0  ;;  %v592_v41 = vpop.f32.mrf.mxu1  ;;  %790 = vst [vmem:[%s1496_s30 + $0x80] sm:$0xff] %v1207_v39  ;;  %1210 = vtanh.f32 %v670_v38 }
  0xa0   : > { %1212 = vtanh.f32 %v552_v40 }
  0xa1   : > { %1214 = vtanh.f32 %v592_v41 }
  0xa4   : > { %v1209_v42 = vpop.eup %1208 }
  0xa5   : > { %v1211_v43 = vpop.eup %1210  ;;  %806 = vst [vmem:[%s1496_s30 + $0x100] sm:$0xff] %v1209_v42  ;;  %v632_v44 = vpop.f32.mrf.mxu2 }
  0xa6   : > { %v672_v45 = vpop.f32.mrf.mxu3  ;;  %v1213_v46 = vpop.eup %1212  ;;  %822 = vst [vmem:[%s1496_s30 + $0x180] sm:$0xff] %v1211_v43  ;;  %1216 = vtanh.f32 %v632_v44 }
  0xa7   : > { %v555_v47 = vpop.f32.mrf.mxu0  ;;  %v595_v48 = vpop.f32.mrf.mxu1  ;;  %775 = vst [vmem:[%s1496_s30 + $0x8] sm:$0xff] %v1213_v46  ;;  %1218 = vtanh.f32 %v672_v45 }
  0xa8   : > { %v1215_v49 = vpop.eup %1214  ;;  %1220 = vtanh.f32 %v555_v47 }
  0xa9   : > { %791 = vst [vmem:[%s1496_s30 + $0x88] sm:$0xff] %v1215_v49  ;;  %1222 = vtanh.f32 %v595_v48 }
  0xac   : > { %v1217_v50 = vpop.eup %1216 }
  0xad   : > { %v1219_v51 = vpop.eup %1218  ;;  %807 = vst [vmem:[%s1496_s30 + $0x108] sm:$0xff] %v1217_v50  ;;  %v635_v52 = vpop.f32.mrf.mxu2 }
  0xae   : > { %v675_v53 = vpop.f32.mrf.mxu3  ;;  %v1221_v54 = vpop.eup %1220  ;;  %823 = vst [vmem:[%s1496_s30 + $0x188] sm:$0xff] %v1219_v51  ;;  %1224 = vtanh.f32 %v635_v52 }
  0xaf   : > { %v557_v55 = vpop.f32.mrf.mxu0  ;;  %v597_v56 = vpop.f32.mrf.mxu1  ;;  %776 = vst [vmem:[%s1496_s30 + $0x10] sm:$0xff] %v1221_v54  ;;  %1226 = vtanh.f32 %v675_v53 }
  0xb0   : > { %v1223_v57 = vpop.eup %1222  ;;  %1228 = vtanh.f32 %v557_v55 }
  0xb1   : > { %792 = vst [vmem:[%s1496_s30 + $0x90] sm:$0xff] %v1223_v57  ;;  %1230 = vtanh.f32 %v597_v56 }
  0xb4   : > { %v1225_v58 = vpop.eup %1224 }
  0xb5   : > { %v1227_v59 = vpop.eup %1226  ;;  %808 = vst [vmem:[%s1496_s30 + $0x110] sm:$0xff] %v1225_v58  ;;  %v637_v60 = vpop.f32.mrf.mxu2 }
  0xb6   : > { %v677_v61 = vpop.f32.mrf.mxu3  ;;  %v1229_v62 = vpop.eup %1228  ;;  %824 = vst [vmem:[%s1496_s30 + $0x190] sm:$0xff] %v1227_v59  ;;  %1232 = vtanh.f32 %v637_v60 }
  0xb7   : > { %v560_v63 = vpop.f32.mrf.mxu0  ;;  %v600_v0 = vpop.f32.mrf.mxu1  ;;  %777 = vst [vmem:[%s1496_s30 + $0x18] sm:$0xff] %v1229_v62  ;;  %1234 = vtanh.f32 %v677_v61 }
  0xb8   : > { %v1231_v1 = vpop.eup %1230  ;;  %1236 = vtanh.f32 %v560_v63 }
  0xb9   : > { %793 = vst [vmem:[%s1496_s30 + $0x98] sm:$0xff] %v1231_v1  ;;  %1238 = vtanh.f32 %v600_v0 }
  0xbc   : > { %v1233_v2 = vpop.eup %1232 }
  0xbd   : > { %v1235_v3 = vpop.eup %1234  ;;  %809 = vst [vmem:[%s1496_s30 + $0x118] sm:$0xff] %v1233_v2  ;;  %v640_v4 = vpop.f32.mrf.mxu2 }
  0xbe   : > { %v680_v5 = vpop.f32.mrf.mxu3  ;;  %v1237_v6 = vpop.eup %1236  ;;  %825 = vst [vmem:[%s1496_s30 + $0x198] sm:$0xff] %v1235_v3  ;;  %1240 = vtanh.f32 %v640_v4 }
  0xbf   : > { %v562_v7 = vpop.f32.mrf.mxu0  ;;  %v602_v8 = vpop.f32.mrf.mxu1  ;;  %778 = vst [vmem:[%s1496_s30 + $0x20] sm:$0xff] %v1237_v6  ;;  %1242 = vtanh.f32 %v680_v5 }
  0xc0   : > { %v1239_v9 = vpop.eup %1238  ;;  %1244 = vtanh.f32 %v562_v7 }
  0xc1   : > { %794 = vst [vmem:[%s1496_s30 + $0xa0] sm:$0xff] %v1239_v9  ;;  %1246 = vtanh.f32 %v602_v8 }
  0xc4   : > { %v1241_v10 = vpop.eup %1240 }
  0xc5   : > { %v1243_v11 = vpop.eup %1242  ;;  %810 = vst [vmem:[%s1496_s30 + $0x120] sm:$0xff] %v1241_v10  ;;  %v642_v12 = vpop.f32.mrf.mxu2 }
  0xc6   : > { %v682_v13 = vpop.f32.mrf.mxu3  ;;  %v1245_v14 = vpop.eup %1244  ;;  %826 = vst [vmem:[%s1496_s30 + $0x1a0] sm:$0xff] %v1243_v11  ;;  %1248 = vtanh.f32 %v642_v12 }
  0xc7   : > { %v565_v15 = vpop.f32.mrf.mxu0  ;;  %v605_v16 = vpop.f32.mrf.mxu1  ;;  %779 = vst [vmem:[%s1496_s30 + $0x28] sm:$0xff] %v1245_v14  ;;  %1250 = vtanh.f32 %v682_v13 }
  0xc8   : > { %v1247_v17 = vpop.eup %1246  ;;  %1252 = vtanh.f32 %v565_v15 }
  0xc9   : > { %795 = vst [vmem:[%s1496_s30 + $0xa8] sm:$0xff] %v1247_v17  ;;  %1254 = vtanh.f32 %v605_v16 }
  0xcc   : > { %v1249_v18 = vpop.eup %1248 }
  0xcd   : > { %v1251_v19 = vpop.eup %1250  ;;  %811 = vst [vmem:[%s1496_s30 + $0x128] sm:$0xff] %v1249_v18  ;;  %v645_v20 = vpop.f32.mrf.mxu2 }
  0xce   : > { %v685_v21 = vpop.f32.mrf.mxu3  ;;  %v1253_v22 = vpop.eup %1252  ;;  %827 = vst [vmem:[%s1496_s30 + $0x1a8] sm:$0xff] %v1251_v19  ;;  %1256 = vtanh.f32 %v645_v20 }
  0xcf   : > { %v567_v23 = vpop.f32.mrf.mxu0  ;;  %v607_v24 = vpop.f32.mrf.mxu1  ;;  %780 = vst [vmem:[%s1496_s30 + $0x30] sm:$0xff] %v1253_v22  ;;  %1258 = vtanh.f32 %v685_v21 }
  0xd0   : > { %v1255_v25 = vpop.eup %1254  ;;  %1260 = vtanh.f32 %v567_v23 }
  0xd1   : > { %796 = vst [vmem:[%s1496_s30 + $0xb0] sm:$0xff] %v1255_v25  ;;  %1262 = vtanh.f32 %v607_v24 }
  0xd4   : > { %v1257_v26 = vpop.eup %1256 }
  0xd5   : > { %v1259_v27 = vpop.eup %1258  ;;  %812 = vst [vmem:[%s1496_s30 + $0x130] sm:$0xff] %v1257_v26  ;;  %v647_v28 = vpop.f32.mrf.mxu2 }
  0xd6   : > { %v687_v29 = vpop.f32.mrf.mxu3  ;;  %v1261_v30 = vpop.eup %1260  ;;  %828 = vst [vmem:[%s1496_s30 + $0x1b0] sm:$0xff] %v1259_v27  ;;  %1264 = vtanh.f32 %v647_v28 }
  0xd7   : > { %v570_v31 = vpop.f32.mrf.mxu0  ;;  %v610_v32 = vpop.f32.mrf.mxu1  ;;  %781 = vst [vmem:[%s1496_s30 + $0x38] sm:$0xff] %v1261_v30  ;;  %1266 = vtanh.f32 %v687_v29 }
  0xd8   : > { %v1263_v33 = vpop.eup %1262  ;;  %1268 = vtanh.f32 %v570_v31 }
  0xd9   : > { %797 = vst [vmem:[%s1496_s30 + $0xb8] sm:$0xff] %v1263_v33  ;;  %1270 = vtanh.f32 %v610_v32 }
  0xdc   : > { %v1265_v34 = vpop.eup %1264 }
  0xdd   : > { %v1267_v35 = vpop.eup %1266  ;;  %813 = vst [vmem:[%s1496_s30 + $0x138] sm:$0xff] %v1265_v34  ;;  %v650_v36 = vpop.f32.mrf.mxu2 }
  0xde   : > { %v690_v37 = vpop.f32.mrf.mxu3  ;;  %v1269_v38 = vpop.eup %1268  ;;  %829 = vst [vmem:[%s1496_s30 + $0x1b8] sm:$0xff] %v1267_v35  ;;  %1272 = vtanh.f32 %v650_v36 }
  0xdf   : > { %v572_v39 = vpop.f32.mrf.mxu0  ;;  %v612_v40 = vpop.f32.mrf.mxu1  ;;  %782 = vst [vmem:[%s1496_s30 + $0x40] sm:$0xff] %v1269_v38  ;;  %1274 = vtanh.f32 %v690_v37 }
  0xe0   : > { %v1271_v41 = vpop.eup %1270  ;;  %1276 = vtanh.f32 %v572_v39 }
  0xe1   : > { %798 = vst [vmem:[%s1496_s30 + $0xc0] sm:$0xff] %v1271_v41  ;;  %1278 = vtanh.f32 %v612_v40 }
  0xe4   : > { %v1273_v42 = vpop.eup %1272 }
  0xe5   : > { %v1275_v43 = vpop.eup %1274  ;;  %814 = vst [vmem:[%s1496_s30 + $0x140] sm:$0xff] %v1273_v42  ;;  %v652_v44 = vpop.f32.mrf.mxu2 }
  0xe6   : > { %v692_v45 = vpop.f32.mrf.mxu3  ;;  %v1277_v46 = vpop.eup %1276  ;;  %830 = vst [vmem:[%s1496_s30 + $0x1c0] sm:$0xff] %v1275_v43  ;;  %1280 = vtanh.f32 %v652_v44 }
  0xe7   : > { %v575_v47 = vpop.f32.mrf.mxu0  ;;  %v615_v48 = vpop.f32.mrf.mxu1  ;;  %783 = vst [vmem:[%s1496_s30 + $0x48] sm:$0xff] %v1277_v46  ;;  %1282 = vtanh.f32 %v692_v45 }
  0xe8   : > { %v1279_v49 = vpop.eup %1278  ;;  %1284 = vtanh.f32 %v575_v47 }
  0xe9   : > { %799 = vst [vmem:[%s1496_s30 + $0xc8] sm:$0xff] %v1279_v49  ;;  %1286 = vtanh.f32 %v615_v48 }
  0xec   : > { %v1281_v50 = vpop.eup %1280 }
  0xed   : > { %v1283_v51 = vpop.eup %1282  ;;  %815 = vst [vmem:[%s1496_s30 + $0x148] sm:$0xff] %v1281_v50  ;;  %v655_v52 = vpop.f32.mrf.mxu2 }
  0xee   : > { %v695_v53 = vpop.f32.mrf.mxu3  ;;  %v1285_v54 = vpop.eup %1284  ;;  %831 = vst [vmem:[%s1496_s30 + $0x1c8] sm:$0xff] %v1283_v51  ;;  %1288 = vtanh.f32 %v655_v52 }
  0xef   : > { %v577_v55 = vpop.f32.mrf.mxu0  ;;  %v617_v56 = vpop.f32.mrf.mxu1  ;;  %784 = vst [vmem:[%s1496_s30 + $0x50] sm:$0xff] %v1285_v54  ;;  %1290 = vtanh.f32 %v695_v53 }
  0xf0   : > { %v1287_v57 = vpop.eup %1286  ;;  %1292 = vtanh.f32 %v577_v55 }
  0xf1   : > { %800 = vst [vmem:[%s1496_s30 + $0xd0] sm:$0xff] %v1287_v57  ;;  %1294 = vtanh.f32 %v617_v56 }
  0xf4   : > { %v1289_v58 = vpop.eup %1288 }
  0xf5   : > { %v1291_v59 = vpop.eup %1290  ;;  %816 = vst [vmem:[%s1496_s30 + $0x150] sm:$0xff] %v1289_v58  ;;  %v657_v60 = vpop.f32.mrf.mxu2 }
  0xf6   : > { %v697_v61 = vpop.f32.mrf.mxu3  ;;  %v1293_v62 = vpop.eup %1292  ;;  %832 = vst [vmem:[%s1496_s30 + $0x1d0] sm:$0xff] %v1291_v59  ;;  %1296 = vtanh.f32 %v657_v60 }
  0xf7   : > { %v580_v63 = vpop.f32.mrf.mxu0  ;;  %v620_v0 = vpop.f32.mrf.mxu1  ;;  %785 = vst [vmem:[%s1496_s30 + $0x58] sm:$0xff] %v1293_v62  ;;  %1298 = vtanh.f32 %v697_v61 }
  0xf8   : > { %v1295_v1 = vpop.eup %1294  ;;  %1300 = vtanh.f32 %v580_v63 }
  0xf9   : > { %801 = vst [vmem:[%s1496_s30 + $0xd8] sm:$0xff] %v1295_v1  ;;  %1302 = vtanh.f32 %v620_v0 }
  0xfc   : > { %v1297_v2 = vpop.eup %1296 }
  0xfd   : > { %v1299_v3 = vpop.eup %1298  ;;  %817 = vst [vmem:[%s1496_s30 + $0x158] sm:$0xff] %v1297_v2  ;;  %v660_v4 = vpop.f32.mrf.mxu2 }
  0xfe   : > { %v700_v5 = vpop.f32.mrf.mxu3  ;;  %v1301_v6 = vpop.eup %1300  ;;  %833 = vst [vmem:[%s1496_s30 + $0x1d8] sm:$0xff] %v1299_v3  ;;  %1304 = vtanh.f32 %v660_v4 }
  0xff   : > { %v582_v7 = vpop.f32.mrf.mxu0  ;;  %v622_v8 = vpop.f32.mrf.mxu1  ;;  %786 = vst [vmem:[%s1496_s30 + $0x60] sm:$0xff] %v1301_v6  ;;  %1306 = vtanh.f32 %v700_v5 }
 0x100   : > { %v1303_v9 = vpop.eup %1302  ;;  %1308 = vtanh.f32 %v582_v7 }
 0x101   : > { %802 = vst [vmem:[%s1496_s30 + $0xe0] sm:$0xff] %v1303_v9  ;;  %1310 = vtanh.f32 %v622_v8 }
 0x104   : > { %v1305_v10 = vpop.eup %1304 }
 0x105   : > { %v1307_v11 = vpop.eup %1306  ;;  %818 = vst [vmem:[%s1496_s30 + $0x160] sm:$0xff] %v1305_v10  ;;  %v662_v12 = vpop.f32.mrf.mxu2 }
 0x106   : > { %v702_v13 = vpop.f32.mrf.mxu3  ;;  %v1309_v14 = vpop.eup %1308  ;;  %834 = vst [vmem:[%s1496_s30 + $0x1e0] sm:$0xff] %v1307_v11  ;;  %1312 = vtanh.f32 %v662_v12 }
 0x107   : > { %v585_v15 = vpop.f32.mrf.mxu0  ;;  %v625_v16 = vpop.f32.mrf.mxu1  ;;  %787 = vst [vmem:[%s1496_s30 + $0x68] sm:$0xff] %v1309_v14  ;;  %1314 = vtanh.f32 %v702_v13 }
 0x108   : > { %v1311_v17 = vpop.eup %1310  ;;  %1316 = vtanh.f32 %v585_v15 }
 0x109   : > { %803 = vst [vmem:[%s1496_s30 + $0xe8] sm:$0xff] %v1311_v17  ;;  %1318 = vtanh.f32 %v625_v16 }
 0x10c   : > { %v1313_v18 = vpop.eup %1312 }
 0x10d   : > { %v1315_v19 = vpop.eup %1314  ;;  %819 = vst [vmem:[%s1496_s30 + $0x168] sm:$0xff] %v1313_v18  ;;  %v665_v20 = vpop.f32.mrf.mxu2 }
 0x10e   : > { %v705_v21 = vpop.f32.mrf.mxu3  ;;  %v1317_v22 = vpop.eup %1316  ;;  %835 = vst [vmem:[%s1496_s30 + $0x1e8] sm:$0xff] %v1315_v19  ;;  %1320 = vtanh.f32 %v665_v20 }
 0x10f   : > { %v587_v23 = vpop.f32.mrf.mxu0  ;;  %v627_v24 = vpop.f32.mrf.mxu1  ;;  %788 = vst [vmem:[%s1496_s30 + $0x70] sm:$0xff] %v1317_v22  ;;  %1322 = vtanh.f32 %v705_v21 }
 0x110   : > { %v1319_v25 = vpop.eup %1318  ;;  %1324 = vtanh.f32 %v587_v23 }
 0x111   : > { %804 = vst [vmem:[%s1496_s30 + $0xf0] sm:$0xff] %v1319_v25  ;;  %1326 = vtanh.f32 %v627_v24 }
 0x114   : > { %v1321_v26 = vpop.eup %1320 }
 0x115   : > { %v1323_v27 = vpop.eup %1322  ;;  %820 = vst [vmem:[%s1496_s30 + $0x170] sm:$0xff] %v1321_v26  ;;  %v667_v28 = vpop.f32.mrf.mxu2 }
 0x116   : > { %v707_v29 = vpop.f32.mrf.mxu3  ;;  %v1325_v30 = vpop.eup %1324  ;;  %836 = vst [vmem:[%s1496_s30 + $0x1f0] sm:$0xff] %v1323_v27  ;;  %1328 = vtanh.f32 %v667_v28 }
 0x117   : > { %v1327_v31 = vpop.eup %1326  ;;  %789 = vst [vmem:[%s1496_s30 + $0x78] sm:$0xff] %v1325_v30  ;;  %1330 = vtanh.f32 %v707_v29 }
 0x118   : > { %805 = vst [vmem:[%s1496_s30 + $0xf8] sm:$0xff] %v1327_v31 }
 0x11c   : > { %v1329_v32 = vpop.eup %1328 }
 0x11d   : > { %v1331_v33 = vpop.eup %1330  ;;  %821 = vst [vmem:[%s1496_s30 + $0x178] sm:$0xff] %v1329_v32 }
 0x11e   : > { %837 = vst [vmem:[%s1496_s30 + $0x1f8] sm:$0xff] %v1331_v33 }
 0x11f PF: > { %s12_s13 = sadd.s32 1, %s1370_s13   ;;  %s1580_s9 = smov %s1362_s11 }
 0x120   : > { %p9_p7 = scmp.ge.s32.totalorder %s12_s13, 18   ;;  %s1581_s10 = smov %s1366_s12 }
 0x121   : > { %s1582_s11 = smov %s1585_s14  ;;  %s1583_s12 = smov %s1589_s15 }
 0x122   :  { %11 = sbr.rel (!%p9_p7) target bundleno = 3 (0x3), region = 61 }

</bundles_post_ra>
